<compile_context>
chip_gen: v5e
topology: v5e:2x2
jax: 0.10.0
libtpu: 0.0.40
codegen_flags: <defaults>
</compile_context>

<pallas_src>
import functools
import math

import jax
import jax.numpy as jnp
from jax.experimental import pallas as pl
from jax.experimental.pallas import tpu as pltpu

_LANE = 128          # TPU lane width; feature dims are padded to a multiple of this.
_NEG_BIG = -1e30     # additive mask value for non-edges (finite -> no inf-inf NaNs).


def _round_up(x, m):
    return ((x + m - 1) // m) * m


# ---------------------------------------------------------------------------
# Kernel 1: per-head linear projection + attention score halves.
# grid = (node tiles,); heads folded into the kernel body.
# ---------------------------------------------------------------------------
def _gat_project_kernel(h_ref, w_ref, asrc_ref, adst_ref,
                        z_ref, ssrc_ref, sdst_ref, *, num_heads):
    h_bf16 = h_ref[...].astype(jnp.bfloat16)                        # (Tn, Din)
    for hh in range(num_heads):
        # bf16 MXU operands, f32 accumulation.
        z = jnp.dot(h_bf16, w_ref[hh], preferred_element_type=jnp.float32)  # (Tn, Dp)
        # e_{s->d} = leaky_relu(a_src . z_s + a_dst . z_d): precompute both halves.
        ssrc_ref[hh] = jnp.sum(z * asrc_ref[hh], axis=-1, keepdims=True)
        sdst_ref[hh] = jnp.sum(z * adst_ref[hh], axis=-1, keepdims=True)
        z_ref[hh] = z.astype(jnp.bfloat16)


def gat_project(h_pad, w, a_src, a_dst, *, tile_n=128):
    """z = h @ W per head plus the two score vectors. Node/feature dims padded."""
    num_heads, d_in, d_out = w.shape
    n_pad = h_pad.shape[0]
    kernel = functools.partial(_gat_project_kernel, num_heads=num_heads)
    return pl.pallas_call(
        kernel,
        out_shape=(
            jax.ShapeDtypeStruct((num_heads, n_pad, d_out), jnp.bfloat16),   # z
            jax.ShapeDtypeStruct((num_heads, n_pad, 1), jnp.float32),        # s_src (column)
            jax.ShapeDtypeStruct((num_heads, n_pad, 1), jnp.float32),        # s_dst (column)
        ),
        grid=(n_pad // tile_n,),
        in_specs=[
            pl.BlockSpec((tile_n, d_in), lambda n: (n, 0)),
            pl.BlockSpec((num_heads, d_in, d_out), lambda n: (0, 0, 0)),
            pl.BlockSpec((num_heads, 1, d_out), lambda n: (0, 0, 0)),
            pl.BlockSpec((num_heads, 1, d_out), lambda n: (0, 0, 0)),
        ],
        out_specs=(
            pl.BlockSpec((num_heads, tile_n, d_out), lambda n: (0, n, 0)),
            pl.BlockSpec((num_heads, tile_n, 1), lambda n: (0, n, 0)),
            pl.BlockSpec((num_heads, tile_n, 1), lambda n: (0, n, 0)),
        ),
        compiler_params=pltpu.CompilerParams(
            dimension_semantics=("parallel",)),
    )(h_pad, w, a_src, a_dst)


# ---------------------------------------------------------------------------
# Kernel 2: masked edge attention + online softmax + aggregation (flash-style).
# grid = (dst tiles [parallel], src tiles [arbitrary, reduction]).
# ---------------------------------------------------------------------------
def _gat_attention_kernel(sdst_ref, ssrc_ref, adj_ref, z_ref, out_ref,
                          m_ref, l_ref, acc_ref, *, num_heads, apply_elu):
    s_idx = pl.program_id(1)

    @pl.when(s_idx == 0)
    def _init():
        m_ref[...] = jnp.full_like(m_ref, _NEG_BIG)
        l_ref[...] = jnp.zeros_like(l_ref)
        acc_ref[...] = jnp.zeros_like(acc_ref)

    # Adjacency tile / mask computed ONCE and reused for every head.
    mask = adj_ref[...].astype(jnp.float32) > 0.0                   # (Td, Ts)

    for hh in range(num_heads):
        e = sdst_ref[hh] + ssrc_ref[hh]                             # (Td,1)+(1,Ts) -> (Td,Ts)
        e = jnp.where(e > 0, e, 0.01 * e)                           # leaky_relu (torch default 0.01)
        e = jnp.where(mask, e, _NEG_BIG)

        m_prev = m_ref[hh]                                          # (Td, 1)
        m_new = jnp.maximum(m_prev, jnp.max(e, axis=-1, keepdims=True))
        corr = jnp.exp(m_prev - m_new)
        p = jnp.where(mask, jnp.exp(e - m_new), 0.0)                # numerator tile in [0, 1]

        l_ref[hh] = corr * l_ref[hh] + jnp.sum(p, axis=-1, keepdims=True)
        acc_ref[hh] = corr * acc_ref[hh] + jnp.dot(
            p.astype(jnp.bfloat16), z_ref[hh],                      # bf16 MXU, f32 accumulate
            preferred_element_type=jnp.float32)
        m_ref[hh] = m_new

    @pl.when(s_idx == pl.num_programs(1) - 1)
    def _finalize():
        d_out = acc_ref.shape[-1]
        for hh in range(num_heads):
            res = acc_ref[hh] / jnp.maximum(l_ref[hh], 1e-20)
            if apply_elu:                                           # fused F.elu between layers
                res = jnp.where(res > 0, res,
                                jnp.exp(jnp.minimum(res, 0.0)) - 1.0)
            # lane-dense concatenated output: head hh occupies columns [hh*Dp, (hh+1)*Dp)
            out_ref[:, hh * d_out:(hh + 1) * d_out] = res.astype(out_ref.dtype)


def _attention_vmem_bytes(num_heads, tile_dst, tile_src, d_out):
    db = 2  # double buffering of pipelined operands
    tensors = db * (tile_dst * tile_src * 2                      # adj tile (bf16)
                    + num_heads * tile_src * d_out * 2           # z tile (bf16)
                    + num_heads * (tile_dst + tile_src) * 4      # score tiles (f32)
                    + tile_dst * num_heads * d_out * 4)          # output tile (f32)
    scratch = num_heads * tile_dst * (d_out + 2) * 4             # acc + m + l
    temps = 4 * tile_dst * tile_src * 4                          # e / p / mask intermediates
    est = tensors + scratch + temps
    # generous headroom, but stay well under v7x's 64 MiB physical VMEM.
    return int(min(max(4 * est, 32 * 1024 * 1024), 48 * 1024 * 1024))


def gat_attention(adj_t, z, s_src_row, s_dst_col, *, apply_elu,
                  tile_dst=128, tile_src=128):
    num_heads, n_pad, d_out = z.shape
    kernel = functools.partial(_gat_attention_kernel,
                               num_heads=num_heads, apply_elu=apply_elu)
    return pl.pallas_call(
        kernel,
        out_shape=jax.ShapeDtypeStruct((n_pad, num_heads * d_out), jnp.float32),
        grid=(n_pad // tile_dst, n_pad // tile_src),
        in_specs=[
            pl.BlockSpec((num_heads, tile_dst, 1), lambda d, s: (0, d, 0)),
            pl.BlockSpec((num_heads, 1, tile_src), lambda d, s: (0, 0, s)),
            pl.BlockSpec((tile_dst, tile_src), lambda d, s: (d, s)),
            pl.BlockSpec((num_heads, tile_src, d_out), lambda d, s: (0, s, 0)),
        ],
        out_specs=pl.BlockSpec((tile_dst, num_heads * d_out), lambda d, s: (d, 0)),
        scratch_shapes=[
            pltpu.VMEM((num_heads, tile_dst, 1), jnp.float32),       # running max
            pltpu.VMEM((num_heads, tile_dst, 1), jnp.float32),       # running denominator
            pltpu.VMEM((num_heads, tile_dst, d_out), jnp.float32),   # accumulator
        ],
        compiler_params=pltpu.CompilerParams(
            dimension_semantics=("parallel", "arbitrary"),
            vmem_limit_bytes=_attention_vmem_bytes(num_heads, tile_dst, tile_src, d_out)),
    )(s_dst_col, s_src_row, adj_t, z)


# ---------------------------------------------------------------------------
# Layer / network wrappers
# ---------------------------------------------------------------------------
def multi_head_gat_layer(h_pad, adj_t, w, a_src, a_dst, *, apply_elu, tile=128):
    """One MultiHeadGATLayer (merge='cat'). Returns (N_pad, H * Dout_pad)."""
    z, s_src_col, s_dst_col = gat_project(h_pad, w, a_src, a_dst, tile_n=tile)
    # Move the per-source scores into lane orientation once (tiny XLA transpose, O(H*N)).
    s_src_row = jnp.swapaxes(s_src_col, 1, 2)                        # (H, 1, N_pad)
    return gat_attention(adj_t, z, s_src_row, s_dst_col,
                         apply_elu=apply_elu, tile_dst=tile, tile_src=tile)


def gat_forward(h, adj, params, *, out_dim, tile=128):
    """Full 2-layer GAT forward. adj[i, j] = 1 iff directed edge i -> j."""
    (w1, a1s, a1d), (w2, a2s, a2d) = params
    n = h.shape[0]
    n_pad = _round_up(n, tile)
    # Pad nodes; transpose adjacency to (dst, src) so the softmax reduces over lanes;
    # carry it as bf16 to halve the dominant N^2 HBM traffic.
    h_pad = jnp.zeros((n_pad, h.shape[1]), h.dtype).at[:n].set(h)
    adj_t = jnp.zeros((n_pad, n_pad), jnp.bfloat16).at[:n, :n].set(
        adj.T.astype(jnp.bfloat16))
    # Layer 1: multi-head, merge='cat' realized as the lane-concatenated padded layout,
    # with F.elu fused into the kernel epilogue.
    h1 = multi_head_gat_layer(h_pad, adj_t, w1, a1s, a1d, apply_elu=True, tile=tile)
    # Layer 2: single head; consumes the padded layout directly (weight rows for the
    # padding columns are zero), so no reshape / slice HBM round trip in between.
    out = multi_head_gat_layer(h1, adj_t, w2, a2s, a2d, apply_elu=False, tile=tile)
    return out[:n, :out_dim]


# ---------------------------------------------------------------------------
# Parameters (torch-equivalent init) + padding / packing for the kernels
# ---------------------------------------------------------------------------
def _xavier_normal(key, shape, fan_in, fan_out, gain):
    std = gain * math.sqrt(2.0 / (fan_in + fan_out))
    return std * jax.random.normal(key, shape, dtype=jnp.float32)


def init_gat_params(key, in_dim, hidden_dim, out_dim, num_heads):
    """Logical (torch-layout) params: per-head fc.weight^T and attn_fc.weight."""
    gain = math.sqrt(2.0)  # nn.init.calculate_gain('relu')
    keys = jax.random.split(key, 2 * num_heads + 2)
    w1, a1 = [], []
    for i in range(num_heads):
        w1.append(_xavier_normal(keys[2 * i], (in_dim, hidden_dim),
                                 in_dim, hidden_dim, gain))
        a1.append(_xavier_normal(keys[2 * i + 1], (1, 2 * hidden_dim),
                                 2 * hidden_dim, 1, gain))
    w1 = jnp.stack(w1)                              # (H, in_dim, hidden)
    a1 = jnp.stack(a1)                              # (H, 1, 2*hidden) = [a_src || a_dst]
    in2 = hidden_dim * num_heads
    w2 = _xavier_normal(keys[-2], (in2, out_dim), in2, out_dim, gain)[None]   # (1, in2, out)
    a2 = _xavier_normal(keys[-1], (1, 2 * out_dim), 2 * out_dim, 1, gain)[None]
    return (w1, a1), (w2, a2)


def prepare_gat_params(params, hidden_dim, out_dim, num_heads):
    """Pad feature dims to lane multiples and pre-cast matmul weights to bf16."""
    (w1, a1), (w2, a2) = params
    in_dim = w1.shape[1]
    hid_pad = _round_up(hidden_dim, _LANE)
    out_pad = _round_up(out_dim, _LANE)

    w1p = jnp.zeros((num_heads, in_dim, hid_pad), jnp.float32)
    w1p = w1p.at[:, :, :hidden_dim].set(w1).astype(jnp.bfloat16)
    a1s = jnp.zeros((num_heads, 1, hid_pad), jnp.float32).at[:, :, :hidden_dim].set(
        a1[:, :, :hidden_dim])
    a1d = jnp.zeros((num_heads, 1, hid_pad), jnp.float32).at[:, :, :hidden_dim].set(
        a1[:, :, hidden_dim:])

    # Layer 2 consumes layer 1's padded concatenated layout (N, H * hid_pad): scatter the
    # logical (H*hidden, out) rows into their padded positions; padding rows stay zero.
    w2p = jnp.zeros((1, num_heads * hid_pad, out_pad), jnp.float32)
    for hh in range(num_heads):
        w2p = w2p.at[0, hh * hid_pad:hh * hid_pad + hidden_dim, :out_dim].set(
            w2[0, hh * hidden_dim:(hh + 1) * hidden_dim, :])
    w2p = w2p.astype(jnp.bfloat16)
    a2s = jnp.zeros((1, 1, out_pad), jnp.float32).at[:, :, :out_dim].set(
        a2[:, :, :out_dim])
    a2d = jnp.zeros((1, 1, out_pad), jnp.float32).at[:, :, :out_dim].set(
        a2[:, :, out_dim:])
    return (w1p, a1s, a1d), (w2p, a2s, a2d)


# ---------------------------------------------------------------------------
# Pure-JAX reference (dense GAT, emulating the kernel's bf16 matmul operands)
# ---------------------------------------------------------------------------
def _as_bf16(x):
    return x.astype(jnp.bfloat16).astype(jnp.float32)


def gat_reference(h, adj, params):
    (w1, a1), (w2, a2) = params
    mask_t = (adj > 0).T                                # (dst, src)

    def layer(x, w, a):
        heads = []
        d_out = w.shape[2]
        for k in range(w.shape[0]):
            z = _as_bf16(x) @ _as_bf16(w[k])
            s_src = jnp.sum(z * a[k, :, :d_out], axis=-1)
            s_dst = jnp.sum(z * a[k, :, d_out:], axis=-1)
            e = s_dst[:, None] + s_src[None, :]
            e = jnp.where(e > 0, e, 0.01 * e)
            e = jnp.where(mask_t, e, _NEG_BIG)
            alpha = jnp.where(mask_t, jax.nn.softmax(e, axis=-1), 0.0)
            heads.append(_as_bf16(alpha) @ _as_bf16(z))
        return jnp.concatenate(heads, axis=1)

    h1 = jax.nn.elu(layer(h, w1, a1))
    return layer(h1, w2, a2)


if __name__ == "__main__":
    # Small but tiling-exercising sizes: N=160 pads to 256 -> 2x2 (dst, src) tiles, 2 heads.
    N, in_dim, hidden_dim, out_dim, num_heads = 160, 16, 16, 8, 2
    tile = 128

    key = jax.random.PRNGKey(0)
    k_h, k_adj, k_param = jax.random.split(key, 3)

    h = jax.random.normal(k_h, (N, in_dim), dtype=jnp.float32)
    # Random sparse directed graph + self-loops (every node has in-degree >= 1).
    adj = (jax.random.uniform(k_adj, (N, N)) < 0.05).astype(jnp.float32)
    adj = jnp.maximum(adj, jnp.eye(N, dtype=jnp.float32))

    raw_params = init_gat_params(k_param, in_dim, hidden_dim, out_dim, num_heads)
    params = prepare_gat_params(raw_params, hidden_dim, out_dim, num_heads)

    fwd = jax.jit(functools.partial(gat_forward, out_dim=out_dim, tile=tile))
    out = jax.block_until_ready(fwd(h, adj, params))

    assert out.shape == (N, out_dim)
    assert bool(jnp.all(jnp.isfinite(out)))

    ref = gat_reference(h, adj, raw_params)
    max_err = float(jnp.max(jnp.abs(out - ref)))
    tol = 5e-2 * max(1.0, float(jnp.max(jnp.abs(ref))))
    assert max_err <= tol, f"kernel vs reference mismatch: {max_err:.4e} > {tol:.4e}"
    print("KERNEL_OK")
</pallas_src>

<mosaic_0001>
module attributes {stable_mosaic.version = 11 : i64} {
  func.func @_gat_project_kernel(%arg0: i32, %arg1: memref<128x16xf32, #tpu.memory_space<vmem>>, %arg2: memref<2x16x128xbf16, #tpu.memory_space<vmem>>, %arg3: memref<2x1x128xf32, #tpu.memory_space<vmem>>, %arg4: memref<2x1x128xf32, #tpu.memory_space<vmem>>, %arg5: memref<2x128x128xbf16, #tpu.memory_space<vmem>>, %arg6: memref<2x128x1xf32, #tpu.memory_space<vmem>>, %arg7: memref<2x128x1xf32, #tpu.memory_space<vmem>>) attributes {dimension_semantics = [#tpu.dimension_semantics<parallel>], iteration_bounds = array<i64: 2>, scalar_prefetch = 0 : i64, scratch_operands = 0 : i64, tpu.core_type = #tpu.core_type<tc>, window_params = [{transform_indices = @transform_0, window_bounds = array<i64: 128, 16>}, {pipeline_mode = #tpu.pipeline_mode<synchronous>, transform_indices = @transform_1, window_bounds = array<i64: 2, 16, 128>}, {pipeline_mode = #tpu.pipeline_mode<synchronous>, transform_indices = @transform_2, window_bounds = array<i64: 2, 1, 128>}, {pipeline_mode = #tpu.pipeline_mode<synchronous>, transform_indices = @transform_3, window_bounds = array<i64: 2, 1, 128>}, {transform_indices = @transform_4, window_bounds = array<i64: 2, 128, 128>}, {transform_indices = @transform_5, window_bounds = array<i64: 2, 128, 1>}, {transform_indices = @transform_6, window_bounds = array<i64: 2, 128, 1>}]} {
    %c0 = arith.constant 0 : index
    %c0_0 = arith.constant 0 : index
    %0 = vector.load %arg1[%c0, %c0_0] : memref<128x16xf32, #tpu.memory_space<vmem>>, vector<128x16xf32>
    %1 = arith.truncf %0 : vector<128x16xf32> to vector<128x16xbf16>
    %c0_1 = arith.constant 0 : index
    %c0_2 = arith.constant 0 : index
    %c0_3 = arith.constant 0 : index
    %2 = vector.load %arg2[%c0_1, %c0_2, %c0_3] : memref<2x16x128xbf16, #tpu.memory_space<vmem>>, vector<1x16x128xbf16>
    %3 = vector.shape_cast %2 : vector<1x16x128xbf16> to vector<16x128xbf16>
    %cst = arith.constant dense<0.000000e+00> : vector<128x128xf32>
    %4 = tpu.matmul %1, %3, %cst {dimension_numbers = #tpu.dot_dimension_numbers<[1], [0], [0], [1], [0, 0, 1, 1], [], []>} : vector<128x16xbf16>, vector<16x128xbf16>, vector<128x128xf32> -> vector<128x128xf32>
    %c0_4 = arith.constant 0 : index
    %c0_5 = arith.constant 0 : index
    %c0_6 = arith.constant 0 : index
    %5 = vector.load %arg3[%c0_4, %c0_5, %c0_6] : memref<2x1x128xf32, #tpu.memory_space<vmem>>, vector<1x1x128xf32>
    %6 = vector.shape_cast %5 : vector<1x1x128xf32> to vector<1x128xf32>
    %7 = vector.broadcast %6 : vector<1x128xf32> to vector<128x128xf32>
    %8 = arith.mulf %4, %7 : vector<128x128xf32>
    %cst_7 = arith.constant dense<0.000000e+00> : vector<128xf32>
    %9 = vector.multi_reduction <add>, %8, %cst_7 [1] : vector<128x128xf32> to vector<128xf32>
    %10 = vector.shape_cast %9 : vector<128xf32> to vector<128x1xf32>
    %c0_8 = arith.constant 0 : index
    %c0_9 = arith.constant 0 : index
    %c0_10 = arith.constant 0 : index
    %11 = vector.load %arg6[%c0_8, %c0_9, %c0_10] : memref<2x128x1xf32, #tpu.memory_space<vmem>>, vector<1x128x1xf32>
    %12 = vector.shape_cast %11 : vector<1x128x1xf32> to vector<128x1xf32>
    %13 = vector.shape_cast %10 : vector<128x1xf32> to vector<1x128x1xf32>
    tpu.vector_store %arg6[%c0_8, %c0_9, %c0_10], %13 {strides = array<i32>} : memref<2x128x1xf32, #tpu.memory_space<vmem>>, vector<1x128x1xf32>,
    %c0_11 = arith.constant 0 : index
    %c0_12 = arith.constant 0 : index
    %c0_13 = arith.constant 0 : index
    %14 = vector.load %arg4[%c0_11, %c0_12, %c0_13] : memref<2x1x128xf32, #tpu.memory_space<vmem>>, vector<1x1x128xf32>
    %15 = vector.shape_cast %14 : vector<1x1x128xf32> to vector<1x128xf32>
    %16 = vector.broadcast %15 : vector<1x128xf32> to vector<128x128xf32>
    %17 = arith.mulf %4, %16 : vector<128x128xf32>
    %cst_14 = arith.constant dense<0.000000e+00> : vector<128xf32>
    %18 = vector.multi_reduction <add>, %17, %cst_14 [1] : vector<128x128xf32> to vector<128xf32>
    %19 = vector.shape_cast %18 : vector<128xf32> to vector<128x1xf32>
    %c0_15 = arith.constant 0 : index
    %c0_16 = arith.constant 0 : index
    %c0_17 = arith.constant 0 : index
    %20 = vector.load %arg7[%c0_15, %c0_16, %c0_17] : memref<2x128x1xf32, #tpu.memory_space<vmem>>, vector<1x128x1xf32>
    %21 = vector.shape_cast %20 : vector<1x128x1xf32> to vector<128x1xf32>
    %22 = vector.shape_cast %19 : vector<128x1xf32> to vector<1x128x1xf32>
    tpu.vector_store %arg7[%c0_15, %c0_16, %c0_17], %22 {strides = array<i32>} : memref<2x128x1xf32, #tpu.memory_space<vmem>>, vector<1x128x1xf32>,
    %23 = arith.truncf %4 : vector<128x128xf32> to vector<128x128xbf16>
    %c0_18 = arith.constant 0 : index
    %c0_19 = arith.constant 0 : index
    %c0_20 = arith.constant 0 : index
    %24 = vector.load %arg5[%c0_18, %c0_19, %c0_20] : memref<2x128x128xbf16, #tpu.memory_space<vmem>>, vector<1x128x128xbf16>
    %25 = vector.shape_cast %24 : vector<1x128x128xbf16> to vector<128x128xbf16>
    %26 = vector.shape_cast %23 : vector<128x128xbf16> to vector<1x128x128xbf16>
    tpu.vector_store %arg5[%c0_18, %c0_19, %c0_20], %26 {strides = array<i32>} : memref<2x128x128xbf16, #tpu.memory_space<vmem>>, vector<1x128x128xbf16>,
    %c1 = arith.constant 1 : index
    %c0_21 = arith.constant 0 : index
    %c0_22 = arith.constant 0 : index
    %27 = vector.load %arg2[%c1, %c0_21, %c0_22] : memref<2x16x128xbf16, #tpu.memory_space<vmem>>, vector<1x16x128xbf16>
    %28 = vector.shape_cast %27 : vector<1x16x128xbf16> to vector<16x128xbf16>
    %cst_23 = arith.constant dense<0.000000e+00> : vector<128x128xf32>
    %29 = tpu.matmul %1, %28, %cst_23 {dimension_numbers = #tpu.dot_dimension_numbers<[1], [0], [0], [1], [0, 0, 1, 1], [], []>} : vector<128x16xbf16>, vector<16x128xbf16>, vector<128x128xf32> -> vector<128x128xf32>
    %c1_24 = arith.constant 1 : index
    %c0_25 = arith.constant 0 : index
    %c0_26 = arith.constant 0 : index
    %30 = vector.load %arg3[%c1_24, %c0_25, %c0_26] : memref<2x1x128xf32, #tpu.memory_space<vmem>>, vector<1x1x128xf32>
    %31 = vector.shape_cast %30 : vector<1x1x128xf32> to vector<1x128xf32>
    %32 = vector.broadcast %31 : vector<1x128xf32> to vector<128x128xf32>
    %33 = arith.mulf %29, %32 : vector<128x128xf32>
    %cst_27 = arith.constant dense<0.000000e+00> : vector<128xf32>
    %34 = vector.multi_reduction <add>, %33, %cst_27 [1] : vector<128x128xf32> to vector<128xf32>
    %35 = vector.shape_cast %34 : vector<128xf32> to vector<128x1xf32>
    %c1_28 = arith.constant 1 : index
    %c0_29 = arith.constant 0 : index
    %c0_30 = arith.constant 0 : index
    %36 = vector.load %arg6[%c1_28, %c0_29, %c0_30] : memref<2x128x1xf32, #tpu.memory_space<vmem>>, vector<1x128x1xf32>
    %37 = vector.shape_cast %36 : vector<1x128x1xf32> to vector<128x1xf32>
    %38 = vector.shape_cast %35 : vector<128x1xf32> to vector<1x128x1xf32>
    tpu.vector_store %arg6[%c1_28, %c0_29, %c0_30], %38 {strides = array<i32>} : memref<2x128x1xf32, #tpu.memory_space<vmem>>, vector<1x128x1xf32>,
    %c1_31 = arith.constant 1 : index
    %c0_32 = arith.constant 0 : index
    %c0_33 = arith.constant 0 : index
    %39 = vector.load %arg4[%c1_31, %c0_32, %c0_33] : memref<2x1x128xf32, #tpu.memory_space<vmem>>, vector<1x1x128xf32>
    %40 = vector.shape_cast %39 : vector<1x1x128xf32> to vector<1x128xf32>
    %41 = vector.broadcast %40 : vector<1x128xf32> to vector<128x128xf32>
    %42 = arith.mulf %29, %41 : vector<128x128xf32>
    %cst_34 = arith.constant dense<0.000000e+00> : vector<128xf32>
    %43 = vector.multi_reduction <add>, %42, %cst_34 [1] : vector<128x128xf32> to vector<128xf32>
    %44 = vector.shape_cast %43 : vector<128xf32> to vector<128x1xf32>
    %c1_35 = arith.constant 1 : index
    %c0_36 = arith.constant 0 : index
    %c0_37 = arith.constant 0 : index
    %45 = vector.load %arg7[%c1_35, %c0_36, %c0_37] : memref<2x128x1xf32, #tpu.memory_space<vmem>>, vector<1x128x1xf32>
    %46 = vector.shape_cast %45 : vector<1x128x1xf32> to vector<128x1xf32>
    %47 = vector.shape_cast %44 : vector<128x1xf32> to vector<1x128x1xf32>
    tpu.vector_store %arg7[%c1_35, %c0_36, %c0_37], %47 {strides = array<i32>} : memref<2x128x1xf32, #tpu.memory_space<vmem>>, vector<1x128x1xf32>,
    %48 = arith.truncf %29 : vector<128x128xf32> to vector<128x128xbf16>
    %c1_38 = arith.constant 1 : index
    %c0_39 = arith.constant 0 : index
    %c0_40 = arith.constant 0 : index
    %49 = vector.load %arg5[%c1_38, %c0_39, %c0_40] : memref<2x128x128xbf16, #tpu.memory_space<vmem>>, vector<1x128x128xbf16>
    %50 = vector.shape_cast %49 : vector<1x128x128xbf16> to vector<128x128xbf16>
    %51 = vector.shape_cast %48 : vector<128x128xbf16> to vector<1x128x128xbf16>
    tpu.vector_store %arg5[%c1_38, %c0_39, %c0_40], %51 {strides = array<i32>} : memref<2x128x128xbf16, #tpu.memory_space<vmem>>, vector<1x128x128xbf16>,
    return
  }
  func.func @transform_0(%arg0: i32) -> (i32, i32) {
    %c0_i32 = arith.constant 0 : i32
    %c0_i32_0 = arith.constant 0 : i32
    return %arg0, %c0_i32 : i32, i32
  }
  func.func @transform_1(%arg0: i32) -> (i32, i32, i32) {
    %c0_i32 = arith.constant 0 : i32
    %c0_i32_0 = arith.constant 0 : i32
    %c0_i32_1 = arith.constant 0 : i32
    %c0_i32_2 = arith.constant 0 : i32
    return %c0_i32, %c0_i32_0, %c0_i32_1 : i32, i32, i32
  }
  func.func @transform_2(%arg0: i32) -> (i32, i32, i32) {
    %c0_i32 = arith.constant 0 : i32
    %c0_i32_0 = arith.constant 0 : i32
    %c0_i32_1 = arith.constant 0 : i32
    %c0_i32_2 = arith.constant 0 : i32
    return %c0_i32, %c0_i32_0, %c0_i32_1 : i32, i32, i32
  }
  func.func @transform_3(%arg0: i32) -> (i32, i32, i32) {
    %c0_i32 = arith.constant 0 : i32
    %c0_i32_0 = arith.constant 0 : i32
    %c0_i32_1 = arith.constant 0 : i32
    %c0_i32_2 = arith.constant 0 : i32
    return %c0_i32, %c0_i32_0, %c0_i32_1 : i32, i32, i32
  }
  func.func @transform_4(%arg0: i32) -> (i32, i32, i32) {
    %c0_i32 = arith.constant 0 : i32
    %c0_i32_0 = arith.constant 0 : i32
    %c0_i32_1 = arith.constant 0 : i32
    return %c0_i32, %arg0, %c0_i32_0 : i32, i32, i32
  }
  func.func @transform_5(%arg0: i32) -> (i32, i32, i32) {
    %c0_i32 = arith.constant 0 : i32
    %c0_i32_0 = arith.constant 0 : i32
    %c0_i32_1 = arith.constant 0 : i32
    return %c0_i32, %arg0, %c0_i32_0 : i32, i32, i32
  }
  func.func @transform_6(%arg0: i32) -> (i32, i32, i32) {
    %c0_i32 = arith.constant 0 : i32
    %c0_i32_0 = arith.constant 0 : i32
    %c0_i32_1 = arith.constant 0 : i32
    return %c0_i32, %arg0, %c0_i32_0 : i32, i32, i32
  }
}

module attributes {stable_mosaic.version = 11 : i64} {
  func.func @_gat_attention_kernel(%arg0: i32, %arg1: i32, %arg2: memref<2x128x1xf32, #tpu.memory_space<vmem>>, %arg3: memref<2x1x128xf32, #tpu.memory_space<vmem>>, %arg4: memref<128x128xbf16, #tpu.memory_space<vmem>>, %arg5: memref<2x128x128xbf16, #tpu.memory_space<vmem>>, %arg6: memref<128x256xf32, #tpu.memory_space<vmem>>, %arg7: memref<2x128x1xf32, #tpu.memory_space<vmem>>, %arg8: memref<2x128x1xf32, #tpu.memory_space<vmem>>, %arg9: memref<2x128x128xf32, #tpu.memory_space<vmem>>) attributes {dimension_semantics = [#tpu.dimension_semantics<parallel>, #tpu.dimension_semantics<arbitrary>], iteration_bounds = array<i64: 2, 2>, scalar_prefetch = 0 : i64, scratch_operands = 3 : i64, tpu.core_type = #tpu.core_type<tc>, window_params = [{transform_indices = @transform_0, window_bounds = array<i64: 2, 128, 1>}, {transform_indices = @transform_1, window_bounds = array<i64: 2, 1, 128>}, {transform_indices = @transform_2, window_bounds = array<i64: 128, 128>}, {transform_indices = @transform_3, window_bounds = array<i64: 2, 128, 128>}, {transform_indices = @transform_4, window_bounds = array<i64: 128, 256>}]} {
    %c0_i32 = arith.constant 0 : i32
    %0 = arith.cmpi eq, %arg1, %c0_i32 : i32
    %1 = arith.extui %0 : i1 to i32
    %c0_i32_0 = arith.constant 0 : i32
    %2 = arith.cmpi ne, %1, %c0_i32_0 : i32
    scf.if %2 {
      %cst_70 = arith.constant -1.000000e+30 : f32
      %110 = vector.broadcast %cst_70 : f32 to vector<2x128x1xf32>
      %c0_71 = arith.constant 0 : index
      %c0_72 = arith.constant 0 : index
      %c0_73 = arith.constant 0 : index
      %111 = vector.load %arg7[%c0_71, %c0_72, %c0_73] : memref<2x128x1xf32, #tpu.memory_space<vmem>>, vector<2x128x1xf32>
      tpu.vector_store %arg7[%c0_71, %c0_72, %c0_73], %110 {strides = array<i32>} : memref<2x128x1xf32, #tpu.memory_space<vmem>>, vector<2x128x1xf32>,
      %cst_74 = arith.constant 0.000000e+00 : f32
      %112 = vector.broadcast %cst_74 : f32 to vector<2x128x1xf32>
      %c0_75 = arith.constant 0 : index
      %c0_76 = arith.constant 0 : index
      %c0_77 = arith.constant 0 : index
      %113 = vector.load %arg8[%c0_75, %c0_76, %c0_77] : memref<2x128x1xf32, #tpu.memory_space<vmem>>, vector<2x128x1xf32>
      tpu.vector_store %arg8[%c0_75, %c0_76, %c0_77], %112 {strides = array<i32>} : memref<2x128x1xf32, #tpu.memory_space<vmem>>, vector<2x128x1xf32>,
      %cst_78 = arith.constant 0.000000e+00 : f32
      %114 = vector.broadcast %cst_78 : f32 to vector<2x128x128xf32>
      %c0_79 = arith.constant 0 : index
      %c0_80 = arith.constant 0 : index
      %c0_81 = arith.constant 0 : index
      %115 = vector.load %arg9[%c0_79, %c0_80, %c0_81] : memref<2x128x128xf32, #tpu.memory_space<vmem>>, vector<2x128x128xf32>
      tpu.vector_store %arg9[%c0_79, %c0_80, %c0_81], %114 {strides = array<i32>} : memref<2x128x128xf32, #tpu.memory_space<vmem>>, vector<2x128x128xf32>,
    } else {
    }
    %c0 = arith.constant 0 : index
    %c0_1 = arith.constant 0 : index
    %3 = vector.load %arg4[%c0, %c0_1] : memref<128x128xbf16, #tpu.memory_space<vmem>>, vector<128x128xbf16>
    %4 = arith.extf %3 : vector<128x128xbf16> to vector<128x128xf32>
    %cst = arith.constant 0.000000e+00 : f32
    %5 = vector.broadcast %cst : f32 to vector<128x128xf32>
    %6 = arith.cmpf ogt, %4, %5 : vector<128x128xf32>
    %c0_2 = arith.constant 0 : index
    %c0_3 = arith.constant 0 : index
    %c0_4 = arith.constant 0 : index
    %7 = vector.load %arg2[%c0_2, %c0_3, %c0_4] : memref<2x128x1xf32, #tpu.memory_space<vmem>>, vector<1x128x1xf32>
    %8 = vector.shape_cast %7 : vector<1x128x1xf32> to vector<128x1xf32>
    %c0_5 = arith.constant 0 : index
    %c0_6 = arith.constant 0 : index
    %c0_7 = arith.constant 0 : index
    %9 = vector.load %arg3[%c0_5, %c0_6, %c0_7] : memref<2x1x128xf32, #tpu.memory_space<vmem>>, vector<1x1x128xf32>
    %10 = vector.shape_cast %9 : vector<1x1x128xf32> to vector<1x128xf32>
    %11 = vector.broadcast %8 : vector<128x1xf32> to vector<128x128xf32>
    %12 = vector.broadcast %10 : vector<1x128xf32> to vector<128x128xf32>
    %13 = arith.addf %11, %12 : vector<128x128xf32>
    %cst_8 = arith.constant 0.000000e+00 : f32
    %14 = vector.broadcast %cst_8 : f32 to vector<128x128xf32>
    %15 = arith.cmpf ogt, %13, %14 : vector<128x128xf32>
    %cst_9 = arith.constant 0.00999999977 : f32
    %16 = vector.broadcast %cst_9 : f32 to vector<128x128xf32>
    %17 = arith.mulf %16, %13 : vector<128x128xf32>
    %18 = arith.select %15, %13, %17 : vector<128x128xi1>, vector<128x128xf32>
    %cst_10 = arith.constant -1.000000e+30 : f32
    %19 = vector.broadcast %cst_10 : f32 to vector<128x128xf32>
    %20 = arith.select %6, %18, %19 : vector<128x128xi1>, vector<128x128xf32>
    %c0_11 = arith.constant 0 : index
    %c0_12 = arith.constant 0 : index
    %c0_13 = arith.constant 0 : index
    %21 = vector.load %arg7[%c0_11, %c0_12, %c0_13] : memref<2x128x1xf32, #tpu.memory_space<vmem>>, vector<1x128x1xf32>
    %22 = vector.shape_cast %21 : vector<1x128x1xf32> to vector<128x1xf32>
    %cst_14 = arith.constant dense<0xFF800000> : vector<128xf32>
    %23 = vector.multi_reduction <maximumf>, %20, %cst_14 [1] : vector<128x128xf32> to vector<128xf32>
    %24 = vector.shape_cast %23 : vector<128xf32> to vector<128x1xf32>
    %25 = arith.maximumf %22, %24 : vector<128x1xf32>
    %26 = arith.subf %22, %25 : vector<128x1xf32>
    %27 = math.exp %26 : vector<128x1xf32>
    %28 = vector.broadcast %25 : vector<128x1xf32> to vector<128x128xf32>
    %29 = arith.subf %20, %28 : vector<128x128xf32>
    %30 = math.exp %29 : vector<128x128xf32>
    %cst_15 = arith.constant 0.000000e+00 : f32
    %31 = vector.broadcast %cst_15 : f32 to vector<128x128xf32>
    %32 = arith.select %6, %30, %31 : vector<128x128xi1>, vector<128x128xf32>
    %c0_16 = arith.constant 0 : index
    %c0_17 = arith.constant 0 : index
    %c0_18 = arith.constant 0 : index
    %33 = vector.load %arg8[%c0_16, %c0_17, %c0_18] : memref<2x128x1xf32, #tpu.memory_space<vmem>>, vector<1x128x1xf32>
    %34 = vector.shape_cast %33 : vector<1x128x1xf32> to vector<128x1xf32>
    %35 = arith.mulf %27, %34 : vector<128x1xf32>
    %cst_19 = arith.constant dense<0.000000e+00> : vector<128xf32>
    %36 = vector.multi_reduction <add>, %32, %cst_19 [1] : vector<128x128xf32> to vector<128xf32>
    %37 = vector.shape_cast %36 : vector<128xf32> to vector<128x1xf32>
    %38 = arith.addf %35, %37 : vector<128x1xf32>
    %c0_20 = arith.constant 0 : index
    %c0_21 = arith.constant 0 : index
    %c0_22 = arith.constant 0 : index
    %39 = vector.load %arg8[%c0_20, %c0_21, %c0_22] : memref<2x128x1xf32, #tpu.memory_space<vmem>>, vector<1x128x1xf32>
    %40 = vector.shape_cast %39 : vector<1x128x1xf32> to vector<128x1xf32>
    %41 = vector.shape_cast %38 : vector<128x1xf32> to vector<1x128x1xf32>
    tpu.vector_store %arg8[%c0_20, %c0_21, %c0_22], %41 {strides = array<i32>} : memref<2x128x1xf32, #tpu.memory_space<vmem>>, vector<1x128x1xf32>,
    %c0_23 = arith.constant 0 : index
    %c0_24 = arith.constant 0 : index
    %c0_25 = arith.constant 0 : index
    %42 = vector.load %arg9[%c0_23, %c0_24, %c0_25] : memref<2x128x128xf32, #tpu.memory_space<vmem>>, vector<1x128x128xf32>
    %43 = vector.shape_cast %42 : vector<1x128x128xf32> to vector<128x128xf32>
    %44 = vector.broadcast %27 : vector<128x1xf32> to vector<128x128xf32>
    %45 = arith.mulf %44, %43 : vector<128x128xf32>
    %46 = arith.truncf %32 : vector<128x128xf32> to vector<128x128xbf16>
    %c0_26 = arith.constant 0 : index
    %c0_27 = arith.constant 0 : index
    %c0_28 = arith.constant 0 : index
    %47 = vector.load %arg5[%c0_26, %c0_27, %c0_28] : memref<2x128x128xbf16, #tpu.memory_space<vmem>>, vector<1x128x128xbf16>
    %48 = vector.shape_cast %47 : vector<1x128x128xbf16> to vector<128x128xbf16>
    %cst_29 = arith.constant dense<0.000000e+00> : vector<128x128xf32>
    %49 = tpu.matmul %46, %48, %cst_29 {dimension_numbers = #tpu.dot_dimension_numbers<[1], [0], [0], [1], [0, 0, 1, 1], [], []>} : vector<128x128xbf16>, vector<128x128xbf16>, vector<128x128xf32> -> vector<128x128xf32>
    %50 = arith.addf %45, %49 : vector<128x128xf32>
    %c0_30 = arith.constant 0 : index
    %c0_31 = arith.constant 0 : index
    %c0_32 = arith.constant 0 : index
    %51 = vector.load %arg9[%c0_30, %c0_31, %c0_32] : memref<2x128x128xf32, #tpu.memory_space<vmem>>, vector<1x128x128xf32>
    %52 = vector.shape_cast %51 : vector<1x128x128xf32> to vector<128x128xf32>
    %53 = vector.shape_cast %50 : vector<128x128xf32> to vector<1x128x128xf32>
    tpu.vector_store %arg9[%c0_30, %c0_31, %c0_32], %53 {strides = array<i32>} : memref<2x128x128xf32, #tpu.memory_space<vmem>>, vector<1x128x128xf32>,
    %c0_33 = arith.constant 0 : index
    %c0_34 = arith.constant 0 : index
    %c0_35 = arith.constant 0 : index
    %54 = vector.load %arg7[%c0_33, %c0_34, %c0_35] : memref<2x128x1xf32, #tpu.memory_space<vmem>>, vector<1x128x1xf32>
    %55 = vector.shape_cast %54 : vector<1x128x1xf32> to vector<128x1xf32>
    %56 = vector.shape_cast %25 : vector<128x1xf32> to vector<1x128x1xf32>
    tpu.vector_store %arg7[%c0_33, %c0_34, %c0_35], %56 {strides = array<i32>} : memref<2x128x1xf32, #tpu.memory_space<vmem>>, vector<1x128x1xf32>,
    %c1 = arith.constant 1 : index
    %c0_36 = arith.constant 0 : index
    %c0_37 = arith.constant 0 : index
    %57 = vector.load %arg2[%c1, %c0_36, %c0_37] : memref<2x128x1xf32, #tpu.memory_space<vmem>>, vector<1x128x1xf32>
    %58 = vector.shape_cast %57 : vector<1x128x1xf32> to vector<128x1xf32>
    %c1_38 = arith.constant 1 : index
    %c0_39 = arith.constant 0 : index
    %c0_40 = arith.constant 0 : index
    %59 = vector.load %arg3[%c1_38, %c0_39, %c0_40] : memref<2x1x128xf32, #tpu.memory_space<vmem>>, vector<1x1x128xf32>
    %60 = vector.shape_cast %59 : vector<1x1x128xf32> to vector<1x128xf32>
    %61 = vector.broadcast %58 : vector<128x1xf32> to vector<128x128xf32>
    %62 = vector.broadcast %60 : vector<1x128xf32> to vector<128x128xf32>
    %63 = arith.addf %61, %62 : vector<128x128xf32>
    %cst_41 = arith.constant 0.000000e+00 : f32
    %64 = vector.broadcast %cst_41 : f32 to vector<128x128xf32>
    %65 = arith.cmpf ogt, %63, %64 : vector<128x128xf32>
    %cst_42 = arith.constant 0.00999999977 : f32
    %66 = vector.broadcast %cst_42 : f32 to vector<128x128xf32>
    %67 = arith.mulf %66, %63 : vector<128x128xf32>
    %68 = arith.select %65, %63, %67 : vector<128x128xi1>, vector<128x128xf32>
    %cst_43 = arith.constant -1.000000e+30 : f32
    %69 = vector.broadcast %cst_43 : f32 to vector<128x128xf32>
    %70 = arith.select %6, %68, %69 : vector<128x128xi1>, vector<128x128xf32>
    %c1_44 = arith.constant 1 : index
    %c0_45 = arith.constant 0 : index
    %c0_46 = arith.constant 0 : index
    %71 = vector.load %arg7[%c1_44, %c0_45, %c0_46] : memref<2x128x1xf32, #tpu.memory_space<vmem>>, vector<1x128x1xf32>
    %72 = vector.shape_cast %71 : vector<1x128x1xf32> to vector<128x1xf32>
    %cst_47 = arith.constant dense<0xFF800000> : vector<128xf32>
    %73 = vector.multi_reduction <maximumf>, %70, %cst_47 [1] : vector<128x128xf32> to vector<128xf32>
    %74 = vector.shape_cast %73 : vector<128xf32> to vector<128x1xf32>
    %75 = arith.maximumf %72, %74 : vector<128x1xf32>
    %76 = arith.subf %72, %75 : vector<128x1xf32>
    %77 = math.exp %76 : vector<128x1xf32>
    %78 = vector.broadcast %75 : vector<128x1xf32> to vector<128x128xf32>
    %79 = arith.subf %70, %78 : vector<128x128xf32>
    %80 = math.exp %79 : vector<128x128xf32>
    %cst_48 = arith.constant 0.000000e+00 : f32
    %81 = vector.broadcast %cst_48 : f32 to vector<128x128xf32>
    %82 = arith.select %6, %80, %81 : vector<128x128xi1>, vector<128x128xf32>
    %c1_49 = arith.constant 1 : index
    %c0_50 = arith.constant 0 : index
    %c0_51 = arith.constant 0 : index
    %83 = vector.load %arg8[%c1_49, %c0_50, %c0_51] : memref<2x128x1xf32, #tpu.memory_space<vmem>>, vector<1x128x1xf32>
    %84 = vector.shape_cast %83 : vector<1x128x1xf32> to vector<128x1xf32>
    %85 = arith.mulf %77, %84 : vector<128x1xf32>
    %cst_52 = arith.constant dense<0.000000e+00> : vector<128xf32>
    %86 = vector.multi_reduction <add>, %82, %cst_52 [1] : vector<128x128xf32> to vector<128xf32>
    %87 = vector.shape_cast %86 : vector<128xf32> to vector<128x1xf32>
    %88 = arith.addf %85, %87 : vector<128x1xf32>
    %c1_53 = arith.constant 1 : index
    %c0_54 = arith.constant 0 : index
    %c0_55 = arith.constant 0 : index
    %89 = vector.load %arg8[%c1_53, %c0_54, %c0_55] : memref<2x128x1xf32, #tpu.memory_space<vmem>>, vector<1x128x1xf32>
    %90 = vector.shape_cast %89 : vector<1x128x1xf32> to vector<128x1xf32>
    %91 = vector.shape_cast %88 : vector<128x1xf32> to vector<1x128x1xf32>
    tpu.vector_store %arg8[%c1_53, %c0_54, %c0_55], %91 {strides = array<i32>} : memref<2x128x1xf32, #tpu.memory_space<vmem>>, vector<1x128x1xf32>,
    %c1_56 = arith.constant 1 : index
    %c0_57 = arith.constant 0 : index
    %c0_58 = arith.constant 0 : index
    %92 = vector.load %arg9[%c1_56, %c0_57, %c0_58] : memref<2x128x128xf32, #tpu.memory_space<vmem>>, vector<1x128x128xf32>
    %93 = vector.shape_cast %92 : vector<1x128x128xf32> to vector<128x128xf32>
    %94 = vector.broadcast %77 : vector<128x1xf32> to vector<128x128xf32>
    %95 = arith.mulf %94, %93 : vector<128x128xf32>
    %96 = arith.truncf %82 : vector<128x128xf32> to vector<128x128xbf16>
    %c1_59 = arith.constant 1 : index
    %c0_60 = arith.constant 0 : index
    %c0_61 = arith.constant 0 : index
    %97 = vector.load %arg5[%c1_59, %c0_60, %c0_61] : memref<2x128x128xbf16, #tpu.memory_space<vmem>>, vector<1x128x128xbf16>
    %98 = vector.shape_cast %97 : vector<1x128x128xbf16> to vector<128x128xbf16>
    %cst_62 = arith.constant dense<0.000000e+00> : vector<128x128xf32>
    %99 = tpu.matmul %96, %98, %cst_62 {dimension_numbers = #tpu.dot_dimension_numbers<[1], [0], [0], [1], [0, 0, 1, 1], [], []>} : vector<128x128xbf16>, vector<128x128xbf16>, vector<128x128xf32> -> vector<128x128xf32>
    %100 = arith.addf %95, %99 : vector<128x128xf32>
    %c1_63 = arith.constant 1 : index
    %c0_64 = arith.constant 0 : index
    %c0_65 = arith.constant 0 : index
    %101 = vector.load %arg9[%c1_63, %c0_64, %c0_65] : memref<2x128x128xf32, #tpu.memory_space<vmem>>, vector<1x128x128xf32>
    %102 = vector.shape_cast %101 : vector<1x128x128xf32> to vector<128x128xf32>
    %103 = vector.shape_cast %100 : vector<128x128xf32> to vector<1x128x128xf32>
    tpu.vector_store %arg9[%c1_63, %c0_64, %c0_65], %103 {strides = array<i32>} : memref<2x128x128xf32, #tpu.memory_space<vmem>>, vector<1x128x128xf32>,
    %c1_66 = arith.constant 1 : index
    %c0_67 = arith.constant 0 : index
    %c0_68 = arith.constant 0 : index
    %104 = vector.load %arg7[%c1_66, %c0_67, %c0_68] : memref<2x128x1xf32, #tpu.memory_space<vmem>>, vector<1x128x1xf32>
    %105 = vector.shape_cast %104 : vector<1x128x1xf32> to vector<128x1xf32>
    %106 = vector.shape_cast %75 : vector<128x1xf32> to vector<1x128x1xf32>
    tpu.vector_store %arg7[%c1_66, %c0_67, %c0_68], %106 {strides = array<i32>} : memref<2x128x1xf32, #tpu.memory_space<vmem>>, vector<1x128x1xf32>,
    %c1_i32 = arith.constant 1 : i32
    %107 = arith.cmpi eq, %arg1, %c1_i32 : i32
    %108 = arith.extui %107 : i1 to i32
    %c0_i32_69 = arith.constant 0 : i32
    %109 = arith.cmpi ne, %108, %c0_i32_69 : i32
    scf.if %109 {
      %c0_70 = arith.constant 0 : index
      %c0_71 = arith.constant 0 : index
      %c0_72 = arith.constant 0 : index
      %110 = vector.load %arg9[%c0_70, %c0_71, %c0_72] : memref<2x128x128xf32, #tpu.memory_space<vmem>>, vector<1x128x128xf32>
      %111 = vector.shape_cast %110 : vector<1x128x128xf32> to vector<128x128xf32>
      %c0_73 = arith.constant 0 : index
      %c0_74 = arith.constant 0 : index
      %c0_75 = arith.constant 0 : index
      %112 = vector.load %arg8[%c0_73, %c0_74, %c0_75] : memref<2x128x1xf32, #tpu.memory_space<vmem>>, vector<1x128x1xf32>
      %113 = vector.shape_cast %112 : vector<1x128x1xf32> to vector<128x1xf32>
      %cst_76 = arith.constant 9.99999968E-21 : f32
      %114 = vector.broadcast %cst_76 : f32 to vector<128x1xf32>
      %115 = arith.maximumf %113, %114 : vector<128x1xf32>
      %116 = vector.broadcast %115 : vector<128x1xf32> to vector<128x128xf32>
      %117 = arith.divf %111, %116 : vector<128x128xf32>
      %cst_77 = arith.constant 0.000000e+00 : f32
      %118 = vector.broadcast %cst_77 : f32 to vector<128x128xf32>
      %119 = arith.cmpf ogt, %117, %118 : vector<128x128xf32>
      %cst_78 = arith.constant 0.000000e+00 : f32
      %120 = vector.broadcast %cst_78 : f32 to vector<128x128xf32>
      %121 = arith.minimumf %117, %120 : vector<128x128xf32>
      %122 = math.exp %121 : vector<128x128xf32>
      %cst_79 = arith.constant 1.000000e+00 : f32
      %123 = vector.broadcast %cst_79 : f32 to vector<128x128xf32>
      %124 = arith.subf %122, %123 : vector<128x128xf32>
      %125 = arith.select %119, %117, %124 : vector<128x128xi1>, vector<128x128xf32>
      %c0_80 = arith.constant 0 : index
      %c0_81 = arith.constant 0 : index
      %126 = vector.load %arg6[%c0_80, %c0_81] : memref<128x256xf32, #tpu.memory_space<vmem>>, vector<128x128xf32>
      tpu.vector_store %arg6[%c0_80, %c0_81], %125 {strides = array<i32>} : memref<128x256xf32, #tpu.memory_space<vmem>>, vector<128x128xf32>,
      %c1_82 = arith.constant 1 : index
      %c0_83 = arith.constant 0 : index
      %c0_84 = arith.constant 0 : index
      %127 = vector.load %arg9[%c1_82, %c0_83, %c0_84] : memref<2x128x128xf32, #tpu.memory_space<vmem>>, vector<1x128x128xf32>
      %128 = vector.shape_cast %127 : vector<1x128x128xf32> to vector<128x128xf32>
      %c1_85 = arith.constant 1 : index
      %c0_86 = arith.constant 0 : index
      %c0_87 = arith.constant 0 : index
      %129 = vector.load %arg8[%c1_85, %c0_86, %c0_87] : memref<2x128x1xf32, #tpu.memory_space<vmem>>, vector<1x128x1xf32>
      %130 = vector.shape_cast %129 : vector<1x128x1xf32> to vector<128x1xf32>
      %cst_88 = arith.constant 9.99999968E-21 : f32
      %131 = vector.broadcast %cst_88 : f32 to vector<128x1xf32>
      %132 = arith.maximumf %130, %131 : vector<128x1xf32>
      %133 = vector.broadcast %132 : vector<128x1xf32> to vector<128x128xf32>
      %134 = arith.divf %128, %133 : vector<128x128xf32>
      %cst_89 = arith.constant 0.000000e+00 : f32
      %135 = vector.broadcast %cst_89 : f32 to vector<128x128xf32>
      %136 = arith.cmpf ogt, %134, %135 : vector<128x128xf32>
      %cst_90 = arith.constant 0.000000e+00 : f32
      %137 = vector.broadcast %cst_90 : f32 to vector<128x128xf32>
      %138 = arith.minimumf %134, %137 : vector<128x128xf32>
      %139 = math.exp %138 : vector<128x128xf32>
      %cst_91 = arith.constant 1.000000e+00 : f32
      %140 = vector.broadcast %cst_91 : f32 to vector<128x128xf32>
      %141 = arith.subf %139, %140 : vector<128x128xf32>
      %142 = arith.select %136, %134, %141 : vector<128x128xi1>, vector<128x128xf32>
      %c0_92 = arith.constant 0 : index
      %c128 = arith.constant 128 : index
      %143 = vector.load %arg6[%c0_92, %c128] : memref<128x256xf32, #tpu.memory_space<vmem>>, vector<128x128xf32>
      tpu.vector_store %arg6[%c0_92, %c128], %142 {strides = array<i32>} : memref<128x256xf32, #tpu.memory_space<vmem>>, vector<128x128xf32>,
    } else {
    }
    return
  }
  func.func @transform_0(%arg0: i32, %arg1: i32) -> (i32, i32, i32) {
    %c0_i32 = arith.constant 0 : i32
    %c0_i32_0 = arith.constant 0 : i32
    %c0_i32_1 = arith.constant 0 : i32
    return %c0_i32, %arg0, %c0_i32_0 : i32, i32, i32
  }
  func.func @transform_1(%arg0: i32, %arg1: i32) -> (i32, i32, i32) {
    %c0_i32 = arith.constant 0 : i32
    %c0_i32_0 = arith.constant 0 : i32
    %c0_i32_1 = arith.constant 0 : i32
    return %c0_i32, %c0_i32_0, %arg1 : i32, i32, i32
  }
  func.func @transform_2(%arg0: i32, %arg1: i32) -> (i32, i32) {
    %c0_i32 = arith.constant 0 : i32
    return %arg0, %arg1 : i32, i32
  }
  func.func @transform_3(%arg0: i32, %arg1: i32) -> (i32, i32, i32) {
    %c0_i32 = arith.constant 0 : i32
    %c0_i32_0 = arith.constant 0 : i32
    %c0_i32_1 = arith.constant 0 : i32
    return %c0_i32, %arg1, %c0_i32_0 : i32, i32, i32
  }
  func.func @transform_4(%arg0: i32, %arg1: i32) -> (i32, i32) {
    %c0_i32 = arith.constant 0 : i32
    %c0_i32_0 = arith.constant 0 : i32
    return %arg0, %c0_i32 : i32, i32
  }
}

module attributes {stable_mosaic.version = 11 : i64} {
  func.func @_gat_project_kernel(%arg0: i32, %arg1: memref<128x256xf32, #tpu.memory_space<vmem>>, %arg2: memref<1x256x128xbf16, #tpu.memory_space<vmem>>, %arg3: memref<1x1x128xf32, #tpu.memory_space<vmem>>, %arg4: memref<1x1x128xf32, #tpu.memory_space<vmem>>, %arg5: memref<1x128x128xbf16, #tpu.memory_space<vmem>>, %arg6: memref<1x128x1xf32, #tpu.memory_space<vmem>>, %arg7: memref<1x128x1xf32, #tpu.memory_space<vmem>>) attributes {dimension_semantics = [#tpu.dimension_semantics<parallel>], iteration_bounds = array<i64: 2>, scalar_prefetch = 0 : i64, scratch_operands = 0 : i64, tpu.core_type = #tpu.core_type<tc>, window_params = [{transform_indices = @transform_0, window_bounds = array<i64: 128, 256>}, {pipeline_mode = #tpu.pipeline_mode<synchronous>, transform_indices = @transform_1, window_bounds = array<i64: 1, 256, 128>}, {pipeline_mode = #tpu.pipeline_mode<synchronous>, transform_indices = @transform_2, window_bounds = array<i64: 1, 1, 128>}, {pipeline_mode = #tpu.pipeline_mode<synchronous>, transform_indices = @transform_3, window_bounds = array<i64: 1, 1, 128>}, {transform_indices = @transform_4, window_bounds = array<i64: 1, 128, 128>}, {transform_indices = @transform_5, window_bounds = array<i64: 1, 128, 1>}, {transform_indices = @transform_6, window_bounds = array<i64: 1, 128, 1>}]} {
    %c0 = arith.constant 0 : index
    %c0_0 = arith.constant 0 : index
    %0 = vector.load %arg1[%c0, %c0_0] : memref<128x256xf32, #tpu.memory_space<vmem>>, vector<128x256xf32>
    %1 = arith.truncf %0 : vector<128x256xf32> to vector<128x256xbf16>
    %c0_1 = arith.constant 0 : index
    %c0_2 = arith.constant 0 : index
    %c0_3 = arith.constant 0 : index
    %2 = vector.load %arg2[%c0_1, %c0_2, %c0_3] : memref<1x256x128xbf16, #tpu.memory_space<vmem>>, vector<1x256x128xbf16>
    %3 = vector.shape_cast %2 : vector<1x256x128xbf16> to vector<256x128xbf16>
    %cst = arith.constant dense<0.000000e+00> : vector<128x128xf32>
    %4 = tpu.matmul %1, %3, %cst {dimension_numbers = #tpu.dot_dimension_numbers<[1], [0], [0], [1], [0, 0, 1, 1], [], []>} : vector<128x256xbf16>, vector<256x128xbf16>, vector<128x128xf32> -> vector<128x128xf32>
    %c0_4 = arith.constant 0 : index
    %c0_5 = arith.constant 0 : index
    %c0_6 = arith.constant 0 : index
    %5 = vector.load %arg3[%c0_4, %c0_5, %c0_6] : memref<1x1x128xf32, #tpu.memory_space<vmem>>, vector<1x1x128xf32>
    %6 = vector.shape_cast %5 : vector<1x1x128xf32> to vector<1x128xf32>
    %7 = vector.broadcast %6 : vector<1x128xf32> to vector<128x128xf32>
    %8 = arith.mulf %4, %7 : vector<128x128xf32>
    %cst_7 = arith.constant dense<0.000000e+00> : vector<128xf32>
    %9 = vector.multi_reduction <add>, %8, %cst_7 [1] : vector<128x128xf32> to vector<128xf32>
    %10 = vector.shape_cast %9 : vector<128xf32> to vector<128x1xf32>
    %c0_8 = arith.constant 0 : index
    %c0_9 = arith.constant 0 : index
    %c0_10 = arith.constant 0 : index
    %11 = vector.load %arg6[%c0_8, %c0_9, %c0_10] : memref<1x128x1xf32, #tpu.memory_space<vmem>>, vector<1x128x1xf32>
    %12 = vector.shape_cast %11 : vector<1x128x1xf32> to vector<128x1xf32>
    %13 = vector.shape_cast %10 : vector<128x1xf32> to vector<1x128x1xf32>
    tpu.vector_store %arg6[%c0_8, %c0_9, %c0_10], %13 {strides = array<i32>} : memref<1x128x1xf32, #tpu.memory_space<vmem>>, vector<1x128x1xf32>,
    %c0_11 = arith.constant 0 : index
    %c0_12 = arith.constant 0 : index
    %c0_13 = arith.constant 0 : index
    %14 = vector.load %arg4[%c0_11, %c0_12, %c0_13] : memref<1x1x128xf32, #tpu.memory_space<vmem>>, vector<1x1x128xf32>
    %15 = vector.shape_cast %14 : vector<1x1x128xf32> to vector<1x128xf32>
    %16 = vector.broadcast %15 : vector<1x128xf32> to vector<128x128xf32>
    %17 = arith.mulf %4, %16 : vector<128x128xf32>
    %cst_14 = arith.constant dense<0.000000e+00> : vector<128xf32>
    %18 = vector.multi_reduction <add>, %17, %cst_14 [1] : vector<128x128xf32> to vector<128xf32>
    %19 = vector.shape_cast %18 : vector<128xf32> to vector<128x1xf32>
    %c0_15 = arith.constant 0 : index
    %c0_16 = arith.constant 0 : index
    %c0_17 = arith.constant 0 : index
    %20 = vector.load %arg7[%c0_15, %c0_16, %c0_17] : memref<1x128x1xf32, #tpu.memory_space<vmem>>, vector<1x128x1xf32>
    %21 = vector.shape_cast %20 : vector<1x128x1xf32> to vector<128x1xf32>
    %22 = vector.shape_cast %19 : vector<128x1xf32> to vector<1x128x1xf32>
    tpu.vector_store %arg7[%c0_15, %c0_16, %c0_17], %22 {strides = array<i32>} : memref<1x128x1xf32, #tpu.memory_space<vmem>>, vector<1x128x1xf32>,
    %23 = arith.truncf %4 : vector<128x128xf32> to vector<128x128xbf16>
    %c0_18 = arith.constant 0 : index
    %c0_19 = arith.constant 0 : index
    %c0_20 = arith.constant 0 : index
    %24 = vector.load %arg5[%c0_18, %c0_19, %c0_20] : memref<1x128x128xbf16, #tpu.memory_space<vmem>>, vector<1x128x128xbf16>
    %25 = vector.shape_cast %24 : vector<1x128x128xbf16> to vector<128x128xbf16>
    %26 = vector.shape_cast %23 : vector<128x128xbf16> to vector<1x128x128xbf16>
    tpu.vector_store %arg5[%c0_18, %c0_19, %c0_20], %26 {strides = array<i32>} : memref<1x128x128xbf16, #tpu.memory_space<vmem>>, vector<1x128x128xbf16>,
    return
  }
  func.func @transform_0(%arg0: i32) -> (i32, i32) {
    %c0_i32 = arith.constant 0 : i32
    %c0_i32_0 = arith.constant 0 : i32
    return %arg0, %c0_i32 : i32, i32
  }
  func.func @transform_1(%arg0: i32) -> (i32, i32, i32) {
    %c0_i32 = arith.constant 0 : i32
    %c0_i32_0 = arith.constant 0 : i32
    %c0_i32_1 = arith.constant 0 : i32
    %c0_i32_2 = arith.constant 0 : i32
    return %c0_i32, %c0_i32_0, %c0_i32_1 : i32, i32, i32
  }
  func.func @transform_2(%arg0: i32) -> (i32, i32, i32) {
    %c0_i32 = arith.constant 0 : i32
    %c0_i32_0 = arith.constant 0 : i32
    %c0_i32_1 = arith.constant 0 : i32
    %c0_i32_2 = arith.constant 0 : i32
    return %c0_i32, %c0_i32_0, %c0_i32_1 : i32, i32, i32
  }
  func.func @transform_3(%arg0: i32) -> (i32, i32, i32) {
    %c0_i32 = arith.constant 0 : i32
    %c0_i32_0 = arith.constant 0 : i32
    %c0_i32_1 = arith.constant 0 : i32
    %c0_i32_2 = arith.constant 0 : i32
    return %c0_i32, %c0_i32_0, %c0_i32_1 : i32, i32, i32
  }
  func.func @transform_4(%arg0: i32) -> (i32, i32, i32) {
    %c0_i32 = arith.constant 0 : i32
    %c0_i32_0 = arith.constant 0 : i32
    %c0_i32_1 = arith.constant 0 : i32
    return %c0_i32, %arg0, %c0_i32_0 : i32, i32, i32
  }
  func.func @transform_5(%arg0: i32) -> (i32, i32, i32) {
    %c0_i32 = arith.constant 0 : i32
    %c0_i32_0 = arith.constant 0 : i32
    %c0_i32_1 = arith.constant 0 : i32
    return %c0_i32, %arg0, %c0_i32_0 : i32, i32, i32
  }
  func.func @transform_6(%arg0: i32) -> (i32, i32, i32) {
    %c0_i32 = arith.constant 0 : i32
    %c0_i32_0 = arith.constant 0 : i32
    %c0_i32_1 = arith.constant 0 : i32
    return %c0_i32, %arg0, %c0_i32_0 : i32, i32, i32
  }
}

module attributes {stable_mosaic.version = 11 : i64} {
  func.func @_gat_attention_kernel(%arg0: i32, %arg1: i32, %arg2: memref<1x128x1xf32, #tpu.memory_space<vmem>>, %arg3: memref<1x1x128xf32, #tpu.memory_space<vmem>>, %arg4: memref<128x128xbf16, #tpu.memory_space<vmem>>, %arg5: memref<1x128x128xbf16, #tpu.memory_space<vmem>>, %arg6: memref<128x128xf32, #tpu.memory_space<vmem>>, %arg7: memref<1x128x1xf32, #tpu.memory_space<vmem>>, %arg8: memref<1x128x1xf32, #tpu.memory_space<vmem>>, %arg9: memref<1x128x128xf32, #tpu.memory_space<vmem>>) attributes {dimension_semantics = [#tpu.dimension_semantics<parallel>, #tpu.dimension_semantics<arbitrary>], iteration_bounds = array<i64: 2, 2>, scalar_prefetch = 0 : i64, scratch_operands = 3 : i64, tpu.core_type = #tpu.core_type<tc>, window_params = [{transform_indices = @transform_0, window_bounds = array<i64: 1, 128, 1>}, {transform_indices = @transform_1, window_bounds = array<i64: 1, 1, 128>}, {transform_indices = @transform_2, window_bounds = array<i64: 128, 128>}, {transform_indices = @transform_3, window_bounds = array<i64: 1, 128, 128>}, {transform_indices = @transform_4, window_bounds = array<i64: 128, 128>}]} {
    %c0_i32 = arith.constant 0 : i32
    %0 = arith.cmpi eq, %arg1, %c0_i32 : i32
    %1 = arith.extui %0 : i1 to i32
    %c0_i32_0 = arith.constant 0 : i32
    %2 = arith.cmpi ne, %1, %c0_i32_0 : i32
    scf.if %2 {
      %cst_37 = arith.constant -1.000000e+30 : f32
      %60 = vector.broadcast %cst_37 : f32 to vector<1x128x1xf32>
      %c0_38 = arith.constant 0 : index
      %c0_39 = arith.constant 0 : index
      %c0_40 = arith.constant 0 : index
      %61 = vector.load %arg7[%c0_38, %c0_39, %c0_40] : memref<1x128x1xf32, #tpu.memory_space<vmem>>, vector<1x128x1xf32>
      tpu.vector_store %arg7[%c0_38, %c0_39, %c0_40], %60 {strides = array<i32>} : memref<1x128x1xf32, #tpu.memory_space<vmem>>, vector<1x128x1xf32>,
      %cst_41 = arith.constant 0.000000e+00 : f32
      %62 = vector.broadcast %cst_41 : f32 to vector<1x128x1xf32>
      %c0_42 = arith.constant 0 : index
      %c0_43 = arith.constant 0 : index
      %c0_44 = arith.constant 0 : index
      %63 = vector.load %arg8[%c0_42, %c0_43, %c0_44] : memref<1x128x1xf32, #tpu.memory_space<vmem>>, vector<1x128x1xf32>
      tpu.vector_store %arg8[%c0_42, %c0_43, %c0_44], %62 {strides = array<i32>} : memref<1x128x1xf32, #tpu.memory_space<vmem>>, vector<1x128x1xf32>,
      %cst_45 = arith.constant 0.000000e+00 : f32
      %64 = vector.broadcast %cst_45 : f32 to vector<1x128x128xf32>
      %c0_46 = arith.constant 0 : index
      %c0_47 = arith.constant 0 : index
      %c0_48 = arith.constant 0 : index
      %65 = vector.load %arg9[%c0_46, %c0_47, %c0_48] : memref<1x128x128xf32, #tpu.memory_space<vmem>>, vector<1x128x128xf32>
      tpu.vector_store %arg9[%c0_46, %c0_47, %c0_48], %64 {strides = array<i32>} : memref<1x128x128xf32, #tpu.memory_space<vmem>>, vector<1x128x128xf32>,
    } else {
    }
    %c0 = arith.constant 0 : index
    %c0_1 = arith.constant 0 : index
    %3 = vector.load %arg4[%c0, %c0_1] : memref<128x128xbf16, #tpu.memory_space<vmem>>, vector<128x128xbf16>
    %4 = arith.extf %3 : vector<128x128xbf16> to vector<128x128xf32>
    %cst = arith.constant 0.000000e+00 : f32
    %5 = vector.broadcast %cst : f32 to vector<128x128xf32>
    %6 = arith.cmpf ogt, %4, %5 : vector<128x128xf32>
    %c0_2 = arith.constant 0 : index
    %c0_3 = arith.constant 0 : index
    %c0_4 = arith.constant 0 : index
    %7 = vector.load %arg2[%c0_2, %c0_3, %c0_4] : memref<1x128x1xf32, #tpu.memory_space<vmem>>, vector<1x128x1xf32>
    %8 = vector.shape_cast %7 : vector<1x128x1xf32> to vector<128x1xf32>
    %c0_5 = arith.constant 0 : index
    %c0_6 = arith.constant 0 : index
    %c0_7 = arith.constant 0 : index
    %9 = vector.load %arg3[%c0_5, %c0_6, %c0_7] : memref<1x1x128xf32, #tpu.memory_space<vmem>>, vector<1x1x128xf32>
    %10 = vector.shape_cast %9 : vector<1x1x128xf32> to vector<1x128xf32>
    %11 = vector.broadcast %8 : vector<128x1xf32> to vector<128x128xf32>
    %12 = vector.broadcast %10 : vector<1x128xf32> to vector<128x128xf32>
    %13 = arith.addf %11, %12 : vector<128x128xf32>
    %cst_8 = arith.constant 0.000000e+00 : f32
    %14 = vector.broadcast %cst_8 : f32 to vector<128x128xf32>
    %15 = arith.cmpf ogt, %13, %14 : vector<128x128xf32>
    %cst_9 = arith.constant 0.00999999977 : f32
    %16 = vector.broadcast %cst_9 : f32 to vector<128x128xf32>
    %17 = arith.mulf %16, %13 : vector<128x128xf32>
    %18 = arith.select %15, %13, %17 : vector<128x128xi1>, vector<128x128xf32>
    %cst_10 = arith.constant -1.000000e+30 : f32
    %19 = vector.broadcast %cst_10 : f32 to vector<128x128xf32>
    %20 = arith.select %6, %18, %19 : vector<128x128xi1>, vector<128x128xf32>
    %c0_11 = arith.constant 0 : index
    %c0_12 = arith.constant 0 : index
    %c0_13 = arith.constant 0 : index
    %21 = vector.load %arg7[%c0_11, %c0_12, %c0_13] : memref<1x128x1xf32, #tpu.memory_space<vmem>>, vector<1x128x1xf32>
    %22 = vector.shape_cast %21 : vector<1x128x1xf32> to vector<128x1xf32>
    %cst_14 = arith.constant dense<0xFF800000> : vector<128xf32>
    %23 = vector.multi_reduction <maximumf>, %20, %cst_14 [1] : vector<128x128xf32> to vector<128xf32>
    %24 = vector.shape_cast %23 : vector<128xf32> to vector<128x1xf32>
    %25 = arith.maximumf %22, %24 : vector<128x1xf32>
    %26 = arith.subf %22, %25 : vector<128x1xf32>
    %27 = math.exp %26 : vector<128x1xf32>
    %28 = vector.broadcast %25 : vector<128x1xf32> to vector<128x128xf32>
    %29 = arith.subf %20, %28 : vector<128x128xf32>
    %30 = math.exp %29 : vector<128x128xf32>
    %cst_15 = arith.constant 0.000000e+00 : f32
    %31 = vector.broadcast %cst_15 : f32 to vector<128x128xf32>
    %32 = arith.select %6, %30, %31 : vector<128x128xi1>, vector<128x128xf32>
    %c0_16 = arith.constant 0 : index
    %c0_17 = arith.constant 0 : index
    %c0_18 = arith.constant 0 : index
    %33 = vector.load %arg8[%c0_16, %c0_17, %c0_18] : memref<1x128x1xf32, #tpu.memory_space<vmem>>, vector<1x128x1xf32>
    %34 = vector.shape_cast %33 : vector<1x128x1xf32> to vector<128x1xf32>
    %35 = arith.mulf %27, %34 : vector<128x1xf32>
    %cst_19 = arith.constant dense<0.000000e+00> : vector<128xf32>
    %36 = vector.multi_reduction <add>, %32, %cst_19 [1] : vector<128x128xf32> to vector<128xf32>
    %37 = vector.shape_cast %36 : vector<128xf32> to vector<128x1xf32>
    %38 = arith.addf %35, %37 : vector<128x1xf32>
    %c0_20 = arith.constant 0 : index
    %c0_21 = arith.constant 0 : index
    %c0_22 = arith.constant 0 : index
    %39 = vector.load %arg8[%c0_20, %c0_21, %c0_22] : memref<1x128x1xf32, #tpu.memory_space<vmem>>, vector<1x128x1xf32>
    %40 = vector.shape_cast %39 : vector<1x128x1xf32> to vector<128x1xf32>
    %41 = vector.shape_cast %38 : vector<128x1xf32> to vector<1x128x1xf32>
    tpu.vector_store %arg8[%c0_20, %c0_21, %c0_22], %41 {strides = array<i32>} : memref<1x128x1xf32, #tpu.memory_space<vmem>>, vector<1x128x1xf32>,
    %c0_23 = arith.constant 0 : index
    %c0_24 = arith.constant 0 : index
    %c0_25 = arith.constant 0 : index
    %42 = vector.load %arg9[%c0_23, %c0_24, %c0_25] : memref<1x128x128xf32, #tpu.memory_space<vmem>>, vector<1x128x128xf32>
    %43 = vector.shape_cast %42 : vector<1x128x128xf32> to vector<128x128xf32>
    %44 = vector.broadcast %27 : vector<128x1xf32> to vector<128x128xf32>
    %45 = arith.mulf %44, %43 : vector<128x128xf32>
    %46 = arith.truncf %32 : vector<128x128xf32> to vector<128x128xbf16>
    %c0_26 = arith.constant 0 : index
    %c0_27 = arith.constant 0 : index
    %c0_28 = arith.constant 0 : index
    %47 = vector.load %arg5[%c0_26, %c0_27, %c0_28] : memref<1x128x128xbf16, #tpu.memory_space<vmem>>, vector<1x128x128xbf16>
    %48 = vector.shape_cast %47 : vector<1x128x128xbf16> to vector<128x128xbf16>
    %cst_29 = arith.constant dense<0.000000e+00> : vector<128x128xf32>
    %49 = tpu.matmul %46, %48, %cst_29 {dimension_numbers = #tpu.dot_dimension_numbers<[1], [0], [0], [1], [0, 0, 1, 1], [], []>} : vector<128x128xbf16>, vector<128x128xbf16>, vector<128x128xf32> -> vector<128x128xf32>
    %50 = arith.addf %45, %49 : vector<128x128xf32>
    %c0_30 = arith.constant 0 : index
    %c0_31 = arith.constant 0 : index
    %c0_32 = arith.constant 0 : index
    %51 = vector.load %arg9[%c0_30, %c0_31, %c0_32] : memref<1x128x128xf32, #tpu.memory_space<vmem>>, vector<1x128x128xf32>
    %52 = vector.shape_cast %51 : vector<1x128x128xf32> to vector<128x128xf32>
    %53 = vector.shape_cast %50 : vector<128x128xf32> to vector<1x128x128xf32>
    tpu.vector_store %arg9[%c0_30, %c0_31, %c0_32], %53 {strides = array<i32>} : memref<1x128x128xf32, #tpu.memory_space<vmem>>, vector<1x128x128xf32>,
    %c0_33 = arith.constant 0 : index
    %c0_34 = arith.constant 0 : index
    %c0_35 = arith.constant 0 : index
    %54 = vector.load %arg7[%c0_33, %c0_34, %c0_35] : memref<1x128x1xf32, #tpu.memory_space<vmem>>, vector<1x128x1xf32>
    %55 = vector.shape_cast %54 : vector<1x128x1xf32> to vector<128x1xf32>
    %56 = vector.shape_cast %25 : vector<128x1xf32> to vector<1x128x1xf32>
    tpu.vector_store %arg7[%c0_33, %c0_34, %c0_35], %56 {strides = array<i32>} : memref<1x128x1xf32, #tpu.memory_space<vmem>>, vector<1x128x1xf32>,
    %c1_i32 = arith.constant 1 : i32
    %57 = arith.cmpi eq, %arg1, %c1_i32 : i32
    %58 = arith.extui %57 : i1 to i32
    %c0_i32_36 = arith.constant 0 : i32
    %59 = arith.cmpi ne, %58, %c0_i32_36 : i32
    scf.if %59 {
      %c0_37 = arith.constant 0 : index
      %c0_38 = arith.constant 0 : index
      %c0_39 = arith.constant 0 : index
      %60 = vector.load %arg9[%c0_37, %c0_38, %c0_39] : memref<1x128x128xf32, #tpu.memory_space<vmem>>, vector<1x128x128xf32>
      %61 = vector.shape_cast %60 : vector<1x128x128xf32> to vector<128x128xf32>
      %c0_40 = arith.constant 0 : index
      %c0_41 = arith.constant 0 : index
      %c0_42 = arith.constant 0 : index
      %62 = vector.load %arg8[%c0_40, %c0_41, %c0_42] : memref<1x128x1xf32, #tpu.memory_space<vmem>>, vector<1x128x1xf32>
      %63 = vector.shape_cast %62 : vector<1x128x1xf32> to vector<128x1xf32>
      %cst_43 = arith.constant 9.99999968E-21 : f32
      %64 = vector.broadcast %cst_43 : f32 to vector<128x1xf32>
      %65 = arith.maximumf %63, %64 : vector<128x1xf32>
      %66 = vector.broadcast %65 : vector<128x1xf32> to vector<128x128xf32>
      %67 = arith.divf %61, %66 : vector<128x128xf32>
      %c0_44 = arith.constant 0 : index
      %c0_45 = arith.constant 0 : index
      %68 = vector.load %arg6[%c0_44, %c0_45] : memref<128x128xf32, #tpu.memory_space<vmem>>, vector<128x128xf32>
      tpu.vector_store %arg6[%c0_44, %c0_45], %67 {strides = array<i32>} : memref<128x128xf32, #tpu.memory_space<vmem>>, vector<128x128xf32>,
    } else {
    }
    return
  }
  func.func @transform_0(%arg0: i32, %arg1: i32) -> (i32, i32, i32) {
    %c0_i32 = arith.constant 0 : i32
    %c0_i32_0 = arith.constant 0 : i32
    %c0_i32_1 = arith.constant 0 : i32
    return %c0_i32, %arg0, %c0_i32_0 : i32, i32, i32
  }
  func.func @transform_1(%arg0: i32, %arg1: i32) -> (i32, i32, i32) {
    %c0_i32 = arith.constant 0 : i32
    %c0_i32_0 = arith.constant 0 : i32
    %c0_i32_1 = arith.constant 0 : i32
    return %c0_i32, %c0_i32_0, %arg1 : i32, i32, i32
  }
  func.func @transform_2(%arg0: i32, %arg1: i32) -> (i32, i32) {
    %c0_i32 = arith.constant 0 : i32
    return %arg0, %arg1 : i32, i32
  }
  func.func @transform_3(%arg0: i32, %arg1: i32) -> (i32, i32, i32) {
    %c0_i32 = arith.constant 0 : i32
    %c0_i32_0 = arith.constant 0 : i32
    %c0_i32_1 = arith.constant 0 : i32
    return %c0_i32, %arg1, %c0_i32_0 : i32, i32, i32
  }
  func.func @transform_4(%arg0: i32, %arg1: i32) -> (i32, i32) {
    %c0_i32 = arith.constant 0 : i32
    %c0_i32_0 = arith.constant 0 : i32
    return %arg0, %c0_i32 : i32, i32
  }
}

</mosaic_0001>

<bundles_post_ra>
// kernel: gat_forward.4
= control target key start
LH: loop header
LB: loop body
LE: loop exit
PB: predicated region body
PF: predicated region fallthrough
CT: control target
= control target key end

     0   :  { %s1672_s21 = smov 0   ;;  %s1674_s22 = smov 0   ;;  %s2225_s0 = inlined_call_operand.vmem [shape: f32[256,16], index: 0, kind: input, shape index: {}]   ;;  %s2226_s1 = inlined_call_operand.vmem [shape: bf16[2,16,128], index: 1, kind: input, shape index: {}]   ;;  %s2227_s2 = inlined_call_operand.vmem [shape: f32[2,1,128], index: 2, kind: input, shape index: {}]   ;;  %s2228_s3 = inlined_call_operand.vmem [shape: f32[2,1,128], index: 3, kind: input, shape index: {}]   ;;  %s2229_s4 = inlined_call_operand.vmem [shape: bf16[2,256,128], index: 4, kind: output, shape index: {0}]   ;;  %s2230_s5 = inlined_call_operand.vmem [shape: f32[2,256,1], index: 5, kind: output, shape index: {1}]   ;;  %s2231_s6 = inlined_call_operand.vmem [shape: f32[2,256,1], index: 6, kind: output, shape index: {2}]  }
   0x1   :  { %s1676_s23 = smov 0  }
   0x2 LB: > { %s1685_s24 = sadd.s32 4294967295, %s1635_s23   ;;  %s1687_s25 = sadd.s32 1, %s1635_s23   ;;  %s1635_s23 = sphi %s1676_s23, %s2235_s23   ;;  %s1631_s22 = sphi %s1674_s22, %s2234_s22   ;;  %s1627_s21 = sphi %s1672_s21, %s2233_s21  }
   0x3   : > { %s110_s26 = ssub.s32 %s1635_s23, %s1687_s25  ;;  %s113_s27 = sadd.s32 1, %s1631_s22 }
   0x4   : > { %p111_p0 = scmp.eq.s32.totalorder %s110_s26, 0  ;;  %p123_p1 = scmp.ne.s32.totalorder %s1631_s22, %s1627_s21 }
   0x5   : > { %p124_p2 = scmp.eq.s32.totalorder %s1685_s24, 1  ;;  %p1390_p3 = scmp.ge.s32.totalorder %s1635_s23, 1 }
   0x6   : > { %s1695_s28 = scalar_select %p111_p0, %s1631_s22, %s113_s27  }
   0x7   : > { %p1697_p4 = por %p124_p2, %p123_p1  ;;  %p218_p5 = scmp.lt.s32.totalorder %s1635_s23, 3 }
   0x9   : > { %p219_p6 = pnand %p1390_p3, %p218_p5 }
   0xa   : > { %s1394_s10 = sshll.u32 (!%p219_p6), %s1685_s24, 4  ;;  %s240_s23 = sand.u32 (!%p219_p6), 1, %s1627_s21  }
   0xb   : > { %222 = sbr.rel (%p219_p6) target bundleno = 504 (0x1f8), region = 36  ;;  %p256_p7 = scmp.lt.s32.totalorder (!%p219_p6), %s1394_s10, 31 }
   0xc   : > { %s1391_s30 = sshll.u32 (!%p219_p6), %s240_s23, 7  ;;  %s1392_s8 = sshll.u32 (!%p219_p6), %s240_s23, 8 }
   0xd   : > { %s1774_s7 = scalar_lea.vmem (!%p219_p6), [#allocation2], %s1391_s30  ;;  %s1881_s9 = scalar_lea.vmem (!%p219_p6), [#allocation3], %s1392_s8 }
   0xe   : > { %s1886_s21 = scalar_lea.vmem (!%p219_p6), [#allocation4], %s1392_s8 }
  0x10   : > { %v1483_v0 = vld [vmem:[%s2226_s1] sm:$0xff]  ;;  %v1484_v1 = vld [vmem:[%s2226_s1 + $0x8] sm:$0xff]  ;;  %s2237_s10 = smov (!%p256_p7, %s1394_s10), 31  ;;  %vm297_vm0 = vcmask 130048   ;;  %vm423_vm1 = vcmask 7168  }
  0x11   : > { %329 = vmatpush.bf16.msra.mxu0 %v1483_v0  ;;  %556 = vmatpush.bf16.msra.mxu1 %v1484_v1  ;;  %s1395_s11 = sshll.u32 %s2237_s10, 3  ;;  %v1748_v26 = vld [vmem:[%s2227_s2 + $0x1] ss:$0 sm:$0xff]  ;;  %v1753_v27 = vld [vmem:[%s2228_s3] ss:$0 sm:$0xff]  ;;  %s1485_s10 = sshll.u32 (%p1697_p4), %s1685_s24, 6 }
  0x12   : > { %1583 = vmatpush.bf16.msra.mxu2 %v1483_v0  ;;  %1584 = vmatpush.bf16.msra.mxu3 %v1484_v1  ;;  %s1711_s14 = scalar_lea.vmem %s2225_s0, %s1395_s11  ;;  %v1758_v28 = vld [vmem:[%s2227_s2] ss:$0 sm:$0xff]  ;;  %v1767_v34 = vld [vmem:[%s2228_s3 + $0x1] ss:$0 sm:$0xff]  ;;  %s788_s13 = scalar_lea.vmem (%p1697_p4), %s2229_s4, %s1485_s10 }
  0x13   : > { %v265_v2 = vld [vmem:[%s1711_s14] sm:$0xff]  ;;  %v266_v3 = vld [vmem:[%s1711_s14 + $0x8] sm:$0xff]  ;;  %v267_v8 = vld [vmem:[%s1711_s14 + $0x10] sm:$0xff] }
  0x14   : > { %v273_v4 = vld [vmem:[%s1711_s14 + $0x40] sm:$0xff]  ;;  %v281_v5 = vpack.c.bf16 %v266_v3, %v265_v2  ;;  %v274_v6 = vld [vmem:[%s1711_s14 + $0x48] sm:$0xff]  ;;  %v268_v9 = vld [vmem:[%s1711_s14 + $0x18] sm:$0xff] }
  0x15   : > { %v285_v7 = vpack.c.bf16 %v274_v6, %v273_v4  ;;  %v275_v10 = vld [vmem:[%s1711_s14 + $0x50] sm:$0xff]  ;;  %v276_v11 = vld [vmem:[%s1711_s14 + $0x58] sm:$0xff]  ;;  %v282_v12 = vpack.c.bf16 %v268_v9, %v267_v8  ;;  %v269_v14 = vld [vmem:[%s1711_s14 + $0x20] sm:$0xff] }
  0x16   : > { %1400 = vmatmul.msk.bf16.vlgmr.msra.gmra.mxu0 %vm297_vm0, %v281_v5  ;;  %1414 = vmatmul.msk.bf16.vlgmr.msra.gmra.mxu1 %vm297_vm0, %v281_v5  ;;  %v286_v13 = vpack.c.bf16 %v276_v11, %v275_v10  ;;  %v270_v15 = vld [vmem:[%s1711_s14 + $0x28] sm:$0xff]  ;;  %v277_v16 = vld [vmem:[%s1711_s14 + $0x60] sm:$0xff]  ;;  %v271_v20 = vld [vmem:[%s1711_s14 + $0x30] sm:$0xff] }
  0x17   : > { %1404 = vmatmul.msk.bf16.vlgmr.msra.gmra.mxu2 %vm297_vm0, %v285_v7  ;;  %1418 = vmatmul.msk.bf16.vlgmr.msra.gmra.mxu3 %vm297_vm0, %v285_v7  ;;  %v278_v17 = vld [vmem:[%s1711_s14 + $0x68] sm:$0xff]  ;;  %v283_v18 = vpack.c.bf16 %v270_v15, %v269_v14  ;;  %v272_v21 = vld [vmem:[%s1711_s14 + $0x38] sm:$0xff]  ;;  %v279_v22 = vld [vmem:[%s1711_s14 + $0x70] sm:$0xff] }
  0x18   : > { %v287_v19 = vpack.c.bf16 %v278_v17, %v277_v16  ;;  %v280_v23 = vld [vmem:[%s1711_s14 + $0x78] sm:$0xff]  ;;  %v284_v24 = vpack.c.bf16 %v272_v21, %v271_v20 }
  0x19   : > { %v288_v25 = vpack.c.bf16 %v280_v23, %v279_v22 }
  0x26   : > { %1401 = vmatmul.msk.bf16.gmra.mxu0 %vm297_vm0, %v282_v12  ;;  %1415 = vmatmul.msk.bf16.gmra.mxu1 %vm297_vm0, %v282_v12 }
  0x27   : > { %1405 = vmatmul.msk.bf16.gmra.mxu2 %vm297_vm0, %v286_v13  ;;  %1419 = vmatmul.msk.bf16.gmra.mxu3 %vm297_vm0, %v286_v13 }
  0x36   : > { %1402 = vmatmul.msk.bf16.gmra.mxu0 %vm297_vm0, %v283_v18  ;;  %1416 = vmatmul.msk.bf16.gmra.mxu1 %vm297_vm0, %v283_v18 }
  0x37   : > { %1406 = vmatmul.msk.bf16.gmra.mxu2 %vm297_vm0, %v287_v19  ;;  %1420 = vmatmul.msk.bf16.gmra.mxu3 %vm297_vm0, %v287_v19 }
  0x46   : > { %1403 = vmatmul.msk.bf16.gmra.mxu0 %vm297_vm0, %v284_v24  ;;  %1417 = vmatmul.msk.bf16.gmra.mxu1 %vm297_vm0, %v284_v24 }
  0x47   : > { %1421 = vmatmul.msk.bf16.gmra.mxu3 %vm297_vm0, %v288_v25  ;;  %1407 = vmatmul.msk.bf16.gmra.mxu2 %vm297_vm0, %v288_v25 }
  0x93   : > { %v331_v29 = vpop.f32.mrf.mxu0  ;;  %v558_v30 = vpop.f32.mrf.mxu1 }
  0x94   : > { %v603_v31 = vmul.f32 %v1748_v26, %v558_v30  ;;  %v444_v32 = vmul.f32 %v1753_v27, %v331_v29  ;;  %v375_v33 = vmul.f32 %v1758_v28, %v331_v29  ;;  %v673_v41 = vmul.f32 %v1767_v34, %v558_v30 }
  0x96   : > { %619 = vadd.xlane.f32.xlu2 %v603_v31  ;;  %460 = vadd.xlane.f32.xlu1 %v444_v32 }
  0x97   : > { %391 = vadd.xlane.f32.xlu0 %v375_v33 }
  0x9a   : > { %v351_v35 = vpop.f32.mrf.mxu2  ;;  %v578_v36 = vpop.f32.mrf.mxu3 }
  0x9b   : > { %v333_v37 = vpop.f32.mrf.mxu0  ;;  %v560_v38 = vpop.f32.mrf.mxu1  ;;  %v383_v39 = vmul.f32 %v1758_v28, %v351_v35  ;;  %v611_v40 = vmul.f32 %v1748_v26, %v578_v36  ;;  %v681_v46 = vmul.f32 %v1767_v34, %v578_v36  ;;  %v452_v49 = vmul.f32 %v1753_v27, %v351_v35 }
  0x9c   : > { %v1491_v42 = vpack.c.bf16 %v333_v37, %v331_v29  ;;  %v1531_v43 = vpack.c.bf16 %v560_v38, %v558_v30  ;;  %v674_v52 = vmul.f32 %v1767_v34, %v560_v38  ;;  %v445_v58 = vmul.f32 %v1753_v27, %v333_v37 }
  0x9d   : > { %v376_v61 = vmul.f32 %v1758_v28, %v333_v37  ;;  %v604_v4 = vmul.f32 %v1748_v26, %v560_v38 }
  0x9e   : > { %1492 = vst [vmem:[%s1774_s7] sm:$0xff] %v1491_v42   ;;  %407 = vadd.xlane.f32.xlu2 %v383_v39  ;;  %635 = vadd.xlane.f32.xlu1 %v611_v40 }
  0x9f   : > { %1575 = vst [vmem:[%s1774_s7 + $0x40] sm:$0xff] %v1531_v43   ;;  %689 = vadd.xlane.f32.xlu0 %v673_v41 }
  0xa2   : > { %v353_v44 = vpop.f32.mrf.mxu2  ;;  %v580_v45 = vpop.f32.mrf.mxu3 }
  0xa3   : > { %v1511_v47 = vpack.c.bf16 %v353_v44, %v351_v35  ;;  %v1551_v48 = vpack.c.bf16 %v580_v45, %v578_v36  ;;  %v336_v50 = vpop.f32.mrf.mxu0  ;;  %v563_v51 = vpop.f32.mrf.mxu1  ;;  %v453_v57 = vmul.f32 %v1753_v27, %v353_v44  ;;  %v612_v3 = vmul.f32 %v1748_v26, %v580_v45 }
  0xa4   : > { %v377_v62 = vmul.f32 %v1758_v28, %v336_v50  ;;  %v675_v5 = vmul.f32 %v1767_v34, %v563_v51  ;;  %v605_v6 = vmul.f32 %v1748_v26, %v563_v51  ;;  %v384_v7 = vmul.f32 %v1758_v28, %v353_v44 }
  0xa5   : > { %1571 = vst [vmem:[%s1774_s7 + $0x20] sm:$0xff] %v1511_v47   ;;  %v682_v12 = vmul.f32 %v1767_v34, %v580_v45  ;;  %v446_v20 = vmul.f32 %v1753_v27, %v336_v50 }
  0xa6   : > { %1579 = vst [vmem:[%s1774_s7 + $0x60] sm:$0xff] %v1551_v48   ;;  %705 = vadd.xlane.f32.xlu2 %v681_v46  ;;  %691 = vadd.xlane.f32.xlu1 %v674_v52 }
  0xa7   : > { %476 = vadd.xlane.f32.xlu0 %v452_v49 }
  0xaa   : > { %v356_v53 = vpop.f32.mrf.mxu2  ;;  %v583_v54 = vpop.f32.mrf.mxu3 }
  0xab   : > { %v1783_v55 = vpop.f32.mrf.mxu0  ;;  %v1785_v56 = vpop.f32.mrf.mxu1  ;;  %v454_v10 = vmul.f32 %v1753_v27, %v356_v53  ;;  %v385_v11 = vmul.f32 %v1758_v28, %v356_v53  ;;  %v683_v18 = vmul.f32 %v1767_v34, %v583_v54  ;;  %v613_v24 = vmul.f32 %v1748_v26, %v583_v54 }
  0xac   : > { %v1496_v59 = vpack.c.bf16 %v1783_v55, %v336_v50  ;;  %v1536_v60 = vpack.c.bf16 %v1785_v56, %v563_v51  ;;  %v606_v19 = vmul.f32 %v1748_v26, %v1785_v56  ;;  %v378_v29 = vmul.f32 %v1758_v28, %v1783_v55 }
  0xad   : > { %v447_v33 = vmul.f32 %v1753_v27, %v1783_v55  ;;  %v676_v35 = vmul.f32 %v1767_v34, %v1785_v56 }
  0xae   : > { %478 = vadd.xlane.f32.xlu1 %v453_v57  ;;  %462 = vadd.xlane.f32.xlu2 %v445_v58  ;;  %1568 = vst [vmem:[%s1774_s7 + $0x8] sm:$0xff] %v1496_v59  }
  0xaf   : > { %393 = vadd.xlane.f32.xlu0 %v376_v61  ;;  %1576 = vst [vmem:[%s1774_s7 + $0x48] sm:$0xff] %v1536_v60  }
  0xb2   : > { %v358_v63 = vpop.f32.mrf.mxu2  ;;  %v585_v0 = vpop.f32.mrf.mxu3 }
  0xb3   : > { %v1516_v1 = vpack.c.bf16 %v358_v63, %v356_v53  ;;  %v1556_v2 = vpack.c.bf16 %v585_v0, %v583_v54  ;;  %v341_v8 = vpop.f32.mrf.mxu0  ;;  %v568_v9 = vpop.f32.mrf.mxu1  ;;  %v386_v25 = vmul.f32 %v1758_v28, %v358_v63  ;;  %v684_v32 = vmul.f32 %v1767_v34, %v585_v0 }
  0xb4   : > { %v379_v36 = vmul.f32 %v1758_v28, %v341_v8  ;;  %v614_v37 = vmul.f32 %v1748_v26, %v585_v0  ;;  %v455_v38 = vmul.f32 %v1753_v27, %v358_v63  ;;  %v677_v39 = vmul.f32 %v1767_v34, %v568_v9 }
  0xb5   : > { %1572 = vst [vmem:[%s1774_s7 + $0x28] sm:$0xff] %v1516_v1   ;;  %v448_v40 = vmul.f32 %v1753_v27, %v341_v8  ;;  %v607_v41 = vmul.f32 %v1748_v26, %v568_v9 }
  0xb6   : > { %637 = vadd.xlane.f32.xlu2 %v612_v3  ;;  %395 = vadd.xlane.f32.xlu1 %v377_v62  ;;  %1580 = vst [vmem:[%s1774_s7 + $0x68] sm:$0xff] %v1556_v2  }
  0xb7   : > { %621 = vadd.xlane.f32.xlu0 %v604_v4 }
  0xba   : > { %v361_v14 = vpop.f32.mrf.mxu2  ;;  %v588_v22 = vpop.f32.mrf.mxu3 }
  0xbb   : > { %v1805_v13 = vpop.f32.mrf.mxu0  ;;  %v1808_v16 = vpop.f32.mrf.mxu1  ;;  %v456_v43 = vmul.f32 %v1753_v27, %v361_v14  ;;  %v615_v44 = vmul.f32 %v1748_v26, %v588_v22  ;;  %v387_v45 = vmul.f32 %v1758_v28, %v361_v14  ;;  %v685_v50 = vmul.f32 %v1767_v34, %v588_v22 }
  0xbc   : > { %v1501_v15 = vpack.c.bf16 %v1805_v13, %v341_v8  ;;  %v1541_v17 = vpack.c.bf16 %v1808_v16, %v568_v9  ;;  %v608_v51 = vmul.f32 %v1748_v26, %v1808_v16  ;;  %v380_v52 = vmul.f32 %v1758_v28, %v1805_v13 }
  0xbd   : > { %v678_v59 = vmul.f32 %v1767_v34, %v1808_v16  ;;  %v449_v61 = vmul.f32 %v1753_v27, %v1805_v13 }
  0xbe   : > { %693 = vadd.xlane.f32.xlu2 %v675_v5  ;;  %623 = vadd.xlane.f32.xlu1 %v605_v6  ;;  %1569 = vst [vmem:[%s1774_s7 + $0x10] sm:$0xff] %v1501_v15  }
  0xbf   : > { %409 = vadd.xlane.f32.xlu0 %v384_v7  ;;  %1577 = vst [vmem:[%s1774_s7 + $0x50] sm:$0xff] %v1541_v17  }
  0xc2   : > { %v1817_v21 = vpop.f32.mrf.mxu2  ;;  %v1825_v30 = vpop.f32.mrf.mxu3 }
  0xc3   : > { %v1521_v23 = vpack.c.bf16 %v1817_v21, %v361_v14  ;;  %v1561_v31 = vpack.c.bf16 %v1825_v30, %v588_v22  ;;  %v346_v42 = vpop.f32.mrf.mxu0  ;;  %v1845_v47 = vpop.f32.mrf.mxu1  ;;  %v388_v58 = vmul.f32 %v1758_v28, %v1817_v21  ;;  %v457_v3 = vmul.f32 %v1753_v27, %v1817_v21 }
  0xc4   : > { %v450_v2 = vmul.f32 %v1753_v27, %v346_v42  ;;  %v616_v4 = vmul.f32 %v1748_v26, %v1825_v30  ;;  %v609_v8 = vmul.f32 %v1748_v26, %v1845_v47  ;;  %v679_v15 = vmul.f32 %v1767_v34, %v1845_v47 }
  0xc5   : > { %1573 = vst [vmem:[%s1774_s7 + $0x30] sm:$0xff] %v1521_v23  }
  0xc6   : > { %480 = vadd.xlane.f32.xlu2 %v454_v10  ;;  %411 = vadd.xlane.f32.xlu1 %v385_v11  ;;  %1581 = vst [vmem:[%s1774_s7 + $0x70] sm:$0xff] %v1561_v31   ;;  %v381_v10 = vmul.f32 %v1758_v28, %v346_v42 }
  0xc7   : > { %707 = vadd.xlane.f32.xlu0 %v682_v12 }
  0xca   : > { %v1848_v49 = vpop.f32.mrf.mxu3  ;;  %v1856_v53 = vpop.f32.mrf.mxu2 }
  0xcb   : > { %v1843_v46 = vpop.f32.mrf.mxu0  ;;  %v1858_v54 = vpop.f32.mrf.mxu1  ;;  %v617_v9 = vmul.f32 %v1748_v26, %v1848_v49  ;;  %v389_v14 = vmul.f32 %v1758_v28, %v1856_v53 }
  0xcc   : > { %v1506_v48 = vpack.c.bf16 %v1843_v46, %v346_v42  ;;  %v1546_v55 = vpack.c.bf16 %v1858_v54, %v1845_v47  ;;  %v382_v16 = vmul.f32 %v1758_v28, %v1843_v46  ;;  %v451_v21 = vmul.f32 %v1753_v27, %v1843_v46 }
  0xcd   : > { %v680_v22 = vmul.f32 %v1767_v34, %v1858_v54 }
  0xce   : > { %625 = vadd.xlane.f32.xlu2 %v606_v19  ;;  %709 = vadd.xlane.f32.xlu1 %v683_v18  ;;  %1570 = vst [vmem:[%s1774_s7 + $0x18] sm:$0xff] %v1506_v48  }
  0xcf   : > { %464 = vadd.xlane.f32.xlu0 %v446_v20  ;;  %1578 = vst [vmem:[%s1774_s7 + $0x58] sm:$0xff] %v1546_v55   ;;  %v458_v20 = vmul.f32 %v1753_v27, %v1856_v53 }
  0xd2   : > { %v1862_v56 = vpop.f32.mrf.mxu3  ;;  %v1872_v60 = vpop.f32.mrf.mxu2 }
  0xd3   : > { %v1566_v57 = vpack.c.bf16 %v1862_v56, %v1848_v49  ;;  %v1526_v62 = vpack.c.bf16 %v1872_v60, %v1856_v53  ;;  %v459_v31 = vmul.f32 %v1753_v27, %v1872_v60  ;;  %v687_v27 = vmul.f32 %v1767_v34, %v1848_v49 }
  0xd5   : > { %1582 = vst [vmem:[%s1774_s7 + $0x78] sm:$0xff] %v1566_v57  }
  0xd6   : > { %413 = vadd.xlane.f32.xlu2 %v386_v25  ;;  %397 = vadd.xlane.f32.xlu1 %v378_v29  ;;  %1574 = vst [vmem:[%s1774_s7 + $0x38] sm:$0xff] %v1526_v62   ;;  %v618_v29 = vmul.f32 %v1748_v26, %v1862_v56 }
  0xd7   : > { %639 = vadd.xlane.f32.xlu0 %v613_v24 }
  0xde   : > { %711 = vadd.xlane.f32.xlu2 %v684_v32  ;;  %466 = vadd.xlane.f32.xlu1 %v447_v33  ;;  %v610_v32 = vmul.f32 %v1748_v26, %v1858_v54  ;;  %v686_v26 = vmul.f32 %v1767_v34, %v1825_v30 }
  0xdf   : > { %695 = vadd.xlane.f32.xlu0 %v676_v35 }
  0xe6   : > { %641 = vadd.xlane.f32.xlu1 %v614_v37  ;;  %399 = vadd.xlane.f32.xlu2 %v379_v36  ;;  %v390_v37 = vmul.f32 %v1758_v28, %v1872_v60  ;;  %v688_v28 = vmul.f32 %v1767_v34, %v1862_v56 }
  0xe7   : > { %482 = vadd.xlane.f32.xlu0 %v455_v38 }
  0xee   : > { %697 = vadd.xlane.f32.xlu1 %v677_v39  ;;  %468 = vadd.xlane.f32.xlu2 %v448_v40 }
  0xef   : > { %627 = vadd.xlane.f32.xlu0 %v607_v41 }
  0xf6   : > { %484 = vadd.xlane.f32.xlu1 %v456_v43  ;;  %643 = vadd.xlane.f32.xlu2 %v615_v44 }
  0xf7   : > { %415 = vadd.xlane.f32.xlu0 %v387_v45 }
  0xfe   : > { %629 = vadd.xlane.f32.xlu1 %v608_v51  ;;  %401 = vadd.xlane.f32.xlu2 %v380_v52 }
  0xff   : > { %713 = vadd.xlane.f32.xlu0 %v685_v50 }
 0x106   : > { %417 = vadd.xlane.f32.xlu1 %v388_v58  ;;  %699 = vadd.xlane.f32.xlu2 %v678_v59 }
 0x107   : > { %470 = vadd.xlane.f32.xlu0 %v449_v61 }
 0x109   : > { %v620_v63 = vpop.xlane.xlu2 %619  ;;  %v461_v0 = vpop.xlane.xlu1 %460 }
 0x10a   : > { %1423 = vst.msk [vmem:[%s1881_s9 + $0x80] sm:$0xff] %vm423_vm1, %v620_v63  ;;  %v392_v1 = vpop.xlane.xlu0 %391 }
 0x10b   : > { %492 = vst.msk [vmem:[%s1886_s21] sm:$0xff] %vm423_vm1, %v461_v0 }
 0x10c   : > { %424 = vst.msk [vmem:[%s1881_s9] sm:$0xff] %vm423_vm1, %v392_v1 }
 0x10e   : > { %486 = vadd.xlane.f32.xlu2 %v457_v3  ;;  %472 = vadd.xlane.f32.xlu1 %v450_v2 }
 0x10f   : > { %645 = vadd.xlane.f32.xlu0 %v616_v4 }
 0x111   : > { %v408_v5 = vpop.xlane.xlu2 %407  ;;  %v636_v6 = vpop.xlane.xlu1 %635 }
 0x112   : > { %432 = vst.msk [vmem:[%s1881_s9 + $0x40] sm:$0xff] %vm423_vm1, %v408_v5  ;;  %v690_v7 = vpop.xlane.xlu0 %689 }
 0x113   : > { %1431 = vst.msk [vmem:[%s1881_s9 + $0xc0] sm:$0xff] %vm423_vm1, %v636_v6 }
 0x114   : > { %1440 = vst.msk [vmem:[%s1886_s21 + $0x80] sm:$0xff] %vm423_vm1, %v690_v7 }
 0x116   : > { %631 = vadd.xlane.f32.xlu2 %v609_v8  ;;  %647 = vadd.xlane.f32.xlu1 %v617_v9 }
 0x117   : > { %403 = vadd.xlane.f32.xlu0 %v381_v10 }
 0x119   : > { %v706_v11 = vpop.xlane.xlu2 %705  ;;  %v692_v12 = vpop.xlane.xlu1 %691 }
 0x11a   : > { %1448 = vst.msk [vmem:[%s1886_s21 + $0xc0] sm:$0xff] %vm423_vm1, %v706_v11  ;;  %v477_v13 = vpop.xlane.xlu0 %476 }
 0x11b   : > { %1441 = vst.msk [vmem:[%s1886_s21 + $0x88] sm:$0xff] %vm423_vm1, %v692_v12 }
 0x11c   : > { %500 = vst.msk [vmem:[%s1886_s21 + $0x40] sm:$0xff] %vm423_vm1, %v477_v13 }
 0x11e   : > { %419 = vadd.xlane.f32.xlu2 %v389_v14  ;;  %405 = vadd.xlane.f32.xlu1 %v382_v16 }
 0x11f   : > { %701 = vadd.xlane.f32.xlu0 %v679_v15 }
 0x121   : > { %v479_v17 = vpop.xlane.xlu1 %478  ;;  %v463_v18 = vpop.xlane.xlu2 %462 }
 0x122   : > { %501 = vst.msk [vmem:[%s1886_s21 + $0x48] sm:$0xff] %vm423_vm1, %v479_v17  ;;  %v394_v19 = vpop.xlane.xlu0 %393 }
 0x123   : > { %493 = vst.msk [vmem:[%s1886_s21 + $0x8] sm:$0xff] %vm423_vm1, %v463_v18  ;;  %v805_v18 = vld [vmem:[%s1774_s7] sm:$0xff] (%p1697_p4)  }
 0x124   : > { %425 = vst.msk [vmem:[%s1881_s9 + $0x8] sm:$0xff] %vm423_vm1, %v394_v19  ;;  %v809_v19 = vld [vmem:[%s1774_s7 + $0x8] sm:$0xff] (%p1697_p4)  }
 0x125   : > { %806 = vst [vmem:[%s788_s13] sm:$0xff] (%p1697_p4), %v805_v18  }
 0x126   : > { %474 = vadd.xlane.f32.xlu2 %v451_v21  ;;  %703 = vadd.xlane.f32.xlu1 %v680_v22  ;;  %v817_v21 = vld [vmem:[%s1774_s7 + $0x18] sm:$0xff] (%p1697_p4)   ;;  %810 = vst [vmem:[%s788_s13 + $0x8] sm:$0xff] (%p1697_p4), %v809_v19   ;;  %v821_v22 = vld [vmem:[%s1774_s7 + $0x20] sm:$0xff] (%p1697_p4)  }
 0x127   : > { %488 = vadd.xlane.f32.xlu0 %v458_v20  ;;  %v813_v20 = vld [vmem:[%s1774_s7 + $0x10] sm:$0xff] (%p1697_p4)   ;;  %818 = vst [vmem:[%s788_s13 + $0x18] sm:$0xff] (%p1697_p4), %v817_v21  }
 0x128   : > { %814 = vst [vmem:[%s788_s13 + $0x10] sm:$0xff] (%p1697_p4), %v813_v20  }
 0x129   : > { %v638_v23 = vpop.xlane.xlu2 %637  ;;  %v396_v24 = vpop.xlane.xlu1 %395  ;;  %822 = vst [vmem:[%s788_s13 + $0x20] sm:$0xff] (%p1697_p4), %v821_v22  }
 0x12a   : > { %1432 = vst.msk [vmem:[%s1881_s9 + $0xc8] sm:$0xff] %vm423_vm1, %v638_v23  ;;  %v622_v25 = vpop.xlane.xlu0 %621  ;;  %v825_v23 = vld [vmem:[%s1774_s7 + $0x28] sm:$0xff] (%p1697_p4)  }
 0x12b   : > { %1424 = vst.msk [vmem:[%s1881_s9 + $0x88] sm:$0xff] %vm423_vm1, %v622_v25  ;;  %v833_v25 = vld [vmem:[%s1774_s7 + $0x38] sm:$0xff] (%p1697_p4)  }
 0x12c   : > { %426 = vst.msk [vmem:[%s1881_s9 + $0x10] sm:$0xff] %vm423_vm1, %v396_v24  ;;  %v829_v24 = vld [vmem:[%s1774_s7 + $0x30] sm:$0xff] (%p1697_p4)  }
 0x12d   : > { %826 = vst [vmem:[%s788_s13 + $0x28] sm:$0xff] (%p1697_p4), %v825_v23  }
 0x12e   : > { %649 = vadd.xlane.f32.xlu2 %v618_v29  ;;  %490 = vadd.xlane.f32.xlu1 %v459_v31  ;;  %v837_v29 = vld [vmem:[%s1774_s7 + $0x40] sm:$0xff] (%p1697_p4)   ;;  %830 = vst [vmem:[%s788_s13 + $0x30] sm:$0xff] (%p1697_p4), %v829_v24   ;;  %v841_v31 = vld [vmem:[%s1774_s7 + $0x48] sm:$0xff] (%p1697_p4)  }
 0x12f   : > { %633 = vadd.xlane.f32.xlu0 %v610_v32  ;;  %834 = vst [vmem:[%s788_s13 + $0x38] sm:$0xff] (%p1697_p4), %v833_v25   ;;  %v845_v32 = vld [vmem:[%s1774_s7 + $0x50] sm:$0xff] (%p1697_p4)  }
 0x130   : > { %838 = vst [vmem:[%s788_s13 + $0x80] sm:$0xff] (%p1697_p4), %v837_v29  }
 0x131   : > { %v694_v33 = vpop.xlane.xlu2 %693  ;;  %v624_v35 = vpop.xlane.xlu1 %623  ;;  %842 = vst [vmem:[%s788_s13 + $0x88] sm:$0xff] (%p1697_p4), %v841_v31  }
 0x132   : > { %1442 = vst.msk [vmem:[%s1886_s21 + $0x90] sm:$0xff] %vm423_vm1, %v694_v33  ;;  %v410_v36 = vpop.xlane.xlu0 %409  ;;  %v849_v33 = vld [vmem:[%s1774_s7 + $0x58] sm:$0xff] (%p1697_p4)  }
 0x133   : > { %433 = vst.msk [vmem:[%s1881_s9 + $0x48] sm:$0xff] %vm423_vm1, %v410_v36  ;;  %v857_v36 = vld [vmem:[%s1774_s7 + $0x68] sm:$0xff] (%p1697_p4)  }
 0x134   : > { %1425 = vst.msk [vmem:[%s1881_s9 + $0x90] sm:$0xff] %vm423_vm1, %v624_v35  ;;  %v853_v35 = vld [vmem:[%s1774_s7 + $0x60] sm:$0xff] (%p1697_p4)  }
 0x135   : > { %846 = vst [vmem:[%s788_s13 + $0x90] sm:$0xff] (%p1697_p4), %v845_v32  }
 0x136   : > { %717 = vadd.xlane.f32.xlu2 %v687_v27  ;;  %715 = vadd.xlane.f32.xlu1 %v686_v26  ;;  %850 = vst [vmem:[%s788_s13 + $0x98] sm:$0xff] (%p1697_p4), %v849_v33   ;;  %v861_v27 = vld [vmem:[%s1774_s7 + $0x70] sm:$0xff] (%p1697_p4)   ;;  %v865_v26 = vld [vmem:[%s1774_s7 + $0x78] sm:$0xff] (%p1697_p4)  }
 0x137   : > { %421 = vadd.xlane.f32.xlu0 %v390_v37  ;;  %854 = vst [vmem:[%s788_s13 + $0xa0] sm:$0xff] (%p1697_p4), %v853_v35  }
 0x138   : > { %858 = vst [vmem:[%s788_s13 + $0xa8] sm:$0xff] (%p1697_p4), %v857_v36  }
 0x139   : > { %v481_v38 = vpop.xlane.xlu2 %480  ;;  %v412_v39 = vpop.xlane.xlu1 %411  ;;  %862 = vst [vmem:[%s788_s13 + $0xb0] sm:$0xff] (%p1697_p4), %v861_v27  }
 0x13a   : > { %502 = vst.msk [vmem:[%s1886_s21 + $0x50] sm:$0xff] %vm423_vm1, %v481_v38  ;;  %v708_v40 = vpop.xlane.xlu0 %707 }
 0x13b   : > { %1449 = vst.msk [vmem:[%s1886_s21 + $0xc8] sm:$0xff] %vm423_vm1, %v708_v40 }
 0x13c   : > { %434 = vst.msk [vmem:[%s1881_s9 + $0x50] sm:$0xff] %vm423_vm1, %v412_v39 }
 0x13d   : > { %866 = vst [vmem:[%s788_s13 + $0xb8] sm:$0xff] (%p1697_p4), %v865_v26  }
 0x13f   : > { %719 = vadd.xlane.f32.xlu0 %v688_v28 }
 0x141   : > { %v626_v30 = vpop.xlane.xlu2 %625  ;;  %v710_v41 = vpop.xlane.xlu1 %709 }
 0x142   : > { %1426 = vst.msk [vmem:[%s1881_s9 + $0x98] sm:$0xff] %vm423_vm1, %v626_v30  ;;  %v465_v42 = vpop.xlane.xlu0 %464 }
 0x143   : > { %494 = vst.msk [vmem:[%s1886_s21 + $0x10] sm:$0xff] %vm423_vm1, %v465_v42 }
 0x144   : > { %1450 = vst.msk [vmem:[%s1886_s21 + $0xd0] sm:$0xff] %vm423_vm1, %v710_v41 }
 0x149   : > { %v414_v43 = vpop.xlane.xlu2 %413  ;;  %v398_v44 = vpop.xlane.xlu1 %397 }
 0x14a   : > { %435 = vst.msk [vmem:[%s1881_s9 + $0x58] sm:$0xff] %vm423_vm1, %v414_v43  ;;  %v640_v34 = vpop.xlane.xlu0 %639 }
 0x14b   : > { %1433 = vst.msk [vmem:[%s1881_s9 + $0xd0] sm:$0xff] %vm423_vm1, %v640_v34 }
 0x14c   : > { %427 = vst.msk [vmem:[%s1881_s9 + $0x18] sm:$0xff] %vm423_vm1, %v398_v44 }
 0x151   : > { %v712_v45 = vpop.xlane.xlu2 %711  ;;  %v467_v46 = vpop.xlane.xlu1 %466 }
 0x152   : > { %1451 = vst.msk [vmem:[%s1886_s21 + $0xd8] sm:$0xff] %vm423_vm1, %v712_v45  ;;  %v696_v47 = vpop.xlane.xlu0 %695 }
 0x153   : > { %1443 = vst.msk [vmem:[%s1886_s21 + $0x98] sm:$0xff] %vm423_vm1, %v696_v47 }
 0x154   : > { %495 = vst.msk [vmem:[%s1886_s21 + $0x18] sm:$0xff] %vm423_vm1, %v467_v46 }
 0x159   : > { %v642_v48 = vpop.xlane.xlu1 %641  ;;  %v400_v49 = vpop.xlane.xlu2 %399 }
 0x15a   : > { %v483_v50 = vpop.xlane.xlu0 %482  ;;  %1434 = vst.msk [vmem:[%s1881_s9 + $0xd8] sm:$0xff] %vm423_vm1, %v642_v48 }
 0x15b   : > { %503 = vst.msk [vmem:[%s1886_s21 + $0x58] sm:$0xff] %vm423_vm1, %v483_v50 }
 0x15c   : > { %428 = vst.msk [vmem:[%s1881_s9 + $0x20] sm:$0xff] %vm423_vm1, %v400_v49 }
 0x161   : > { %v698_v51 = vpop.xlane.xlu1 %697  ;;  %v469_v52 = vpop.xlane.xlu2 %468 }
 0x162   : > { %v628_v53 = vpop.xlane.xlu0 %627  ;;  %1444 = vst.msk [vmem:[%s1886_s21 + $0xa0] sm:$0xff] %vm423_vm1, %v698_v51 }
 0x163   : > { %1427 = vst.msk [vmem:[%s1881_s9 + $0xa0] sm:$0xff] %vm423_vm1, %v628_v53 }
 0x164   : > { %496 = vst.msk [vmem:[%s1886_s21 + $0x20] sm:$0xff] %vm423_vm1, %v469_v52 }
 0x169   : > { %v485_v54 = vpop.xlane.xlu1 %484  ;;  %v644_v55 = vpop.xlane.xlu2 %643 }
 0x16a   : > { %v416_v56 = vpop.xlane.xlu0 %415  ;;  %504 = vst.msk [vmem:[%s1886_s21 + $0x60] sm:$0xff] %vm423_vm1, %v485_v54 }
 0x16b   : > { %436 = vst.msk [vmem:[%s1881_s9 + $0x60] sm:$0xff] %vm423_vm1, %v416_v56 }
 0x16c   : > { %1435 = vst.msk [vmem:[%s1881_s9 + $0xe0] sm:$0xff] %vm423_vm1, %v644_v55 }
 0x171   : > { %v630_v57 = vpop.xlane.xlu1 %629  ;;  %v402_v58 = vpop.xlane.xlu2 %401 }
 0x172   : > { %v714_v59 = vpop.xlane.xlu0 %713  ;;  %1428 = vst.msk [vmem:[%s1881_s9 + $0xa8] sm:$0xff] %vm423_vm1, %v630_v57 }
 0x173   : > { %1452 = vst.msk [vmem:[%s1886_s21 + $0xe0] sm:$0xff] %vm423_vm1, %v714_v59 }
 0x174   : > { %429 = vst.msk [vmem:[%s1881_s9 + $0x28] sm:$0xff] %vm423_vm1, %v402_v58 }
 0x179   : > { %v418_v60 = vpop.xlane.xlu1 %417  ;;  %v700_v61 = vpop.xlane.xlu2 %699 }
 0x17a   : > { %437 = vst.msk [vmem:[%s1881_s9 + $0x68] sm:$0xff] %vm423_vm1, %v418_v60  ;;  %v471_v62 = vpop.xlane.xlu0 %470 }
 0x17b   : > { %497 = vst.msk [vmem:[%s1886_s21 + $0x28] sm:$0xff] %vm423_vm1, %v471_v62 }
 0x17c   : > { %1445 = vst.msk [vmem:[%s1886_s21 + $0xa8] sm:$0xff] %vm423_vm1, %v700_v61 }
 0x181   : > { %v487_v63 = vpop.xlane.xlu2 %486  ;;  %v473_v0 = vpop.xlane.xlu1 %472 }
 0x182   : > { %v646_v1 = vpop.xlane.xlu0 %645  ;;  %505 = vst.msk [vmem:[%s1886_s21 + $0x68] sm:$0xff] %vm423_vm1, %v487_v63 }
 0x183   : > { %1436 = vst.msk [vmem:[%s1881_s9 + $0xe8] sm:$0xff] %vm423_vm1, %v646_v1 }
 0x184   : > { %498 = vst.msk [vmem:[%s1886_s21 + $0x30] sm:$0xff] %vm423_vm1, %v473_v0 }
 0x189   : > { %v632_v2 = vpop.xlane.xlu2 %631  ;;  %v648_v3 = vpop.xlane.xlu1 %647 }
 0x18a   : > { %1429 = vst.msk [vmem:[%s1881_s9 + $0xb0] sm:$0xff] %vm423_vm1, %v632_v2  ;;  %v404_v4 = vpop.xlane.xlu0 %403 }
 0x18b   : > { %1437 = vst.msk [vmem:[%s1881_s9 + $0xf0] sm:$0xff] %vm423_vm1, %v648_v3 }
 0x18c   : > { %430 = vst.msk [vmem:[%s1881_s9 + $0x30] sm:$0xff] %vm423_vm1, %v404_v4 }
 0x191   : > { %v420_v5 = vpop.xlane.xlu2 %419  ;;  %v406_v6 = vpop.xlane.xlu1 %405 }
 0x192   : > { %438 = vst.msk [vmem:[%s1881_s9 + $0x70] sm:$0xff] %vm423_vm1, %v420_v5  ;;  %v702_v7 = vpop.xlane.xlu0 %701 }
 0x193   : > { %1446 = vst.msk [vmem:[%s1886_s21 + $0xb0] sm:$0xff] %vm423_vm1, %v702_v7 }
 0x194   : > { %431 = vst.msk [vmem:[%s1881_s9 + $0x38] sm:$0xff] %vm423_vm1, %v406_v6 }
 0x199   : > { %v475_v8 = vpop.xlane.xlu2 %474  ;;  %v704_v9 = vpop.xlane.xlu1 %703 }
 0x19a   : > { %v489_v10 = vpop.xlane.xlu0 %488  ;;  %499 = vst.msk [vmem:[%s1886_s21 + $0x38] sm:$0xff] %vm423_vm1, %v475_v8 }
 0x19b   : > { %506 = vst.msk [vmem:[%s1886_s21 + $0x70] sm:$0xff] %vm423_vm1, %v489_v10 }
 0x19c   : > { %1447 = vst.msk [vmem:[%s1886_s21 + $0xb8] sm:$0xff] %vm423_vm1, %v704_v9 }
 0x1a1   : > { %v650_v11 = vpop.xlane.xlu2 %649  ;;  %v491_v12 = vpop.xlane.xlu1 %490 }
 0x1a2   : > { %v634_v13 = vpop.xlane.xlu0 %633  ;;  %1438 = vst.msk [vmem:[%s1881_s9 + $0xf8] sm:$0xff] %vm423_vm1, %v650_v11 }
 0x1a3   : > { %1430 = vst.msk [vmem:[%s1881_s9 + $0xb8] sm:$0xff] %vm423_vm1, %v634_v13 }
 0x1a4   : > { %507 = vst.msk [vmem:[%s1886_s21 + $0x78] sm:$0xff] %vm423_vm1, %v491_v12 }
 0x1a9   : > { %v718_v14 = vpop.xlane.xlu2 %717  ;;  %v716_v15 = vpop.xlane.xlu1 %715 }
 0x1aa   : > { %v422_v16 = vpop.xlane.xlu0 %421  ;;  %1454 = vst.msk [vmem:[%s1886_s21 + $0xf0] sm:$0xff] %vm423_vm1, %v718_v14 }
 0x1ab   : > { %439 = vst.msk [vmem:[%s1881_s9 + $0x78] sm:$0xff] %vm423_vm1, %v422_v16 }
 0x1ac   : > { %1453 = vst.msk [vmem:[%s1886_s21 + $0xe8] sm:$0xff] %vm423_vm1, %v716_v15 }
 0x1af   : > { %785 = sbr.rel (!%p1697_p4) target bundleno = 436 (0x1b4), region = 40 }
 0x1b2   : > { %v720_v17 = vpop.xlane.xlu0 %719 }
 0x1b3   : > { %1455 = vst.msk [vmem:[%s1886_s21 + $0xf8] sm:$0xff] %vm423_vm1, %v720_v17 }
 0x1b4 PF: > { %956 = sbr.rel (!%p1697_p4) target bundleno = 470 (0x1d6), region = 81  ;;  %s1486_s14 = sshll.u32 (%p1697_p4), %s1685_s24, 7  ;;  %v1050_v37 = vld [vmem:[%s1881_s9] sm:$0xff] (%p1697_p4)  ;;  %v1052_v38 = vld [vmem:[%s1881_s9 + $0x8] sm:$0xff] (%p1697_p4)  ;;  %v1054_v39 = vld [vmem:[%s1881_s9 + $0x10] sm:$0xff] (%p1697_p4) }
 0x1b5   : > { %s2079_s17 = scalar_lea.vmem (%p1697_p4), %s2230_s5, %s1486_s14  ;;  %v1056_v40 = vld [vmem:[%s1881_s9 + $0x18] sm:$0xff] (%p1697_p4)  ;;  %v1058_v28 = vld [vmem:[%s1881_s9 + $0x20] sm:$0xff] (%p1697_p4)  ;;  %v1060_v30 = vld [vmem:[%s1881_s9 + $0x28] sm:$0xff] (%p1697_p4) }
 0x1b6   : > { %1051 = vst [vmem:[%s2079_s17] sm:$0xff] (%p1697_p4), %v1050_v37  ;;  %v1062_v41 = vld [vmem:[%s1881_s9 + $0x30] sm:$0xff] (%p1697_p4)  ;;  %v1064_v42 = vld [vmem:[%s1881_s9 + $0x38] sm:$0xff] (%p1697_p4)  ;;  %v1066_v43 = vld [vmem:[%s1881_s9 + $0x40] sm:$0xff] (%p1697_p4) }
 0x1b7   : > { %1053 = vst [vmem:[%s2079_s17 + $0x8] sm:$0xff] (%p1697_p4), %v1052_v38  ;;  %v1068_v44 = vld [vmem:[%s1881_s9 + $0x48] sm:$0xff] (%p1697_p4)  ;;  %v1070_v34 = vld [vmem:[%s1881_s9 + $0x50] sm:$0xff] (%p1697_p4)  ;;  %v1072_v45 = vld [vmem:[%s1881_s9 + $0x58] sm:$0xff] (%p1697_p4) }
 0x1b8   : > { %1055 = vst [vmem:[%s2079_s17 + $0x10] sm:$0xff] (%p1697_p4), %v1054_v39  ;;  %v1074_v46 = vld [vmem:[%s1881_s9 + $0x60] sm:$0xff] (%p1697_p4)  ;;  %v1076_v47 = vld [vmem:[%s1881_s9 + $0x68] sm:$0xff] (%p1697_p4)  ;;  %v1078_v48 = vld [vmem:[%s1881_s9 + $0x70] sm:$0xff] (%p1697_p4) }
 0x1b9   : > { %1057 = vst [vmem:[%s2079_s17 + $0x18] sm:$0xff] %v1056_v40  ;;  %v1080_v49 = vld [vmem:[%s1881_s9 + $0x78] sm:$0xff]  ;;  %v1082_v50 = vld [vmem:[%s1881_s9 + $0x80] sm:$0xff]  ;;  %v1084_v51 = vld [vmem:[%s1881_s9 + $0x88] sm:$0xff] }
 0x1ba   : > { %1059 = vst [vmem:[%s2079_s17 + $0x20] sm:$0xff] %v1058_v28  ;;  %v1086_v52 = vld [vmem:[%s1881_s9 + $0x90] sm:$0xff]  ;;  %v1088_v53 = vld [vmem:[%s1881_s9 + $0x98] sm:$0xff]  ;;  %v1090_v54 = vld [vmem:[%s1881_s9 + $0xa0] sm:$0xff] }
 0x1bb   : > { %1061 = vst [vmem:[%s2079_s17 + $0x28] sm:$0xff] %v1060_v30  ;;  %v1092_v55 = vld [vmem:[%s1881_s9 + $0xa8] sm:$0xff]  ;;  %v1094_v56 = vld [vmem:[%s1881_s9 + $0xb0] sm:$0xff]  ;;  %v1096_v57 = vld [vmem:[%s1881_s9 + $0xb8] sm:$0xff] }
 0x1bc   : > { %1063 = vst [vmem:[%s2079_s17 + $0x30] sm:$0xff] %v1062_v41  ;;  %v1098_v58 = vld [vmem:[%s1881_s9 + $0xc0] sm:$0xff]  ;;  %v1100_v59 = vld [vmem:[%s1881_s9 + $0xc8] sm:$0xff]  ;;  %v1102_v60 = vld [vmem:[%s1881_s9 + $0xd0] sm:$0xff] }
 0x1bd   : > { %1065 = vst [vmem:[%s2079_s17 + $0x38] sm:$0xff] %v1064_v42  ;;  %v1104_v61 = vld [vmem:[%s1881_s9 + $0xd8] sm:$0xff]  ;;  %v1106_v62 = vld [vmem:[%s1881_s9 + $0xe0] sm:$0xff]  ;;  %v1108_v63 = vld [vmem:[%s1881_s9 + $0xe8] sm:$0xff] }
 0x1be   : > { %1067 = vst [vmem:[%s2079_s17 + $0x40] sm:$0xff] %v1066_v43  ;;  %v1110_v0 = vld [vmem:[%s1881_s9 + $0xf0] sm:$0xff]  ;;  %v1112_v1 = vld [vmem:[%s1881_s9 + $0xf8] sm:$0xff] }
 0x1bf   : > { %1069 = vst [vmem:[%s2079_s17 + $0x48] sm:$0xff] %v1068_v44 }
 0x1c0   : > { %1071 = vst [vmem:[%s2079_s17 + $0x50] sm:$0xff] %v1070_v34 }
 0x1c1   : > { %1073 = vst [vmem:[%s2079_s17 + $0x58] sm:$0xff] %v1072_v45 }
 0x1c2   : > { %1075 = vst [vmem:[%s2079_s17 + $0x60] sm:$0xff] %v1074_v46 }
 0x1c3   : > { %1077 = vst [vmem:[%s2079_s17 + $0x68] sm:$0xff] %v1076_v47 }
 0x1c4   : > { %1079 = vst [vmem:[%s2079_s17 + $0x70] sm:$0xff] %v1078_v48 }
 0x1c5   : > { %1081 = vst [vmem:[%s2079_s17 + $0x78] sm:$0xff] %v1080_v49 }
 0x1c6   : > { %1083 = vst [vmem:[%s2079_s17 + $0x100] sm:$0xff] %v1082_v50 }
 0x1c7   : > { %1085 = vst [vmem:[%s2079_s17 + $0x108] sm:$0xff] %v1084_v51 }
 0x1c8   : > { %1087 = vst [vmem:[%s2079_s17 + $0x110] sm:$0xff] %v1086_v52 }
 0x1c9   : > { %1089 = vst [vmem:[%s2079_s17 + $0x118] sm:$0xff] %v1088_v53 }
 0x1ca   : > { %1091 = vst [vmem:[%s2079_s17 + $0x120] sm:$0xff] %v1090_v54 }
 0x1cb   : > { %1093 = vst [vmem:[%s2079_s17 + $0x128] sm:$0xff] %v1092_v55 }
 0x1cc   : > { %1095 = vst [vmem:[%s2079_s17 + $0x130] sm:$0xff] %v1094_v56 }
 0x1cd   : > { %1097 = vst [vmem:[%s2079_s17 + $0x138] sm:$0xff] %v1096_v57 }
 0x1ce   : > { %1099 = vst [vmem:[%s2079_s17 + $0x140] sm:$0xff] %v1098_v58 }
 0x1cf   : > { %1101 = vst [vmem:[%s2079_s17 + $0x148] sm:$0xff] %v1100_v59 }
 0x1d0   : > { %1103 = vst [vmem:[%s2079_s17 + $0x150] sm:$0xff] %v1102_v60 }
 0x1d1   : > { %1105 = vst [vmem:[%s2079_s17 + $0x158] sm:$0xff] %v1104_v61 }
 0x1d2   : > { %1107 = vst [vmem:[%s2079_s17 + $0x160] sm:$0xff] %v1106_v62 }
 0x1d3   : > { %1109 = vst [vmem:[%s2079_s17 + $0x168] sm:$0xff] %v1108_v63 }
 0x1d4   : > { %1111 = vst [vmem:[%s2079_s17 + $0x170] sm:$0xff] %v1110_v0 }
 0x1d5   : > { %1113 = vst [vmem:[%s2079_s17 + $0x178] sm:$0xff] %v1112_v1 }
 0x1d6 PF: > { %1119 = sbr.rel (!%p1697_p4) target bundleno = 504 (0x1f8), region = 119  ;;  %s1487_s18 = sshll.u32 (%p1697_p4), %s1685_s24, 7  ;;  %v1213_v2 = vld [vmem:[%s1886_s21] sm:$0xff] (%p1697_p4)  ;;  %v1215_v3 = vld [vmem:[%s1886_s21 + $0x8] sm:$0xff] (%p1697_p4)  ;;  %v1217_v4 = vld [vmem:[%s1886_s21 + $0x10] sm:$0xff] (%p1697_p4) }
 0x1d7   : > { %s2151_s23 = scalar_lea.vmem (%p1697_p4), %s2231_s6, %s1487_s18  ;;  %v1219_v5 = vld [vmem:[%s1886_s21 + $0x18] sm:$0xff] (%p1697_p4)  ;;  %v1221_v6 = vld [vmem:[%s1886_s21 + $0x20] sm:$0xff] (%p1697_p4)  ;;  %v1223_v7 = vld [vmem:[%s1886_s21 + $0x28] sm:$0xff] (%p1697_p4) }
 0x1d8   : > { %1214 = vst [vmem:[%s2151_s23] sm:$0xff] (%p1697_p4), %v1213_v2  ;;  %v1225_v8 = vld [vmem:[%s1886_s21 + $0x30] sm:$0xff] (%p1697_p4)  ;;  %v1227_v9 = vld [vmem:[%s1886_s21 + $0x38] sm:$0xff] (%p1697_p4)  ;;  %v1229_v10 = vld [vmem:[%s1886_s21 + $0x40] sm:$0xff] (%p1697_p4) }
 0x1d9   : > { %1216 = vst [vmem:[%s2151_s23 + $0x8] sm:$0xff] (%p1697_p4), %v1215_v3  ;;  %v1231_v11 = vld [vmem:[%s1886_s21 + $0x48] sm:$0xff] (%p1697_p4)  ;;  %v1233_v12 = vld [vmem:[%s1886_s21 + $0x50] sm:$0xff] (%p1697_p4)  ;;  %v1235_v13 = vld [vmem:[%s1886_s21 + $0x58] sm:$0xff] (%p1697_p4) }
 0x1da   : > { %1218 = vst [vmem:[%s2151_s23 + $0x10] sm:$0xff] (%p1697_p4), %v1217_v4  ;;  %v1237_v14 = vld [vmem:[%s1886_s21 + $0x60] sm:$0xff] (%p1697_p4)  ;;  %v1239_v15 = vld [vmem:[%s1886_s21 + $0x68] sm:$0xff] (%p1697_p4)  ;;  %v1241_v16 = vld [vmem:[%s1886_s21 + $0x70] sm:$0xff] (%p1697_p4) }
 0x1db   : > { %1220 = vst [vmem:[%s2151_s23 + $0x18] sm:$0xff] %v1219_v5  ;;  %v1243_v17 = vld [vmem:[%s1886_s21 + $0x78] sm:$0xff]  ;;  %v1245_v18 = vld [vmem:[%s1886_s21 + $0x80] sm:$0xff]  ;;  %v1247_v19 = vld [vmem:[%s1886_s21 + $0x88] sm:$0xff] }
 0x1dc   : > { %1222 = vst [vmem:[%s2151_s23 + $0x20] sm:$0xff] %v1221_v6  ;;  %v1249_v20 = vld [vmem:[%s1886_s21 + $0x90] sm:$0xff]  ;;  %v1251_v21 = vld [vmem:[%s1886_s21 + $0x98] sm:$0xff]  ;;  %v1253_v22 = vld [vmem:[%s1886_s21 + $0xa0] sm:$0xff] }
 0x1dd   : > { %1224 = vst [vmem:[%s2151_s23 + $0x28] sm:$0xff] %v1223_v7  ;;  %v1255_v23 = vld [vmem:[%s1886_s21 + $0xa8] sm:$0xff]  ;;  %v1257_v24 = vld [vmem:[%s1886_s21 + $0xb0] sm:$0xff]  ;;  %v1259_v25 = vld [vmem:[%s1886_s21 + $0xb8] sm:$0xff] }
 0x1de   : > { %1226 = vst [vmem:[%s2151_s23 + $0x30] sm:$0xff] %v1225_v8  ;;  %v1261_v29 = vld [vmem:[%s1886_s21 + $0xc0] sm:$0xff]  ;;  %v1263_v31 = vld [vmem:[%s1886_s21 + $0xc8] sm:$0xff]  ;;  %v1265_v32 = vld [vmem:[%s1886_s21 + $0xd0] sm:$0xff] }
 0x1df   : > { %1228 = vst [vmem:[%s2151_s23 + $0x38] sm:$0xff] %v1227_v9  ;;  %v1267_v33 = vld [vmem:[%s1886_s21 + $0xd8] sm:$0xff]  ;;  %v1269_v35 = vld [vmem:[%s1886_s21 + $0xe0] sm:$0xff]  ;;  %v1271_v36 = vld [vmem:[%s1886_s21 + $0xe8] sm:$0xff] }
 0x1e0   : > { %1230 = vst [vmem:[%s2151_s23 + $0x40] sm:$0xff] %v1229_v10  ;;  %v1273_v27 = vld [vmem:[%s1886_s21 + $0xf0] sm:$0xff]  ;;  %v1275_v26 = vld [vmem:[%s1886_s21 + $0xf8] sm:$0xff] }
 0x1e1   : > { %1232 = vst [vmem:[%s2151_s23 + $0x48] sm:$0xff] %v1231_v11 }
 0x1e2   : > { %1234 = vst [vmem:[%s2151_s23 + $0x50] sm:$0xff] %v1233_v12 }
 0x1e3   : > { %1236 = vst [vmem:[%s2151_s23 + $0x58] sm:$0xff] %v1235_v13 }
 0x1e4   : > { %1238 = vst [vmem:[%s2151_s23 + $0x60] sm:$0xff] %v1237_v14 }
 0x1e5   : > { %1240 = vst [vmem:[%s2151_s23 + $0x68] sm:$0xff] %v1239_v15 }
 0x1e6   : > { %1242 = vst [vmem:[%s2151_s23 + $0x70] sm:$0xff] %v1241_v16 }
 0x1e7   : > { %1244 = vst [vmem:[%s2151_s23 + $0x78] sm:$0xff] %v1243_v17 }
 0x1e8   : > { %1246 = vst [vmem:[%s2151_s23 + $0x100] sm:$0xff] %v1245_v18 }
 0x1e9   : > { %1248 = vst [vmem:[%s2151_s23 + $0x108] sm:$0xff] %v1247_v19 }
 0x1ea   : > { %1250 = vst [vmem:[%s2151_s23 + $0x110] sm:$0xff] %v1249_v20 }
 0x1eb   : > { %1252 = vst [vmem:[%s2151_s23 + $0x118] sm:$0xff] %v1251_v21 }
 0x1ec   : > { %1254 = vst [vmem:[%s2151_s23 + $0x120] sm:$0xff] %v1253_v22 }
 0x1ed   : > { %1256 = vst [vmem:[%s2151_s23 + $0x128] sm:$0xff] %v1255_v23 }
 0x1ee   : > { %1258 = vst [vmem:[%s2151_s23 + $0x130] sm:$0xff] %v1257_v24 }
 0x1ef   : > { %1260 = vst [vmem:[%s2151_s23 + $0x138] sm:$0xff] %v1259_v25 }
 0x1f0   : > { %1262 = vst [vmem:[%s2151_s23 + $0x140] sm:$0xff] %v1261_v29 }
 0x1f1   : > { %1264 = vst [vmem:[%s2151_s23 + $0x148] sm:$0xff] %v1263_v31 }
 0x1f2   : > { %1266 = vst [vmem:[%s2151_s23 + $0x150] sm:$0xff] %v1265_v32 }
 0x1f3   : > { %1268 = vst [vmem:[%s2151_s23 + $0x158] sm:$0xff] %v1267_v33 }
 0x1f4   : > { %1270 = vst [vmem:[%s2151_s23 + $0x160] sm:$0xff] %v1269_v35 }
 0x1f5   : > { %1272 = vst [vmem:[%s2151_s23 + $0x168] sm:$0xff] %v1271_v36 }
 0x1f6   : > { %1274 = vst [vmem:[%s2151_s23 + $0x170] sm:$0xff] %v1273_v27 }
 0x1f7   : > { %1276 = vst [vmem:[%s2151_s23 + $0x178] sm:$0xff] %v1275_v26 }
 0x1f8 PF: > { %p14_p8 = scmp.ge.s32.totalorder %s1687_s25, 4   ;;  %s2233_s21 = smov %s1631_s22 }
 0x1f9   : > { %s2234_s22 = smov %s1695_s28  ;;  %s2235_s23 = smov %s1687_s25 }
 0x1fa   :  { %16 = sbr.rel (!%p14_p8) target bundleno = 2 (0x2), region = 213 }

// kernel: gat_forward.6
= control target key start
LH: loop header
LB: loop body
LE: loop exit
PB: predicated region body
PF: predicated region fallthrough
CT: control target
= control target key end

     0   :  { %s1065_s21 = smov 0   ;;  %s1295_s0 = inlined_call_operand.vmem [shape: f32[256,256], index: 0, kind: input, shape index: {}]   ;;  %s1296_s1 = inlined_call_operand.vmem [shape: bf16[1,256,128], index: 1, kind: input, shape index: {}]   ;;  %s1297_s2 = inlined_call_operand.vmem [shape: f32[1,1,128], index: 2, kind: input, shape index: {}]   ;;  %s1298_s3 = inlined_call_operand.vmem [shape: f32[1,1,128], index: 3, kind: input, shape index: {}]   ;;  %s1299_s4 = inlined_call_operand.vmem [shape: bf16[1,256,128], index: 4, kind: output, shape index: {0}]   ;;  %s1300_s5 = inlined_call_operand.vmem [shape: f32[1,256,1], index: 5, kind: output, shape index: {1}]   ;;  %s1301_s6 = inlined_call_operand.vmem [shape: f32[1,256,1], index: 6, kind: output, shape index: {2}]  }
   0x1 LB: > { %s852_s22 = sadd.s32 4294967295, %s1028_s21   ;;  %p856_p0 = scmp.ge.s32.totalorder %s1028_s21, 1  ;;  %s1028_s21 = sphi %s1065_s21, %s17_s21  }
   0x2   : > { %p219_p1 = scmp.lt.s32.totalorder %s1028_s21, 3 }
   0x4   : > { %p220_p2 = pnand %p856_p0, %p219_p1 }
   0x5   : > { %s857_s11 = sshll.u32 (!%p220_p2), %s852_s22, 4 }
   0x6   : > { %223 = sbr.rel (%p220_p2) target bundleno = 377 (0x179), region = 36  ;;  %p261_p3 = scmp.lt.s32.totalorder (!%p220_p2), %s857_s11, 31 }
   0xb   : > { %v940_v0 = vld [vmem:[%s1296_s1 + $0x38] sm:$0xff]  ;;  %v939_v2 = vld [vmem:[%s1296_s1 + $0x30] sm:$0xff]  ;;  %v938_v4 = vld [vmem:[%s1296_s1 + $0x28] sm:$0xff]  ;;  %s1303_s11 = smov (!%p261_p3, %s857_s11), 31  ;;  %vm611_vm0 = vcmask 7168  }
   0xc   : > { %v948_v1 = vld [vmem:[%s1296_s1 + $0x78] sm:$0xff]  ;;  %461 = vmatpush.bf16.msra.mxu0 %v940_v0  ;;  %996 = vmatpush.bf16.msra.mxu2 %v940_v0  ;;  %v947_v3 = vld [vmem:[%s1296_s1 + $0x70] sm:$0xff]  ;;  %v946_v5 = vld [vmem:[%s1296_s1 + $0x68] sm:$0xff]  ;;  %s932_s25 = sshll.u32 %s1303_s11, 4  ;;  %s861_s18 = sshll.u32 %s1303_s11, 2 }
   0xd   : > { %510 = vmatpush.bf16.msra.mxu1 %v948_v1  ;;  %1004 = vmatpush.bf16.msra.mxu3 %v948_v1  ;;  %v937_v6 = vld [vmem:[%s1296_s1 + $0x20] sm:$0xff]  ;;  %v936_v8 = vld [vmem:[%s1296_s1 + $0x18] sm:$0xff]  ;;  %v935_v10 = vld [vmem:[%s1296_s1 + $0x10] sm:$0xff]  ;;  %s1118_s30 = scalar_lea.vmem %s1295_s0, %s932_s25  ;;  %s1178_s22 = scalar_lea.vmem %s1299_s4, %s861_s18 }
   0xe   : > { %v945_v7 = vld [vmem:[%s1296_s1 + $0x60] sm:$0xff]  ;;  %v944_v9 = vld [vmem:[%s1296_s1 + $0x58] sm:$0xff]  ;;  %v943_v11 = vld [vmem:[%s1296_s1 + $0x50] sm:$0xff]  ;;  %s863_s23 = sshll.u32 %s1303_s11, 3 }
   0xf   : > { %v934_v12 = vld [vmem:[%s1296_s1 + $0x8] sm:$0xff]  ;;  %v933_v14 = vld [vmem:[%s1296_s1] sm:$0xff]  ;;  %v287_v17 = vld [vmem:[%s1118_s30 + $0x10] sm:$0xff]  ;;  %s1221_s26 = scalar_lea.vmem %s1300_s5, %s863_s23  ;;  %s1226_s29 = scalar_lea.vmem %s1301_s6, %s863_s23 }
  0x10   : > { %462 = vmatpush.bf16.msra.mxu0 %v939_v2  ;;  %997 = vmatpush.bf16.msra.mxu2 %v939_v2  ;;  %v942_v13 = vld [vmem:[%s1296_s1 + $0x48] sm:$0xff]  ;;  %v941_v15 = vld [vmem:[%s1296_s1 + $0x40] sm:$0xff]  ;;  %v303_v19 = vld [vmem:[%s1118_s30 + $0x90] sm:$0xff] }
  0x11   : > { %511 = vmatpush.bf16.msra.mxu1 %v947_v3  ;;  %1005 = vmatpush.bf16.msra.mxu3 %v947_v3  ;;  %v285_v16 = vld [vmem:[%s1118_s30] sm:$0xff]  ;;  %v286_v20 = vld [vmem:[%s1118_s30 + $0x8] sm:$0xff]  ;;  %v288_v21 = vld [vmem:[%s1118_s30 + $0x18] sm:$0xff] }
  0x12   : > { %v301_v18 = vld [vmem:[%s1118_s30 + $0x80] sm:$0xff]  ;;  %v302_v22 = vld [vmem:[%s1118_s30 + $0x88] sm:$0xff]  ;;  %v304_v23 = vld [vmem:[%s1118_s30 + $0x98] sm:$0xff]  ;;  %v317_v24 = vpack.c.bf16 %v287_v17, %v285_v16  ;;  %v318_v26 = vpack.c.bf16 %v288_v21, %v286_v20 }
  0x13   : > { %v325_v25 = vpack.c.bf16 %v303_v19, %v301_v18  ;;  %v326_v27 = vpack.c.bf16 %v304_v23, %v302_v22  ;;  %v289_v28 = vld [vmem:[%s1118_s30 + $0x20] sm:$0xff]  ;;  %v291_v29 = vld [vmem:[%s1118_s30 + $0x30] sm:$0xff]  ;;  %v290_v32 = vld [vmem:[%s1118_s30 + $0x28] sm:$0xff] }
  0x14   : > { %463 = vmatpush.bf16.msra.mxu0 %v938_v4  ;;  %998 = vmatpush.bf16.msra.mxu2 %v938_v4  ;;  %v305_v30 = vld [vmem:[%s1118_s30 + $0xa0] sm:$0xff]  ;;  %v307_v31 = vld [vmem:[%s1118_s30 + $0xb0] sm:$0xff]  ;;  %v292_v33 = vld [vmem:[%s1118_s30 + $0x38] sm:$0xff]  ;;  %v319_v36 = vpack.c.bf16 %v291_v29, %v289_v28 }
  0x15   : > { %512 = vmatpush.bf16.msra.mxu1 %v946_v5  ;;  %1006 = vmatpush.bf16.msra.mxu3 %v946_v5  ;;  %v306_v34 = vld [vmem:[%s1118_s30 + $0xa8] sm:$0xff]  ;;  %v308_v35 = vld [vmem:[%s1118_s30 + $0xb8] sm:$0xff]  ;;  %v327_v37 = vpack.c.bf16 %v307_v31, %v305_v30  ;;  %v320_v38 = vpack.c.bf16 %v292_v33, %v290_v32  ;;  %v293_v40 = vld [vmem:[%s1118_s30 + $0x40] sm:$0xff] }
  0x16   : > { %v328_v39 = vpack.c.bf16 %v308_v35, %v306_v34  ;;  %v295_v41 = vld [vmem:[%s1118_s30 + $0x50] sm:$0xff]  ;;  %v294_v42 = vld [vmem:[%s1118_s30 + $0x48] sm:$0xff]  ;;  %v309_v43 = vld [vmem:[%s1118_s30 + $0xc0] sm:$0xff] }
  0x17   : > { %v311_v44 = vld [vmem:[%s1118_s30 + $0xd0] sm:$0xff]  ;;  %v296_v45 = vld [vmem:[%s1118_s30 + $0x58] sm:$0xff]  ;;  %v310_v46 = vld [vmem:[%s1118_s30 + $0xc8] sm:$0xff]  ;;  %v321_v48 = vpack.c.bf16 %v295_v41, %v293_v40 }
  0x18   : > { %464 = vmatpush.bf16.msra.mxu0 %v937_v6  ;;  %999 = vmatpush.bf16.msra.mxu2 %v937_v6  ;;  %v312_v47 = vld [vmem:[%s1118_s30 + $0xd8] sm:$0xff]  ;;  %v329_v49 = vpack.c.bf16 %v311_v44, %v309_v43  ;;  %v322_v50 = vpack.c.bf16 %v296_v45, %v294_v42  ;;  %v313_v52 = vld [vmem:[%s1118_s30 + $0xe0] sm:$0xff]  ;;  %v315_v53 = vld [vmem:[%s1118_s30 + $0xf0] sm:$0xff] }
  0x19   : > { %513 = vmatpush.bf16.msra.mxu1 %v945_v7  ;;  %1007 = vmatpush.bf16.msra.mxu3 %v945_v7  ;;  %v330_v51 = vpack.c.bf16 %v312_v47, %v310_v46  ;;  %v314_v54 = vld [vmem:[%s1118_s30 + $0xe8] sm:$0xff]  ;;  %v297_v55 = vld [vmem:[%s1118_s30 + $0x60] sm:$0xff]  ;;  %v299_v56 = vld [vmem:[%s1118_s30 + $0x70] sm:$0xff]  ;;  %v331_v60 = vpack.c.bf16 %v315_v53, %v313_v52 }
  0x1a   : > { %v316_v57 = vld [vmem:[%s1118_s30 + $0xf8] sm:$0xff]  ;;  %v298_v58 = vld [vmem:[%s1118_s30 + $0x68] sm:$0xff]  ;;  %v323_v61 = vpack.c.bf16 %v299_v56, %v297_v55  ;;  %v1164_v1 = vld [vmem:[%s1297_s2] ss:$0 sm:$0xff] }
  0x1b   : > { %v300_v59 = vld [vmem:[%s1118_s30 + $0x78] sm:$0xff]  ;;  %v332_v62 = vpack.c.bf16 %v316_v57, %v314_v54  ;;  %v1169_v2 = vld [vmem:[%s1298_s3] ss:$0 sm:$0xff] }
  0x1c   : > { %465 = vmatpush.bf16.msra.mxu0 %v936_v8  ;;  %1000 = vmatpush.bf16.msra.mxu2 %v936_v8  ;;  %v324_v63 = vpack.c.bf16 %v300_v59, %v298_v58 }
  0x1d   : > { %514 = vmatpush.bf16.msra.mxu1 %v944_v9  ;;  %1008 = vmatpush.bf16.msra.mxu3 %v944_v9 }
  0x20   : > { %466 = vmatpush.bf16.msra.mxu0 %v935_v10  ;;  %1001 = vmatpush.bf16.msra.mxu2 %v935_v10 }
  0x21   : > { %515 = vmatpush.bf16.msra.mxu1 %v943_v11  ;;  %1009 = vmatpush.bf16.msra.mxu3 %v943_v11 }
  0x24   : > { %467 = vmatpush.bf16.msra.mxu0 %v934_v12  ;;  %1002 = vmatpush.bf16.msra.mxu2 %v934_v12 }
  0x25   : > { %516 = vmatpush.bf16.msra.mxu1 %v942_v13  ;;  %1010 = vmatpush.bf16.msra.mxu3 %v942_v13 }
  0x28   : > { %468 = vmatpush.bf16.msra.mxu0 %v933_v14  ;;  %1003 = vmatpush.bf16.msra.mxu2 %v933_v14 }
  0x29   : > { %517 = vmatpush.bf16.msra.mxu1 %v941_v15  ;;  %1011 = vmatpush.bf16.msra.mxu3 %v941_v15 }
  0x2b   : > { %469 = vmatmul.bf16.vlgmr.msra.gmra.mxu0 %v317_v24  ;;  %489 = vmatmul.bf16.vlgmr.msra.gmra.mxu2 %v325_v25 }
  0x2c   : > { %518 = vmatmul.bf16.vlgmr.msra.gmra.mxu1 %v318_v26  ;;  %538 = vmatmul.bf16.vlgmr.msra.gmra.mxu3 %v326_v27 }
  0x3b   : > { %474 = vmatmul.bf16.gmra.mxu0 %v319_v36  ;;  %494 = vmatmul.bf16.gmra.mxu2 %v327_v37 }
  0x3c   : > { %523 = vmatmul.bf16.gmra.mxu1 %v320_v38  ;;  %543 = vmatmul.bf16.gmra.mxu3 %v328_v39 }
  0x4b   : > { %479 = vmatmul.bf16.gmra.mxu0 %v321_v48  ;;  %499 = vmatmul.bf16.gmra.mxu2 %v329_v49 }
  0x4c   : > { %528 = vmatmul.bf16.gmra.mxu1 %v322_v50  ;;  %548 = vmatmul.bf16.gmra.mxu3 %v330_v51 }
  0x5b   : > { %504 = vmatmul.bf16.gmra.mxu2 %v331_v60  ;;  %484 = vmatmul.bf16.gmra.mxu0 %v323_v61 }
  0x5c   : > { %553 = vmatmul.bf16.gmra.mxu3 %v332_v62  ;;  %533 = vmatmul.bf16.gmra.mxu1 %v324_v63 }
  0xa8   : > { %v470_v0 = vpop.f32.mrf.mxu0 }
  0xa9   : > { %v519_v3 = vpop.f32.mrf.mxu1 }
  0xaa   : > { %v520_v4 = vadd.f32 %v519_v3, %v470_v0 }
  0xac   : > { %v563_v5 = vmul.f32 %v1164_v1, %v520_v4  ;;  %v632_v6 = vmul.f32 %v1169_v2, %v520_v4 }
  0xae   : > { %579 = vadd.xlane.f32.xlu0 %v563_v5  ;;  %v490_v7 = vpop.f32.mrf.mxu2  ;;  %648 = vadd.xlane.f32.xlu1 %v632_v6 }
  0xaf   : > { %v539_v8 = vpop.f32.mrf.mxu3 }
  0xb0   : > { %v540_v9 = vadd.f32 %v539_v8, %v490_v7  ;;  %v472_v10 = vpop.f32.mrf.mxu0 }
  0xb1   : > { %v521_v11 = vpop.f32.mrf.mxu1 }
  0xb2   : > { %v522_v12 = vadd.f32 %v521_v11, %v472_v10  ;;  %v571_v13 = vmul.f32 %v1164_v1, %v540_v9  ;;  %v640_v15 = vmul.f32 %v1169_v2, %v540_v9 }
  0xb4   : > { %v952_v14 = vpack.c.bf16 %v522_v12, %v520_v4  ;;  %595 = vadd.xlane.f32.xlu2 %v571_v13  ;;  %v633_v23 = vmul.f32 %v1169_v2, %v522_v12  ;;  %v564_v25 = vmul.f32 %v1164_v1, %v522_v12 }
  0xb6   : > { %953 = vst [vmem:[%s1178_s22] sm:$0xff] %v952_v14   ;;  %664 = vadd.xlane.f32.xlu0 %v640_v15  ;;  %v492_v16 = vpop.f32.mrf.mxu2 }
  0xb7   : > { %v541_v17 = vpop.f32.mrf.mxu3 }
  0xb8   : > { %v542_v18 = vadd.f32 %v541_v17, %v492_v16  ;;  %v475_v19 = vpop.f32.mrf.mxu0 }
  0xb9   : > { %v524_v20 = vpop.f32.mrf.mxu1 }
  0xba   : > { %v972_v21 = vpack.c.bf16 %v542_v18, %v540_v9  ;;  %v641_v22 = vmul.f32 %v1169_v2, %v542_v18  ;;  %v525_v24 = vadd.f32 %v524_v20, %v475_v19  ;;  %v572_v35 = vmul.f32 %v1164_v1, %v542_v18 }
  0xbc   : > { %992 = vst [vmem:[%s1178_s22 + $0x20] sm:$0xff] %v972_v21   ;;  %666 = vadd.xlane.f32.xlu1 %v641_v22  ;;  %650 = vadd.xlane.f32.xlu2 %v633_v23  ;;  %v565_v30 = vmul.f32 %v1164_v1, %v525_v24  ;;  %v634_v44 = vmul.f32 %v1169_v2, %v525_v24 }
  0xbe   : > { %581 = vadd.xlane.f32.xlu0 %v564_v25  ;;  %v495_v26 = vpop.f32.mrf.mxu2 }
  0xbf   : > { %v544_v27 = vpop.f32.mrf.mxu3 }
  0xc0   : > { %v545_v28 = vadd.f32 %v544_v27, %v495_v26  ;;  %v477_v29 = vpop.f32.mrf.mxu0 }
  0xc1   : > { %v526_v31 = vpop.f32.mrf.mxu1 }
  0xc2   : > { %v527_v32 = vadd.f32 %v526_v31, %v477_v29  ;;  %v642_v33 = vmul.f32 %v1169_v2, %v545_v28  ;;  %v573_v39 = vmul.f32 %v1164_v1, %v545_v28 }
  0xc4   : > { %v957_v34 = vpack.c.bf16 %v527_v32, %v525_v24  ;;  %668 = vadd.xlane.f32.xlu2 %v642_v33  ;;  %583 = vadd.xlane.f32.xlu1 %v565_v30  ;;  %v566_v51 = vmul.f32 %v1164_v1, %v527_v32  ;;  %v635_v62 = vmul.f32 %v1169_v2, %v527_v32 }
  0xc6   : > { %989 = vst [vmem:[%s1178_s22 + $0x8] sm:$0xff] %v957_v34   ;;  %597 = vadd.xlane.f32.xlu0 %v572_v35  ;;  %v497_v36 = vpop.f32.mrf.mxu2 }
  0xc7   : > { %v546_v37 = vpop.f32.mrf.mxu3 }
  0xc8   : > { %v547_v38 = vadd.f32 %v546_v37, %v497_v36  ;;  %v480_v40 = vpop.f32.mrf.mxu0 }
  0xc9   : > { %v529_v41 = vpop.f32.mrf.mxu1 }
  0xca   : > { %v977_v42 = vpack.c.bf16 %v547_v38, %v545_v28  ;;  %v574_v43 = vmul.f32 %v1164_v1, %v547_v38  ;;  %v530_v45 = vadd.f32 %v529_v41, %v480_v40  ;;  %v643_v53 = vmul.f32 %v1169_v2, %v547_v38 }
  0xcc   : > { %993 = vst [vmem:[%s1178_s22 + $0x28] sm:$0xff] %v977_v42   ;;  %601 = vadd.xlane.f32.xlu2 %v574_v43  ;;  %599 = vadd.xlane.f32.xlu1 %v573_v39  ;;  %v567_v48 = vmul.f32 %v1164_v1, %v530_v45  ;;  %v636_v58 = vmul.f32 %v1169_v2, %v530_v45 }
  0xce   : > { %652 = vadd.xlane.f32.xlu0 %v634_v44  ;;  %v500_v46 = vpop.f32.mrf.mxu2 }
  0xcf   : > { %v549_v47 = vpop.f32.mrf.mxu3 }
  0xd0   : > { %v482_v49 = vpop.f32.mrf.mxu0  ;;  %v550_v55 = vadd.f32 %v549_v47, %v500_v46 }
  0xd1   : > { %v531_v50 = vpop.f32.mrf.mxu1 }
  0xd2   : > { %v532_v52 = vadd.f32 %v531_v50, %v482_v49  ;;  %v575_v63 = vmul.f32 %v1164_v1, %v550_v55  ;;  %v644_v5 = vmul.f32 %v1169_v2, %v550_v55 }
  0xd4   : > { %585 = vadd.xlane.f32.xlu1 %v566_v51  ;;  %587 = vadd.xlane.f32.xlu2 %v567_v48  ;;  %v962_v54 = vpack.c.bf16 %v532_v52, %v530_v45  ;;  %v568_v8 = vmul.f32 %v1164_v1, %v532_v52  ;;  %v637_v11 = vmul.f32 %v1169_v2, %v532_v52 }
  0xd6   : > { %670 = vadd.xlane.f32.xlu0 %v643_v53  ;;  %990 = vst [vmem:[%s1178_s22 + $0x10] sm:$0xff] %v962_v54   ;;  %v502_v56 = vpop.f32.mrf.mxu2 }
  0xd7   : > { %v551_v57 = vpop.f32.mrf.mxu3 }
  0xd8   : > { %v552_v59 = vadd.f32 %v551_v57, %v502_v56  ;;  %v485_v60 = vpop.f32.mrf.mxu0 }
  0xd9   : > { %v534_v61 = vpop.f32.mrf.mxu1 }
  0xda   : > { %v982_v0 = vpack.c.bf16 %v552_v59, %v550_v55  ;;  %v535_v9 = vadd.f32 %v534_v61, %v485_v60  ;;  %v576_v18 = vmul.f32 %v1164_v1, %v552_v59  ;;  %v645_v24 = vmul.f32 %v1169_v2, %v552_v59 }
  0xdc   : > { %654 = vadd.xlane.f32.xlu1 %v635_v62  ;;  %656 = vadd.xlane.f32.xlu2 %v636_v58  ;;  %994 = vst [vmem:[%s1178_s22 + $0x30] sm:$0xff] %v982_v0   ;;  %v569_v19 = vmul.f32 %v1164_v1, %v535_v9  ;;  %v638_v21 = vmul.f32 %v1169_v2, %v535_v9 }
  0xde   : > { %603 = vadd.xlane.f32.xlu0 %v575_v63  ;;  %v505_v3 = vpop.f32.mrf.mxu2 }
  0xdf   : > { %v554_v4 = vpop.f32.mrf.mxu3 }
  0xe0   : > { %v487_v6 = vpop.f32.mrf.mxu0  ;;  %v555_v12 = vadd.f32 %v554_v4, %v505_v3 }
  0xe1   : > { %v536_v7 = vpop.f32.mrf.mxu1 }
  0xe2   : > { %v537_v10 = vadd.f32 %v536_v7, %v487_v6  ;;  %v577_v16 = vmul.f32 %v1164_v1, %v555_v12  ;;  %v646_v26 = vmul.f32 %v1169_v2, %v555_v12 }
  0xe4   : > { %672 = vadd.xlane.f32.xlu1 %v644_v5  ;;  %589 = vadd.xlane.f32.xlu2 %v568_v8  ;;  %v967_v13 = vpack.c.bf16 %v537_v10, %v535_v9  ;;  %v639_v22 = vmul.f32 %v1169_v2, %v537_v10  ;;  %v570_v25 = vmul.f32 %v1164_v1, %v537_v10 }
  0xe6   : > { %658 = vadd.xlane.f32.xlu0 %v637_v11  ;;  %v507_v14 = vpop.f32.mrf.mxu2  ;;  %991 = vst [vmem:[%s1178_s22 + $0x18] sm:$0xff] %v967_v13  }
  0xe7   : > { %v556_v15 = vpop.f32.mrf.mxu3 }
  0xe8   : > { %v557_v17 = vadd.f32 %v556_v15, %v507_v14 }
  0xea   : > { %v987_v20 = vpack.c.bf16 %v557_v17, %v555_v12  ;;  %v578_v23 = vmul.f32 %v1164_v1, %v557_v17  ;;  %v647_v27 = vmul.f32 %v1169_v2, %v557_v17 }
  0xec   : > { %605 = vadd.xlane.f32.xlu1 %v576_v18  ;;  %607 = vadd.xlane.f32.xlu2 %v577_v16  ;;  %995 = vst [vmem:[%s1178_s22 + $0x38] sm:$0xff] %v987_v20  }
  0xee   : > { %591 = vadd.xlane.f32.xlu0 %v569_v19 }
  0xf4   : > { %660 = vadd.xlane.f32.xlu1 %v638_v21  ;;  %662 = vadd.xlane.f32.xlu2 %v639_v22 }
  0xf6   : > { %609 = vadd.xlane.f32.xlu0 %v578_v23 }
  0xfc   : > { %674 = vadd.xlane.f32.xlu2 %v645_v24  ;;  %593 = vadd.xlane.f32.xlu1 %v570_v25 }
  0xfe   : > { %676 = vadd.xlane.f32.xlu0 %v646_v26 }
 0x104   : > { %678 = vadd.xlane.f32.xlu1 %v647_v27 }
 0x121   : > { %v580_v1 = vpop.xlane.xlu0 %579  ;;  %v649_v2 = vpop.xlane.xlu1 %648 }
 0x122   : > { %612 = vst.msk [vmem:[%s1221_s26] sm:$0xff] %vm611_vm0, %v580_v1 }
 0x123   : > { %680 = vst.msk [vmem:[%s1226_s29] sm:$0xff] %vm611_vm0, %v649_v2 }
 0x127   : > { %v596_v28 = vpop.xlane.xlu2 %595 }
 0x128   : > { %620 = vst.msk [vmem:[%s1221_s26 + $0x40] sm:$0xff] %vm611_vm0, %v596_v28 }
 0x129   : > { %v665_v29 = vpop.xlane.xlu0 %664 }
 0x12a   : > { %688 = vst.msk [vmem:[%s1226_s29 + $0x40] sm:$0xff] %vm611_vm0, %v665_v29 }
 0x12f   : > { %v667_v30 = vpop.xlane.xlu1 %666  ;;  %v651_v31 = vpop.xlane.xlu2 %650 }
 0x130   : > { %689 = vst.msk [vmem:[%s1226_s29 + $0x48] sm:$0xff] %vm611_vm0, %v667_v30 }
 0x131   : > { %681 = vst.msk [vmem:[%s1226_s29 + $0x8] sm:$0xff] %vm611_vm0, %v651_v31  ;;  %v582_v32 = vpop.xlane.xlu0 %581 }
 0x132   : > { %613 = vst.msk [vmem:[%s1221_s26 + $0x8] sm:$0xff] %vm611_vm0, %v582_v32 }
 0x137   : > { %v669_v33 = vpop.xlane.xlu2 %668  ;;  %v584_v34 = vpop.xlane.xlu1 %583 }
 0x138   : > { %690 = vst.msk [vmem:[%s1226_s29 + $0x50] sm:$0xff] %vm611_vm0, %v669_v33 }
 0x139   : > { %614 = vst.msk [vmem:[%s1221_s26 + $0x10] sm:$0xff] %vm611_vm0, %v584_v34  ;;  %v598_v35 = vpop.xlane.xlu0 %597 }
 0x13a   : > { %621 = vst.msk [vmem:[%s1221_s26 + $0x48] sm:$0xff] %vm611_vm0, %v598_v35 }
 0x13f   : > { %v602_v36 = vpop.xlane.xlu2 %601  ;;  %v600_v37 = vpop.xlane.xlu1 %599 }
 0x140   : > { %623 = vst.msk [vmem:[%s1221_s26 + $0x58] sm:$0xff] %vm611_vm0, %v602_v36 }
 0x141   : > { %622 = vst.msk [vmem:[%s1221_s26 + $0x50] sm:$0xff] %vm611_vm0, %v600_v37  ;;  %v653_v38 = vpop.xlane.xlu0 %652 }
 0x142   : > { %682 = vst.msk [vmem:[%s1226_s29 + $0x10] sm:$0xff] %vm611_vm0, %v653_v38 }
 0x147   : > { %v586_v39 = vpop.xlane.xlu1 %585  ;;  %v588_v40 = vpop.xlane.xlu2 %587 }
 0x148   : > { %615 = vst.msk [vmem:[%s1221_s26 + $0x18] sm:$0xff] %vm611_vm0, %v586_v39 }
 0x149   : > { %616 = vst.msk [vmem:[%s1221_s26 + $0x20] sm:$0xff] %vm611_vm0, %v588_v40  ;;  %v671_v41 = vpop.xlane.xlu0 %670 }
 0x14a   : > { %691 = vst.msk [vmem:[%s1226_s29 + $0x58] sm:$0xff] %vm611_vm0, %v671_v41 }
 0x14f   : > { %v655_v42 = vpop.xlane.xlu1 %654  ;;  %v657_v43 = vpop.xlane.xlu2 %656 }
 0x150   : > { %683 = vst.msk [vmem:[%s1226_s29 + $0x18] sm:$0xff] %vm611_vm0, %v655_v42 }
 0x151   : > { %684 = vst.msk [vmem:[%s1226_s29 + $0x20] sm:$0xff] %vm611_vm0, %v657_v43  ;;  %v604_v44 = vpop.xlane.xlu0 %603 }
 0x152   : > { %624 = vst.msk [vmem:[%s1221_s26 + $0x60] sm:$0xff] %vm611_vm0, %v604_v44 }
 0x157   : > { %v673_v45 = vpop.xlane.xlu1 %672  ;;  %v590_v46 = vpop.xlane.xlu2 %589 }
 0x158   : > { %692 = vst.msk [vmem:[%s1226_s29 + $0x60] sm:$0xff] %vm611_vm0, %v673_v45 }
 0x159   : > { %617 = vst.msk [vmem:[%s1221_s26 + $0x28] sm:$0xff] %vm611_vm0, %v590_v46  ;;  %v659_v47 = vpop.xlane.xlu0 %658 }
 0x15a   : > { %685 = vst.msk [vmem:[%s1226_s29 + $0x28] sm:$0xff] %vm611_vm0, %v659_v47 }
 0x15f   : > { %v606_v48 = vpop.xlane.xlu1 %605  ;;  %v608_v49 = vpop.xlane.xlu2 %607 }
 0x160   : > { %625 = vst.msk [vmem:[%s1221_s26 + $0x68] sm:$0xff] %vm611_vm0, %v606_v48 }
 0x161   : > { %626 = vst.msk [vmem:[%s1221_s26 + $0x70] sm:$0xff] %vm611_vm0, %v608_v49  ;;  %v592_v50 = vpop.xlane.xlu0 %591 }
 0x162   : > { %618 = vst.msk [vmem:[%s1221_s26 + $0x30] sm:$0xff] %vm611_vm0, %v592_v50 }
 0x167   : > { %v661_v51 = vpop.xlane.xlu1 %660  ;;  %v663_v52 = vpop.xlane.xlu2 %662 }
 0x168   : > { %686 = vst.msk [vmem:[%s1226_s29 + $0x30] sm:$0xff] %vm611_vm0, %v661_v51 }
 0x169   : > { %687 = vst.msk [vmem:[%s1226_s29 + $0x38] sm:$0xff] %vm611_vm0, %v663_v52  ;;  %v610_v53 = vpop.xlane.xlu0 %609 }
 0x16a   : > { %627 = vst.msk [vmem:[%s1221_s26 + $0x78] sm:$0xff] %vm611_vm0, %v610_v53 }
 0x16f   : > { %v675_v54 = vpop.xlane.xlu2 %674  ;;  %v594_v55 = vpop.xlane.xlu1 %593 }
 0x170   : > { %693 = vst.msk [vmem:[%s1226_s29 + $0x68] sm:$0xff] %vm611_vm0, %v675_v54 }
 0x171   : > { %619 = vst.msk [vmem:[%s1221_s26 + $0x38] sm:$0xff] %vm611_vm0, %v594_v55  ;;  %v677_v56 = vpop.xlane.xlu0 %676 }
 0x172   : > { %694 = vst.msk [vmem:[%s1226_s29 + $0x70] sm:$0xff] %vm611_vm0, %v677_v56 }
 0x177   : > { %v679_v57 = vpop.xlane.xlu1 %678 }
 0x178   : > { %695 = vst.msk [vmem:[%s1226_s29 + $0x78] sm:$0xff] %vm611_vm0, %v679_v57 }
 0x179 PF: > { %s17_s21 = sadd.s32 1, %s1028_s21  }
 0x17a   : > { %p14_p4 = scmp.ge.s32.totalorder %s17_s21, 4  }
 0x17c   :  { %16 = sbr.rel (!%p14_p4) target bundleno = 1 (0x1), region = 90 }

// kernel: gat_forward.7
= control target key start
LH: loop header
LB: loop body
LE: loop exit
PB: predicated region body
PF: predicated region fallthrough
CT: control target
= control target key end

     0   :  { %s2186_s15 = smov 0   ;;  %s2188_s16 = smov 0   ;;  %s3050_s0 = inlined_call_operand.vmem [shape: f32[1,256,1], index: 0, kind: input, shape index: {}]   ;;  %s3051_s1 = inlined_call_operand.vmem [shape: f32[1,1,256], index: 1, kind: input, shape index: {}]   ;;  %s3052_s2 = inlined_call_operand.vmem [shape: bf16[256,256], index: 2, kind: input, shape index: {}]   ;;  %s3053_s3 = inlined_call_operand.vmem [shape: bf16[1,256,128], index: 3, kind: input, shape index: {}]   ;;  %s3054_s4 = inlined_call_operand.vmem [shape: f32[256,128], index: 4, kind: output, shape index: {}]  }
   0x1   :  { %s2190_s17 = smov 0   ;;  %s2192_s18 = smov 0  }
   0x2   :  { %s2194_s19 = smov 0   ;;  %s2196_s20 = smov 0  }
   0x3   :  { %s2198_s21 = smov 0  }
   0x4 LB: > { %s23_s22 = sadd.s32 1, %s2147_s19  ;;  %s26_s23 = sadd.s32 1, %s2151_s20  ;;  %s2155_s21 = sphi %s2198_s21, %s14_s21   ;;  %s2151_s20 = sphi %s2196_s20, %s3127_s20   ;;  %s2147_s19 = sphi %s2194_s19, %s3126_s19   ;;  %s2143_s18 = sphi %s2192_s18, %s3125_s18   ;;  %s2139_s17 = sphi %s2190_s17, %s3124_s17   ;;  %s2135_s16 = sphi %s2188_s16, %s3123_s16   ;;  %s2131_s15 = sphi %s2186_s15, %s3122_s15  }
   0x5   : > { %p24_p0 = scmp.ge.s32.totalorder %s23_s22, 2  ;;  %p94_p1 = scmp.ne.s32.totalorder %s2135_s16, %s2131_s15 }
   0x6   : > { %p95_p2 = scmp.eq.s32.totalorder %s2155_s21, 0  ;;  %s87_s27 = sadd.s32 1, %s2135_s16 }
   0x7   : > { %s3129_s22 = smov (%p24_p0, %s23_s22), 0  ;;  %s3131_s23 = smov (!%p24_p0, %s26_s23), %s2151_s20 }
   0x8   : > { %p96_p3 = por %p95_p2, %p94_p1  ;;  %p28_p4 = scmp.ge.s32.totalorder %s3131_s23, 2 }
   0x9   : > { %s83_s24 = ssub.s32 %s2147_s19, %s3129_s22  ;;  %p1793_p6 = scmp.ge.s32.totalorder %s2155_s21, 4 }
   0xa   : > { %s3133_s23 = smov (%p28_p4, %s3131_s23), 0 }
   0xb   : > { %s82_s25 = ssub.s32 %s2151_s20, %s3133_s23  ;;  %172 = sbr.rel (%p1793_p6) target bundleno = 38 (0x26), region = 16 }
   0xc   : > { %s84_s26 = sor.u32 %s83_s24, %s82_s25 }
   0xd   : > { %p85_p5 = scmp.eq.s32.totalorder %s84_s26, 0 }
   0xf   : > { %s2237_s28 = scalar_select %p85_p5, %s2135_s16, %s87_s27  }
  0x10   : > { %190 = sbr.rel (!%p96_p3) target bundleno = 38 (0x26), region = 28  ;;  %s192_s29 = sand.u32 (%p96_p3), 1, %s2135_s16  }
  0x11   : > { %s1866_s30 = sshll.u32 (%p96_p3), %s2151_s20, 5  ;;  %s1794_s5 = sshll.u32 (%p96_p3), %s192_s29, 6 }
  0x12   : > { %s197_s6 = sadd.s32 (%p96_p3), %s2147_s19, %s1866_s30  ;;  %s194_s11 = scalar_lea.vmem (%p96_p3), [#allocation5], %s1794_s5 }
  0x13   : > { %s1797_s7 = sshll.u32 (%p96_p3), %s197_s6, 2 }
  0x14   : > { %s2246_s10 = scalar_lea.vmem (%p96_p3), %s3052_s2, %s1797_s7 }
  0x15   : > { %v216_v0 = vld [vmem:[%s2246_s10] sm:$0xf]  ;;  %v218_v1 = vld [vmem:[%s2246_s10 + $0x8] sm:$0xf]  ;;  %v220_v2 = vld [vmem:[%s2246_s10 + $0x10] sm:$0xf] }
  0x16   : > { %217 = vst [vmem:[%s194_s11] sm:$0xf] %v216_v0  ;;  %v222_v3 = vld [vmem:[%s2246_s10 + $0x18] sm:$0xf]  ;;  %v224_v4 = vld [vmem:[%s2246_s10 + $0x20] sm:$0xf] }
  0x17   : > { %219 = vst [vmem:[%s194_s11 + $0x4] sm:$0xf] %v218_v1  ;;  %v226_v5 = vld [vmem:[%s2246_s10 + $0x28] sm:$0xf]  ;;  %v228_v6 = vld [vmem:[%s2246_s10 + $0x30] sm:$0xf] }
  0x18   : > { %221 = vst [vmem:[%s194_s11 + $0x8] sm:$0xf] %v220_v2  ;;  %v230_v7 = vld [vmem:[%s2246_s10 + $0x38] sm:$0xf]  ;;  %v232_v8 = vld [vmem:[%s2246_s10 + $0x40] sm:$0xf] }
  0x19   : > { %223 = vst [vmem:[%s194_s11 + $0xc] sm:$0xf] %v222_v3  ;;  %v234_v9 = vld [vmem:[%s2246_s10 + $0x48] sm:$0xf]  ;;  %v236_v10 = vld [vmem:[%s2246_s10 + $0x50] sm:$0xf] }
  0x1a   : > { %225 = vst [vmem:[%s194_s11 + $0x10] sm:$0xf] %v224_v4  ;;  %v238_v11 = vld [vmem:[%s2246_s10 + $0x58] sm:$0xf]  ;;  %v240_v12 = vld [vmem:[%s2246_s10 + $0x60] sm:$0xf] }
  0x1b   : > { %227 = vst [vmem:[%s194_s11 + $0x14] sm:$0xf] %v226_v5  ;;  %v242_v13 = vld [vmem:[%s2246_s10 + $0x68] sm:$0xf]  ;;  %v244_v14 = vld [vmem:[%s2246_s10 + $0x70] sm:$0xf] }
  0x1c   : > { %229 = vst [vmem:[%s194_s11 + $0x18] sm:$0xf] %v228_v6  ;;  %v246_v15 = vld [vmem:[%s2246_s10 + $0x78] sm:$0xf] }
  0x1d   : > { %231 = vst [vmem:[%s194_s11 + $0x1c] sm:$0xf] %v230_v7 }
  0x1e   : > { %233 = vst [vmem:[%s194_s11 + $0x20] sm:$0xf] %v232_v8 }
  0x1f   : > { %235 = vst [vmem:[%s194_s11 + $0x24] sm:$0xf] %v234_v9 }
  0x20   : > { %237 = vst [vmem:[%s194_s11 + $0x28] sm:$0xf] %v236_v10 }
  0x21   : > { %239 = vst [vmem:[%s194_s11 + $0x2c] sm:$0xf] %v238_v11 }
  0x22   : > { %241 = vst [vmem:[%s194_s11 + $0x30] sm:$0xf] %v240_v12 }
  0x23   : > { %243 = vst [vmem:[%s194_s11 + $0x34] sm:$0xf] %v242_v13 }
  0x24   : > { %245 = vst [vmem:[%s194_s11 + $0x38] sm:$0xf] %v244_v14 }
  0x25   : > { %247 = vst [vmem:[%s194_s11 + $0x3c] sm:$0xf] %v246_v15 }
  0x26 PF: > { %p1798_p7 = scmp.ge.s32.totalorder %s2155_s21, 1  ;;  %p311_p8 = scmp.lt.s32.totalorder %s2155_s21, 5 }
  0x28   : > { %p312_p9 = pnand %p1798_p7, %p311_p8 }
  0x2a   : > { %315 = sbr.rel (%p312_p9) target bundleno = 853 (0x355), region = 73 }
  0x2f   : > { %s318_s12 = sand.u32 1, %s2131_s15   ;;  %s1800_s13 = sshll.u32 %s2143_s18, 4 }
  0x30   : > { %s1799_s14 = sshll.u32 %s318_s12, 6  ;;  %p357_p10 = scmp.lt.s32.totalorder %s1800_s13, 31 }
  0x31   : > { %p362_p11 = scmp.lt.s32.totalorder %s2139_s17, 1  ;;  %s1802_s26 = sshll.u32 %s2139_s17, 4 }
  0x32   : > { %s3135_s13 = smov (!%p357_p10, %s1800_s13), 31  ;;  %p367_p12 = scmp.lt.s32.totalorder %s1802_s26, 31 }
  0x33   : > { %s2270_s24 = scalar_select %p362_p11, %s2139_s17, 1 }
  0x34   : > { %s1801_s25 = sshll.u32 %s3135_s13, 3  ;;  %s3137_s26 = smov (!%p367_p12, %s1802_s26), 31 }
  0x35   : > { %s2276_s30 = scalar_lea.vmem %s3050_s0, %s1801_s25  ;;  %s364_s7 = scalar_lea.vmem %s3051_s1, %s2270_s24 }
  0x36   : > { %s2285_s8 = scalar_lea.vmem %s3054_s4, %s1801_s25  ;;  %s1803_s9 = sshll.u32 %s3137_s26, 2 }
  0x37   : > { %s2290_s12 = scalar_lea.vmem %s3053_s3, %s1803_s9  ;;  %s2292_s13 = scalar_lea.vmem [#allocation5], %s1799_s14 }
  0x38   : > { %p1806_p13 = scmp.ne.s32.totalorder %s2139_s17, 0 }
  0x3a   : > { %381 = sbr.rel (%p1806_p13) target bundleno = 112 (0x70), region = 81 }
  0x3f   : > { %vm382_vm0 = vcmask 7168   ;;  %v2157_v16 = vmov -1e+30   ;;  %v2158_v17 = vmov 0.0  }
  0x40   : > { %383 = vst.msk [vmem:[#allocation2] sm:$0xff] %vm382_vm0, %v2157_v16 }
  0x41   : > { %384 = vst.msk [vmem:[#allocation2 + $0x8] sm:$0xff] %vm382_vm0, %v2157_v16 }
  0x42   : > { %385 = vst.msk [vmem:[#allocation2 + $0x10] sm:$0xff] %vm382_vm0, %v2157_v16 }
  0x43   : > { %386 = vst.msk [vmem:[#allocation2 + $0x18] sm:$0xff] %vm382_vm0, %v2157_v16 }
  0x44   : > { %387 = vst.msk [vmem:[#allocation2 + $0x20] sm:$0xff] %vm382_vm0, %v2157_v16 }
  0x45   : > { %388 = vst.msk [vmem:[#allocation2 + $0x28] sm:$0xff] %vm382_vm0, %v2157_v16 }
  0x46   : > { %389 = vst.msk [vmem:[#allocation2 + $0x30] sm:$0xff] %vm382_vm0, %v2157_v16 }
  0x47   : > { %390 = vst.msk [vmem:[#allocation2 + $0x38] sm:$0xff] %vm382_vm0, %v2157_v16 }
  0x48   : > { %391 = vst.msk [vmem:[#allocation2 + $0x40] sm:$0xff] %vm382_vm0, %v2157_v16 }
  0x49   : > { %392 = vst.msk [vmem:[#allocation2 + $0x48] sm:$0xff] %vm382_vm0, %v2157_v16 }
  0x4a   : > { %393 = vst.msk [vmem:[#allocation2 + $0x50] sm:$0xff] %vm382_vm0, %v2157_v16 }
  0x4b   : > { %394 = vst.msk [vmem:[#allocation2 + $0x58] sm:$0xff] %vm382_vm0, %v2157_v16 }
  0x4c   : > { %395 = vst.msk [vmem:[#allocation2 + $0x60] sm:$0xff] %vm382_vm0, %v2157_v16 }
  0x4d   : > { %396 = vst.msk [vmem:[#allocation2 + $0x68] sm:$0xff] %vm382_vm0, %v2157_v16 }
  0x4e   : > { %397 = vst.msk [vmem:[#allocation2 + $0x70] sm:$0xff] %vm382_vm0, %v2157_v16 }
  0x4f   : > { %398 = vst.msk [vmem:[#allocation2 + $0x78] sm:$0xff] %vm382_vm0, %v2157_v16 }
  0x50   : > { %399 = vst.msk [vmem:[#allocation3] sm:$0xff] %vm382_vm0, %v2158_v17 }
  0x51   : > { %400 = vst.msk [vmem:[#allocation3 + $0x8] sm:$0xff] %vm382_vm0, %v2158_v17 }
  0x52   : > { %401 = vst.msk [vmem:[#allocation3 + $0x10] sm:$0xff] %vm382_vm0, %v2158_v17 }
  0x53   : > { %402 = vst.msk [vmem:[#allocation3 + $0x18] sm:$0xff] %vm382_vm0, %v2158_v17 }
  0x54   : > { %403 = vst.msk [vmem:[#allocation3 + $0x20] sm:$0xff] %vm382_vm0, %v2158_v17 }
  0x55   : > { %404 = vst.msk [vmem:[#allocation3 + $0x28] sm:$0xff] %vm382_vm0, %v2158_v17 }
  0x56   : > { %405 = vst.msk [vmem:[#allocation3 + $0x30] sm:$0xff] %vm382_vm0, %v2158_v17 }
  0x57   : > { %406 = vst.msk [vmem:[#allocation3 + $0x38] sm:$0xff] %vm382_vm0, %v2158_v17 }
  0x58   : > { %407 = vst.msk [vmem:[#allocation3 + $0x40] sm:$0xff] %vm382_vm0, %v2158_v17 }
  0x59   : > { %408 = vst.msk [vmem:[#allocation3 + $0x48] sm:$0xff] %vm382_vm0, %v2158_v17 }
  0x5a   : > { %409 = vst.msk [vmem:[#allocation3 + $0x50] sm:$0xff] %vm382_vm0, %v2158_v17 }
  0x5b   : > { %410 = vst.msk [vmem:[#allocation3 + $0x58] sm:$0xff] %vm382_vm0, %v2158_v17 }
  0x5c   : > { %411 = vst.msk [vmem:[#allocation3 + $0x60] sm:$0xff] %vm382_vm0, %v2158_v17 }
  0x5d   : > { %412 = vst.msk [vmem:[#allocation3 + $0x68] sm:$0xff] %vm382_vm0, %v2158_v17 }
  0x5e   : > { %413 = vst.msk [vmem:[#allocation3 + $0x70] sm:$0xff] %vm382_vm0, %v2158_v17 }
  0x5f   : > { %414 = vst.msk [vmem:[#allocation3 + $0x78] sm:$0xff] %vm382_vm0, %v2158_v17 }
  0x60   : > { %415 = vst [vmem:[#allocation4 + $0x30] sm:$0xff] %v2158_v17 }
  0x61   : > { %416 = vst [vmem:[#allocation4] sm:$0xff] %v2158_v17 }
  0x62   : > { %417 = vst [vmem:[#allocation4 + $0x58] sm:$0xff] %v2158_v17 }
  0x63   : > { %418 = vst [vmem:[#allocation4 + $0x18] sm:$0xff] %v2158_v17 }
  0x64   : > { %419 = vst [vmem:[#allocation4 + $0x50] sm:$0xff] %v2158_v17 }
  0x65   : > { %420 = vst [vmem:[#allocation4 + $0x68] sm:$0xff] %v2158_v17 }
  0x66   : > { %421 = vst [vmem:[#allocation4 + $0x8] sm:$0xff] %v2158_v17 }
  0x67   : > { %422 = vst [vmem:[#allocation4 + $0x48] sm:$0xff] %v2158_v17 }
  0x68   : > { %423 = vst [vmem:[#allocation4 + $0x40] sm:$0xff] %v2158_v17 }
  0x69   : > { %424 = vst [vmem:[#allocation4 + $0x20] sm:$0xff] %v2158_v17 }
  0x6a   : > { %425 = vst [vmem:[#allocation4 + $0x10] sm:$0xff] %v2158_v17 }
  0x6b   : > { %426 = vst [vmem:[#allocation4 + $0x38] sm:$0xff] %v2158_v17 }
  0x6c   : > { %427 = vst [vmem:[#allocation4 + $0x60] sm:$0xff] %v2158_v17 }
  0x6d   : > { %428 = vst [vmem:[#allocation4 + $0x70] sm:$0xff] %v2158_v17 }
  0x6e   : > { %429 = vst [vmem:[#allocation4 + $0x78] sm:$0xff] %v2158_v17 }
  0x6f   : > { %430 = vst [vmem:[#allocation4 + $0x28] sm:$0xff] %v2158_v17 }
  0x70 PF: > { %v481_v18 = vld [vmem:[%s2276_s30 + $0x10] sm:$0xff]  ;;  %v479_v19 = vld [vmem:[%s2276_s30] sm:$0xff]  ;;  %v2159_v20 = vmov 0   ;;  %v482_v22 = vld [vmem:[%s2276_s30 + $0x18] sm:$0xff]  ;;  %p1863_p0 = scmp.ne.s32.totalorder %s2139_s17, 1 }
  0x71   : > { %1999 = vset.pattern.permute.xlu1 %v2159_v20  ;;  %1998 = vset.pattern.permute.xlu0 %v2159_v20  ;;  %v483_v21 = vld [vmem:[%s2276_s30 + $0x20] sm:$0xff]  ;;  %v480_v23 = vld [vmem:[%s2276_s30 + $0x8] sm:$0xff]  ;;  %v486_v25 = vld [vmem:[%s2276_s30 + $0x38] sm:$0xff] }
  0x72   : > { %508 = vperm.xlu1 %1999, %v481_v18   ;;  %498 = vperm.xlu0 %1998, %v479_v19   ;;  %v484_v24 = vld [vmem:[%s2276_s30 + $0x28] sm:$0xff]  ;;  %v485_v26 = vld [vmem:[%s2276_s30 + $0x30] sm:$0xff]  ;;  %v487_v27 = vld [vmem:[%s2276_s30 + $0x40] sm:$0xff] }
  0x73   : > { %2000 = vset.pattern.permute.xlu2 %v2159_v20  ;;  %v489_v28 = vld [vmem:[%s2276_s30 + $0x50] sm:$0xff]  ;;  %v488_v29 = vld [vmem:[%s2276_s30 + $0x48] sm:$0xff]  ;;  %v490_v30 = vld [vmem:[%s2276_s30 + $0x58] sm:$0xff] }
  0x74   : > { %518 = vperm.xlu2 %2000, %v483_v21   ;;  %v492_v31 = vld [vmem:[%s2276_s30 + $0x68] sm:$0xff]  ;;  %v491_v32 = vld [vmem:[%s2276_s30 + $0x60] sm:$0xff]  ;;  %v493_v33 = vld [vmem:[%s2276_s30 + $0x70] sm:$0xff] }
  0x75   : > { %v494_v34 = vld [vmem:[%s2276_s30 + $0x78] sm:$0xff]  ;;  %v1907_v35 = vld [vmem:[%s2292_s13 + $0x8] sm:$0xff]   ;;  %v1876_v36 = vld [vmem:[%s2292_s13] sm:$0xff]  }
  0x76   : > { %v2350_v37 = vld [vmem:[%s364_s7] ss:$0 sm:$0xff]  ;;  %v1881_v38 = vunpack.c.l.bf16 %v1907_v35  ;;  %v1877_v40 = vunpack.c.l.bf16 %v1876_v36  ;;  %v2360_v47 = vld [vmem:[%s2292_s13 + $0x10] sm:$0xff]   ;;  %v1878_v57 = vunpack.c.h.bf16 %v1876_v36  ;;  %v1909_v3 = vld [vmem:[%s2292_s13 + $0x18] sm:$0xff]   ;;  %v1882_v6 = vunpack.c.h.bf16 %v1907_v35 }
  0x77   : > { %v1885_v54 = vunpack.c.l.bf16 %v2360_v47  ;;  %v1889_v9 = vunpack.c.l.bf16 %v1909_v3  ;;  %v1890_v10 = vunpack.c.h.bf16 %v1909_v3 }
  0x78   : > { %vm2355_vm1 = vcmp.gt.f32.partialorder %v1881_v38, 0.0  ;;  %vm2362_vm3 = vcmp.gt.f32.partialorder %v1877_v40, 0.0  ;;  %vm2383_vm7 = vcmp.gt.f32.partialorder %v1878_v57, 0.0  ;;  %vm2405_vm11 = vcmp.gt.f32.partialorder %v1882_v6, 0.0 }
  0x79   : > { %vm2378_vm6 = vcmp.gt.f32.partialorder %v1885_v54, 0.0  ;;  %vm2401_vm10 = vcmp.gt.f32.partialorder %v1889_v9, 0.0  ;;  %vm2409_vm12 = vcmp.gt.f32.partialorder %v1890_v10, 0.0  ;;  %v3090_v9 = vmov 0 }
  0x7a   : > { %513 = vperm.xlu1 %1999, %v482_v22   ;;  %503 = vperm.xlu0 %1998, %v480_v23   ;;  %v1910_v23 = vld [vmem:[%s2292_s13 + $0x20] sm:$0xff]  }
  0x7c   : > { %523 = vperm.xlu2 %2000, %v484_v24   ;;  %v1886_v24 = vunpack.c.h.bf16 %v2360_v47 }
  0x82   : > { %533 = vperm.xlu1 %1999, %v486_v25   ;;  %528 = vperm.xlu0 %1998, %v485_v26  }
  0x84   : > { %538 = vperm.xlu2 %2000, %v487_v27  }
  0x8a   : > { %548 = vperm.xlu1 %1999, %v489_v28   ;;  %543 = vperm.xlu0 %1998, %v488_v29   ;;  %v1894_v28 = vunpack.c.h.bf16 %v1910_v23  ;;  %v2416_v29 = vld [vmem:[%s2292_s13 + $0x28] sm:$0xff]  }
  0x8c   : > { %553 = vperm.xlu2 %2000, %v490_v30   ;;  %vm2437_vm0 = vcmp.gt.f32.partialorder %v1894_v28, 0.0 }
  0x92   : > { %563 = vperm.xlu1 %1999, %v492_v31   ;;  %558 = vperm.xlu0 %1998, %v491_v32  }
  0x94   : > { %568 = vperm.xlu2 %2000, %v493_v33   ;;  %v1897_v33 = vunpack.c.l.bf16 %v2416_v29 }
  0x9a   : > { %573 = vperm.xlu0 %1998, %v494_v34  }
  0xce   : > { %v519_v39 = vpop.permute.xlu2 %518 }
  0xcf   : > { %v583_v43 = vadd.f32 %v2350_v37, %v519_v39 }
  0xd1   : > { %v615_v51 = vmul.f32 0.01, %v583_v43  ;;  %vm599_vm5 = vcmp.gt.f32.partialorder %v583_v43, 0.0 }
  0xd3   : > { %v631_v62 = vsel %vm599_vm5, %v583_v43, %v615_v51  ;;  %v3084_v43 = vmov 0 }
  0xd4   : > { %v2390_v4 = vsel %vm2378_vm6, %v631_v62, -1e+30 }
  0xd6   : > { %v524_v63 = vpop.permute.xlu2 %523 }
  0xd7   : > { %v584_v13 = vadd.f32 %v2350_v37, %v524_v63 }
  0xd9   : > { %v616_v25 = vmul.f32 0.01, %v584_v13  ;;  %vm600_vm15 = vcmp.gt.f32.partialorder %v584_v13, 0.0 }
  0xde   : > { %v539_v22 = vpop.permute.xlu2 %538 }
  0xdf   : > { %v587_v36 = vadd.f32 %v2350_v37, %v539_v22  ;;  %v1898_v22 = vunpack.c.h.bf16 %v2416_v29 }
  0xe4   : > { %v509_v41 = vpop.permute.xlu1 %508  ;;  %v499_v42 = vpop.permute.xlu0 %498 }
  0xe5   : > { %v581_v44 = vadd.f32 %v2350_v37, %v509_v41  ;;  %v579_v45 = vadd.f32 %v2350_v37, %v499_v42  ;;  %v632_v42 = vsel %vm600_vm15, %v584_v13, %v616_v25 }
  0xe6   : > { %v554_v54 = vpop.permute.xlu2 %553 }
  0xe7   : > { %v613_v48 = vmul.f32 0.01, %v581_v44  ;;  %v611_v49 = vmul.f32 0.01, %v579_v45  ;;  %vm597_vm2 = vcmp.gt.f32.partialorder %v581_v44, 0.0  ;;  %vm595_vm4 = vcmp.gt.f32.partialorder %v579_v45, 0.0 }
  0xe9   : > { %v629_v52 = vsel %vm597_vm2, %v581_v44, %v613_v48  ;;  %v627_v53 = vsel %vm595_vm4, %v579_v45, %v611_v49  ;;  %vm2441_vm2 = vcmp.gt.f32.partialorder %v1886_v24, 0.0  ;;  %vm2445_vm4 = vcmp.gt.f32.partialorder %v1897_v33, 0.0  ;;  %v1912_v44 = vld [vmem:[%s2292_s13 + $0x30] sm:$0xff]  }
  0xea   : > { %v2369_v55 = vsel %vm2355_vm1, %v629_v52, -1e+30  ;;  %v2373_v56 = vsel %vm2362_vm3, %v627_v53, -1e+30  ;;  %v3085_v43 = vsel %vm2445_vm4, 4294967295, %v3084_v43  ;;  %v1893_v48 = vunpack.c.l.bf16 %v1910_v23 }
  0xeb   : > { %679 = vmax.xlane.f32.xlu0 %v2369_v55  ;;  %675 = vmax.xlane.f32.xlu1 %v2373_v56  ;;  %v619_v49 = vmul.f32 0.01, %v587_v36  ;;  %v2452_v52 = vsel %vm2441_vm2, %v632_v42, -1e+30  ;;  %v3097_v42 = vmov 0 }
  0xec   : > { %v514_v58 = vpop.permute.xlu1 %513  ;;  %v504_v59 = vpop.permute.xlu0 %503 }
  0xed   : > { %v580_v60 = vadd.f32 %v2350_v37, %v504_v59  ;;  %v582_v0 = vadd.f32 %v2350_v37, %v514_v58  ;;  %v1901_v59 = vunpack.c.l.bf16 %v1912_v44 }
  0xee   : > { %v569_v24 = vpop.permute.xlu2 %568 }
  0xef   : > { %v612_v1 = vmul.f32 0.01, %v580_v60  ;;  %vm596_vm8 = vcmp.gt.f32.partialorder %v580_v60, 0.0  ;;  %v614_v7 = vmul.f32 0.01, %v582_v0  ;;  %vm598_vm9 = vcmp.gt.f32.partialorder %v582_v0, 0.0 }
  0xf0   : > { %v593_v33 = vadd.f32 %v2350_v37, %v569_v24  ;;  %v2583_v24 = vld [vmem:[#allocation2 + $0x28] sm:$0xff] }
  0xf1   : > { %v628_v5 = vsel %vm596_vm8, %v580_v60, %v612_v1  ;;  %v630_v18 = vsel %vm598_vm9, %v582_v0, %v614_v7  ;;  %v1902_v60 = vunpack.c.h.bf16 %v1912_v44  ;;  %vm603_vm9 = vcmp.gt.f32.partialorder %v587_v36, 0.0 }
  0xf2   : > { %v2394_v8 = vsel %vm2383_vm7, %v628_v5, -1e+30  ;;  %v2424_v31 = vsel %vm2405_vm11, %v630_v18, -1e+30  ;;  %v590_v5 = vadd.f32 %v2350_v37, %v554_v54  ;;  %v635_v7 = vsel %vm603_vm9, %v587_v36, %v619_v49 }
  0xf3   : > { %677 = vmax.xlane.f32.xlu2 %v2394_v8  ;;  %683 = vmax.xlane.f32.xlu1 %v2390_v4  ;;  %vm2476_vm15 = vcmp.gt.f32.partialorder %v1902_v60, 0.0  ;;  %v2544_v60 = vld [vmem:[#allocation2 + $0x20] sm:$0xff] }
  0xf4   : > { %v534_v11 = vpop.permute.xlu1 %533  ;;  %v529_v12 = vpop.permute.xlu0 %528  ;;  %v3091_v9 = vsel %vm2476_vm15, 4294967295, %v3090_v9  ;;  %v622_v18 = vmul.f32 0.01, %v590_v5  ;;  %vm606_vm9 = vcmp.gt.f32.partialorder %v590_v5, 0.0 }
  0xf5   : > { %v586_v14 = vadd.f32 %v2350_v37, %v534_v11  ;;  %v585_v15 = vadd.f32 %v2350_v37, %v529_v12 }
  0xf6   : > { %v638_v28 = vsel %vm606_vm9, %v590_v5, %v622_v18  ;;  %vm609_vm9 = vcmp.gt.f32.partialorder %v593_v33, 0.0  ;;  %v2558_v5 = vld [vmem:[#allocation2 + $0x30] sm:$0xff] }
  0xf7   : > { %v618_v20 = vmul.f32 0.01, %v586_v14  ;;  %v617_v21 = vmul.f32 0.01, %v585_v15  ;;  %vm601_vm13 = vcmp.gt.f32.partialorder %v585_v15, 0.0  ;;  %vm602_vm14 = vcmp.gt.f32.partialorder %v586_v14, 0.0 }
  0xf9   : > { %v633_v26 = vsel %vm601_vm13, %v585_v15, %v617_v21  ;;  %v634_v27 = vsel %vm602_vm14, %v586_v14, %v618_v20  ;;  %vm2467_vm13 = vcmp.gt.f32.partialorder %v1893_v48, 0.0  ;;  %vm2472_vm14 = vcmp.gt.f32.partialorder %v1901_v59, 0.0  ;;  %v1913_v15 = vld [vmem:[%s2292_s13 + $0x38] sm:$0xff]   ;;  %v2528_v48 = vld [vmem:[#allocation2] sm:$0xff]  ;;  %v2542_v59 = vld [vmem:[#allocation2 + $0x8] sm:$0xff] }
  0xfa   : > { %v2420_v30 = vsel %vm2401_vm10, %v633_v26, -1e+30  ;;  %v2428_v32 = vsel %vm2409_vm12, %v634_v27, -1e+30  ;;  %v2482_v13 = vsel %vm2467_vm13, %v635_v7, -1e+30  ;;  %v1906_v23 = vunpack.c.h.bf16 %v1913_v15 }
  0xfb   : > { %687 = vmax.xlane.f32.xlu0 %v2420_v30  ;;  %681 = vmax.xlane.f32.xlu2 %v2424_v31  ;;  %v2560_v7 = vld [vmem:[#allocation2 + $0x18] sm:$0xff] }
  0xfc   : > { %689 = vmax.xlane.f32.xlu1 %v2428_v32  ;;  %v549_v34 = vpop.permute.xlu1 %548  ;;  %v544_v35 = vpop.permute.xlu0 %543 }
  0xfd   : > { %v589_v38 = vadd.f32 %v2350_v37, %v549_v34  ;;  %v588_v39 = vadd.f32 %v2350_v37, %v544_v35  ;;  %v3094_v34 = vmov 0 }
  0xff   : > { %v621_v45 = vmul.f32 0.01, %v589_v38  ;;  %v620_v47 = vmul.f32 0.01, %v588_v39  ;;  %vm604_vm5 = vcmp.gt.f32.partialorder %v588_v39, 0.0  ;;  %vm605_vm8 = vcmp.gt.f32.partialorder %v589_v38, 0.0 }
 0x101   : > { %v636_v51 = vsel %vm604_vm5, %v588_v39, %v620_v47  ;;  %v637_v53 = vsel %vm605_vm8, %v589_v38, %v621_v45  ;;  %v625_v39 = vmul.f32 0.01, %v593_v33  ;;  %v2526_v47 = vld [vmem:[#allocation2 + $0x10] sm:$0xff] }
 0x102   : > { %v2456_v57 = vsel %vm2437_vm0, %v636_v51, -1e+30  ;;  %v2460_v58 = vsel %vm2445_vm4, %v637_v53, -1e+30 }
 0x103   : > { %693 = vmax.xlane.f32.xlu0 %v2456_v57  ;;  %685 = vmax.xlane.f32.xlu2 %v2452_v52  ;;  %v641_v44 = vsel %vm609_vm9, %v593_v33, %v625_v39  ;;  %vm1839_vm9 = vmpackc.low %vm2383_vm7, %vm2362_vm3 }
 0x104   : > { %695 = vmax.xlane.f32.xlu1 %v2460_v58  ;;  %v564_v62 = vpop.permute.xlu1 %563  ;;  %v559_v63 = vpop.permute.xlu0 %558 }
 0x105   : > { %v592_v0 = vadd.f32 %v2350_v37, %v564_v62  ;;  %v591_v1 = vadd.f32 %v2350_v37, %v559_v63 }
 0x107   : > { %v624_v10 = vmul.f32 0.01, %v592_v0  ;;  %v623_v11 = vmul.f32 0.01, %v591_v1  ;;  %vm607_vm5 = vcmp.gt.f32.partialorder %v591_v1, 0.0  ;;  %vm608_vm8 = vcmp.gt.f32.partialorder %v592_v0, 0.0 }
 0x109   : > { %v639_v12 = vsel %vm607_vm5, %v591_v1, %v623_v11  ;;  %v640_v14 = vsel %vm608_vm8, %v592_v0, %v624_v10  ;;  %vm2498_vm5 = vcmp.gt.f32.partialorder %v1898_v22, 0.0  ;;  %vm2503_vm8 = vcmp.gt.f32.partialorder %v1906_v23, 0.0  ;;  %v2562_v10 = vld [vmem:[#allocation2 + $0x38] sm:$0xff]  ;;  %v2581_v23 = vld [vmem:[#allocation2 + $0x48] sm:$0xff] }
 0x10a   : > { %v2487_v20 = vsel %vm2472_vm14, %v639_v12, -1e+30  ;;  %v2491_v21 = vsel %vm2476_vm15, %v640_v14, -1e+30  ;;  %v3095_v34 = vsel %vm2503_vm8, 4294967295, %v3094_v34 }
 0x10b   : > { %699 = vmax.xlane.f32.xlu0 %v2487_v20  ;;  %691 = vmax.xlane.f32.xlu2 %v2482_v13  ;;  %3096 = vst [vmem:[#allocation6_spill] sm:$0xff] %v3095_v34  ;;  %v2513_v38 = vsel %vm2498_vm5, %v638_v28, -1e+30 }
 0x10c   : > { %701 = vmax.xlane.f32.xlu1 %v2491_v21  ;;  %v574_v25 = vpop.permute.xlu0 %573 }
 0x10d   : > { %v594_v26 = vadd.f32 %v2350_v37, %v574_v25  ;;  %v1905_v37 = vunpack.c.l.bf16 %v1913_v15  ;;  %v2585_v25 = vld [vmem:[#allocation2 + $0x50] sm:$0xff] }
 0x10f   : > { %v626_v29 = vmul.f32 0.01, %v594_v26  ;;  %vm610_vm4 = vcmp.gt.f32.partialorder %v594_v26, 0.0  ;;  %vm2517_vm15 = vcmp.gt.f32.partialorder %v1905_v37, 0.0  ;;  %v2600_v37 = vld [vmem:[#allocation2 + $0x60] sm:$0xff] }
 0x110   : > { %v3098_v42 = vsel %vm2517_vm15, 4294967295, %v3097_v42  ;;  %v2523_v45 = vsel %vm2517_vm15, %v641_v44, -1e+30  ;;  %v2602_v44 = vld [vmem:[#allocation2 + $0x40] sm:$0xff] }
 0x111   : > { %v642_v35 = vsel %vm610_vm4, %v594_v26, %v626_v29  ;;  %3099 = vst [vmem:[#allocation7_spill] sm:$0xff] %v3098_v42  ;;  %vm995_vm4 = vcmask 7168  }
 0x112   : > { %v2509_v36 = vsel %vm2503_vm8, %v642_v35, -1e+30 }
 0x113   : > { %705 = vmax.xlane.f32.xlu0 %v2509_v36  ;;  %697 = vmax.xlane.f32.xlu2 %v2513_v38 }
 0x11b   : > { %703 = vmax.xlane.f32.xlu2 %v2523_v45 }
 0x15e   : > { %v680_v49 = vpop.xlane.xlu0 %679  ;;  %v676_v51 = vpop.xlane.xlu1 %675 }
 0x15f   : > { %v2531_v53 = vmax.f32 %v2526_v47, %v680_v49  ;;  %v2534_v54 = vmax.f32 %v2528_v48, %v676_v51  ;;  %v2604_v49 = vld [vmem:[#allocation2 + $0x68] sm:$0xff] }
 0x160   : > { %3100 = vst [vmem:[#allocation8_spill] sm:$0xff] %v2604_v49 }
 0x161   : > { %1279 = vst.msk [vmem:[#allocation2 + $0x10] sm:$0xff] %vm995_vm4, %v2531_v53  ;;  %783 = vperm.xlu0 %1998, %v2531_v53   ;;  %773 = vperm.xlu1 %1999, %v2534_v54  }
 0x162   : > { %1277 = vst.msk [vmem:[#allocation2] sm:$0xff] %vm995_vm4, %v2534_v54 }
 0x166   : > { %v678_v62 = vpop.xlane.xlu2 %677  ;;  %v684_v63 = vpop.xlane.xlu1 %683 }
 0x167   : > { %v2547_v0 = vmax.f32 %v2542_v59, %v678_v62  ;;  %v2550_v1 = vmax.f32 %v2544_v60, %v684_v63 }
 0x169   : > { %1278 = vst.msk [vmem:[#allocation2 + $0x8] sm:$0xff] %vm995_vm4, %v2547_v0  ;;  %778 = vperm.xlu2 %2000, %v2547_v0   ;;  %793 = vperm.xlu0 %1998, %v2550_v1  }
 0x16a   : > { %1281 = vst.msk [vmem:[#allocation2 + $0x20] sm:$0xff] %vm995_vm4, %v2550_v1 }
 0x16e   : > { %v688_v11 = vpop.xlane.xlu0 %687  ;;  %v682_v12 = vpop.xlane.xlu2 %681 }
 0x16f   : > { %v2565_v14 = vmax.f32 %v2558_v5, %v688_v11  ;;  %v2568_v15 = vmax.f32 %v2560_v7, %v682_v12  ;;  %v690_v18 = vpop.xlane.xlu1 %689 }
 0x170   : > { %v2571_v22 = vmax.f32 %v2562_v10, %v690_v18 }
 0x171   : > { %1283 = vst.msk [vmem:[#allocation2 + $0x30] sm:$0xff] %vm995_vm4, %v2565_v14  ;;  %788 = vperm.xlu1 %1999, %v2568_v15  }
 0x172   : > { %1280 = vst.msk [vmem:[#allocation2 + $0x18] sm:$0xff] %vm995_vm4, %v2568_v15  ;;  %808 = vperm.xlu0 %1998, %v2571_v22  }
 0x173   : > { %1284 = vst.msk [vmem:[#allocation2 + $0x38] sm:$0xff] %vm995_vm4, %v2571_v22 }
 0x176   : > { %v694_v26 = vpop.xlane.xlu0 %693  ;;  %v686_v28 = vpop.xlane.xlu2 %685 }
 0x177   : > { %v2588_v33 = vmax.f32 %v2581_v23, %v694_v26  ;;  %v712_v29 = vmax.f32 %v2583_v24, %v686_v28  ;;  %v696_v35 = vpop.xlane.xlu1 %695  ;;  %v725_v28 = vsub.f32 %v2526_v47, %v2531_v53  ;;  %v724_v53 = vsub.f32 %v2542_v59, %v2547_v0 }
 0x178   : > { %v2592_v39 = vmax.f32 %v2585_v25, %v696_v35  ;;  %v2628_v35 = vld [vmem:[#allocation2 + $0x78] sm:$0xff]  ;;  %v726_v59 = vsub.f32 %v2560_v7, %v2568_v15  ;;  %v730_v0 = vsub.f32 %v2562_v10, %v2571_v22 }
 0x179   : > { %1286 = vst.msk [vmem:[#allocation2 + $0x48] sm:$0xff] %vm995_vm4, %v2588_v33  ;;  %798 = vperm.xlu2 %2000, %v712_v29   ;;  %803 = vperm.xlu1 %1999, %v2565_v14   ;;  %v743_v42 = vmul.f32 1.442695, %v725_v28 }
 0x17a   : > { %1282 = vst.msk [vmem:[#allocation2 + $0x28] sm:$0xff] %vm995_vm4, %v712_v29  ;;  %v733_v22 = vsub.f32 %v2585_v25, %v2592_v39 }
 0x17b   : > { %1287 = vst.msk [vmem:[#allocation2 + $0x50] sm:$0xff] %vm995_vm4, %v2592_v39  ;;  %2002 = vpow2.f32 %v743_v42 }
 0x17c   : > { %3102 = vst [vmem:[#allocation10_spill] sm:$0xff] %v2628_v35 }
 0x17e   : > { %v700_v51 = vpop.xlane.xlu0 %699  ;;  %v692_v62 = vpop.xlane.xlu2 %691 }
 0x17f   : > { %v2607_v63 = vmax.f32 %v2600_v37, %v700_v51  ;;  %v2610_v11 = vmax.f32 %v2602_v44, %v692_v62  ;;  %v702_v12 = vpop.xlane.xlu1 %701  ;;  %v2630_v51 = vld [vmem:[#allocation2 + $0x58] sm:$0xff] }
 0x180   : > { %v2613_v18 = vmax.f32 %v2604_v49, %v702_v12  ;;  %v723_v49 = vsub.f32 %v2528_v48, %v2534_v54  ;;  %v727_v48 = vsub.f32 %v2544_v60, %v2550_v1  ;;  %v2653_v54 = vld [vmem:[#allocation2 + $0x70] sm:$0xff]  ;;  %v728_v60 = vsub.f32 %v2583_v24, %v712_v29  ;;  %v1874_v24 = vld [vmem:[%s2290_s12 + $0x38] sm:$0xff] }
 0x181   : > { %1289 = vst.msk [vmem:[#allocation2 + $0x60] sm:$0xff] %vm995_vm4, %v2607_v63  ;;  %813 = vperm.xlu2 %2000, %v2610_v11   ;;  %818 = vperm.xlu1 %1999, %v2588_v33   ;;  %v745_v1 = vmul.f32 1.442695, %v726_v59  ;;  %v731_v10 = vsub.f32 %v2602_v44, %v2610_v11  ;;  %v1873_v59 = vld [vmem:[%s2290_s12 + $0x30] sm:$0xff] }
 0x182   : > { %3101 = vst [vmem:[#allocation9_spill] sm:$0xff] %v2613_v18  ;;  %833 = vperm.xlu0 %1998, %v2607_v63   ;;  %v739_v28 = vmul.f32 1.442695, %v723_v49  ;;  %v747_v47 = vmul.f32 1.442695, %v727_v48  ;;  %1196 = vmatpush.bf16.msra.mxu0 %v1874_v24 }
 0x183   : > { %1285 = vst.msk [vmem:[#allocation2 + $0x40] sm:$0xff] %vm995_vm4, %v2610_v11  ;;  %v749_v7 = vmul.f32 1.442695, %v728_v60  ;;  %v753_v49 = vmul.f32 1.442695, %v730_v0  ;;  %1914 = vmatpush.bf16.msra.mxu1 %v1874_v24  ;;  %1915 = vmatpush.bf16.msra.mxu2 %v1874_v24  ;;  %v732_v11 = vsub.f32 %v2581_v23, %v2588_v33  ;;  %v1872_v23 = vld [vmem:[%s2290_s12 + $0x28] sm:$0xff] }
 0x184   : > { %1290 = vst.msk [vmem:[#allocation2 + $0x68] sm:$0xff] %vm995_vm4, %v2613_v18  ;;  %2004 = vpow2.f32 %v739_v28  ;;  %v729_v28 = vsub.f32 %v2558_v5, %v2565_v14  ;;  %1916 = vmatpush.bf16.msra.mxu3 %v1874_v24  ;;  %v755_v14 = vmul.f32 1.442695, %v731_v10  ;;  %v1868_v24 = vld [vmem:[%s2290_s12 + $0x8] sm:$0xff]  ;;  %v1867_v10 = vld [vmem:[%s2290_s12] sm:$0xff] }
 0x186   : > { %v706_v62 = vpop.xlane.xlu0 %705  ;;  %v698_v12 = vpop.xlane.xlu2 %697  ;;  %v751_v5 = vmul.f32 1.442695, %v729_v28  ;;  %1197 = vmatpush.bf16.msra.mxu0 %v1873_v59  ;;  %v1870_v28 = vld [vmem:[%s2290_s12 + $0x18] sm:$0xff] }
 0x187   : > { %v2633_v34 = vmax.f32 %v2628_v35, %v706_v62  ;;  %v2636_v26 = vmax.f32 %v2630_v51, %v698_v12  ;;  %v741_v62 = vmul.f32 1.442695, %v724_v53  ;;  %1917 = vmatpush.bf16.msra.mxu1 %v1873_v59  ;;  %1918 = vmatpush.bf16.msra.mxu2 %v1873_v59 }
 0x188   : > { %1919 = vmatpush.bf16.msra.mxu3 %v1873_v59 }
 0x189   : > { %1292 = vst.msk [vmem:[#allocation2 + $0x78] sm:$0xff] %vm995_vm4, %v2633_v34  ;;  %823 = vperm.xlu1 %1999, %v2592_v39   ;;  %838 = vperm.xlu2 %2000, %v2613_v18   ;;  %v2658_v18 = vpop.eup %2002  ;;  %2006 = vpow2.f32 %v741_v62  ;;  %v734_v25 = vsub.f32 %v2630_v51, %v2636_v26  ;;  %v757_v39 = vmul.f32 1.442695, %v732_v11  ;;  %v1871_v51 = vld [vmem:[%s2290_s12 + $0x20] sm:$0xff] }
 0x18a   : > { %1288 = vst.msk [vmem:[#allocation2 + $0x58] sm:$0xff] %vm995_vm4, %v2636_v26  ;;  %828 = vperm.xlu0 %1998, %v2636_v26   ;;  %2008 = vpow2.f32 %v747_v47  ;;  %v2672_v15 = vpop.eup %2004  ;;  %v759_v47 = vmul.f32 1.442695, %v733_v22  ;;  %v735_v26 = vsub.f32 %v2600_v37, %v2607_v63  ;;  %1198 = vmatpush.bf16.msra.mxu0 %v1872_v23  ;;  %v1869_v37 = vld [vmem:[%s2290_s12 + $0x10] sm:$0xff] }
 0x18b   : > { %2010 = vpow2.f32 %v745_v1  ;;  %1920 = vmatpush.bf16.msra.mxu1 %v1872_v23  ;;  %1921 = vmatpush.bf16.msra.mxu2 %v1872_v23 }
 0x18c   : > { %2012 = vpow2.f32 %v749_v7  ;;  %v763_v1 = vmul.f32 1.442695, %v735_v26  ;;  %1922 = vmatpush.bf16.msra.mxu3 %v1872_v23 }
 0x18d   : > { %2014 = vpow2.f32 %v753_v49 }
 0x18e   : > { %v704_v12 = vpop.xlane.xlu2 %703  ;;  %2016 = vpow2.f32 %v751_v5  ;;  %1199 = vmatpush.bf16.msra.mxu0 %v1871_v51 }
 0x18f   : > { %v2656_v35 = vmax.f32 %v2653_v54, %v704_v12  ;;  %v2674_v53 = vpop.eup %2006  ;;  %2018 = vpow2.f32 %v755_v14  ;;  %v761_v12 = vmul.f32 1.442695, %v734_v25  ;;  %1923 = vmatpush.bf16.msra.mxu1 %v1871_v51  ;;  %1924 = vmatpush.bf16.msra.mxu2 %v1871_v51 }
 0x190   : > { %v2676_v48 = vpop.eup %2008  ;;  %2020 = vpow2.f32 %v759_v47  ;;  %1925 = vmatpush.bf16.msra.mxu3 %v1871_v51 }
 0x191   : > { %v737_v42 = vsub.f32 %v2653_v54, %v2656_v35  ;;  %1291 = vst.msk [vmem:[#allocation2 + $0x70] sm:$0xff] %vm995_vm4, %v2656_v35  ;;  %848 = vperm.xlu1 %1999, %v2633_v34   ;;  %843 = vperm.xlu2 %2000, %v2656_v35   ;;  %v2688_v29 = vpop.eup %2010  ;;  %2022 = vpow2.f32 %v757_v39 }
 0x192   : > { %1040 = vperm.xlu0 %1998, %v2658_v18   ;;  %v2690_v62 = vpop.eup %2012  ;;  %2024 = vpow2.f32 %v761_v12  ;;  %1200 = vmatpush.bf16.msra.mxu0 %v1870_v28 }
 0x193   : > { %v2692_v44 = vpop.eup %2014  ;;  %2026 = vpow2.f32 %v763_v1  ;;  %1926 = vmatpush.bf16.msra.mxu1 %v1870_v28  ;;  %1927 = vmatpush.bf16.msra.mxu2 %v1870_v28 }
 0x194   : > { %v2702_v60 = vpop.eup %2016  ;;  %1928 = vmatpush.bf16.msra.mxu3 %v1870_v28 }
 0x195   : > { %v2704_v0 = vpop.eup %2018 }
 0x196   : > { %v2707_v33 = vpop.eup %2020  ;;  %1201 = vmatpush.bf16.msra.mxu0 %v1869_v37 }
 0x197   : > { %v2715_v7 = vpop.eup %2022  ;;  %1929 = vmatpush.bf16.msra.mxu1 %v1869_v37  ;;  %1930 = vmatpush.bf16.msra.mxu2 %v1869_v37 }
 0x198   : > { %v2717_v49 = vpop.eup %2024  ;;  %1931 = vmatpush.bf16.msra.mxu3 %v1869_v37 }
 0x199   : > { %1035 = vperm.xlu1 %1999, %v2674_v53   ;;  %1030 = vperm.xlu2 %2000, %v2672_v15   ;;  %v2723_v63 = vpop.eup %2026 }
 0x19a   : > { %1050 = vperm.xlu0 %1998, %v2676_v48   ;;  %1202 = vmatpush.bf16.msra.mxu0 %v1868_v24 }
 0x19b   : > { %1932 = vmatpush.bf16.msra.mxu1 %v1868_v24  ;;  %1933 = vmatpush.bf16.msra.mxu2 %v1868_v24 }
 0x19c   : > { %1934 = vmatpush.bf16.msra.mxu3 %v1868_v24 }
 0x19e   : > { %1203 = vmatpush.bf16.msra.mxu0 %v1867_v10 }
 0x19f   : > { %1935 = vmatpush.bf16.msra.mxu1 %v1867_v10  ;;  %1936 = vmatpush.bf16.msra.mxu2 %v1867_v10 }
 0x1a0   : > { %1937 = vmatpush.bf16.msra.mxu3 %v1867_v10 }
 0x1a1   : > { %1055 = vperm.xlu1 %1999, %v2690_v62   ;;  %1045 = vperm.xlu2 %2000, %v2688_v29  }
 0x1a2   : > { %1065 = vperm.xlu0 %1998, %v2692_v44  }
 0x1a9   : > { %1070 = vperm.xlu1 %1999, %v2704_v0   ;;  %1060 = vperm.xlu2 %2000, %v2702_v60  }
 0x1aa   : > { %1080 = vperm.xlu0 %1998, %v2707_v33  }
 0x1b1   : > { %1085 = vperm.xlu1 %1999, %v2717_v49   ;;  %1075 = vperm.xlu2 %2000, %v2715_v7  }
 0x1b9   : > { %1090 = vperm.xlu2 %2000, %v2723_v63  }
 0x1c3   : > { %v779_v22 = vpop.permute.xlu2 %778 }
 0x1c4   : > { %v852_v5 = vsub.f32 %v2394_v8, %v779_v22 }
 0x1c6   : > { %v869_v14 = vmul.f32 1.442695, %v852_v5 }
 0x1c8   : > { %2028 = vpow2.f32 %v869_v14 }
 0x1ce   : > { %v2029_v37 = vpop.eup %2028 }
 0x1cf   : > { %v900_v5 = vsel %vm2383_vm7, %v2029_v37, 0.0  ;;  %vm1851_vm7 = vmpackc.low %vm2437_vm0, %vm2467_vm13 }
 0x1d3   : > { %v784_v47 = vpop.permute.xlu0 %783  ;;  %v799_v11 = vpop.permute.xlu2 %798 }
 0x1d4   : > { %v853_v25 = vsub.f32 %v2369_v55, %v784_v47  ;;  %v774_v39 = vpop.permute.xlu1 %773  ;;  %v856_v23 = vsub.f32 %v2452_v52, %v799_v11 }
 0x1d5   : > { %v851_v12 = vsub.f32 %v2373_v56, %v774_v39 }
 0x1d6   : > { %v871_v59 = vmul.f32 1.442695, %v853_v25  ;;  %v877_v51 = vmul.f32 1.442695, %v856_v23 }
 0x1d7   : > { %v867_v26 = vmul.f32 1.442695, %v851_v12 }
 0x1d8   : > { %2030 = vpow2.f32 %v871_v59 }
 0x1d9   : > { %2032 = vpow2.f32 %v867_v26 }
 0x1da   : > { %2034 = vpow2.f32 %v877_v51 }
 0x1db   : > { %v814_v1 = vpop.permute.xlu2 %813  ;;  %v794_v28 = vpop.permute.xlu0 %793 }
 0x1dc   : > { %v855_v8 = vsub.f32 %v2390_v4, %v794_v28  ;;  %v859_v55 = vsub.f32 %v2482_v13, %v814_v1 }
 0x1de   : > { %v2031_v24 = vpop.eup %2030  ;;  %v875_v10 = vmul.f32 1.442695, %v855_v8  ;;  %v883_v13 = vmul.f32 1.442695, %v859_v55 }
 0x1df   : > { %v901_v56 = vsel %vm2355_vm1, %v2031_v24, 0.0  ;;  %v2033_v22 = vpop.eup %2032 }
 0x1e0   : > { %951 = vadd.xlane.f32.xlu1 %v901_v56  ;;  %2036 = vpow2.f32 %v875_v10  ;;  %v899_v4 = vsel %vm2362_vm3, %v2033_v22, 0.0  ;;  %v1840_v52 = vpack.c.bf16 %v2029_v37, %v2033_v22  ;;  %v2035_v47 = vpop.eup %2034  ;;  %vm1845_vm3 = vmpackc.low %vm2441_vm2, %vm2378_vm6 }
 0x1e1   : > { %947 = vadd.xlane.f32.xlu0 %v899_v4  ;;  %2038 = vpow2.f32 %v883_v13  ;;  %v904_v23 = vsel %vm2441_vm2, %v2035_v47, 0.0  ;;  %vm1860_vm2 = vmpackc.low %vm2503_vm8, %vm2517_vm15 }
 0x1e2   : > { %949 = vadd.xlane.f32.xlu2 %v900_v5  ;;  %1841 = vmatmul.msk.bf16.vlgmr.msra.gmra.mxu0 %vm1839_vm9, %v1840_v52 }
 0x1e3   : > { %v789_v14 = vpop.permute.xlu1 %788  ;;  %v839_v51 = vpop.permute.xlu2 %838 }
 0x1e4   : > { %v809_v11 = vpop.permute.xlu0 %808  ;;  %v854_v25 = vsub.f32 %v2424_v31, %v789_v14  ;;  %v864_v37 = vsub.f32 %v2491_v21, %v839_v51 }
 0x1e5   : > { %v858_v39 = vsub.f32 %v2428_v32, %v809_v11 }
 0x1e6   : > { %v873_v12 = vmul.f32 1.442695, %v854_v25  ;;  %v2037_v59 = vpop.eup %2036  ;;  %v893_v21 = vmul.f32 1.442695, %v864_v37 }
 0x1e7   : > { %v881_v50 = vmul.f32 1.442695, %v858_v39  ;;  %v1846_v2 = vpack.c.bf16 %v2035_v47, %v2037_v59  ;;  %v903_v31 = vsel %vm2378_vm6, %v2037_v59, 0.0  ;;  %v2039_v26 = vpop.eup %2038  ;;  %vm1842_vm6 = vmpackc.low %vm2405_vm11, %vm2355_vm1 }
 0x1e8   : > { %957 = vadd.xlane.f32.xlu1 %v904_v23  ;;  %v907_v41 = vsel %vm2467_vm13, %v2039_v26, 0.0  ;;  %vm1848_vm1 = vmpackc.low %vm2409_vm12, %vm2401_vm10 }
 0x1e9   : > { %2040 = vpow2.f32 %v881_v50  ;;  %1847 = vmatmul.msk.bf16.vlgmr.msra.gmra.mxu1 %vm1845_vm3, %v1846_v2 }
 0x1ea   : > { %2042 = vpow2.f32 %v873_v12  ;;  %955 = vadd.xlane.f32.xlu2 %v903_v31 }
 0x1eb   : > { %v804_v32 = vpop.permute.xlu1 %803  ;;  %v844_v14 = vpop.permute.xlu2 %843 }
 0x1ec   : > { %v857_v1 = vsub.f32 %v2420_v30, %v804_v32  ;;  %v865_v19 = vsub.f32 %v2523_v45, %v844_v14 }
 0x1ee   : > { %v879_v28 = vmul.f32 1.442695, %v857_v1  ;;  %v895_v3 = vmul.f32 1.442695, %v865_v19 }
 0x1ef   : > { %v2041_v8 = vpop.eup %2040 }
 0x1f0   : > { %v2043_v55 = vpop.eup %2042  ;;  %963 = vadd.xlane.f32.xlu1 %v907_v41  ;;  %2044 = vpow2.f32 %v879_v28  ;;  %v906_v30 = vsel %vm2409_vm12, %v2041_v8, 0.0  ;;  %vm3104_vm12 = vnez %v3085_v43  ;;  %v3107_v43 = vld [vmem:[#allocation8_spill] sm:$0xff] }
 0x1f1   : > { %v902_v61 = vsel %vm2405_vm11, %v2043_v55, 0.0  ;;  %v1843_v10 = vpack.c.bf16 %v2043_v55, %v2031_v24  ;;  %2046 = vpow2.f32 %v893_v21 }
 0x1f2   : > { %953 = vadd.xlane.f32.xlu0 %v902_v61  ;;  %961 = vadd.xlane.f32.xlu2 %v906_v30  ;;  %v3110_v30 = vld [vmem:[#allocation10_spill] sm:$0xff] }
 0x1f3   : > { %1844 = vmatmul.msk.bf16.gmra.mxu0 %vm1842_vm6, %v1843_v10  ;;  %v819_v56 = vpop.permute.xlu1 %818  ;;  %v3111_v21 = vsub.f32 %v3110_v30, %v2633_v34 }
 0x1f4   : > { %v834_v22 = vpop.permute.xlu0 %833  ;;  %v860_v4 = vsub.f32 %v2456_v57, %v819_v56 }
 0x1f5   : > { %v863_v46 = vsub.f32 %v2487_v20, %v834_v22  ;;  %v769_v56 = vmul.f32 1.442695, %v3111_v21  ;;  %v767_v22 = vmul.f32 1.442695, %v737_v42 }
 0x1f6   : > { %v885_v52 = vmul.f32 1.442695, %v860_v4  ;;  %v2045_v5 = vpop.eup %2044 }
 0x1f7   : > { %v891_v13 = vmul.f32 1.442695, %v863_v46  ;;  %v905_v17 = vsel %vm2401_vm10, %v2045_v5, 0.0  ;;  %v1849_v24 = vpack.c.bf16 %v2041_v8, %v2045_v5  ;;  %v2047_v11 = vpop.eup %2046  ;;  %vm3103_vm10 = vnez %v3091_v9  ;;  %v3108_v9 = vld [vmem:[#allocation9_spill] sm:$0xff]  ;;  %v1031_v46 = vpop.permute.xlu2 %1030 }
 0x1f8   : > { %2048 = vpow2.f32 %v885_v52  ;;  %vm1857_vm11 = vmpackc.low %vm3103_vm10, %vm2472_vm14  ;;  %v3109_v27 = vsub.f32 %v3107_v43, %v3108_v9 }
 0x1f9   : > { %2050 = vpow2.f32 %v891_v13  ;;  %1850 = vmatmul.msk.bf16.gmra.mxu1 %vm1848_vm1, %v1849_v24 }
 0x1fa   : > { %959 = vadd.xlane.f32.xlu0 %v905_v17  ;;  %v765_v10 = vmul.f32 1.442695, %v3109_v27 }
 0x1fb   : > { %v824_v57 = vpop.permute.xlu1 %823 }
 0x1fc   : > { %v829_v20 = vpop.permute.xlu0 %828  ;;  %v861_v47 = vsub.f32 %v2460_v58, %v824_v57 }
 0x1fd   : > { %v862_v25 = vsub.f32 %v2513_v38, %v829_v20 }
 0x1fe   : > { %v2049_v39 = vpop.eup %2048  ;;  %v887_v12 = vmul.f32 1.442695, %v861_v47 }
 0x1ff   : > { %v2051_v16 = vpop.eup %2050  ;;  %v889_v59 = vmul.f32 1.442695, %v862_v25  ;;  %v908_v50 = vsel %vm2437_vm0, %v2049_v39, 0.0  ;;  %v1852_v23 = vpack.c.bf16 %v2049_v39, %v2039_v26  ;;  %vm1854_vm0 = vmpackc.low %vm2498_vm5, %vm3104_vm12  ;;  %v2826_v13 = vpop.permute.xlu2 %1045  ;;  %v917_v25 = vld [vmem:[#allocation3 + $0x10] sm:$0xff]  ;;  %v915_v39 = vld [vmem:[#allocation3] sm:$0xff] }
 0x200   : > { %2052 = vpow2.f32 %v887_v12  ;;  %v1858_v58 = vpack.c.bf16 %v2047_v11, %v2051_v16  ;;  %v911_v51 = vsel %vm2472_vm14, %v2051_v16, 0.0  ;;  %v916_v12 = vld [vmem:[#allocation3 + $0x8] sm:$0xff]  ;;  %v933_v16 = vmul.f32 %v2658_v18, %v917_v25 }
 0x201   : > { %2054 = vpow2.f32 %v889_v59  ;;  %1853 = vmatmul.msk.bf16.vlgmr.msra.gmra.mxu2 %vm1851_vm7, %v1852_v23  ;;  %v931_v59 = vmul.f32 %v2672_v15, %v915_v39  ;;  %v932_v23 = vmul.f32 %v2674_v53, %v916_v12  ;;  %v1017_v12 = vld [vmem:[#allocation4 + $0x68] sm:$0xff] }
 0x202   : > { %965 = vadd.xlane.f32.xlu0 %v908_v50  ;;  %1859 = vmatmul.msk.bf16.vlgmr.msra.gmra.mxu3 %vm1857_vm11, %v1858_v58  ;;  %2056 = vpow2.f32 %v895_v3 }
 0x203   : > { %v849_v38 = vpop.permute.xlu1 %848 }
 0x204   : > { %v866_v45 = vsub.f32 %v2509_v36, %v849_v38  ;;  %v912_v36 = vsel %vm3103_vm10, %v2047_v11, 0.0  ;;  %v2828_v35 = vpop.permute.xlu0 %1040 }
 0x206   : > { %v2053_v2 = vpop.eup %2052  ;;  %v897_v31 = vmul.f32 1.442695, %v866_v45 }
 0x207   : > { %v2055_v40 = vpop.eup %2054  ;;  %v909_v32 = vsel %vm3104_vm12, %v2053_v2, 0.0  ;;  %v2832_v42 = vpop.permute.xlu2 %1060 }
 0x208   : > { %2058 = vpow2.f32 %v897_v31  ;;  %v910_v26 = vsel %vm2498_vm5, %v2055_v40, 0.0  ;;  %967 = vadd.xlane.f32.xlu2 %v909_v32  ;;  %v2057_v1 = vpop.eup %2056  ;;  %v1855_v41 = vpack.c.bf16 %v2055_v40, %v2053_v2  ;;  %v920_v2 = vld [vmem:[#allocation3 + $0x28] sm:$0xff]  ;;  %v919_v31 = vld [vmem:[#allocation3 + $0x20] sm:$0xff]  ;;  %v1012_v32 = vld [vmem:[#allocation4 + $0x30] sm:$0xff] }
 0x209   : > { %969 = vadd.xlane.f32.xlu1 %v910_v26  ;;  %v913_v61 = vsel %vm2517_vm15, %v2057_v1, 0.0  ;;  %2060 = vpow2.f32 %v765_v10  ;;  %v936_v18 = vmul.f32 %v2690_v62, %v920_v2  ;;  %v935_v26 = vmul.f32 %v2676_v48, %v919_v31  ;;  %v1016_v62 = vld [vmem:[#allocation4 + $0x50] sm:$0xff]  ;;  %v1015_v2 = vld [vmem:[#allocation4 + $0x18] sm:$0xff] }
 0x20a   : > { %971 = vadd.xlane.f32.xlu0 %v911_v51  ;;  %2062 = vpow2.f32 %v769_v56 }
 0x20b   : > { %2064 = vpow2.f32 %v767_v22  ;;  %v1036_v34 = vpop.permute.xlu1 %1035 }
 0x20c   : > { %v1051_v17 = vpop.permute.xlu0 %1050 }
 0x20d   : > { %v1112_v30 = vmul.f32 %v1051_v17, %v1016_v62 }
 0x20e   : > { %v2059_v28 = vpop.eup %2058 }
 0x20f   : > { %v914_v37 = vsel %vm2503_vm8, %v2059_v28, 0.0  ;;  %v1861_v6 = vpack.c.bf16 %v2059_v28, %v2057_v1  ;;  %v2817_v4 = vpop.eup %2060  ;;  %v2836_v57 = vpop.permute.xlu2 %1075  ;;  %v1108_v1 = vmul.f32 %v1031_v46, %v1012_v32  ;;  %v923_v28 = vld [vmem:[#allocation3 + $0x40] sm:$0xff]  ;;  %v925_v32 = vld [vmem:[#allocation3 + $0x50] sm:$0xff] }
 0x210   : > { %973 = vadd.xlane.f32.xlu2 %v912_v36  ;;  %v2820_v52 = vpop.eup %2062  ;;  %v939_v55 = vmul.f32 %v2704_v0, %v923_v28  ;;  %v941_v28 = vmul.f32 %v2707_v33, %v925_v32  ;;  %v928_v33 = vld [vmem:[#allocation3 + $0x68] sm:$0xff] }
 0x211   : > { %975 = vadd.xlane.f32.xlu1 %v913_v61  ;;  %1856 = vmatmul.msk.bf16.gmra.mxu2 %vm1854_vm0, %v1855_v41  ;;  %v2823_v5 = vpop.eup %2064  ;;  %v922_v41 = vld [vmem:[#allocation3 + $0x38] sm:$0xff]  ;;  %v1013_v61 = vld [vmem:[#allocation4] sm:$0xff] }
 0x212   : > { %977 = vadd.xlane.f32.xlu0 %v914_v37  ;;  %1862 = vmatmul.msk.bf16.gmra.mxu3 %vm1860_vm2, %v1861_v6  ;;  %v918_v37 = vld [vmem:[#allocation3 + $0x18] sm:$0xff]  ;;  %v938_v9 = vmul.f32 %v2692_v44, %v922_v41  ;;  %v1109_v22 = vmul.f32 %v1036_v34, %v1013_v61 }
 0x213   : > { %v2830_v54 = vpop.permute.xlu1 %1055  ;;  %v934_v48 = vmul.f32 %v2688_v29, %v918_v37  ;;  %v921_v29 = vld [vmem:[#allocation3 + $0x30] sm:$0xff]  ;;  %v1014_v44 = vld [vmem:[#allocation4 + $0x58] sm:$0xff] }
 0x214   : > { %v2838_v14 = vpop.permute.xlu0 %1065  ;;  %v937_v17 = vmul.f32 %v2702_v60, %v921_v29  ;;  %v1110_v34 = vmul.f32 %v2828_v35, %v1014_v44 }
 0x217   : > { %v2842_v47 = vpop.permute.xlu2 %1090 }
 0x21b   : > { %v2834_v24 = vpop.permute.xlu1 %1070 }
 0x21c   : > { %v2844_v11 = vpop.permute.xlu0 %1080 }
 0x223   : > { %v2840_v20 = vpop.permute.xlu1 %1085 }
 0x226   : > { %1095 = vperm.xlu0 %1998, %v2817_v4  }
 0x228   : > { %1105 = vperm.xlu2 %2000, %v2820_v52  }
 0x22a   : > { %1100 = vperm.xlu1 %1999, %v2823_v5  }
 0x253   : > { %v952_v19 = vpop.xlane.xlu1 %951 }
 0x254   : > { %v981_v50 = vadd.f32 %v952_v19, %v933_v16  ;;  %v948_v58 = vpop.xlane.xlu0 %947  ;;  %v1113_v19 = vmul.f32 %v2830_v54, %v1017_v12 }
 0x255   : > { %v950_v3 = vpop.xlane.xlu2 %949  ;;  %v979_v38 = vadd.f32 %v948_v58, %v931_v59 }
 0x256   : > { %998 = vst.msk [vmem:[#allocation3 + $0x10] sm:$0xff] %vm995_vm4, %v981_v50  ;;  %v980_v45 = vadd.f32 %v950_v3, %v932_v23 }
 0x257   : > { %996 = vst.msk [vmem:[#allocation3] sm:$0xff] %vm995_vm4, %v979_v38  ;;  %v924_v38 = vld [vmem:[#allocation3 + $0x48] sm:$0xff] }
 0x258   : > { %997 = vst.msk [vmem:[#allocation3 + $0x8] sm:$0xff] %vm995_vm4, %v980_v45  ;;  %v1018_v45 = vld [vmem:[#allocation4 + $0x8] sm:$0xff]  ;;  %v940_v31 = vmul.f32 %v2715_v7, %v924_v38 }
 0x259   : > { %v1027_v38 = vld [vmem:[#allocation4 + $0x28] sm:$0xff] }
 0x25b   : > { %v958_v40 = vpop.xlane.xlu1 %957 }
 0x25c   : > { %v984_v15 = vadd.f32 %v958_v40, %v936_v18  ;;  %v1114_v18 = vmul.f32 %v2832_v42, %v1018_v45  ;;  %v1111_v40 = vmul.f32 %v2826_v13, %v1015_v2 }
 0x25d   : > { %v956_v53 = vpop.xlane.xlu2 %955 }
 0x25e   : > { %1001 = vst.msk [vmem:[#allocation3 + $0x28] sm:$0xff] %vm995_vm4, %v984_v15  ;;  %v983_v51 = vadd.f32 %v956_v53, %v935_v26  ;;  %v926_v53 = vld [vmem:[#allocation3 + $0x58] sm:$0xff] }
 0x25f   : > { %v1205_v36 = vpop.f32.mrf.mxu0  ;;  %v942_v42 = vmul.f32 %v2717_v49, %v926_v53  ;;  %v929_v49 = vld [vmem:[#allocation3 + $0x70] sm:$0xff] }
 0x260   : > { %1000 = vst.msk [vmem:[#allocation3 + $0x20] sm:$0xff] %vm995_vm4, %v983_v51  ;;  %v1245_v8 = vadd.f32 %v1205_v36, %v1108_v1  ;;  %v927_v1 = vld [vmem:[#allocation3 + $0x60] sm:$0xff]  ;;  %v1019_v36 = vld [vmem:[#allocation4 + $0x48] sm:$0xff] }
 0x261   : > { %v1115_v62 = vmul.f32 %v2838_v14, %v1019_v36 }
 0x262   : > { %1261 = vst [vmem:[#allocation4 + $0x30] sm:$0xff] %v1245_v8  ;;  %v943_v8 = vmul.f32 %v2723_v63, %v927_v1  ;;  %v930_v63 = vld [vmem:[#allocation3 + $0x78] sm:$0xff] }
 0x263   : > { %v964_v6 = vpop.xlane.xlu1 %963 }
 0x264   : > { %v987_v43 = vadd.f32 %v964_v6, %v939_v55 }
 0x265   : > { %v954_v27 = vpop.xlane.xlu0 %953  ;;  %v962_v10 = vpop.xlane.xlu2 %961 }
 0x266   : > { %v982_v21 = vadd.f32 %v954_v27, %v934_v48  ;;  %1004 = vst.msk [vmem:[#allocation3 + $0x40] sm:$0xff] %vm995_vm4, %v987_v43  ;;  %v986_v56 = vadd.f32 %v962_v10, %v938_v9  ;;  %v1215_v46 = vpop.f32.mrf.mxu1  ;;  %v1020_v48 = vld [vmem:[#allocation4 + $0x40] sm:$0xff]  ;;  %v944_v27 = vmul.f32 %v2817_v4, %v928_v33 }
 0x267   : > { %v1207_v0 = vpop.f32.mrf.mxu0  ;;  %v1249_v25 = vadd.f32 %v1215_v46, %v1112_v30  ;;  %v1024_v9 = vld [vmem:[#allocation4 + $0x60] sm:$0xff]  ;;  %v1116_v10 = vmul.f32 %v2834_v24, %v1020_v48  ;;  %v945_v30 = vmul.f32 %v2823_v5, %v929_v49 }
 0x268   : > { %999 = vst.msk [vmem:[#allocation3 + $0x18] sm:$0xff] %vm995_vm4, %v982_v21  ;;  %v1246_v39 = vadd.f32 %v1207_v0, %v1109_v22  ;;  %v1120_v21 = vmul.f32 %v2842_v47, %v1024_v9  ;;  %v946_v22 = vmul.f32 %v2820_v52, %v930_v63  ;;  %v1021_v24 = vld [vmem:[#allocation4 + $0x20] sm:$0xff] }
 0x269   : > { %1003 = vst.msk [vmem:[#allocation3 + $0x38] sm:$0xff] %vm995_vm4, %v986_v56  ;;  %v1117_v5 = vmul.f32 %v2836_v57, %v1021_v24 }
 0x26a   : > { %1265 = vst [vmem:[#allocation4 + $0x50] sm:$0xff] %v1249_v25 }
 0x26b   : > { %1262 = vst [vmem:[#allocation4] sm:$0xff] %v1246_v39 }
 0x26d   : > { %v960_v16 = vpop.xlane.xlu0 %959 }
 0x26e   : > { %v985_v59 = vadd.f32 %v960_v16, %v937_v17  ;;  %v1217_v50 = vpop.f32.mrf.mxu1  ;;  %v1022_v16 = vld [vmem:[#allocation4 + $0x10] sm:$0xff] }
 0x26f   : > { %v1250_v58 = vadd.f32 %v1217_v50, %v1113_v19  ;;  %v1118_v19 = vmul.f32 %v2844_v11, %v1022_v16 }
 0x270   : > { %1002 = vst.msk [vmem:[#allocation3 + $0x30] sm:$0xff] %vm995_vm4, %v985_v59  ;;  %v1210_v23 = vpop.f32.mrf.mxu0 }
 0x271   : > { %v1247_v3 = vadd.f32 %v1210_v23, %v1110_v34  ;;  %1266 = vst [vmem:[#allocation4 + $0x68] sm:$0xff] %v1250_v58  ;;  %v1025_v23 = vld [vmem:[#allocation4 + $0x70] sm:$0xff]  ;;  %v1023_v58 = vld [vmem:[#allocation4 + $0x38] sm:$0xff] }
 0x272   : > { %v1119_v57 = vmul.f32 %v2840_v20, %v1023_v58 }
 0x273   : > { %1263 = vst [vmem:[#allocation4 + $0x58] sm:$0xff] %v1247_v3 }
 0x275   : > { %v966_v60 = vpop.xlane.xlu0 %965 }
 0x276   : > { %v988_v54 = vadd.f32 %v966_v60, %v940_v31  ;;  %v1220_v35 = vpop.f32.mrf.mxu1  ;;  %v1026_v31 = vld [vmem:[#allocation4 + $0x78] sm:$0xff] }
 0x277   : > { %v1251_v26 = vadd.f32 %v1220_v35, %v1114_v18 }
 0x278   : > { %1005 = vst.msk [vmem:[#allocation3 + $0x48] sm:$0xff] %vm995_vm4, %v988_v54  ;;  %v1212_v15 = vpop.f32.mrf.mxu0 }
 0x279   : > { %v1248_v51 = vadd.f32 %v1212_v15, %v1111_v40  ;;  %1267 = vst [vmem:[#allocation4 + $0x8] sm:$0xff] %v1251_v26 }
 0x27b   : > { %1264 = vst [vmem:[#allocation4 + $0x18] sm:$0xff] %v1248_v51  ;;  %v968_v7 = vpop.xlane.xlu2 %967 }
 0x27c   : > { %v989_v13 = vadd.f32 %v968_v7, %v941_v28  ;;  %v970_v37 = vpop.xlane.xlu1 %969 }
 0x27d   : > { %v972_v41 = vpop.xlane.xlu0 %971  ;;  %v990_v55 = vadd.f32 %v970_v37, %v942_v42 }
 0x27e   : > { %v991_v6 = vadd.f32 %v972_v41, %v943_v8  ;;  %1006 = vst.msk [vmem:[#allocation3 + $0x50] sm:$0xff] %vm995_vm4, %v989_v13  ;;  %v1222_v61 = vpop.f32.mrf.mxu1 }
 0x27f   : > { %1007 = vst.msk [vmem:[#allocation3 + $0x58] sm:$0xff] %vm995_vm4, %v990_v55  ;;  %v1252_v43 = vadd.f32 %v1222_v61, %v1115_v62 }
 0x280   : > { %1008 = vst.msk [vmem:[#allocation3 + $0x60] sm:$0xff] %vm995_vm4, %v991_v6 }
 0x281   : > { %1268 = vst [vmem:[#allocation4 + $0x48] sm:$0xff] %v1252_v43 }
 0x283   : > { %v974_v14 = vpop.xlane.xlu2 %973 }
 0x284   : > { %v992_v56 = vadd.f32 %v974_v14, %v944_v27  ;;  %v976_v46 = vpop.xlane.xlu1 %975  ;;  %v1225_v0 = vpop.f32.mrf.mxu2 }
 0x285   : > { %v978_v25 = vpop.xlane.xlu0 %977  ;;  %v993_v39 = vadd.f32 %v976_v46, %v945_v30  ;;  %v1253_v29 = vadd.f32 %v1225_v0, %v1116_v10  ;;  %v1235_v12 = vpop.f32.mrf.mxu3 }
 0x286   : > { %1009 = vst.msk [vmem:[#allocation3 + $0x68] sm:$0xff] %vm995_vm4, %v992_v56  ;;  %v994_v44 = vadd.f32 %v978_v25, %v946_v22  ;;  %v1257_v4 = vadd.f32 %v1235_v12, %v1120_v21 }
 0x287   : > { %1010 = vst.msk [vmem:[#allocation3 + $0x70] sm:$0xff] %vm995_vm4, %v993_v39 }
 0x288   : > { %1011 = vst.msk [vmem:[#allocation3 + $0x78] sm:$0xff] %vm995_vm4, %v994_v44 }
 0x289   : > { %1269 = vst [vmem:[#allocation4 + $0x40] sm:$0xff] %v1253_v29 }
 0x28a   : > { %1273 = vst [vmem:[#allocation4 + $0x60] sm:$0xff] %v1257_v4 }
 0x28b   : > { %v1106_v45 = vpop.permute.xlu2 %1105 }
 0x28c   : > { %v1227_v52 = vpop.f32.mrf.mxu2  ;;  %v1123_v18 = vmul.f32 %v1106_v45, %v1027_v38 }
 0x28d   : > { %v1254_v47 = vadd.f32 %v1227_v52, %v1117_v5  ;;  %v1237_v17 = vpop.f32.mrf.mxu3 }
 0x28f   : > { %1270 = vst [vmem:[#allocation4 + $0x20] sm:$0xff] %v1254_v47 }
 0x294   : > { %v1230_v59 = vpop.f32.mrf.mxu2 }
 0x295   : > { %v1255_v34 = vadd.f32 %v1230_v59, %v1118_v19  ;;  %v1240_v50 = vpop.f32.mrf.mxu3 }
 0x297   : > { %1271 = vst [vmem:[#allocation4 + $0x10] sm:$0xff] %v1255_v34 }
 0x298   : > { %v1096_v3 = vpop.permute.xlu0 %1095 }
 0x299   : > { %v1121_v2 = vmul.f32 %v1096_v3, %v1025_v23 }
 0x29b   : > { %v1258_v60 = vadd.f32 %v1237_v17, %v1121_v2 }
 0x29c   : > { %v1101_v54 = vpop.permute.xlu1 %1100  ;;  %v1232_v40 = vpop.f32.mrf.mxu2 }
 0x29d   : > { %1274 = vst [vmem:[#allocation4 + $0x70] sm:$0xff] %v1258_v60  ;;  %v1122_v35 = vmul.f32 %v1101_v54, %v1026_v31  ;;  %v1256_v11 = vadd.f32 %v1232_v40, %v1119_v57  ;;  %v1242_v32 = vpop.f32.mrf.mxu3  ;;  %1296 = sbr.rel (%p1863_p0) target bundleno = 853 (0x355), region = 85 }
 0x29e   : > { %v1260_v15 = vadd.f32 %v1242_v32, %v1123_v18 }
 0x29f   : > { %v1259_v26 = vadd.f32 %v1240_v50, %v1122_v35  ;;  %1272 = vst [vmem:[#allocation4 + $0x38] sm:$0xff] %v1256_v11 }
 0x2a0   : > { %1276 = vst [vmem:[#allocation4 + $0x28] sm:$0xff] %v1260_v15 }
 0x2a1   : > { %1275 = vst [vmem:[#allocation4 + $0x78] sm:$0xff] %v1259_v26 }
 0x2a2   : > { %v1317_v53 = vld [vmem:[#allocation3 + $0x20] sm:$0xff]  ;;  %v1315_v51 = vld [vmem:[#allocation3 + $0x10] sm:$0xff]  ;;  %v2160_v20 = vmov 0   ;;  %v1318_v42 = vld [vmem:[#allocation3 + $0x28] sm:$0xff] }
 0x2a3   : > { %v1313_v1 = vld [vmem:[#allocation3] sm:$0xff]  ;;  %2068 = vset.pattern.permute.xlu2 %v2160_v20  ;;  %2067 = vset.pattern.permute.xlu1 %v2160_v20  ;;  %v1333_v28 = vmax.f32 %v1317_v53, 1e-20  ;;  %v1331_v36 = vmax.f32 %v1315_v51, 1e-20  ;;  %v1316_v8 = vld [vmem:[#allocation3 + $0x18] sm:$0xff] }
 0x2a4   : > { %v1329_v7 = vmax.f32 %v1313_v1, 1e-20  ;;  %2066 = vset.pattern.permute.xlu0 %v2160_v20  ;;  %v1314_v13 = vld [vmem:[#allocation3 + $0x8] sm:$0xff]  ;;  %v1334_v37 = vmax.f32 %v1318_v42, 1e-20  ;;  %v1321_v62 = vld [vmem:[#allocation3 + $0x40] sm:$0xff] }
 0x2a5   : > { %1367 = vperm.xlu2 %2068, %v1333_v28   ;;  %1357 = vperm.xlu1 %2067, %v1331_v36   ;;  %v1332_v41 = vmax.f32 %v1316_v8, 1e-20  ;;  %v1330_v55 = vmax.f32 %v1314_v13, 1e-20  ;;  %v1320_v6 = vld [vmem:[#allocation3 + $0x38] sm:$0xff]  ;;  %v1319_v61 = vld [vmem:[#allocation3 + $0x30] sm:$0xff] }
 0x2a6   : > { %1347 = vperm.xlu0 %2066, %v1329_v7   ;;  %v1337_v33 = vmax.f32 %v1321_v62, 1e-20  ;;  %v1336_v48 = vmax.f32 %v1320_v6, 1e-20  ;;  %v1335_v43 = vmax.f32 %v1319_v61, 1e-20 }
 0x2a7   : > { %v1324_v49 = vld [vmem:[#allocation3 + $0x58] sm:$0xff]  ;;  %v1323_v9 = vld [vmem:[#allocation3 + $0x50] sm:$0xff]  ;;  %v1322_v63 = vld [vmem:[#allocation3 + $0x48] sm:$0xff] }
 0x2a8   : > { %v1340_v27 = vmax.f32 %v1324_v49, 1e-20  ;;  %v1339_v10 = vmax.f32 %v1323_v9, 1e-20  ;;  %v1338_v14 = vmax.f32 %v1322_v63, 1e-20 }
 0x2a9   : > { %v1327_v30 = vld [vmem:[#allocation3 + $0x70] sm:$0xff]  ;;  %v1326_v21 = vld [vmem:[#allocation3 + $0x68] sm:$0xff]  ;;  %v1325_v56 = vld [vmem:[#allocation3 + $0x60] sm:$0xff] }
 0x2aa   : > { %v1343_v22 = vmax.f32 %v1327_v30, 1e-20  ;;  %v1342_v46 = vmax.f32 %v1326_v21, 1e-20  ;;  %v1341_v0 = vmax.f32 %v1325_v56, 1e-20 }
 0x2ab   : > { %v1328_v25 = vld [vmem:[#allocation3 + $0x78] sm:$0xff]  ;;  %v1301_v59 = vld [vmem:[#allocation4 + $0x50] sm:$0xff]  ;;  %v1302_v54 = vld [vmem:[#allocation4 + $0x68] sm:$0xff] }
 0x2ac   : > { %v1344_v39 = vmax.f32 %v1328_v25, 1e-20  ;;  %v1305_v13 = vld [vmem:[#allocation4 + $0x40] sm:$0xff] }
 0x2ad   : > { %1372 = vperm.xlu2 %2068, %v1334_v37   ;;  %1362 = vperm.xlu1 %2067, %v1332_v41  }
 0x2ae   : > { %1352 = vperm.xlu0 %2066, %v1330_v55  }
 0x2b5   : > { %1387 = vperm.xlu2 %2068, %v1337_v33   ;;  %1382 = vperm.xlu1 %2067, %v1336_v48  }
 0x2b6   : > { %1377 = vperm.xlu0 %2066, %v1335_v43  }
 0x2bd   : > { %1402 = vperm.xlu2 %2068, %v1340_v27   ;;  %1397 = vperm.xlu1 %2067, %v1339_v10  }
 0x2be   : > { %1392 = vperm.xlu0 %2066, %v1338_v14  }
 0x2c5   : > { %1417 = vperm.xlu2 %2068, %v1343_v22   ;;  %1412 = vperm.xlu1 %2067, %v1342_v46  }
 0x2c6   : > { %1407 = vperm.xlu0 %2066, %v1341_v0  }
 0x2ce   : > { %1422 = vperm.xlu0 %2066, %v1344_v39  }
 0x2ff   : > { %v1368_v29 = vpop.permute.xlu2 %1367 }
 0x300   : > { %2069 = vrcp.f32 %v1368_v29  ;;  %v1496_v24 = vand.u32 2147483648, %v1368_v29  ;;  %vm1490_vm13 = vweird.f32 %v1368_v29  ;;  %v1494_v52 = vand.u32 2147483647, %v1368_v29 }
 0x302   : > { %v1497_v17 = vor.u32 1.1754944e-38, %v1496_v24  ;;  %vm1495_vm5 = vcmp.eq.f32.partialorder %v1494_v52, 8.507059e+37 }
 0x306   : > { %v2070_v12 = vpop.eup %2069 }
 0x307   : > { %v1486_v44 = vmul.f32 %v2070_v12, %v1368_v29  ;;  %v1373_v4 = vpop.permute.xlu2 %1372  ;;  %vm1491_vm14 = vweird.f32 %v2070_v12 }
 0x308   : > { %2071 = vrcp.f32 %v1373_v4  ;;  %vm1492_vm15 = vmor %vm1490_vm13, %vm1491_vm14  ;;  %vm1505_vm8 = vweird.f32 %v1373_v4  ;;  %v1511_v3 = vand.u32 2147483648, %v1373_v4  ;;  %v1509_v2 = vand.u32 2147483647, %v1373_v4 }
 0x309   : > { %v1487_v5 = vsub.f32 1.0, %v1486_v44 }
 0x30a   : > { %v1512_v57 = vor.u32 1.1754944e-38, %v1511_v3  ;;  %vm1510_vm3 = vcmp.eq.f32.partialorder %v1509_v2, 8.507059e+37 }
 0x30b   : > { %v1488_v47 = vmul.f32 %v2070_v12, %v1487_v5 }
 0x30d   : > { %v1489_v16 = vadd.f32 %v2070_v12, %v1488_v47 }
 0x30e   : > { %v2072_v19 = vpop.eup %2071 }
 0x30f   : > { %v1493_v34 = vsel %vm1492_vm15, %v2070_v12, %v1489_v16  ;;  %v1501_v50 = vmul.f32 %v2072_v19, %v1373_v4  ;;  %v1388_v23 = vpop.permute.xlu2 %1387  ;;  %vm1506_vm4 = vweird.f32 %v2072_v19  ;;  %v1308_v4 = vld [vmem:[#allocation4 + $0x38] sm:$0xff] }
 0x310   : > { %v1498_v58 = vsel %vm1495_vm5, %v1497_v17, %v1493_v34  ;;  %2073 = vrcp.f32 %v1388_v23  ;;  %vm1507_vm9 = vmor %vm1505_vm8, %vm1506_vm4  ;;  %vm1550_vm6 = vweird.f32 %v1388_v23  ;;  %v1554_v26 = vand.u32 2147483647, %v1388_v23  ;;  %v1299_v17 = vld [vmem:[#allocation4 + $0x58] sm:$0xff] }
 0x311   : > { %v1499_v38 = vmul.f32 %v1498_v58, %v1301_v59  ;;  %v1502_v45 = vsub.f32 1.0, %v1501_v50  ;;  %v1556_v53 = vand.u32 2147483648, %v1388_v23 }
 0x312   : > { %vm1555_vm10 = vcmp.eq.f32.partialorder %v1554_v26, 8.507059e+37 }
 0x313   : > { %1669 = vst [vmem:[%s2285_s8 + $0x20] sm:$0xff] %v1499_v38  ;;  %v1503_v31 = vmul.f32 %v2072_v19, %v1502_v45  ;;  %v1557_v36 = vor.u32 1.1754944e-38, %v1556_v53 }
 0x315   : > { %v1504_v60 = vadd.f32 %v2072_v19, %v1503_v31 }
 0x316   : > { %v2074_v18 = vpop.eup %2073 }
 0x317   : > { %v1508_v40 = vsel %vm1507_vm9, %v2072_v19, %v1504_v60  ;;  %v1546_v35 = vmul.f32 %v2074_v18, %v1388_v23  ;;  %v1403_v11 = vpop.permute.xlu2 %1402  ;;  %v2890_v32 = vpop.permute.xlu1 %1357  ;;  %vm1551_vm1 = vweird.f32 %v2074_v18 }
 0x318   : > { %v1513_v15 = vsel %vm1510_vm3, %v1512_v57, %v1508_v40  ;;  %2075 = vrcp.f32 %v1403_v11  ;;  %v2892_v51 = vpop.permute.xlu0 %1347  ;;  %vm1552_vm7 = vmor %vm1550_vm6, %vm1551_vm1  ;;  %v1599_v7 = vand.u32 2147483647, %v1403_v11  ;;  %vm1595_vm11 = vweird.f32 %v1403_v11  ;;  %v1297_v57 = vld [vmem:[#allocation4 + $0x30] sm:$0xff] }
 0x319   : > { %v1514_v1 = vmul.f32 %v1513_v15, %v1302_v54  ;;  %v1547_v20 = vsub.f32 1.0, %v1546_v35  ;;  %2077 = vrcp.f32 %v2890_v32  ;;  %v1601_v62 = vand.u32 2147483648, %v1403_v11 }
 0x31a   : > { %2079 = vrcp.f32 %v2892_v51  ;;  %vm2902_vm12 = vcmp.eq.f32.partialorder %v1599_v7, 8.507059e+37  ;;  %vm1460_vm0 = vweird.f32 %v2890_v32  ;;  %v1464_v10 = vand.u32 2147483647, %v2890_v32 }
 0x31b   : > { %1670 = vst [vmem:[%s2285_s8 + $0x28] sm:$0xff] %v1514_v1  ;;  %v1548_v28 = vmul.f32 %v2074_v18, %v1547_v20  ;;  %v1466_v30 = vand.u32 2147483648, %v2890_v32  ;;  %v1434_v56 = vand.u32 2147483647, %v2892_v51  ;;  %v1436_v46 = vand.u32 2147483648, %v2892_v51 }
 0x31c   : > { %v1602_v0 = vor.u32 1.1754944e-38, %v1601_v62  ;;  %vm2918_vm14 = vcmp.eq.f32.partialorder %v1464_v10, 8.507059e+37  ;;  %vm1430_vm15 = vweird.f32 %v2892_v51 }
 0x31d   : > { %v1549_v42 = vadd.f32 %v2074_v18, %v1548_v28  ;;  %v1467_v5 = vor.u32 1.1754944e-38, %v1466_v30  ;;  %vm2928_vm9 = vcmp.eq.f32.partialorder %v1434_v56, 8.507059e+37  ;;  %v1437_v19 = vor.u32 1.1754944e-38, %v1436_v46  ;;  %v1298_v56 = vld [vmem:[#allocation4] sm:$0xff] }
 0x31e   : > { %v2076_v8 = vpop.eup %2075 }
 0x31f   : > { %v2078_v37 = vpop.eup %2077  ;;  %v1553_v41 = vsel %vm1552_vm7, %v2074_v18, %v1549_v42  ;;  %v1591_v55 = vmul.f32 %v2076_v8, %v1403_v11  ;;  %v2898_v6 = vpop.permute.xlu2 %1417  ;;  %vm1596_vm2 = vweird.f32 %v2076_v8  ;;  %v1311_v42 = vld [vmem:[#allocation4 + $0x78] sm:$0xff] }
 0x320   : > { %v2900_v61 = vpop.permute.xlu1 %1362  ;;  %v1558_v33 = vsel %vm1555_vm10, %v1557_v36, %v1553_v41  ;;  %v1456_v43 = vmul.f32 %v2078_v37, %v2890_v32  ;;  %2081 = vrcp.f32 %v2898_v6  ;;  %v2908_v49 = vpop.permute.xlu0 %1352  ;;  %vm1461_vm13 = vweird.f32 %v2078_v37  ;;  %vm1597_vm5 = vmor %vm1595_vm11, %vm1596_vm2 }
 0x321   : > { %v2080_v9 = vpop.eup %2079  ;;  %v1559_v63 = vmul.f32 %v1558_v33, %v1305_v13  ;;  %v1592_v27 = vsub.f32 1.0, %v1591_v55  ;;  %2083 = vrcp.f32 %v2900_v61  ;;  %vm1462_vm4 = vmor %vm1460_vm0, %vm1461_vm13  ;;  %v1644_v3 = vand.u32 2147483647, %v2898_v6 }
 0x322   : > { %v1457_v14 = vsub.f32 1.0, %v1456_v43  ;;  %v1426_v21 = vmul.f32 %v2080_v9, %v2892_v51  ;;  %2085 = vrcp.f32 %v2908_v49  ;;  %vm1431_vm8 = vweird.f32 %v2080_v9 }
 0x323   : > { %1673 = vst [vmem:[%s2285_s8 + $0x40] sm:$0xff] %v1559_v63  ;;  %v1593_v22 = vmul.f32 %v2076_v8, %v1592_v27  ;;  %vm1432_vm3 = vmor %vm1430_vm15, %vm1431_vm8  ;;  %v1646_v18 = vand.u32 2147483648, %v2898_v6  ;;  %vm1640_vm6 = vweird.f32 %v2898_v6  ;;  %vm2953_vm7 = vcmp.eq.f32.partialorder %v1644_v3, 8.507059e+37  ;;  %v1300_v27 = vld [vmem:[#allocation4 + $0x18] sm:$0xff] }
 0x324   : > { %v1458_v25 = vmul.f32 %v2078_v37, %v1457_v14  ;;  %v1427_v39 = vsub.f32 1.0, %v1426_v21  ;;  %v1479_v36 = vand.u32 2147483647, %v2900_v61  ;;  %v1481_v7 = vand.u32 2147483648, %v2900_v61 }
 0x325   : > { %v1594_v29 = vadd.f32 %v2076_v8, %v1593_v22  ;;  %v1647_v28 = vor.u32 1.1754944e-38, %v1646_v18  ;;  %v1449_v41 = vand.u32 2147483647, %v2908_v49  ;;  %v1451_v55 = vand.u32 2147483648, %v2908_v49 }
 0x326   : > { %v2082_v44 = vpop.eup %2081  ;;  %v1459_v24 = vadd.f32 %v2078_v37, %v1458_v25  ;;  %v1428_v52 = vmul.f32 %v2080_v9, %v1427_v39  ;;  %vm1445_vm13 = vweird.f32 %v2908_v49 }
 0x327   : > { %v1598_v47 = vsel %vm1597_vm5, %v2076_v8, %v1594_v29  ;;  %v1636_v59 = vmul.f32 %v2082_v44, %v2898_v6  ;;  %v2084_v45 = vpop.eup %2083  ;;  %vm1641_vm1 = vweird.f32 %v2082_v44  ;;  %vm1450_vm5 = vcmp.eq.f32.partialorder %v1449_v41, 8.507059e+37 }
 0x328   : > { %v2933_v34 = vpop.permute.xlu1 %1382  ;;  %v1603_v50 = vsel %vm2902_vm12, %v1602_v0, %v1598_v47  ;;  %v1463_v23 = vsel %vm1462_vm4, %v2078_v37, %v1459_v24  ;;  %v1429_v58 = vadd.f32 %v2080_v9, %v1428_v52  ;;  %v2938_v38 = vpop.permute.xlu0 %1377  ;;  %v1471_v35 = vmul.f32 %v2084_v45, %v2900_v61  ;;  %vm1642_vm10 = vmor %vm1640_vm6, %vm1641_vm1 }
 0x329   : > { %v1604_v2 = vmul.f32 %v1603_v50, %v1308_v4  ;;  %v1468_v31 = vsel %vm2918_vm14, %v1467_v5, %v1463_v23  ;;  %v1637_v60 = vsub.f32 1.0, %v1636_v59  ;;  %v2086_v11 = vpop.eup %2085  ;;  %2087 = vrcp.f32 %v2933_v34  ;;  %v1304_v23 = vld [vmem:[#allocation4 + $0x48] sm:$0xff] }
 0x32a   : > { %v1469_v54 = vmul.f32 %v1468_v31, %v1299_v17  ;;  %v1433_v40 = vsel %vm1432_vm3, %v2080_v9, %v1429_v58  ;;  %v1472_v51 = vsub.f32 1.0, %v1471_v35  ;;  %v1441_v1 = vmul.f32 %v2086_v11, %v2908_v49 }
 0x32b   : > { %1676 = vst [vmem:[%s2285_s8 + $0x58] sm:$0xff] %v1604_v2  ;;  %v1438_v32 = vsel %vm2928_vm9, %v1437_v19, %v1433_v40  ;;  %v1638_v15 = vmul.f32 %v2082_v44, %v1637_v60  ;;  %vm1476_vm11 = vweird.f32 %v2084_v45  ;;  %2089 = vrcp.f32 %v2938_v38 }
 0x32c   : > { %1667 = vst [vmem:[%s2285_s8 + $0x10] sm:$0xff] %v1469_v54  ;;  %v1439_v26 = vmul.f32 %v1438_v32, %v1297_v57  ;;  %v1473_v8 = vmul.f32 %v2084_v45, %v1472_v51  ;;  %v1442_v13 = vsub.f32 1.0, %v1441_v1  ;;  %vm1475_vm12 = vweird.f32 %v2900_v61 }
 0x32d   : > { %v1639_v20 = vadd.f32 %v2082_v44, %v1638_v15  ;;  %vm1446_vm0 = vweird.f32 %v2086_v11  ;;  %vm1477_vm2 = vmor %vm1475_vm12, %vm1476_vm11  ;;  %v1482_v61 = vor.u32 1.1754944e-38, %v1481_v7  ;;  %vm1480_vm14 = vcmp.eq.f32.partialorder %v1479_v36, 8.507059e+37 }
 0x32e   : > { %1665 = vst [vmem:[%s2285_s8] sm:$0xff] %v1439_v26  ;;  %v1474_v6 = vadd.f32 %v2084_v45, %v1473_v8  ;;  %v1443_v48 = vmul.f32 %v2086_v11, %v1442_v13  ;;  %vm1447_vm15 = vmor %vm1445_vm13, %vm1446_vm0  ;;  %v1452_v22 = vor.u32 1.1754944e-38, %v1451_v55  ;;  %v1539_v46 = vand.u32 2147483647, %v2933_v34 }
 0x32f   : > { %v1643_v37 = vsel %vm1642_vm10, %v2082_v44, %v1639_v20  ;;  %v2088_v9 = vpop.eup %2087  ;;  %v1541_v12 = vand.u32 2147483648, %v2933_v34  ;;  %v1524_v5 = vand.u32 2147483647, %v2938_v38  ;;  %vm1535_vm4 = vweird.f32 %v2933_v34 }
 0x330   : > { %v2967_v62 = vpop.permute.xlu1 %1397  ;;  %v1648_v33 = vsel %vm2953_vm7, %v1647_v28, %v1643_v37  ;;  %v2971_v43 = vpop.permute.xlu0 %1392  ;;  %v1478_v10 = vsel %vm1477_vm2, %v2084_v45, %v1474_v6  ;;  %v1444_v14 = vadd.f32 %v2086_v11, %v1443_v48  ;;  %v1531_v30 = vmul.f32 %v2088_v9, %v2933_v34 }
 0x331   : > { %v1649_v63 = vmul.f32 %v1648_v33, %v1311_v42  ;;  %2091 = vrcp.f32 %v2967_v62  ;;  %v1483_v21 = vsel %vm1480_vm14, %v1482_v61, %v1478_v10  ;;  %v2090_v0 = vpop.eup %2089  ;;  %vm1536_vm8 = vweird.f32 %v2088_v9  ;;  %v1307_v42 = vld [vmem:[#allocation4 + $0x10] sm:$0xff] }
 0x332   : > { %v1484_v25 = vmul.f32 %v1483_v21, %v1300_v27  ;;  %v1448_v49 = vsel %vm1447_vm15, %v2086_v11, %v1444_v14  ;;  %v1532_v39 = vsub.f32 1.0, %v1531_v30  ;;  %2093 = vrcp.f32 %v2971_v43  ;;  %vm1537_vm6 = vmor %vm1535_vm4, %vm1536_vm8  ;;  %v1303_v11 = vld [vmem:[#allocation4 + $0x8] sm:$0xff] }
 0x333   : > { %1679 = vst [vmem:[%s2285_s8 + $0x70] sm:$0xff] %v1649_v63  ;;  %v1453_v29 = vsel %vm1450_vm5, %v1452_v22, %v1448_v49  ;;  %v1516_v44 = vmul.f32 %v2090_v0, %v2938_v38  ;;  %vm1520_vm9 = vweird.f32 %v2938_v38  ;;  %v1526_v17 = vand.u32 2147483648, %v2938_v38  ;;  %v1310_v22 = vld [vmem:[#allocation4 + $0x70] sm:$0xff] }
 0x334   : > { %1668 = vst [vmem:[%s2285_s8 + $0x18] sm:$0xff] %v1484_v25  ;;  %v1454_v4 = vmul.f32 %v1453_v29, %v1298_v56  ;;  %v1533_v24 = vmul.f32 %v2088_v9, %v1532_v39  ;;  %vm1540_vm3 = vcmp.eq.f32.partialorder %v1539_v46, 8.507059e+37  ;;  %v1542_v34 = vor.u32 1.1754944e-38, %v1541_v12 }
 0x335   : > { %v1517_v47 = vsub.f32 1.0, %v1516_v44  ;;  %vm1521_vm1 = vweird.f32 %v2090_v0  ;;  %v1586_v3 = vand.u32 2147483648, %v2967_v62  ;;  %vm2997_vm7 = vcmp.eq.f32.partialorder %v1524_v5, 8.507059e+37 }
 0x336   : > { %1666 = vst [vmem:[%s2285_s8 + $0x8] sm:$0xff] %v1454_v4  ;;  %v1534_v19 = vadd.f32 %v2088_v9, %v1533_v24  ;;  %vm1580_vm10 = vweird.f32 %v2967_v62  ;;  %v1527_v54 = vor.u32 1.1754944e-38, %v1526_v17  ;;  %vm1522_vm11 = vmor %vm1520_vm9, %vm1521_vm1  ;;  %v1584_v15 = vand.u32 2147483647, %v2967_v62 }
 0x337   : > { %v2092_v52 = vpop.eup %2091  ;;  %v1518_v58 = vmul.f32 %v2090_v0, %v1517_v47  ;;  %v1587_v53 = vor.u32 1.1754944e-38, %v1586_v3  ;;  %v1569_v36 = vand.u32 2147483647, %v2971_v43  ;;  %v1571_v38 = vand.u32 2147483648, %v2971_v43  ;;  %v1309_v47 = vld [vmem:[#allocation4 + $0x60] sm:$0xff] }
 0x338   : > { %v2988_v16 = vpop.permute.xlu1 %1412  ;;  %v1576_v59 = vmul.f32 %v2092_v52, %v2967_v62  ;;  %v2993_v50 = vpop.permute.xlu0 %1407  ;;  %v1538_v2 = vsel %vm1537_vm6, %v2088_v9, %v1534_v19  ;;  %vm1581_vm12 = vweird.f32 %v2092_v52  ;;  %vm1585_vm13 = vcmp.eq.f32.partialorder %v1584_v15, 8.507059e+37  ;;  %v1306_v9 = vld [vmem:[#allocation4 + $0x20] sm:$0xff] }
 0x339   : > { %2095 = vrcp.f32 %v2988_v16  ;;  %v2094_v45 = vpop.eup %2093  ;;  %v1543_v60 = vsel %vm1540_vm3, %v1542_v34, %v1538_v2  ;;  %v1519_v18 = vadd.f32 %v2090_v0, %v1518_v58  ;;  %vm1582_vm0 = vmor %vm1580_vm10, %vm1581_vm12  ;;  %vm1565_vm14 = vweird.f32 %v2971_v43 }
 0x33a   : > { %v1577_v57 = vsub.f32 1.0, %v1576_v59  ;;  %v1561_v40 = vmul.f32 %v2094_v45, %v2971_v43  ;;  %v1544_v35 = vmul.f32 %v1543_v60, %v1304_v23  ;;  %2097 = vrcp.f32 %v2993_v50 }
 0x33b   : > { %v1523_v26 = vsel %vm1522_vm11, %v2090_v0, %v1519_v18  ;;  %vm1566_vm2 = vweird.f32 %v2094_v45  ;;  %vm1570_vm5 = vcmp.eq.f32.partialorder %v1569_v36, 8.507059e+37  ;;  %v1572_v62 = vor.u32 1.1754944e-38, %v1571_v38 }
 0x33c   : > { %v1578_v32 = vmul.f32 %v2092_v52, %v1577_v57  ;;  %v1562_v51 = vsub.f32 1.0, %v1561_v40  ;;  %1672 = vst [vmem:[%s2285_s8 + $0x38] sm:$0xff] %v1544_v35  ;;  %v1528_v20 = vsel %vm2997_vm7, %v1527_v54, %v1523_v26  ;;  %vm1567_vm15 = vmor %vm1565_vm14, %vm1566_vm2  ;;  %v1631_v63 = vand.u32 2147483648, %v2988_v16 }
 0x33d   : > { %v1529_v7 = vmul.f32 %v1528_v20, %v1303_v11  ;;  %v1629_v43 = vand.u32 2147483647, %v2988_v16  ;;  %vm1625_vm4 = vweird.f32 %v2988_v16  ;;  %v1614_v39 = vand.u32 2147483647, %v2993_v50 }
 0x33e   : > { %v1579_v28 = vadd.f32 %v2092_v52, %v1578_v32  ;;  %v1563_v8 = vmul.f32 %v2094_v45, %v1562_v51  ;;  %v1632_v46 = vor.u32 1.1754944e-38, %v1631_v63  ;;  %v1616_v29 = vand.u32 2147483648, %v2993_v50 }
 0x33f   : > { %v2096_v1 = vpop.eup %2095  ;;  %1671 = vst [vmem:[%s2285_s8 + $0x30] sm:$0xff] %v1529_v7  ;;  %vm1630_vm3 = vcmp.eq.f32.partialorder %v1629_v43, 8.507059e+37  ;;  %vm1610_vm1 = vweird.f32 %v2993_v50  ;;  %vm1615_vm10 = vcmp.eq.f32.partialorder %v1614_v39, 8.507059e+37 }
 0x340   : > { %v1621_v13 = vmul.f32 %v2096_v1, %v2988_v16  ;;  %v1583_v37 = vsel %vm1582_vm0, %v2092_v52, %v1579_v28  ;;  %v1423_v41 = vpop.permute.xlu0 %1422  ;;  %v1564_v33 = vadd.f32 %v2094_v45, %v1563_v8  ;;  %v2098_v27 = vpop.eup %2097  ;;  %vm1626_vm8 = vweird.f32 %v2096_v1 }
 0x341   : > { %v1588_v55 = vsel %vm1585_vm13, %v1587_v53, %v1583_v37  ;;  %2099 = vrcp.f32 %v1423_v41  ;;  %v1606_v30 = vmul.f32 %v2098_v27, %v2993_v50  ;;  %vm1627_vm9 = vmor %vm1625_vm4, %vm1626_vm8  ;;  %vm1611_vm6 = vweird.f32 %v2098_v27 }
 0x342   : > { %v1622_v6 = vsub.f32 1.0, %v1621_v13  ;;  %v1589_v48 = vmul.f32 %v1588_v55, %v1307_v42  ;;  %v1568_v61 = vsel %vm1567_vm15, %v2094_v45, %v1564_v33  ;;  %vm1612_vm7 = vmor %vm1610_vm1, %vm1611_vm6  ;;  %v1617_v17 = vor.u32 1.1754944e-38, %v1616_v29  ;;  %v1312_v45 = vld [vmem:[#allocation4 + $0x28] sm:$0xff] }
 0x343   : > { %v1573_v14 = vsel %vm1570_vm5, %v1572_v62, %v1568_v61  ;;  %v1607_v0 = vsub.f32 1.0, %v1606_v30  ;;  %v1661_v16 = vand.u32 2147483648, %v1423_v41  ;;  %v1659_v23 = vand.u32 2147483647, %v1423_v41 }
 0x344   : > { %v1623_v10 = vmul.f32 %v2096_v1, %v1622_v6  ;;  %1675 = vst [vmem:[%s2285_s8 + $0x50] sm:$0xff] %v1589_v48  ;;  %v1574_v21 = vmul.f32 %v1573_v14, %v1306_v9  ;;  %vm1655_vm12 = vweird.f32 %v1423_v41 }
 0x345   : > { %v1608_v44 = vmul.f32 %v2098_v27, %v1607_v0  ;;  %v1662_v50 = vor.u32 1.1754944e-38, %v1661_v16  ;;  %vm1660_vm2 = vcmp.eq.f32.partialorder %v1659_v23, 8.507059e+37 }
 0x346   : > { %v1624_v56 = vadd.f32 %v2096_v1, %v1623_v10  ;;  %1674 = vst [vmem:[%s2285_s8 + $0x48] sm:$0xff] %v1574_v21 }
 0x347   : > { %v2100_v25 = vpop.eup %2099  ;;  %v1609_v5 = vadd.f32 %v2098_v27, %v1608_v44 }
 0x348   : > { %v1628_v49 = vsel %vm1627_vm9, %v2096_v1, %v1624_v56  ;;  %v1651_v4 = vmul.f32 %v2100_v25, %v1423_v41  ;;  %vm1656_vm11 = vweird.f32 %v2100_v25 }
 0x349   : > { %v1633_v12 = vsel %vm1630_vm3, %v1632_v46, %v1628_v49  ;;  %v1613_v19 = vsel %vm1612_vm7, %v2098_v27, %v1609_v5  ;;  %vm1657_vm0 = vmor %vm1655_vm12, %vm1656_vm11 }
 0x34a   : > { %v1634_v24 = vmul.f32 %v1633_v12, %v1310_v22  ;;  %v1652_v52 = vsub.f32 1.0, %v1651_v4  ;;  %v1618_v34 = vsel %vm1615_vm10, %v1617_v17, %v1613_v19 }
 0x34b   : > { %v1619_v58 = vmul.f32 %v1618_v34, %v1309_v47 }
 0x34c   : > { %1678 = vst [vmem:[%s2285_s8 + $0x68] sm:$0xff] %v1634_v24  ;;  %v1653_v59 = vmul.f32 %v2100_v25, %v1652_v52 }
 0x34d   : > { %1677 = vst [vmem:[%s2285_s8 + $0x60] sm:$0xff] %v1619_v58 }
 0x34e   : > { %v1654_v3 = vadd.f32 %v2100_v25, %v1653_v59 }
 0x350   : > { %v1658_v2 = vsel %vm1657_vm0, %v2100_v25, %v1654_v3 }
 0x351   : > { %v1663_v31 = vsel %vm1660_vm2, %v1662_v50, %v1658_v2 }
 0x352   : > { %v1664_v57 = vmul.f32 %v1663_v31, %v1312_v45 }
 0x354   : > { %1680 = vst [vmem:[%s2285_s8 + $0x78] sm:$0xff] %v1664_v57 }
 0x355 PF: > { %s14_s21 = sadd.s32 1, %s2155_s21   ;;  %s3122_s15 = smov %s2135_s16 }
 0x356   : > { %p11_p1 = scmp.ge.s32.totalorder %s14_s21, 6   ;;  %s3123_s16 = smov %s2237_s28 }
 0x357   : > { %s3124_s17 = smov %s2147_s19  ;;  %s3125_s18 = smov %s2151_s20 }
 0x358   : > { %s3126_s19 = smov %s3129_s22  ;;  %s3127_s20 = smov %s3133_s23 }
 0x359   :  { %13 = sbr.rel (!%p11_p1) target bundleno = 4 (0x4), region = 129 }

// kernel: gat_forward.5
= control target key start
LH: loop header
LB: loop body
LE: loop exit
PB: predicated region body
PF: predicated region fallthrough
CT: control target
= control target key end

     0   :  { %s6491_s0 = inlined_call_operand.vmem [shape: f32[2,256,1], index: 0, kind: input, shape index: {}]   ;;  %s6492_s1 = inlined_call_operand.vmem [shape: f32[2,1,256], index: 1, kind: input, shape index: {}]   ;;  %s6493_s2 = inlined_call_operand.vmem [shape: bf16[256,256], index: 2, kind: input, shape index: {}]   ;;  %s6494_s3 = inlined_call_operand.vmem [shape: bf16[2,256,128], index: 3, kind: input, shape index: {}]   ;;  %s6495_s4 = inlined_call_operand.vmem [shape: f32[256,256], index: 4, kind: output, shape index: {}]  }
   0x1   :  { %6553 = sst [smem:[#allocation27_spill]] %s6491_s0 }
   0x2   :  { %s4379_s15 = smov 0   ;;  %s4381_s16 = smov 0  }
   0x3   :  { %s4383_s17 = smov 0   ;;  %s4385_s18 = smov 0  }
   0x4   :  { %s4387_s19 = smov 0   ;;  %s4389_s20 = smov 0  }
   0x5   :  { %s4391_s21 = smov 0   ;;  %s4393_s22 = smov 0  }
   0x6   :  { %s4395_s23 = smov 0   ;;  %s4397_s24 = smov 0  }
   0x7   :  { %s4399_s25 = smov 0  }
   0x8 LB: > { %s23_s26 = sadd.s32 1, %s4340_s23  ;;  %s26_s27 = sadd.s32 1, %s4344_s24  ;;  %s4348_s25 = sphi %s4399_s25, %s14_s25   ;;  %s4344_s24 = sphi %s4397_s24, %s6754_s24   ;;  %s4340_s23 = sphi %s4395_s23, %s6753_s23   ;;  %s4336_s22 = sphi %s4393_s22, %s6752_s22   ;;  %s4332_s21 = sphi %s4391_s21, %s6751_s21   ;;  %s4328_s20 = sphi %s4389_s20, %s6750_s20   ;;  %s4324_s19 = sphi %s4387_s19, %s6749_s19   ;;  %s4320_s18 = sphi %s4385_s18, %s6748_s18   ;;  %s4316_s17 = sphi %s4383_s17, %s6747_s17   ;;  %s4312_s16 = sphi %s4381_s16, %s6746_s16   ;;  %s4308_s15 = sphi %s4379_s15, %s6745_s15  }
   0x9   : > { %p24_p0 = scmp.ge.s32.totalorder %s23_s26, 2  ;;  %s33_s28 = sadd.s32 1, %s4328_s20 }
   0xa   : > { %p40_p1 = scmp.ne.s32.totalorder %s4328_s20, %s4324_s19  ;;  %p41_p2 = scmp.eq.s32.totalorder %s4348_s25, 0 }
   0xb   : > { %s6756_s26 = smov (%p24_p0, %s23_s26), 0  ;;  %s6758_s27 = smov (!%p24_p0, %s26_s27), %s4344_s24 }
   0xc   : > { %6554 = sst [smem:[#allocation9_spill]] %s6756_s26  ;;  %p4445_p3 = por %p41_p2, %p40_p1 }
   0xd   : > { %s56_s30 = ssub.s32 %s4340_s23, %s6756_s26  ;;  %p28_p4 = scmp.ge.s32.totalorder %s6758_s27, 2 }
   0xe   : > { %p57_p5 = scmp.eq.s32.totalorder %s56_s30, 0  ;;  %s59_s5 = sadd.s32 1, %s4320_s18 }
   0xf   : > { %p66_p6 = scmp.ne.s32.totalorder %s4320_s18, %s4316_s17  ;;  %s6760_s27 = smov (%p28_p4, %s6758_s27), 0 }
  0x10   : > { %6556 = sst [smem:[#allocation10_spill]] %s6760_s27  ;;  %s30_s7 = ssub.s32 %s4344_s24, %s6760_s27 }
  0x11   : > { %s4457_s6 = scalar_select %p57_p5, %s4320_s18, %s59_s5  }
  0x12   : > { %p4463_p7 = por %p66_p6, %p41_p2  ;;  %p31_p8 = scmp.eq.s32.totalorder %s30_s7, 0 }
  0x13   : > { %s84_s9 = sor.u32 %s56_s30, %s30_s7  ;;  %s87_s10 = sadd.s32 1, %s4312_s16 }
  0x14   : > { %p85_p9 = scmp.eq.s32.totalorder %s84_s9, 0  ;;  %p94_p10 = scmp.ne.s32.totalorder %s4312_s16, %s4308_s15 }
  0x15   : > { %s4469_s11 = scalar_select %p31_p8, %s4328_s20, %s33_s28  }
  0x16   : > { %s4472_s12 = scalar_select %p85_p9, %s4312_s16, %s87_s10  }
  0x17   : > { %p4478_p11 = por %p94_p10, %p41_p2  ;;  %p3630_p12 = scmp.ge.s32.totalorder %s4348_s25, 4 }
  0x19   : > { %172 = sbr.rel (%p3630_p12) target bundleno = 119 (0x77), region = 16 }
  0x1e   : > { %175 = sbr.rel (!%p4445_p3) target bundleno = 72 (0x48), region = 20  ;;  %s177_s14 = sand.u32 (%p4445_p3), 1, %s4328_s20  }
  0x1f   : > { %s3831_s30 = sshll.u32 (%p4445_p3), %s4344_s24, 7  ;;  %s3631_s28 = sshll.u32 (%p4445_p3), %s177_s14, 8 }
  0x20   : > { %s6559_s0 = sld [smem:[#allocation27_spill]] (%p4445_p3)  ;;  %s4495_s29 = scalar_lea.vmem (%p4445_p3), [#allocation5], %s3631_s28 }
  0x26   : > { %s4490_s9 = scalar_lea.vmem %s6559_s0, %s3831_s30 }
  0x27   : > { %v273_v0 = vld [vmem:[%s4490_s9] sm:$0xff]  ;;  %v275_v1 = vld [vmem:[%s4490_s9 + $0x8] sm:$0xff]  ;;  %v277_v2 = vld [vmem:[%s4490_s9 + $0x10] sm:$0xff] }
  0x28   : > { %274 = vst [vmem:[%s4495_s29] sm:$0xff] %v273_v0  ;;  %v279_v3 = vld [vmem:[%s4490_s9 + $0x18] sm:$0xff]  ;;  %v281_v4 = vld [vmem:[%s4490_s9 + $0x20] sm:$0xff]  ;;  %v283_v5 = vld [vmem:[%s4490_s9 + $0x28] sm:$0xff] }
  0x29   : > { %276 = vst [vmem:[%s4495_s29 + $0x8] sm:$0xff] %v275_v1  ;;  %v285_v6 = vld [vmem:[%s4490_s9 + $0x30] sm:$0xff]  ;;  %v287_v7 = vld [vmem:[%s4490_s9 + $0x38] sm:$0xff]  ;;  %v289_v8 = vld [vmem:[%s4490_s9 + $0x40] sm:$0xff] }
  0x2a   : > { %278 = vst [vmem:[%s4495_s29 + $0x10] sm:$0xff] %v277_v2  ;;  %v291_v9 = vld [vmem:[%s4490_s9 + $0x48] sm:$0xff]  ;;  %v293_v10 = vld [vmem:[%s4490_s9 + $0x50] sm:$0xff]  ;;  %v295_v11 = vld [vmem:[%s4490_s9 + $0x58] sm:$0xff] }
  0x2b   : > { %280 = vst [vmem:[%s4495_s29 + $0x18] sm:$0xff] %v279_v3  ;;  %v297_v12 = vld [vmem:[%s4490_s9 + $0x60] sm:$0xff]  ;;  %v299_v13 = vld [vmem:[%s4490_s9 + $0x68] sm:$0xff]  ;;  %v301_v14 = vld [vmem:[%s4490_s9 + $0x70] sm:$0xff] }
  0x2c   : > { %282 = vst [vmem:[%s4495_s29 + $0x20] sm:$0xff] %v281_v4  ;;  %v303_v15 = vld [vmem:[%s4490_s9 + $0x78] sm:$0xff]  ;;  %v305_v16 = vld [vmem:[%s4490_s9 + $0x100] sm:$0xff]  ;;  %v307_v17 = vld [vmem:[%s4490_s9 + $0x108] sm:$0xff] }
  0x2d   : > { %284 = vst [vmem:[%s4495_s29 + $0x28] sm:$0xff] %v283_v5  ;;  %v309_v18 = vld [vmem:[%s4490_s9 + $0x110] sm:$0xff]  ;;  %v311_v19 = vld [vmem:[%s4490_s9 + $0x118] sm:$0xff]  ;;  %v313_v20 = vld [vmem:[%s4490_s9 + $0x120] sm:$0xff] }
  0x2e   : > { %286 = vst [vmem:[%s4495_s29 + $0x30] sm:$0xff] %v285_v6  ;;  %v315_v21 = vld [vmem:[%s4490_s9 + $0x128] sm:$0xff]  ;;  %v317_v22 = vld [vmem:[%s4490_s9 + $0x130] sm:$0xff]  ;;  %v319_v23 = vld [vmem:[%s4490_s9 + $0x138] sm:$0xff] }
  0x2f   : > { %288 = vst [vmem:[%s4495_s29 + $0x38] sm:$0xff] %v287_v7  ;;  %v321_v24 = vld [vmem:[%s4490_s9 + $0x140] sm:$0xff]  ;;  %v323_v25 = vld [vmem:[%s4490_s9 + $0x148] sm:$0xff]  ;;  %v325_v26 = vld [vmem:[%s4490_s9 + $0x150] sm:$0xff] }
  0x30   : > { %290 = vst [vmem:[%s4495_s29 + $0x40] sm:$0xff] %v289_v8  ;;  %v327_v27 = vld [vmem:[%s4490_s9 + $0x158] sm:$0xff]  ;;  %v329_v28 = vld [vmem:[%s4490_s9 + $0x160] sm:$0xff]  ;;  %v331_v29 = vld [vmem:[%s4490_s9 + $0x168] sm:$0xff] }
  0x31   : > { %292 = vst [vmem:[%s4495_s29 + $0x48] sm:$0xff] %v291_v9  ;;  %v333_v30 = vld [vmem:[%s4490_s9 + $0x170] sm:$0xff]  ;;  %v335_v31 = vld [vmem:[%s4490_s9 + $0x178] sm:$0xff] }
  0x32   : > { %294 = vst [vmem:[%s4495_s29 + $0x50] sm:$0xff] %v293_v10 }
  0x33   : > { %296 = vst [vmem:[%s4495_s29 + $0x58] sm:$0xff] %v295_v11 }
  0x34   : > { %298 = vst [vmem:[%s4495_s29 + $0x60] sm:$0xff] %v297_v12 }
  0x35   : > { %300 = vst [vmem:[%s4495_s29 + $0x68] sm:$0xff] %v299_v13 }
  0x36   : > { %302 = vst [vmem:[%s4495_s29 + $0x70] sm:$0xff] %v301_v14 }
  0x37   : > { %304 = vst [vmem:[%s4495_s29 + $0x78] sm:$0xff] %v303_v15 }
  0x38   : > { %306 = vst [vmem:[%s4495_s29 + $0x80] sm:$0xff] %v305_v16 }
  0x39   : > { %308 = vst [vmem:[%s4495_s29 + $0x88] sm:$0xff] %v307_v17 }
  0x3a   : > { %310 = vst [vmem:[%s4495_s29 + $0x90] sm:$0xff] %v309_v18 }
  0x3b   : > { %312 = vst [vmem:[%s4495_s29 + $0x98] sm:$0xff] %v311_v19 }
  0x3c   : > { %314 = vst [vmem:[%s4495_s29 + $0xa0] sm:$0xff] %v313_v20 }
  0x3d   : > { %316 = vst [vmem:[%s4495_s29 + $0xa8] sm:$0xff] %v315_v21 }
  0x3e   : > { %318 = vst [vmem:[%s4495_s29 + $0xb0] sm:$0xff] %v317_v22 }
  0x3f   : > { %320 = vst [vmem:[%s4495_s29 + $0xb8] sm:$0xff] %v319_v23 }
  0x40   : > { %322 = vst [vmem:[%s4495_s29 + $0xc0] sm:$0xff] %v321_v24 }
  0x41   : > { %324 = vst [vmem:[%s4495_s29 + $0xc8] sm:$0xff] %v323_v25 }
  0x42   : > { %326 = vst [vmem:[%s4495_s29 + $0xd0] sm:$0xff] %v325_v26 }
  0x43   : > { %328 = vst [vmem:[%s4495_s29 + $0xd8] sm:$0xff] %v327_v27 }
  0x44   : > { %330 = vst [vmem:[%s4495_s29 + $0xe0] sm:$0xff] %v329_v28 }
  0x45   : > { %332 = vst [vmem:[%s4495_s29 + $0xe8] sm:$0xff] %v331_v29 }
  0x46   : > { %334 = vst [vmem:[%s4495_s29 + $0xf0] sm:$0xff] %v333_v30 }
  0x47   : > { %336 = vst [vmem:[%s4495_s29 + $0xf8] sm:$0xff] %v335_v31 }
  0x48 PF: > { %342 = sbr.rel (!%p4463_p7) target bundleno = 77 (0x4d), region = 58  ;;  %s344_s10 = sand.u32 (%p4463_p7), 1, %s4320_s18  }
  0x49   : > { %s347_s28 = scalar_lea.vmem (%p4463_p7), %s6492_s1, %s4340_s23  ;;  %s3634_s5 = sshll.u32 (%p4463_p7), %s344_s10, 1 }
  0x4a   : > { %v364_v32 = vld [vmem:[%s347_s28] sm:$0x1] (%p4463_p7)  ;;  %v366_v33 = vld [vmem:[%s347_s28 + $0x2] sm:$0x1] (%p4463_p7)  ;;  %s346_s7 = scalar_lea.vmem (%p4463_p7), [#allocation6], %s3634_s5 }
  0x4b   : > { %365 = vst [vmem:[%s346_s7] sm:$0x1] (%p4463_p7), %v364_v32 }
  0x4c   : > { %367 = vst [vmem:[%s346_s7 + $0x1] sm:$0x1] (%p4463_p7), %v366_v33 }
  0x4d PF: > { %387 = sbr.rel (!%p4478_p11) target bundleno = 99 (0x63), region = 92  ;;  %s389_s9 = sand.u32 (%p4478_p11), 1, %s4312_s16  }
  0x4e   : > { %s3832_s29 = sshll.u32 (%p4478_p11), %s4344_s24, 5  ;;  %s3635_s0 = sshll.u32 (%p4478_p11), %s389_s9, 6 }
  0x4f   : > { %s394_s27 = sadd.s32 (%p4478_p11), %s4340_s23, %s3832_s29  ;;  %s391_s13 = scalar_lea.vmem (%p4478_p11), [#allocation7], %s3635_s0 }
  0x50   : > { %s3638_s26 = sshll.u32 (%p4478_p11), %s394_s27, 2 }
  0x51   : > { %s4573_s10 = scalar_lea.vmem (%p4478_p11), %s6493_s2, %s3638_s26 }
  0x52   : > { %v413_v34 = vld [vmem:[%s4573_s10] sm:$0xf]  ;;  %v415_v35 = vld [vmem:[%s4573_s10 + $0x8] sm:$0xf]  ;;  %v417_v36 = vld [vmem:[%s4573_s10 + $0x10] sm:$0xf] }
  0x53   : > { %414 = vst [vmem:[%s391_s13] sm:$0xf] %v413_v34  ;;  %v419_v37 = vld [vmem:[%s4573_s10 + $0x18] sm:$0xf]  ;;  %v421_v38 = vld [vmem:[%s4573_s10 + $0x20] sm:$0xf] }
  0x54   : > { %416 = vst [vmem:[%s391_s13 + $0x4] sm:$0xf] %v415_v35  ;;  %v423_v39 = vld [vmem:[%s4573_s10 + $0x28] sm:$0xf]  ;;  %v425_v40 = vld [vmem:[%s4573_s10 + $0x30] sm:$0xf] }
  0x55   : > { %418 = vst [vmem:[%s391_s13 + $0x8] sm:$0xf] %v417_v36  ;;  %v427_v41 = vld [vmem:[%s4573_s10 + $0x38] sm:$0xf]  ;;  %v429_v42 = vld [vmem:[%s4573_s10 + $0x40] sm:$0xf] }
  0x56   : > { %420 = vst [vmem:[%s391_s13 + $0xc] sm:$0xf] %v419_v37  ;;  %v431_v43 = vld [vmem:[%s4573_s10 + $0x48] sm:$0xf]  ;;  %v433_v44 = vld [vmem:[%s4573_s10 + $0x50] sm:$0xf] }
  0x57   : > { %422 = vst [vmem:[%s391_s13 + $0x10] sm:$0xf] %v421_v38  ;;  %v435_v45 = vld [vmem:[%s4573_s10 + $0x58] sm:$0xf]  ;;  %v437_v46 = vld [vmem:[%s4573_s10 + $0x60] sm:$0xf] }
  0x58   : > { %424 = vst [vmem:[%s391_s13 + $0x14] sm:$0xf] %v423_v39  ;;  %v439_v47 = vld [vmem:[%s4573_s10 + $0x68] sm:$0xf]  ;;  %v441_v48 = vld [vmem:[%s4573_s10 + $0x70] sm:$0xf] }
  0x59   : > { %426 = vst [vmem:[%s391_s13 + $0x18] sm:$0xf] %v425_v40  ;;  %v443_v49 = vld [vmem:[%s4573_s10 + $0x78] sm:$0xf] }
  0x5a   : > { %428 = vst [vmem:[%s391_s13 + $0x1c] sm:$0xf] %v427_v41 }
  0x5b   : > { %430 = vst [vmem:[%s391_s13 + $0x20] sm:$0xf] %v429_v42 }
  0x5c   : > { %432 = vst [vmem:[%s391_s13 + $0x24] sm:$0xf] %v431_v43 }
  0x5d   : > { %434 = vst [vmem:[%s391_s13 + $0x28] sm:$0xf] %v433_v44 }
  0x5e   : > { %436 = vst [vmem:[%s391_s13 + $0x2c] sm:$0xf] %v435_v45 }
  0x5f   : > { %438 = vst [vmem:[%s391_s13 + $0x30] sm:$0xf] %v437_v46 }
  0x60   : > { %440 = vst [vmem:[%s391_s13 + $0x34] sm:$0xf] %v439_v47 }
  0x61   : > { %442 = vst [vmem:[%s391_s13 + $0x38] sm:$0xf] %v441_v48 }
  0x62   : > { %444 = vst [vmem:[%s391_s13 + $0x3c] sm:$0xf] %v443_v49 }
  0x63 PF: > { %500 = sbr.rel (!%p4463_p7) target bundleno = 119 (0x77), region = 133  ;;  %s502_s0 = sand.u32 (%p4463_p7), 1, %s4320_s18  }
  0x64   : > { %s3833_s26 = sshll.u32 (%p4463_p7), %s4340_s23, 6  ;;  %s3639_s27 = sshll.u32 (%p4463_p7), %s502_s0, 7 }
  0x65   : > { %s4598_s7 = scalar_lea.vmem (%p4463_p7), %s6494_s3, %s3833_s26  ;;  %s504_s8 = scalar_lea.vmem (%p4463_p7), [#allocation8], %s3639_s27 }
  0x66   : > { %v524_v50 = vld [vmem:[%s4598_s7] sm:$0xff] (%p4463_p7)   ;;  %v528_v51 = vld [vmem:[%s4598_s7 + $0x8] sm:$0xff] (%p4463_p7)   ;;  %v532_v52 = vld [vmem:[%s4598_s7 + $0x10] sm:$0xff] (%p4463_p7)  }
  0x67   : > { %525 = vst [vmem:[%s504_s8] sm:$0xff] (%p4463_p7), %v524_v50   ;;  %v536_v53 = vld [vmem:[%s4598_s7 + $0x18] sm:$0xff] (%p4463_p7)   ;;  %v540_v54 = vld [vmem:[%s4598_s7 + $0x20] sm:$0xff] (%p4463_p7)   ;;  %v544_v55 = vld [vmem:[%s4598_s7 + $0x28] sm:$0xff] (%p4463_p7)  }
  0x68   : > { %529 = vst [vmem:[%s504_s8 + $0x8] sm:$0xff] %v528_v51   ;;  %v548_v56 = vld [vmem:[%s4598_s7 + $0x30] sm:$0xff]   ;;  %v552_v57 = vld [vmem:[%s4598_s7 + $0x38] sm:$0xff]   ;;  %v556_v58 = vld [vmem:[%s4598_s7 + $0x80] sm:$0xff]  }
  0x69   : > { %533 = vst [vmem:[%s504_s8 + $0x10] sm:$0xff] %v532_v52   ;;  %v560_v59 = vld [vmem:[%s4598_s7 + $0x88] sm:$0xff]   ;;  %v564_v60 = vld [vmem:[%s4598_s7 + $0x90] sm:$0xff]   ;;  %v568_v61 = vld [vmem:[%s4598_s7 + $0x98] sm:$0xff]  }
  0x6a   : > { %537 = vst [vmem:[%s504_s8 + $0x18] sm:$0xff] %v536_v53   ;;  %v572_v62 = vld [vmem:[%s4598_s7 + $0xa0] sm:$0xff]   ;;  %v576_v63 = vld [vmem:[%s4598_s7 + $0xa8] sm:$0xff]   ;;  %v580_v0 = vld [vmem:[%s4598_s7 + $0xb0] sm:$0xff]  }
  0x6b   : > { %541 = vst [vmem:[%s504_s8 + $0x20] sm:$0xff] %v540_v54   ;;  %v584_v1 = vld [vmem:[%s4598_s7 + $0xb8] sm:$0xff]  }
  0x6c   : > { %545 = vst [vmem:[%s504_s8 + $0x28] sm:$0xff] %v544_v55  }
  0x6d   : > { %549 = vst [vmem:[%s504_s8 + $0x30] sm:$0xff] %v548_v56  }
  0x6e   : > { %553 = vst [vmem:[%s504_s8 + $0x38] sm:$0xff] %v552_v57  }
  0x6f   : > { %557 = vst [vmem:[%s504_s8 + $0x40] sm:$0xff] %v556_v58  }
  0x70   : > { %561 = vst [vmem:[%s504_s8 + $0x48] sm:$0xff] %v560_v59  }
  0x71   : > { %565 = vst [vmem:[%s504_s8 + $0x50] sm:$0xff] %v564_v60  }
  0x72   : > { %569 = vst [vmem:[%s504_s8 + $0x58] sm:$0xff] %v568_v61  }
  0x73   : > { %573 = vst [vmem:[%s504_s8 + $0x60] sm:$0xff] %v572_v62  }
  0x74   : > { %577 = vst [vmem:[%s504_s8 + $0x68] sm:$0xff] %v576_v63  }
  0x75   : > { %581 = vst [vmem:[%s504_s8 + $0x70] sm:$0xff] %v580_v0  }
  0x76   : > { %585 = vst [vmem:[%s504_s8 + $0x78] sm:$0xff] %v584_v1  }
  0x77 PF: > { %p3642_p13 = scmp.ge.s32.totalorder %s4348_s25, 1  ;;  %p674_p0 = scmp.lt.s32.totalorder %s4348_s25, 5 }
  0x79   : > { %p675_p1 = pnand %p3642_p13, %p674_p0 }
  0x7b   : > { %678 = sbr.rel (%p675_p1) target bundleno = 1453 (0x5ad), region = 174 }
  0x80   : > { %s681_s9 = sand.u32 1, %s4324_s19   ;;  %s688_s29 = sand.u32 1, %s4316_s17  }
  0x81   : > { %s3643_s14 = sshll.u32 %s681_s9, 8  ;;  %s4620_s30 = sshll.u32 %s688_s29, 1 }
  0x82   : > { %s695_s10 = sand.u32 1, %s4308_s15   ;;  %s3646_s13 = sshll.u32 %s688_s29, 7 }
  0x83   : > { %s3645_s0 = sshll.u32 %s695_s10, 6  ;;  %s3647_s26 = sshll.u32 %s4336_s22, 4 }
  0x84   : > { %p744_p2 = scmp.lt.s32.totalorder %s3647_s26, 31  ;;  %s4629_s8 = scalar_lea.vmem [#allocation5], %s3643_s14 }
  0x85   : > { %s690_s19 = scalar_lea.vmem [#allocation6], %s4620_s30  ;;  %s4632_s17 = scalar_lea.vmem [#allocation7], %s3645_s0 }
  0x86   : > { %s6762_s26 = smov (!%p744_p2, %s3647_s26), 31  ;;  %s4634_s9 = scalar_lea.vmem [#allocation8], %s3646_s13 }
  0x87   : > { %s3834_s27 = sshll.u32 %s6762_s26, 4  ;;  %p3650_p3 = scmp.ne.s32.totalorder %s4332_s21, 0 }
  0x88   : > { %s4627_s7 = scalar_lea.vmem %s6495_s4, %s3834_s27 }
  0x89   : > { %753 = sbr.rel (%p3650_p3) target bundleno = 239 (0xef), region = 194 }
  0x8e   : > { %vm754_vm0 = vcmask 7168   ;;  %v4350_v2 = vmov -1e+30   ;;  %v4351_v3 = vmov 0.0  }
  0x8f   : > { %755 = vst.msk [vmem:[#allocation2] sm:$0xff] %vm754_vm0, %v4350_v2 }
  0x90   : > { %756 = vst.msk [vmem:[#allocation2 + $0x8] sm:$0xff] %vm754_vm0, %v4350_v2 }
  0x91   : > { %757 = vst.msk [vmem:[#allocation2 + $0x10] sm:$0xff] %vm754_vm0, %v4350_v2 }
  0x92   : > { %758 = vst.msk [vmem:[#allocation2 + $0x18] sm:$0xff] %vm754_vm0, %v4350_v2 }
  0x93   : > { %759 = vst.msk [vmem:[#allocation2 + $0x20] sm:$0xff] %vm754_vm0, %v4350_v2 }
  0x94   : > { %760 = vst.msk [vmem:[#allocation2 + $0x28] sm:$0xff] %vm754_vm0, %v4350_v2 }
  0x95   : > { %761 = vst.msk [vmem:[#allocation2 + $0x30] sm:$0xff] %vm754_vm0, %v4350_v2 }
  0x96   : > { %762 = vst.msk [vmem:[#allocation2 + $0x38] sm:$0xff] %vm754_vm0, %v4350_v2 }
  0x97   : > { %763 = vst.msk [vmem:[#allocation2 + $0x40] sm:$0xff] %vm754_vm0, %v4350_v2 }
  0x98   : > { %764 = vst.msk [vmem:[#allocation2 + $0x48] sm:$0xff] %vm754_vm0, %v4350_v2 }
  0x99   : > { %765 = vst.msk [vmem:[#allocation2 + $0x50] sm:$0xff] %vm754_vm0, %v4350_v2 }
  0x9a   : > { %766 = vst.msk [vmem:[#allocation2 + $0x58] sm:$0xff] %vm754_vm0, %v4350_v2 }
  0x9b   : > { %767 = vst.msk [vmem:[#allocation2 + $0x60] sm:$0xff] %vm754_vm0, %v4350_v2 }
  0x9c   : > { %768 = vst.msk [vmem:[#allocation2 + $0x68] sm:$0xff] %vm754_vm0, %v4350_v2 }
  0x9d   : > { %769 = vst.msk [vmem:[#allocation2 + $0x70] sm:$0xff] %vm754_vm0, %v4350_v2 }
  0x9e   : > { %770 = vst.msk [vmem:[#allocation2 + $0x78] sm:$0xff] %vm754_vm0, %v4350_v2 }
  0x9f   : > { %771 = vst.msk [vmem:[#allocation2 + $0x80] sm:$0xff] %vm754_vm0, %v4350_v2 }
  0xa0   : > { %772 = vst.msk [vmem:[#allocation2 + $0x88] sm:$0xff] %vm754_vm0, %v4350_v2 }
  0xa1   : > { %773 = vst.msk [vmem:[#allocation2 + $0x90] sm:$0xff] %vm754_vm0, %v4350_v2 }
  0xa2   : > { %774 = vst.msk [vmem:[#allocation2 + $0x98] sm:$0xff] %vm754_vm0, %v4350_v2 }
  0xa3   : > { %775 = vst.msk [vmem:[#allocation2 + $0xa0] sm:$0xff] %vm754_vm0, %v4350_v2 }
  0xa4   : > { %776 = vst.msk [vmem:[#allocation2 + $0xa8] sm:$0xff] %vm754_vm0, %v4350_v2 }
  0xa5   : > { %777 = vst.msk [vmem:[#allocation2 + $0xb0] sm:$0xff] %vm754_vm0, %v4350_v2 }
  0xa6   : > { %778 = vst.msk [vmem:[#allocation2 + $0xb8] sm:$0xff] %vm754_vm0, %v4350_v2 }
  0xa7   : > { %779 = vst.msk [vmem:[#allocation2 + $0xc0] sm:$0xff] %vm754_vm0, %v4350_v2 }
  0xa8   : > { %780 = vst.msk [vmem:[#allocation2 + $0xc8] sm:$0xff] %vm754_vm0, %v4350_v2 }
  0xa9   : > { %781 = vst.msk [vmem:[#allocation2 + $0xd0] sm:$0xff] %vm754_vm0, %v4350_v2 }
  0xaa   : > { %782 = vst.msk [vmem:[#allocation2 + $0xd8] sm:$0xff] %vm754_vm0, %v4350_v2 }
  0xab   : > { %783 = vst.msk [vmem:[#allocation2 + $0xe0] sm:$0xff] %vm754_vm0, %v4350_v2 }
  0xac   : > { %784 = vst.msk [vmem:[#allocation2 + $0xe8] sm:$0xff] %vm754_vm0, %v4350_v2 }
  0xad   : > { %785 = vst.msk [vmem:[#allocation2 + $0xf0] sm:$0xff] %vm754_vm0, %v4350_v2 }
  0xae   : > { %786 = vst.msk [vmem:[#allocation2 + $0xf8] sm:$0xff] %vm754_vm0, %v4350_v2 }
  0xaf   : > { %787 = vst.msk [vmem:[#allocation3] sm:$0xff] %vm754_vm0, %v4351_v3 }
  0xb0   : > { %788 = vst.msk [vmem:[#allocation3 + $0x8] sm:$0xff] %vm754_vm0, %v4351_v3 }
  0xb1   : > { %789 = vst.msk [vmem:[#allocation3 + $0x10] sm:$0xff] %vm754_vm0, %v4351_v3 }
  0xb2   : > { %790 = vst.msk [vmem:[#allocation3 + $0x18] sm:$0xff] %vm754_vm0, %v4351_v3 }
  0xb3   : > { %791 = vst.msk [vmem:[#allocation3 + $0x20] sm:$0xff] %vm754_vm0, %v4351_v3 }
  0xb4   : > { %792 = vst.msk [vmem:[#allocation3 + $0x28] sm:$0xff] %vm754_vm0, %v4351_v3 }
  0xb5   : > { %793 = vst.msk [vmem:[#allocation3 + $0x30] sm:$0xff] %vm754_vm0, %v4351_v3 }
  0xb6   : > { %794 = vst.msk [vmem:[#allocation3 + $0x38] sm:$0xff] %vm754_vm0, %v4351_v3 }
  0xb7   : > { %795 = vst.msk [vmem:[#allocation3 + $0x40] sm:$0xff] %vm754_vm0, %v4351_v3 }
  0xb8   : > { %796 = vst.msk [vmem:[#allocation3 + $0x48] sm:$0xff] %vm754_vm0, %v4351_v3 }
  0xb9   : > { %797 = vst.msk [vmem:[#allocation3 + $0x50] sm:$0xff] %vm754_vm0, %v4351_v3 }
  0xba   : > { %798 = vst.msk [vmem:[#allocation3 + $0x58] sm:$0xff] %vm754_vm0, %v4351_v3 }
  0xbb   : > { %799 = vst.msk [vmem:[#allocation3 + $0x60] sm:$0xff] %vm754_vm0, %v4351_v3 }
  0xbc   : > { %800 = vst.msk [vmem:[#allocation3 + $0x68] sm:$0xff] %vm754_vm0, %v4351_v3 }
  0xbd   : > { %801 = vst.msk [vmem:[#allocation3 + $0x70] sm:$0xff] %vm754_vm0, %v4351_v3 }
  0xbe   : > { %802 = vst.msk [vmem:[#allocation3 + $0x78] sm:$0xff] %vm754_vm0, %v4351_v3 }
  0xbf   : > { %803 = vst.msk [vmem:[#allocation3 + $0x80] sm:$0xff] %vm754_vm0, %v4351_v3 }
  0xc0   : > { %804 = vst.msk [vmem:[#allocation3 + $0x88] sm:$0xff] %vm754_vm0, %v4351_v3 }
  0xc1   : > { %805 = vst.msk [vmem:[#allocation3 + $0x90] sm:$0xff] %vm754_vm0, %v4351_v3 }
  0xc2   : > { %806 = vst.msk [vmem:[#allocation3 + $0x98] sm:$0xff] %vm754_vm0, %v4351_v3 }
  0xc3   : > { %807 = vst.msk [vmem:[#allocation3 + $0xa0] sm:$0xff] %vm754_vm0, %v4351_v3 }
  0xc4   : > { %808 = vst.msk [vmem:[#allocation3 + $0xa8] sm:$0xff] %vm754_vm0, %v4351_v3 }
  0xc5   : > { %809 = vst.msk [vmem:[#allocation3 + $0xb0] sm:$0xff] %vm754_vm0, %v4351_v3 }
  0xc6   : > { %810 = vst.msk [vmem:[#allocation3 + $0xb8] sm:$0xff] %vm754_vm0, %v4351_v3 }
  0xc7   : > { %811 = vst.msk [vmem:[#allocation3 + $0xc0] sm:$0xff] %vm754_vm0, %v4351_v3 }
  0xc8   : > { %812 = vst.msk [vmem:[#allocation3 + $0xc8] sm:$0xff] %vm754_vm0, %v4351_v3 }
  0xc9   : > { %813 = vst.msk [vmem:[#allocation3 + $0xd0] sm:$0xff] %vm754_vm0, %v4351_v3 }
  0xca   : > { %814 = vst.msk [vmem:[#allocation3 + $0xd8] sm:$0xff] %vm754_vm0, %v4351_v3 }
  0xcb   : > { %815 = vst.msk [vmem:[#allocation3 + $0xe0] sm:$0xff] %vm754_vm0, %v4351_v3 }
  0xcc   : > { %816 = vst.msk [vmem:[#allocation3 + $0xe8] sm:$0xff] %vm754_vm0, %v4351_v3 }
  0xcd   : > { %817 = vst.msk [vmem:[#allocation3 + $0xf0] sm:$0xff] %vm754_vm0, %v4351_v3 }
  0xce   : > { %818 = vst.msk [vmem:[#allocation3 + $0xf8] sm:$0xff] %vm754_vm0, %v4351_v3 }
  0xcf   : > { %819 = vst [vmem:[#allocation4 + $0xb0] sm:$0xff] %v4351_v3 }
  0xd0   : > { %820 = vst [vmem:[#allocation4] sm:$0xff] %v4351_v3 }
  0xd1   : > { %821 = vst [vmem:[#allocation4 + $0xd8] sm:$0xff] %v4351_v3 }
  0xd2   : > { %822 = vst [vmem:[#allocation4 + $0x18] sm:$0xff] %v4351_v3 }
  0xd3   : > { %823 = vst [vmem:[#allocation4 + $0x50] sm:$0xff] %v4351_v3 }
  0xd4   : > { %824 = vst [vmem:[#allocation4 + $0x68] sm:$0xff] %v4351_v3 }
  0xd5   : > { %825 = vst [vmem:[#allocation4 + $0x30] sm:$0xff] %v4351_v3 }
  0xd6   : > { %826 = vst [vmem:[#allocation4 + $0x48] sm:$0xff] %v4351_v3 }
  0xd7   : > { %827 = vst [vmem:[#allocation4 + $0x80] sm:$0xff] %v4351_v3 }
  0xd8   : > { %828 = vst [vmem:[#allocation4 + $0x88] sm:$0xff] %v4351_v3 }
  0xd9   : > { %829 = vst [vmem:[#allocation4 + $0xe8] sm:$0xff] %v4351_v3 }
  0xda   : > { %830 = vst [vmem:[#allocation4 + $0xb8] sm:$0xff] %v4351_v3 }
  0xdb   : > { %831 = vst [vmem:[#allocation4 + $0x60] sm:$0xff] %v4351_v3 }
  0xdc   : > { %832 = vst [vmem:[#allocation4 + $0xf0] sm:$0xff] %v4351_v3 }
  0xdd   : > { %833 = vst [vmem:[#allocation4 + $0x8] sm:$0xff] %v4351_v3 }
  0xde   : > { %834 = vst [vmem:[#allocation4 + $0x78] sm:$0xff] %v4351_v3 }
  0xdf   : > { %835 = vst [vmem:[#allocation4 + $0x38] sm:$0xff] %v4351_v3 }
  0xe0   : > { %836 = vst [vmem:[#allocation4 + $0x58] sm:$0xff] %v4351_v3 }
  0xe1   : > { %837 = vst [vmem:[#allocation4 + $0x40] sm:$0xff] %v4351_v3 }
  0xe2   : > { %838 = vst [vmem:[#allocation4 + $0xc8] sm:$0xff] %v4351_v3 }
  0xe3   : > { %839 = vst [vmem:[#allocation4 + $0xe0] sm:$0xff] %v4351_v3 }
  0xe4   : > { %840 = vst [vmem:[#allocation4 + $0x90] sm:$0xff] %v4351_v3 }
  0xe5   : > { %841 = vst [vmem:[#allocation4 + $0x70] sm:$0xff] %v4351_v3 }
  0xe6   : > { %842 = vst [vmem:[#allocation4 + $0xc0] sm:$0xff] %v4351_v3 }
  0xe7   : > { %843 = vst [vmem:[#allocation4 + $0xa8] sm:$0xff] %v4351_v3 }
  0xe8   : > { %844 = vst [vmem:[#allocation4 + $0xd0] sm:$0xff] %v4351_v3 }
  0xe9   : > { %845 = vst [vmem:[#allocation4 + $0x10] sm:$0xff] %v4351_v3 }
  0xea   : > { %846 = vst [vmem:[#allocation4 + $0x28] sm:$0xff] %v4351_v3 }
  0xeb   : > { %847 = vst [vmem:[#allocation4 + $0xa0] sm:$0xff] %v4351_v3 }
  0xec   : > { %848 = vst [vmem:[#allocation4 + $0xf8] sm:$0xff] %v4351_v3 }
  0xed   : > { %849 = vst [vmem:[#allocation4 + $0x20] sm:$0xff] %v4351_v3 }
  0xee   : > { %850 = vst [vmem:[#allocation4 + $0x98] sm:$0xff] %v4351_v3 }
  0xef PF: > { %v903_v4 = vld [vmem:[%s4629_s8 + $0x20] sm:$0xff]  ;;  %v901_v5 = vld [vmem:[%s4629_s8 + $0x10] sm:$0xff]  ;;  %v4352_v7 = vmov 0   ;;  %v904_v8 = vld [vmem:[%s4629_s8 + $0x28] sm:$0xff]  ;;  %v6560_v35 = vmov 0  ;;  %v6563_v36 = vmov 0 }
  0xf0   : > { %v899_v6 = vld [vmem:[%s4629_s8] sm:$0xff]  ;;  %4000 = vset.pattern.permute.xlu2 %v4352_v7  ;;  %3999 = vset.pattern.permute.xlu1 %v4352_v7  ;;  %v902_v9 = vld [vmem:[%s4629_s8 + $0x18] sm:$0xff]  ;;  %v900_v10 = vld [vmem:[%s4629_s8 + $0x8] sm:$0xff]  ;;  %p3796_p4 = scmp.ne.s32.totalorder %s4332_s21, 1 }
  0xf1   : > { %3998 = vset.pattern.permute.xlu0 %v4352_v7  ;;  %938 = vperm.xlu2 %4000, %v903_v4   ;;  %v907_v11 = vld [vmem:[%s4629_s8 + $0x40] sm:$0xff]  ;;  %v906_v12 = vld [vmem:[%s4629_s8 + $0x38] sm:$0xff]  ;;  %v905_v13 = vld [vmem:[%s4629_s8 + $0x30] sm:$0xff] }
  0xf2   : > { %928 = vperm.xlu1 %3999, %v901_v5   ;;  %918 = vperm.xlu0 %3998, %v899_v6   ;;  %v910_v14 = vld [vmem:[%s4629_s8 + $0x58] sm:$0xff]  ;;  %v909_v15 = vld [vmem:[%s4629_s8 + $0x50] sm:$0xff]  ;;  %v908_v16 = vld [vmem:[%s4629_s8 + $0x48] sm:$0xff]  ;;  %v6569_v5 = vmov 0  ;;  %v6572_v6 = vmov 0 }
  0xf3   : > { %v913_v17 = vld [vmem:[%s4629_s8 + $0x70] sm:$0xff]  ;;  %v912_v18 = vld [vmem:[%s4629_s8 + $0x68] sm:$0xff]  ;;  %v911_v19 = vld [vmem:[%s4629_s8 + $0x60] sm:$0xff] }
  0xf4   : > { %v3709_v20 = vld [vmem:[%s4629_s8 + $0x90] sm:$0xff]  ;;  %v3708_v21 = vld [vmem:[%s4629_s8 + $0x88] sm:$0xff]  ;;  %v914_v22 = vld [vmem:[%s4629_s8 + $0x78] sm:$0xff] }
  0xf5   : > { %v3707_v23 = vld [vmem:[%s4629_s8 + $0x80] sm:$0xff]  ;;  %v3883_v24 = vld [vmem:[%s4632_s17 + $0x8] sm:$0xff]   ;;  %v4802_v37 = vld [vmem:[%s4632_s17 + $0x10] sm:$0xff]  }
  0xf6   : > { %v3852_v25 = vld [vmem:[%s4632_s17] sm:$0xff]   ;;  %v4788_v26 = vld [vmem:[%s690_s19] ss:$0 sm:$0xff]  ;;  %v3857_v27 = vunpack.c.l.bf16 %v3883_v24  ;;  %v3861_v42 = vunpack.c.l.bf16 %v4802_v37  ;;  %v3858_v59 = vunpack.c.h.bf16 %v3883_v24 }
  0xf7   : > { %v3853_v28 = vunpack.c.l.bf16 %v3852_v25  ;;  %v3854_v46 = vunpack.c.h.bf16 %v3852_v25  ;;  %v3885_v56 = vld [vmem:[%s4632_s17 + $0x18] sm:$0xff]  }
  0xf8   : > { %vm4793_vm1 = vcmp.gt.f32.partialorder %v3857_v27, 0.0  ;;  %vm4816_vm6 = vcmp.gt.f32.partialorder %v3861_v42, 0.0  ;;  %v3865_v61 = vunpack.c.l.bf16 %v3885_v56  ;;  %v3866_v63 = vunpack.c.h.bf16 %v3885_v56 }
  0xf9   : > { %943 = vperm.xlu2 %4000, %v904_v8   ;;  %v6561_v35 = vsel %vm4793_vm1, 4294967295, %v6560_v35  ;;  %vm4797_vm2 = vcmp.gt.f32.partialorder %v3853_v28, 0.0  ;;  %vm4821_vm7 = vcmp.gt.f32.partialorder %v3854_v46, 0.0  ;;  %vm4843_vm11 = vcmp.gt.f32.partialorder %v3858_v59, 0.0 }
  0xfa   : > { %933 = vperm.xlu1 %3999, %v902_v9   ;;  %923 = vperm.xlu0 %3998, %v900_v10   ;;  %6562 = vst [vmem:[#allocation11_spill] sm:$0xff] %v6561_v35  ;;  %v6564_v36 = vsel %vm4797_vm2, 4294967295, %v6563_v36  ;;  %vm4839_vm10 = vcmp.gt.f32.partialorder %v3865_v61, 0.0  ;;  %v6573_v6 = vsel %vm4843_vm11, 4294967295, %v6572_v6  ;;  %vm4847_vm12 = vcmp.gt.f32.partialorder %v3866_v63, 0.0 }
  0xfb   : > { %v6570_v5 = vsel %vm4839_vm10, 4294967295, %v6569_v5  ;;  %6574 = vst [vmem:[#allocation13_spill] sm:$0xff] %v6573_v6  ;;  %v6575_v8 = vmov 0  ;;  %v6585_v56 = vmov 0  ;;  %v6588_v59 = vmov 0 }
  0xfc   : > { %6571 = vst [vmem:[#allocation12_spill] sm:$0xff] %v6570_v5  ;;  %v6576_v8 = vsel %vm4847_vm12, 4294967295, %v6575_v8 }
  0xfd   : > { %6577 = vst [vmem:[#allocation14_spill] sm:$0xff] %v6576_v8 }
 0x101   : > { %958 = vperm.xlu2 %4000, %v907_v11   ;;  %v3886_v11 = vld [vmem:[%s4632_s17 + $0x20] sm:$0xff]  }
 0x102   : > { %953 = vperm.xlu1 %3999, %v906_v12   ;;  %948 = vperm.xlu0 %3998, %v905_v13   ;;  %v3862_v12 = vunpack.c.h.bf16 %v4802_v37 }
 0x109   : > { %973 = vperm.xlu2 %4000, %v910_v14  }
 0x10a   : > { %968 = vperm.xlu1 %3999, %v909_v15   ;;  %963 = vperm.xlu0 %3998, %v908_v16   ;;  %v3870_v16 = vunpack.c.h.bf16 %v3886_v11 }
 0x10c   : > { %vm4875_vm0 = vcmp.gt.f32.partialorder %v3870_v16, 0.0  ;;  %v6595_v16 = vmov 0 }
 0x111   : > { %988 = vperm.xlu2 %4000, %v913_v17  }
 0x112   : > { %983 = vperm.xlu1 %3999, %v912_v18   ;;  %978 = vperm.xlu0 %3998, %v911_v19   ;;  %v4854_v18 = vld [vmem:[%s4632_s17 + $0x28] sm:$0xff]  }
 0x119   : > { %1744 = vperm.xlu2 %4000, %v3709_v20  }
 0x11a   : > { %1739 = vperm.xlu1 %3999, %v3708_v21   ;;  %993 = vperm.xlu0 %3998, %v914_v22   ;;  %v3873_v22 = vunpack.c.l.bf16 %v4854_v18 }
 0x122   : > { %1734 = vperm.xlu0 %3998, %v3707_v23  }
 0x14b   : > { %v939_v29 = vpop.permute.xlu2 %938 }
 0x14c   : > { %v1003_v32 = vadd.f32 %v4788_v26, %v939_v29  ;;  %v6578_v29 = vmov 0 }
 0x14d   : > { %v6579_v29 = vsel %vm4875_vm0, 4294967295, %v6578_v29 }
 0x14e   : > { %v1035_v43 = vmul.f32 0.01, %v1003_v32  ;;  %vm1019_vm5 = vcmp.gt.f32.partialorder %v1003_v32, 0.0 }
 0x150   : > { %v1051_v51 = vsel %vm1019_vm5, %v1003_v32, %v1035_v43 }
 0x151   : > { %v4828_v57 = vsel %vm4816_vm6, %v1051_v51, -1e+30 }
 0x153   : > { %v944_v53 = vpop.permute.xlu2 %943 }
 0x154   : > { %v1004_v2 = vadd.f32 %v4788_v26, %v944_v53 }
 0x156   : > { %v1036_v17 = vmul.f32 0.01, %v1004_v2  ;;  %vm1020_vm15 = vcmp.gt.f32.partialorder %v1004_v2, 0.0 }
 0x15b   : > { %v959_v13 = vpop.permute.xlu2 %958 }
 0x15c   : > { %v1007_v25 = vadd.f32 %v4788_v26, %v959_v13 }
 0x15e   : > { %v1039_v42 = vmul.f32 0.01, %v1007_v25 }
 0x164   : > { %v929_v30 = vpop.permute.xlu1 %928  ;;  %v919_v31 = vpop.permute.xlu0 %918 }
 0x165   : > { %v1001_v33 = vadd.f32 %v4788_v26, %v929_v30  ;;  %v999_v34 = vadd.f32 %v4788_v26, %v919_v31  ;;  %v6580_v30 = vmov 0  ;;  %v1052_v31 = vsel %vm1020_vm15, %v1004_v2, %v1036_v17 }
 0x167   : > { %vm1017_vm3 = vcmp.gt.f32.partialorder %v1001_v33, 0.0  ;;  %v1033_v38 = vmul.f32 0.01, %v1001_v33  ;;  %vm1015_vm4 = vcmp.gt.f32.partialorder %v999_v34, 0.0  ;;  %v1031_v39 = vmul.f32 0.01, %v999_v34 }
 0x169   : > { %v1049_v40 = vsel %vm1017_vm3, %v1001_v33, %v1033_v38  ;;  %v1047_v41 = vsel %vm1015_vm4, %v999_v34, %v1031_v39  ;;  %vm4879_vm3 = vcmp.gt.f32.partialorder %v3862_v12, 0.0  ;;  %vm4883_vm4 = vcmp.gt.f32.partialorder %v3873_v22, 0.0  ;;  %v3888_v33 = vld [vmem:[%s4632_s17 + $0x30] sm:$0xff]  }
 0x16a   : > { %v4807_v44 = vsel %vm4793_vm1, %v1049_v40, -1e+30  ;;  %v4811_v45 = vsel %vm4797_vm2, %v1047_v41, -1e+30  ;;  %v6581_v30 = vsel %vm4879_vm3, 4294967295, %v6580_v30  ;;  %v3869_v38 = vunpack.c.l.bf16 %v3886_v11 }
 0x16b   : > { %1099 = vmax.xlane.f32.xlu0 %v4807_v44  ;;  %1095 = vmax.xlane.f32.xlu1 %v4811_v45  ;;  %6582 = vst [vmem:[#allocation15_spill] sm:$0xff] %v6581_v30  ;;  %v4890_v40 = vsel %vm4879_vm3, %v1052_v31, -1e+30  ;;  %v6598_v22 = vmov 0  ;;  %v6601_v31 = vmov 0 }
 0x16c   : > { %v934_v47 = vpop.permute.xlu1 %933  ;;  %v924_v48 = vpop.permute.xlu0 %923 }
 0x16d   : > { %v1000_v49 = vadd.f32 %v4788_v26, %v924_v48  ;;  %v1002_v52 = vadd.f32 %v4788_v26, %v934_v47  ;;  %v3877_v47 = vunpack.c.l.bf16 %v3888_v33  ;;  %v3878_v48 = vunpack.c.h.bf16 %v3888_v33 }
 0x16f   : > { %vm1016_vm8 = vcmp.gt.f32.partialorder %v1000_v49, 0.0  ;;  %v1032_v55 = vmul.f32 0.01, %v1000_v49  ;;  %v1034_v62 = vmul.f32 0.01, %v1002_v52  ;;  %vm1018_vm9 = vcmp.gt.f32.partialorder %v1002_v52, 0.0 }
 0x170   : > { %vm4914_vm15 = vcmp.gt.f32.partialorder %v3878_v48, 0.0 }
 0x171   : > { %v1048_v58 = vsel %vm1016_vm8, %v1000_v49, %v1032_v55  ;;  %v1050_v7 = vsel %vm1018_vm9, %v1002_v52, %v1034_v62  ;;  %v974_v49 = vpop.permute.xlu2 %973  ;;  %vm1023_vm9 = vcmp.gt.f32.partialorder %v1007_v25, 0.0  ;;  %v6591_v62 = vmov 0 }
 0x172   : > { %v4832_v60 = vsel %vm4821_vm7, %v1048_v58, -1e+30  ;;  %v4862_v20 = vsel %vm4843_vm11, %v1050_v7, -1e+30  ;;  %v1010_v58 = vadd.f32 %v4788_v26, %v974_v49  ;;  %v1055_v61 = vsel %vm1023_vm9, %v1007_v25, %v1039_v42  ;;  %v3712_v42 = vld [vmem:[%s4629_s8 + $0xa8] sm:$0xff]  ;;  %v1081_v49 = vld [vmem:[#allocation2 + $0x10] sm:$0xff] }
 0x173   : > { %1097 = vmax.xlane.f32.xlu2 %v4832_v60  ;;  %1103 = vmax.xlane.f32.xlu1 %v4828_v57  ;;  %v6592_v62 = vsel %vm4914_vm15, 4294967295, %v6591_v62 }
 0x174   : > { %v954_v0 = vpop.permute.xlu1 %953  ;;  %v949_v1 = vpop.permute.xlu0 %948  ;;  %6593 = vst [vmem:[#allocation18_spill] sm:$0xff] %v6592_v62  ;;  %v1042_v11 = vmul.f32 0.01, %v1010_v58  ;;  %vm1026_vm9 = vcmp.gt.f32.partialorder %v1010_v58, 0.0 }
 0x175   : > { %v1006_v3 = vadd.f32 %v4788_v26, %v954_v0  ;;  %v1005_v4 = vadd.f32 %v4788_v26, %v949_v1 }
 0x176   : > { %v1058_v17 = vsel %vm1026_vm9, %v1010_v58, %v1042_v11  ;;  %v4993_v11 = vld [vmem:[#allocation2 + $0x30] sm:$0xff] }
 0x177   : > { %vm1021_vm13 = vcmp.gt.f32.partialorder %v1005_v4, 0.0  ;;  %v1037_v9 = vmul.f32 0.01, %v1005_v4  ;;  %vm1022_vm14 = vcmp.gt.f32.partialorder %v1006_v3, 0.0  ;;  %v1038_v10 = vmul.f32 0.01, %v1006_v3 }
 0x179   : > { %v1053_v14 = vsel %vm1021_vm13, %v1005_v4, %v1037_v9  ;;  %v1054_v15 = vsel %vm1022_vm14, %v1006_v3, %v1038_v10  ;;  %vm4905_vm13 = vcmp.gt.f32.partialorder %v3869_v38, 0.0  ;;  %vm4910_vm14 = vcmp.gt.f32.partialorder %v3877_v47, 0.0  ;;  %v3889_v4 = vld [vmem:[%s4632_s17 + $0x38] sm:$0xff]  }
 0x17a   : > { %v4858_v19 = vsel %vm4839_vm10, %v1053_v14, -1e+30  ;;  %v4866_v21 = vsel %vm4847_vm12, %v1054_v15, -1e+30  ;;  %v6586_v56 = vsel %vm4905_vm13, 4294967295, %v6585_v56  ;;  %v6589_v59 = vsel %vm4910_vm14, 4294967295, %v6588_v59  ;;  %v989_v15 = vpop.permute.xlu2 %988 }
 0x17b   : > { %1107 = vmax.xlane.f32.xlu0 %v4858_v19  ;;  %1101 = vmax.xlane.f32.xlu2 %v4862_v20  ;;  %6587 = vst [vmem:[#allocation16_spill] sm:$0xff] %v6586_v56  ;;  %v4920_v2 = vsel %vm4905_vm13, %v1055_v61, -1e+30  ;;  %v3874_v10 = vunpack.c.h.bf16 %v4854_v18  ;;  %v3882_v12 = vunpack.c.h.bf16 %v3889_v4  ;;  %v1013_v18 = vadd.f32 %v4788_v26, %v989_v15  ;;  %v3710_v38 = vld [vmem:[%s4629_s8 + $0x98] sm:$0xff] }
 0x17c   : > { %1109 = vmax.xlane.f32.xlu1 %v4866_v21  ;;  %v969_v23 = vpop.permute.xlu1 %968  ;;  %v964_v24 = vpop.permute.xlu0 %963  ;;  %6590 = vst [vmem:[#allocation17_spill] sm:$0xff] %v6589_v59 }
 0x17d   : > { %v1009_v27 = vadd.f32 %v4788_v26, %v969_v23  ;;  %v1008_v28 = vadd.f32 %v4788_v26, %v964_v24  ;;  %vm1029_vm9 = vcmp.gt.f32.partialorder %v1013_v18, 0.0 }
 0x17f   : > { %v1041_v34 = vmul.f32 0.01, %v1009_v27  ;;  %vm1024_vm5 = vcmp.gt.f32.partialorder %v1008_v28, 0.0  ;;  %v1040_v37 = vmul.f32 0.01, %v1008_v28  ;;  %vm1025_vm8 = vcmp.gt.f32.partialorder %v1009_v27, 0.0 }
 0x181   : > { %v1056_v39 = vsel %vm1024_vm5, %v1008_v28, %v1040_v37  ;;  %v1057_v41 = vsel %vm1025_vm8, %v1009_v27, %v1041_v34  ;;  %v3881_v28 = vunpack.c.l.bf16 %v3889_v4  ;;  %v3711_v37 = vld [vmem:[%s4629_s8 + $0xa0] sm:$0xff] }
 0x182   : > { %v4894_v43 = vsel %vm4875_vm0, %v1056_v39, -1e+30  ;;  %v4898_v46 = vsel %vm4883_vm4, %v1057_v41, -1e+30  ;;  %v3714_v39 = vld [vmem:[%s4629_s8 + $0xb8] sm:$0xff]  ;;  %v3713_v41 = vld [vmem:[%s4629_s8 + $0xb0] sm:$0xff] }
 0x183   : > { %1113 = vmax.xlane.f32.xlu0 %v4894_v43  ;;  %1105 = vmax.xlane.f32.xlu2 %v4890_v40  ;;  %vm4955_vm12 = vcmp.gt.f32.partialorder %v3881_v28, 0.0  ;;  %v5014_v28 = vld [vmem:[#allocation2 + $0x28] sm:$0xff] }
 0x184   : > { %1115 = vmax.xlane.f32.xlu1 %v4898_v46  ;;  %v984_v51 = vpop.permute.xlu1 %983  ;;  %v979_v52 = vpop.permute.xlu0 %978  ;;  %v6602_v31 = vsel %vm4955_vm12, 4294967295, %v6601_v31 }
 0x185   : > { %v1012_v53 = vadd.f32 %v4788_v26, %v984_v51  ;;  %v1011_v55 = vadd.f32 %v4788_v26, %v979_v52  ;;  %6603 = vst [vmem:[#allocation22_spill] sm:$0xff] %v6602_v31  ;;  %v4973_v51 = vld [vmem:[#allocation2] sm:$0xff]  ;;  %v4975_v52 = vpop.permute.xlu2 %1744 }
 0x186   : > { %6605 = vst [vmem:[#allocation24_spill] sm:$0xff] %v4975_v52 }
 0x187   : > { %v1044_v63 = vmul.f32 0.01, %v1012_v53  ;;  %vm1027_vm5 = vcmp.gt.f32.partialorder %v1011_v55, 0.0  ;;  %v1043_v0 = vmul.f32 0.01, %v1011_v55  ;;  %vm1028_vm8 = vcmp.gt.f32.partialorder %v1012_v53, 0.0 }
 0x189   : > { %v1059_v1 = vsel %vm1027_vm5, %v1011_v55, %v1043_v0  ;;  %v1060_v3 = vsel %vm1028_vm8, %v1012_v53, %v1044_v63  ;;  %vm4936_vm5 = vcmp.gt.f32.partialorder %v3874_v10, 0.0  ;;  %vm4941_vm8 = vcmp.gt.f32.partialorder %v3882_v12, 0.0  ;;  %v4984_v63 = vld [vmem:[#allocation2 + $0x8] sm:$0xff]  ;;  %v1083_v0 = vld [vmem:[#allocation2 + $0x20] sm:$0xff]  ;;  %v4995_v12 = vld [vmem:[#allocation2 + $0x18] sm:$0xff] }
 0x18a   : > { %v4925_v7 = vsel %vm4910_vm14, %v1059_v1, -1e+30  ;;  %v4929_v9 = vsel %vm4914_vm15, %v1060_v3, -1e+30  ;;  %v6596_v16 = vsel %vm4936_vm5, 4294967295, %v6595_v16  ;;  %v6599_v22 = vsel %vm4941_vm8, 4294967295, %v6598_v22 }
 0x18b   : > { %6594 = vst [vmem:[#allocation19_spill] sm:$0xff] %v4929_v9  ;;  %1119 = vmax.xlane.f32.xlu0 %v4925_v7  ;;  %1111 = vmax.xlane.f32.xlu2 %v4920_v2  ;;  %v4951_v27 = vsel %vm4936_vm5, %v1058_v17, -1e+30 }
 0x18c   : > { %1121 = vmax.xlane.f32.xlu1 %v4929_v9  ;;  %v994_v13 = vpop.permute.xlu0 %993  ;;  %6597 = vst [vmem:[#allocation20_spill] sm:$0xff] %v6596_v16  ;;  %v4969_v47 = vpop.permute.xlu1 %1739 }
 0x18d   : > { %v1014_v14 = vadd.f32 %v4788_v26, %v994_v13  ;;  %6600 = vst [vmem:[#allocation21_spill] sm:$0xff] %v6599_v22  ;;  %v1045_v26 = vmul.f32 0.01, %v1013_v18  ;;  %v4997_v13 = vld [vmem:[#allocation2 + $0x38] sm:$0xff] }
 0x18e   : > { %6604 = vst [vmem:[#allocation23_spill] sm:$0xff] %v4969_v47 }
 0x18f   : > { %vm1030_vm15 = vcmp.gt.f32.partialorder %v1014_v14, 0.0  ;;  %v1046_v23 = vmul.f32 0.01, %v1014_v14  ;;  %v1061_v33 = vsel %vm1029_vm9, %v1013_v18, %v1045_v26  ;;  %v5012_v26 = vld [vmem:[#allocation2 + $0x48] sm:$0xff]  ;;  %vm6513_vm9 = vmpackc.low %vm4821_vm7, %vm4797_vm2 }
 0x190   : > { %v4961_v34 = vsel %vm4955_vm12, %v1061_v33, -1e+30  ;;  %v5016_v33 = vld [vmem:[#allocation2 + $0x50] sm:$0xff] }
 0x191   : > { %v1062_v24 = vsel %vm1030_vm15, %v1014_v14, %v1046_v23  ;;  %vm6515_vm15 = vcmask 7168  }
 0x192   : > { %v4947_v25 = vsel %vm4941_vm8, %v1062_v24, -1e+30 }
 0x193   : > { %1125 = vmax.xlane.f32.xlu0 %v4947_v25  ;;  %1117 = vmax.xlane.f32.xlu2 %v4951_v27 }
 0x194   : > { %v4971_v48 = vpop.permute.xlu0 %1734 }
 0x19b   : > { %1123 = vmax.xlane.f32.xlu2 %v4961_v34 }
 0x1a5   : > { %1754 = vperm.xlu1 %3999, %v3711_v37  }
 0x1a7   : > { %1749 = vperm.xlu0 %3998, %v3710_v38  }
 0x1ad   : > { %1769 = vperm.xlu1 %3999, %v3714_v39  }
 0x1af   : > { %1764 = vperm.xlu0 %3998, %v3713_v41  }
 0x1b3   : > { %1759 = vperm.xlu2 %4000, %v3712_v42  }
 0x1de   : > { %v1100_v53 = vpop.xlane.xlu0 %1099  ;;  %v1096_v55 = vpop.xlane.xlu1 %1095 }
 0x1df   : > { %v1129_v58 = vmax.f32 %v1081_v49, %v1100_v53  ;;  %v4978_v61 = vmax.f32 %v4973_v51, %v1096_v55 }
 0x1e1   : > { %1699 = vst.msk [vmem:[#allocation2 + $0x10] sm:$0xff] %vm6515_vm15, %v1129_v58  ;;  %1203 = vperm.xlu0 %3998, %v1129_v58   ;;  %1193 = vperm.xlu1 %3999, %v4978_v61   ;;  %v1145_v55 = vsub.f32 %v1081_v49, %v1129_v58 }
 0x1e2   : > { %1697 = vst.msk [vmem:[#allocation2] sm:$0xff] %vm6515_vm15, %v4978_v61 }
 0x1e6   : > { %v1098_v1 = vpop.xlane.xlu2 %1097  ;;  %v1104_v3 = vpop.xlane.xlu1 %1103 }
 0x1e7   : > { %v4987_v4 = vmax.f32 %v4984_v63, %v1098_v1  ;;  %v1131_v10 = vmax.f32 %v1083_v0, %v1104_v3  ;;  %v5036_v1 = vld [vmem:[#allocation2 + $0x60] sm:$0xff] }
 0x1e8   : > { %v5038_v3 = vld [vmem:[#allocation2 + $0x40] sm:$0xff] }
 0x1e9   : > { %1698 = vst.msk [vmem:[#allocation2 + $0x8] sm:$0xff] %vm6515_vm15, %v4987_v4  ;;  %1198 = vperm.xlu2 %4000, %v4987_v4   ;;  %1213 = vperm.xlu0 %3998, %v1131_v10   ;;  %v1147_v58 = vsub.f32 %v1083_v0, %v1131_v10  ;;  %v1144_v0 = vsub.f32 %v4984_v63, %v4987_v4 }
 0x1ea   : > { %1701 = vst.msk [vmem:[#allocation2 + $0x20] sm:$0xff] %vm6515_vm15, %v1131_v10  ;;  %v5072_v10 = vld [vmem:[#allocation2 + $0x70] sm:$0xff] }
 0x1ee   : > { %v1108_v14 = vpop.xlane.xlu0 %1107  ;;  %v1102_v15 = vpop.xlane.xlu2 %1101 }
 0x1ef   : > { %v5000_v17 = vmax.f32 %v4993_v11, %v1108_v14  ;;  %v5003_v18 = vmax.f32 %v4995_v12, %v1102_v15  ;;  %v1110_v23 = vpop.xlane.xlu1 %1109  ;;  %v5040_v14 = vld [vmem:[#allocation2 + $0x68] sm:$0xff] }
 0x1f0   : > { %v1134_v24 = vmax.f32 %v4997_v13, %v1110_v23 }
 0x1f1   : > { %1703 = vst.msk [vmem:[#allocation2 + $0x30] sm:$0xff] %vm6515_vm15, %v5000_v17  ;;  %1208 = vperm.xlu1 %3999, %v5003_v18   ;;  %v1146_v63 = vsub.f32 %v4995_v12, %v5003_v18 }
 0x1f2   : > { %1700 = vst.msk [vmem:[#allocation2 + $0x18] sm:$0xff] %vm6515_vm15, %v5003_v18  ;;  %1228 = vperm.xlu0 %3998, %v1134_v24  }
 0x1f3   : > { %1704 = vst.msk [vmem:[#allocation2 + $0x38] sm:$0xff] %vm6515_vm15, %v1134_v24 }
 0x1f6   : > { %v1114_v37 = vpop.xlane.xlu0 %1113  ;;  %v1106_v38 = vpop.xlane.xlu2 %1105 }
 0x1f7   : > { %v5019_v39 = vmax.f32 %v5012_v26, %v1114_v37  ;;  %v5022_v41 = vmax.f32 %v5014_v28, %v1106_v38  ;;  %v1116_v42 = vpop.xlane.xlu1 %1115  ;;  %v1163_v37 = vmul.f32 1.442695, %v1145_v55  ;;  %v5052_v55 = vld [vmem:[#allocation2 + $0x78] sm:$0xff] }
 0x1f8   : > { %v5025_v53 = vmax.f32 %v5016_v33, %v1116_v42 }
 0x1f9   : > { %1706 = vst.msk [vmem:[#allocation2 + $0x48] sm:$0xff] %vm6515_vm15, %v5019_v39  ;;  %1218 = vperm.xlu2 %4000, %v5022_v41   ;;  %1223 = vperm.xlu1 %3999, %v5000_v17   ;;  %4003 = vpow2.f32 %v1163_v37  ;;  %v1143_v37 = vsub.f32 %v4973_v51, %v4978_v61  ;;  %v1161_v51 = vmul.f32 1.442695, %v1144_v0  ;;  %v1148_v4 = vsub.f32 %v5014_v28, %v5022_v41 }
 0x1fa   : > { %1702 = vst.msk [vmem:[#allocation2 + $0x28] sm:$0xff] %vm6515_vm15, %v5022_v41  ;;  %1243 = vperm.xlu0 %3998, %v5025_v53  }
 0x1fb   : > { %1707 = vst.msk [vmem:[#allocation2 + $0x50] sm:$0xff] %vm6515_vm15, %v5025_v53 }
 0x1fe   : > { %v1120_v15 = vpop.xlane.xlu0 %1119  ;;  %v1112_v23 = vpop.xlane.xlu2 %1111 }
 0x1ff   : > { %v5043_v38 = vmax.f32 %v5036_v1, %v1120_v15  ;;  %v1135_v42 = vmax.f32 %v5038_v3, %v1112_v23  ;;  %v1122_v62 = vpop.xlane.xlu1 %1121  ;;  %v5054_v15 = vld [vmem:[#allocation2 + $0x58] sm:$0xff]  ;;  %v5060_v8 = vpop.eup %4003 }
 0x200   : > { %v1140_v49 = vmax.f32 %v5040_v14, %v1122_v62  ;;  %v1167_v62 = vmul.f32 1.442695, %v1147_v58  ;;  %v1159_v58 = vmul.f32 1.442695, %v1143_v37 }
 0x201   : > { %1709 = vst.msk [vmem:[#allocation2 + $0x60] sm:$0xff] %vm6515_vm15, %v5043_v38  ;;  %1233 = vperm.xlu2 %4000, %v1135_v42   ;;  %1238 = vperm.xlu1 %3999, %v5019_v39   ;;  %v1151_v28 = vsub.f32 %v5038_v3, %v1135_v42  ;;  %v1152_v3 = vsub.f32 %v5012_v26, %v5019_v39 }
 0x202   : > { %1705 = vst.msk [vmem:[#allocation2 + $0x40] sm:$0xff] %vm6515_vm15, %v1135_v42  ;;  %1258 = vperm.xlu0 %3998, %v1140_v49   ;;  %4005 = vpow2.f32 %v1167_v62  ;;  %v1169_v62 = vmul.f32 1.442695, %v1148_v4  ;;  %v3842_v42 = vld [vmem:[%s4634_s9 + $0x38] sm:$0xff] }
 0x203   : > { %1710 = vst.msk [vmem:[#allocation2 + $0x68] sm:$0xff] %vm6515_vm15, %v1140_v49  ;;  %4007 = vpow2.f32 %v1159_v58  ;;  %1616 = vmatpush.bf16.msra.mxu0 %v3842_v42  ;;  %3890 = vmatpush.bf16.msra.mxu2 %v3842_v42 }
 0x204   : > { %4009 = vpow2.f32 %v1161_v51 }
 0x206   : > { %v1126_v23 = vpop.xlane.xlu0 %1125  ;;  %v1118_v47 = vpop.xlane.xlu2 %1117 }
 0x207   : > { %v5057_v22 = vmax.f32 %v5052_v55, %v1126_v23  ;;  %v1138_v31 = vmax.f32 %v5054_v15, %v1118_v47  ;;  %v1150_v47 = vsub.f32 %v4997_v13, %v1134_v24  ;;  %v1153_v13 = vsub.f32 %v5016_v33, %v5025_v53 }
 0x208   : > { %v5077_v52 = vpop.eup %4005  ;;  %v1165_v24 = vmul.f32 1.442695, %v1146_v63  ;;  %v1156_v33 = vsub.f32 %v5040_v14, %v1140_v49  ;;  %v1175_v53 = vmul.f32 1.442695, %v1151_v28  ;;  %v1177_v49 = vmul.f32 1.442695, %v1152_v3 }
 0x209   : > { %1712 = vst.msk [vmem:[#allocation2 + $0x78] sm:$0xff] %vm6515_vm15, %v5057_v22  ;;  %1248 = vperm.xlu2 %4000, %v1138_v31   ;;  %1253 = vperm.xlu1 %3999, %v5043_v38   ;;  %v1173_v23 = vmul.f32 1.442695, %v1150_v47  ;;  %v5090_v12 = vpop.eup %4007  ;;  %v1179_v18 = vmul.f32 1.442695, %v1153_v13  ;;  %v1149_v47 = vsub.f32 %v4993_v11, %v5000_v17  ;;  %v1154_v14 = vsub.f32 %v5054_v15, %v1138_v31  ;;  %v3840_v15 = vld [vmem:[%s4634_s9 + $0x28] sm:$0xff] }
 0x20a   : > { %1708 = vst.msk [vmem:[#allocation2 + $0x58] sm:$0xff] %vm6515_vm15, %v1138_v31  ;;  %1460 = vperm.xlu0 %3998, %v5060_v8   ;;  %v5092_v37 = vpop.eup %4009  ;;  %v1185_v51 = vmul.f32 1.442695, %v1156_v33  ;;  %v1155_v31 = vsub.f32 %v5036_v1, %v5043_v38  ;;  %v3839_v13 = vld [vmem:[%s4634_s9 + $0x20] sm:$0xff]  ;;  %v3837_v28 = vld [vmem:[%s4634_s9 + $0x10] sm:$0xff] }
 0x20b   : > { %4011 = vpow2.f32 %v1173_v23  ;;  %v1171_v41 = vmul.f32 1.442695, %v1149_v47  ;;  %v3841_v23 = vld [vmem:[%s4634_s9 + $0x30] sm:$0xff]  ;;  %v3716_v1 = vld [vmem:[%s4629_s8 + $0xc8] sm:$0xff] }
 0x20c   : > { %4013 = vpow2.f32 %v1165_v24  ;;  %1617 = vmatpush.bf16.msra.mxu0 %v3841_v23  ;;  %3891 = vmatpush.bf16.msra.mxu2 %v3841_v23  ;;  %v1183_v24 = vmul.f32 1.442695, %v1155_v31  ;;  %v3722_v3 = vld [vmem:[%s4629_s8 + $0xf8] sm:$0xff]  ;;  %v3720_v23 = vld [vmem:[%s4629_s8 + $0xe8] sm:$0xff]  ;;  %v3715_v31 = vld [vmem:[%s4629_s8 + $0xc0] sm:$0xff] }
 0x20d   : > { %4015 = vpow2.f32 %v1169_v62 }
 0x20e   : > { %v1124_v61 = vpop.xlane.xlu2 %1123  ;;  %4017 = vpow2.f32 %v1179_v18 }
 0x20f   : > { %v5075_v9 = vmax.f32 %v5072_v10, %v1124_v61  ;;  %4019 = vpow2.f32 %v1171_v41  ;;  %v1181_v61 = vmul.f32 1.442695, %v1154_v14  ;;  %v3719_v41 = vld [vmem:[%s4629_s8 + $0xe0] sm:$0xff] }
 0x210   : > { %4021 = vpow2.f32 %v1175_v53  ;;  %1618 = vmatpush.bf16.msra.mxu0 %v3840_v15  ;;  %3892 = vmatpush.bf16.msra.mxu2 %v3840_v15 }
 0x211   : > { %1711 = vst.msk [vmem:[#allocation2 + $0x70] sm:$0xff] %vm6515_vm15, %v5075_v9  ;;  %1263 = vperm.xlu2 %4000, %v5075_v9   ;;  %1268 = vperm.xlu1 %3999, %v5057_v22   ;;  %v5094_v0 = vpop.eup %4011  ;;  %4023 = vpow2.f32 %v1185_v51  ;;  %v1157_v4 = vsub.f32 %v5072_v10, %v5075_v9  ;;  %v3838_v9 = vld [vmem:[%s4634_s9 + $0x18] sm:$0xff]  ;;  %v1158_v10 = vsub.f32 %v5052_v55, %v5057_v22  ;;  %v3836_v22 = vld [vmem:[%s4634_s9 + $0x8] sm:$0xff]  ;;  %v3835_v51 = vld [vmem:[%s4634_s9] sm:$0xff] }
 0x212   : > { %1470 = vperm.xlu0 %3998, %v5077_v52   ;;  %v5103_v58 = vpop.eup %4013  ;;  %4025 = vpow2.f32 %v1177_v49  ;;  %v3717_v55 = vld [vmem:[%s4629_s8 + $0xd0] sm:$0xff]  ;;  %vm6516_vm15 = vmpackc.low %vm4879_vm3, %vm4816_vm6 }
 0x213   : > { %v5105_v11 = vpop.eup %4015  ;;  %4027 = vpow2.f32 %v1181_v61  ;;  %v1187_v62 = vmul.f32 1.442695, %v1157_v4  ;;  %v1189_v47 = vmul.f32 1.442695, %v1158_v10 }
 0x214   : > { %v5107_v17 = vpop.eup %4017  ;;  %1619 = vmatpush.bf16.msra.mxu0 %v3839_v13  ;;  %3893 = vmatpush.bf16.msra.mxu2 %v3839_v13  ;;  %4029 = vpow2.f32 %v1183_v24  ;;  %v3718_v24 = vld [vmem:[%s4629_s8 + $0xd8] sm:$0xff] }
 0x215   : > { %6606 = vst [vmem:[#allocation25_spill] sm:$0xff] %v5107_v17  ;;  %v5117_v63 = vpop.eup %4019  ;;  %4031 = vpow2.f32 %v1187_v62 }
 0x216   : > { %v5119_v26 = vpop.eup %4021  ;;  %4033 = vpow2.f32 %v1189_v47  ;;  %v5161_v61 = vpop.permute.xlu2 %1759 }
 0x217   : > { %v5121_v39 = vpop.eup %4023  ;;  %v5159_v49 = vpop.permute.xlu1 %1754 }
 0x218   : > { %6607 = vst [vmem:[#allocation26_spill] sm:$0xff] %v5121_v39  ;;  %v5132_v18 = vpop.eup %4025  ;;  %1620 = vmatpush.bf16.msra.mxu0 %v3838_v9  ;;  %3894 = vmatpush.bf16.msra.mxu2 %v3838_v9 }
 0x219   : > { %1455 = vperm.xlu1 %3999, %v5092_v37   ;;  %1450 = vperm.xlu2 %4000, %v5090_v12   ;;  %v5135_v38 = vpop.eup %4027  ;;  %v5156_v42 = vpop.permute.xlu0 %1749 }
 0x21a   : > { %1485 = vperm.xlu0 %3998, %v5094_v0   ;;  %v5143_v33 = vpop.eup %4029 }
 0x21b   : > { %v5146_v53 = vpop.eup %4031 }
 0x21c   : > { %1621 = vmatpush.bf16.msra.mxu0 %v3837_v28  ;;  %3895 = vmatpush.bf16.msra.mxu2 %v3837_v28  ;;  %v5154_v14 = vpop.eup %4033 }
 0x21f   : > { %v5167_v13 = vpop.permute.xlu1 %1769 }
 0x220   : > { %1622 = vmatpush.bf16.msra.mxu0 %v3836_v22  ;;  %3896 = vmatpush.bf16.msra.mxu2 %v3836_v22 }
 0x221   : > { %1475 = vperm.xlu1 %3999, %v5105_v11   ;;  %1465 = vperm.xlu2 %4000, %v5103_v58   ;;  %v5165_v15 = vpop.permute.xlu0 %1764 }
 0x222   : > { %1500 = vperm.xlu0 %3998, %v5107_v17  }
 0x224   : > { %1623 = vmatpush.bf16.msra.mxu0 %v3835_v51  ;;  %3897 = vmatpush.bf16.msra.mxu2 %v3835_v51 }
 0x229   : > { %1490 = vperm.xlu1 %3999, %v5119_v26   ;;  %1480 = vperm.xlu2 %4000, %v5117_v63  }
 0x22a   : > { %1515 = vperm.xlu0 %3998, %v5121_v39  }
 0x231   : > { %1505 = vperm.xlu1 %3999, %v5135_v38   ;;  %1495 = vperm.xlu2 %4000, %v5132_v18  }
 0x232   : > { %1779 = vperm.xlu0 %3998, %v3716_v1  }
 0x239   : > { %1520 = vperm.xlu1 %3999, %v5146_v53   ;;  %1510 = vperm.xlu2 %4000, %v5143_v33  }
 0x23a   : > { %1794 = vperm.xlu0 %3998, %v3719_v41   ;;  %v3721_v41 = vld [vmem:[%s4629_s8 + $0xf0] sm:$0xff] }
 0x241   : > { %1784 = vperm.xlu1 %3999, %v3717_v55   ;;  %1525 = vperm.xlu2 %4000, %v5154_v14  }
 0x242   : > { %1809 = vperm.xlu0 %3998, %v3722_v3  }
 0x243   : > { %v1199_v4 = vpop.permute.xlu2 %1198 }
 0x244   : > { %v1272_v62 = vsub.f32 %v4832_v60, %v1199_v4 }
 0x246   : > { %v1289_v47 = vmul.f32 1.442695, %v1272_v62 }
 0x248   : > { %4035 = vpow2.f32 %v1289_v47 }
 0x249   : > { %1799 = vperm.xlu1 %3999, %v3720_v23   ;;  %1774 = vperm.xlu2 %4000, %v3715_v31  }
 0x24e   : > { %v5173_v3 = vpop.eup %4035 }
 0x251   : > { %1789 = vperm.xlu2 %4000, %v3718_v24  }
 0x253   : > { %v1204_v1 = vpop.permute.xlu0 %1203  ;;  %v1219_v9 = vpop.permute.xlu2 %1218 }
 0x254   : > { %v1194_v10 = vpop.permute.xlu1 %1193  ;;  %v1273_v60 = vsub.f32 %v4807_v44, %v1204_v1 }
 0x255   : > { %v1271_v28 = vsub.f32 %v4811_v45, %v1194_v10 }
 0x256   : > { %v1291_v10 = vmul.f32 1.442695, %v1273_v60 }
 0x257   : > { %v1287_v22 = vmul.f32 1.442695, %v1271_v28  ;;  %v1276_v28 = vsub.f32 %v4890_v40, %v1219_v9 }
 0x259   : > { %1804 = vperm.xlu2 %4000, %v3721_v41   ;;  %4037 = vpow2.f32 %v1287_v22  ;;  %v1297_v39 = vmul.f32 1.442695, %v1276_v28 }
 0x25a   : > { %4039 = vpow2.f32 %v1291_v10 }
 0x25b   : > { %v1234_v55 = vpop.permute.xlu2 %1233  ;;  %v1214_v51 = vpop.permute.xlu0 %1213 }
 0x25c   : > { %v1279_v17 = vsub.f32 %v4920_v2, %v1234_v55 }
 0x25e   : > { %v1303_v9 = vmul.f32 1.442695, %v1279_v17 }
 0x25f   : > { %v4038_v23 = vpop.eup %4037 }
 0x260   : > { %v3684_v31 = vpack.c.bf16 %v5173_v3, %v4038_v23  ;;  %v1319_v1 = vsel %vm4797_vm2, %v4038_v23, 0.0  ;;  %v4040_v60 = vpop.eup %4039 }
 0x262   : > { %3685 = vmatmul.msk.bf16.vlgmr.msra.gmra.mxu0 %vm6513_vm9, %v3684_v31  ;;  %vm6514_vm9 = vmpackc.low %vm4843_vm11, %vm4793_vm1 }
 0x263   : > { %v1249_v45 = vpop.permute.xlu2 %1248  ;;  %v1209_v4 = vpop.permute.xlu1 %1208 }
 0x264   : > { %v5186_v24 = vpop.permute.xlu0 %1228  ;;  %v1274_v62 = vsub.f32 %v4862_v20, %v1209_v4  ;;  %v1275_v4 = vsub.f32 %v4828_v57, %v1214_v51  ;;  %v1282_v28 = vsub.f32 %v4951_v27, %v1249_v45 }
 0x266   : > { %v1293_v47 = vmul.f32 1.442695, %v1274_v62  ;;  %v1295_v23 = vmul.f32 1.442695, %v1275_v4 }
 0x268   : > { %4041 = vpow2.f32 %v1293_v47 }
 0x269   : > { %4043 = vpow2.f32 %v1297_v39 }
 0x26b   : > { %v5190_v44 = vpop.permute.xlu2 %1263  ;;  %v1224_v41 = vpop.permute.xlu1 %1223 }
 0x26c   : > { %v1244_v22 = vpop.permute.xlu0 %1243  ;;  %1367 = vadd.xlane.f32.xlu0 %v1319_v1  ;;  %v1277_v31 = vsub.f32 %v4858_v19, %v1224_v41  ;;  %v1321_v19 = vsel %vm4793_vm1, %v4040_v60, 0.0 }
 0x26d   : > { %v1281_v45 = vsub.f32 %v4898_v46, %v1244_v22 }
 0x26e   : > { %v1299_v20 = vmul.f32 1.442695, %v1277_v31  ;;  %v4042_v62 = vpop.eup %4041 }
 0x26f   : > { %v3687_v40 = vpack.c.bf16 %v4042_v62, %v4040_v60  ;;  %v1322_v2 = vsel %vm4843_vm11, %v4042_v62, 0.0  ;;  %v4044_v10 = vpop.eup %4043 }
 0x270   : > { %4045 = vpow2.f32 %v1299_v20  ;;  %v1324_v1 = vsel %vm4879_vm3, %v4044_v10, 0.0 }
 0x271   : > { %4047 = vpow2.f32 %v1303_v9 }
 0x272   : > { %3688 = vmatmul.msk.bf16.gmra.mxu0 %vm6514_vm9, %v3687_v40  ;;  %4049 = vpow2.f32 %v1295_v23  ;;  %v1309_v40 = vmul.f32 1.442695, %v1282_v28  ;;  %vm6517_vm9 = vmpackc.low %vm4875_vm0, %vm4905_vm13  ;;  %v1278_v23 = vsub.f32 %v4866_v21, %v5186_v24  ;;  %v1320_v21 = vsel %vm4821_vm7, %v5173_v3, 0.0 }
 0x273   : > { %1371 = vadd.xlane.f32.xlu1 %v1321_v19  ;;  %v5208_v57 = vpop.permute.xlu2 %1450  ;;  %v1239_v39 = vpop.permute.xlu1 %1238  ;;  %v1307_v24 = vmul.f32 1.442695, %v1281_v45 }
 0x274   : > { %v5212_v55 = vpop.permute.xlu0 %1258  ;;  %1373 = vadd.xlane.f32.xlu0 %v1322_v2  ;;  %v1280_v17 = vsub.f32 %v4894_v43, %v1239_v39  ;;  %v1301_v3 = vmul.f32 1.442695, %v1278_v23 }
 0x276   : > { %v1305_v51 = vmul.f32 1.442695, %v1280_v17  ;;  %v5215_v47 = vpop.eup %4045 }
 0x277   : > { %v1325_v31 = vsel %vm4839_vm10, %v5215_v47, 0.0  ;;  %v4048_v20 = vpop.eup %4047 }
 0x278   : > { %4051 = vpow2.f32 %v1305_v51  ;;  %v4050_v62 = vpop.eup %4049  ;;  %v1327_v22 = vsel %vm4905_vm13, %v4048_v20, 0.0 }
 0x279   : > { %4053 = vpow2.f32 %v1309_v40  ;;  %v3690_v46 = vpack.c.bf16 %v4044_v10, %v4050_v62 }
 0x27b   : > { %1377 = vadd.xlane.f32.xlu1 %v1324_v1  ;;  %v5220_v41 = vpop.permute.xlu2 %1465  ;;  %v1254_v43 = vpop.permute.xlu1 %1253 }
 0x27c   : > { %v5225_v60 = vpop.permute.xlu0 %1460  ;;  %1379 = vadd.xlane.f32.xlu0 %v1325_v31  ;;  %v1283_v4 = vsub.f32 %v4925_v7, %v1254_v43  ;;  %v1285_v7 = vsub.f32 %v4961_v34, %v5190_v44  ;;  %v1323_v31 = vsel %vm4816_vm6, %v4050_v62, 0.0 }
 0x27e   : > { %v4052_v27 = vpop.eup %4051  ;;  %v1311_v9 = vmul.f32 1.442695, %v1283_v4  ;;  %v1315_v51 = vmul.f32 1.442695, %v1285_v7 }
 0x27f   : > { %v3696_v19 = vpack.c.bf16 %v4052_v27, %v4048_v20  ;;  %v1328_v44 = vsel %vm4875_vm0, %v4052_v27, 0.0  ;;  %v4054_v28 = vpop.eup %4053  ;;  %v5278_v27 = vld [vmem:[%s690_s19 + $0x1] ss:$0 sm:$0xff] }
 0x280   : > { %4055 = vpow2.f32 %v1311_v9  ;;  %v1330_v43 = vsel %vm4936_vm5, %v4054_v28, 0.0 }
 0x281   : > { %3697 = vmatmul.msk.bf16.vlgmr.msra.gmra.mxu2 %vm6517_vm9, %v3696_v19  ;;  %4057 = vpow2.f32 %v1307_v24  ;;  %v1815_v19 = vadd.f32 %v5278_v27, %v4971_v48  ;;  %v6609_v24 = vld [vmem:[#allocation19_spill] sm:$0xff] }
 0x282   : > { %1369 = vadd.xlane.f32.xlu2 %v1320_v21  ;;  %3691 = vmatmul.msk.bf16.gmra.mxu0 %vm6516_vm15, %v3690_v46  ;;  %4059 = vpow2.f32 %v1301_v3  ;;  %vm6520_vm15 = vmpackc.low %vm4936_vm5, %vm4883_vm4  ;;  %v6608_v46 = vld [vmem:[#allocation24_spill] sm:$0xff] }
 0x283   : > { %1383 = vadd.xlane.f32.xlu1 %v1327_v22  ;;  %v5256_v34 = vpop.permute.xlu2 %1480  ;;  %v1269_v2 = vpop.permute.xlu1 %1268  ;;  %4061 = vpow2.f32 %v1315_v51  ;;  %v1817_v21 = vadd.f32 %v5278_v27, %v6608_v46  ;;  %v1284_v22 = vsub.f32 %v6609_v24, %v5212_v55  ;;  %v1820_v46 = vadd.f32 %v5278_v27, %v5161_v61  ;;  %v1337_v51 = vld [vmem:[#allocation3 + $0x10] sm:$0xff] }
 0x284   : > { %v5260_v39 = vpop.permute.xlu0 %1470  ;;  %1385 = vadd.xlane.f32.xlu0 %v1328_v44  ;;  %v1286_v17 = vsub.f32 %v4947_v25, %v1269_v2  ;;  %v6610_v44 = vld [vmem:[#allocation14_spill] sm:$0xff] }
 0x285   : > { %vm6611_vm9 = vnez %v6610_v44  ;;  %vm1833_vm5 = vcmp.gt.f32.partialorder %v1817_v21, 0.0 }
 0x286   : > { %v1317_v10 = vmul.f32 1.442695, %v1286_v17  ;;  %v5263_v1 = vpop.eup %4055  ;;  %vm6523_vm0 = vmpackc.low %vm6611_vm9, %vm4839_vm10  ;;  %v1847_v17 = vmul.f32 0.01, %v1815_v19 }
 0x287   : > { %v1331_v25 = vsel %vm4910_vm14, %v5263_v1, 0.0  ;;  %v4058_v40 = vpop.eup %4057 }
 0x288   : > { %4063 = vpow2.f32 %v1317_v10  ;;  %v4060_v62 = vpop.eup %4059  ;;  %v3699_v23 = vpack.c.bf16 %v4054_v28, %v4058_v40 }
 0x289   : > { %v5286_v9 = vpop.eup %4061  ;;  %v3693_v2 = vpack.c.bf16 %v4060_v62, %v5215_v47  ;;  %v1326_v48 = vsel %vm6611_vm9, %v4060_v62, 0.0  ;;  %v1818_v62 = vadd.f32 %v5278_v27, %v5156_v42 }
 0x28a   : > { %1375 = vadd.xlane.f32.xlu2 %v1323_v31  ;;  %v1333_v55 = vsel %vm4955_vm12, %v5286_v9, 0.0  ;;  %v1849_v31 = vmul.f32 0.01, %v1817_v21 }
 0x28b   : > { %1389 = vadd.xlane.f32.xlu1 %v1330_v43  ;;  %v5269_v20 = vpop.permute.xlu2 %1495  ;;  %v5274_v4 = vpop.permute.xlu1 %1455  ;;  %v1313_v43 = vmul.f32 1.442695, %v1284_v22 }
 0x28c   : > { %v5280_v45 = vpop.permute.xlu0 %1485  ;;  %1391 = vadd.xlane.f32.xlu0 %v1331_v25  ;;  %v1865_v24 = vsel %vm1833_vm5, %v1817_v21, %v1849_v31  ;;  %vm1834_vm5 = vcmp.gt.f32.partialorder %v1818_v62, 0.0  ;;  %v6616_v31 = vld [vmem:[#allocation18_spill] sm:$0xff] }
 0x28d   : > { %4065 = vpow2.f32 %v1313_v43  ;;  %v5340_v42 = vsel %vm4793_vm1, %v1865_v24, -1e+30  ;;  %v1821_v43 = vadd.f32 %v5278_v27, %v5165_v15 }
 0x28e   : > { %v5290_v7 = vpop.eup %4063  ;;  %6614 = vst [vmem:[#allocation24_spill] sm:$0xff] %v5340_v42 }
 0x28f   : > { %v1334_v10 = vsel %vm4941_vm8, %v5290_v7, 0.0  ;;  %v1853_v15 = vmul.f32 0.01, %v1821_v43 }
 0x291   : > { %3700 = vmatmul.msk.bf16.gmra.mxu2 %vm6520_vm15, %v3699_v23  ;;  %vm1831_vm15 = vcmp.gt.f32.partialorder %v1815_v19, 0.0 }
 0x292   : > { %1381 = vadd.xlane.f32.xlu2 %v1326_v48  ;;  %3694 = vmatmul.msk.bf16.gmra.mxu0 %vm6523_vm0, %v3693_v2  ;;  %v1863_v23 = vsel %vm1831_vm15, %v1815_v19, %v1847_v17  ;;  %v1329_v2 = vsel %vm4883_vm4, %v4058_v40, 0.0  ;;  %v1850_v48 = vmul.f32 0.01, %v1818_v62  ;;  %v1852_v19 = vmul.f32 0.01, %v1820_v46  ;;  %v6615_v17 = vld [vmem:[#allocation23_spill] sm:$0xff] }
 0x293   : > { %1395 = vadd.xlane.f32.xlu1 %v1333_v55  ;;  %v5316_v47 = vpop.permute.xlu2 %1510  ;;  %v5321_v28 = vpop.permute.xlu1 %1475  ;;  %v5333_v22 = vsel %vm4797_vm2, %v1863_v23, -1e+30  ;;  %vm1836_vm15 = vcmp.gt.f32.partialorder %v1820_v46, 0.0  ;;  %vm6617_vm0 = vnez %v6616_v31 }
 0x294   : > { %v5323_v25 = vpop.permute.xlu0 %1500  ;;  %1397 = vadd.xlane.f32.xlu0 %v1334_v10  ;;  %v4066_v40 = vpop.eup %4065  ;;  %v1816_v10 = vadd.f32 %v5278_v27, %v6615_v17  ;;  %vm6529_vm2 = vmpackc.low %vm6617_vm0, %vm4910_vm14  ;;  %v1866_v24 = vsel %vm1834_vm5, %v1818_v62, %v1850_v48 }
 0x295   : > { %v3702_v23 = vpack.c.bf16 %v4066_v40, %v5263_v1  ;;  %v1332_v17 = vsel %vm6617_vm0, %v4066_v40, 0.0  ;;  %v1819_v40 = vadd.f32 %v5278_v27, %v5159_v49 }
 0x296   : > { %v1848_v35 = vmul.f32 0.01, %v1816_v10  ;;  %vm1832_vm5 = vcmp.gt.f32.partialorder %v1816_v10, 0.0 }
 0x29a   : > { %1387 = vadd.xlane.f32.xlu2 %v1329_v2  ;;  %v1868_v2 = vsel %vm1836_vm15, %v1820_v46, %v1852_v19  ;;  %vm1837_vm15 = vcmp.gt.f32.partialorder %v1821_v43, 0.0 }
 0x29b   : > { %1912 = vmax.xlane.f32.xlu1 %v5333_v22  ;;  %v5336_v55 = vpop.permute.xlu2 %1525  ;;  %v5342_v61 = vpop.permute.xlu1 %1490  ;;  %v5370_v62 = vsel %vm4879_vm3, %v1868_v2, -1e+30  ;;  %v1869_v30 = vsel %vm1837_vm15, %v1821_v43, %v1853_v15  ;;  %vm6539_vm15 = vmpackc.low %vm4941_vm8, %vm4955_vm12 }
 0x29c   : > { %v5344_v21 = vpop.permute.xlu0 %1515  ;;  %1916 = vmax.xlane.f32.xlu0 %v5340_v42  ;;  %v5365_v42 = vsel %vm4843_vm11, %v1866_v24, -1e+30  ;;  %6618 = vst [vmem:[#allocation19_spill] sm:$0xff] %v5370_v62  ;;  %v1864_v24 = vsel %vm1832_vm5, %v1816_v10, %v1848_v35  ;;  %v5390_v49 = vsel %vm4839_vm10, %v1869_v30, -1e+30 }
 0x29d   : > { %v5381_v6 = vsel %vm4821_vm7, %v1864_v24, -1e+30  ;;  %6619 = vst [vmem:[#allocation23_spill] sm:$0xff] %v5390_v49 }
 0x2a1   : > { %3703 = vmatmul.msk.bf16.gmra.mxu2 %vm6529_vm2, %v3702_v23 }
 0x2a2   : > { %1393 = vadd.xlane.f32.xlu2 %v1332_v17 }
 0x2a3   : > { %1918 = vmax.xlane.f32.xlu1 %v5365_v42  ;;  %v1775_v1 = vpop.permute.xlu2 %1774  ;;  %v5372_v46 = vpop.permute.xlu1 %1505 }
 0x2a4   : > { %v1823_v48 = vadd.f32 %v5278_v27, %v1775_v1  ;;  %v1780_v19 = vpop.permute.xlu0 %1779  ;;  %1922 = vmax.xlane.f32.xlu0 %v5370_v62  ;;  %v1851_v62 = vmul.f32 0.01, %v1819_v40 }
 0x2a5   : > { %v1824_v17 = vadd.f32 %v5278_v27, %v1780_v19  ;;  %v1822_v19 = vadd.f32 %v5278_v27, %v5167_v13 }
 0x2a6   : > { %v1855_v23 = vmul.f32 0.01, %v1823_v48  ;;  %vm1839_vm2 = vcmp.gt.f32.partialorder %v1823_v48, 0.0 }
 0x2a7   : > { %v1856_v35 = vmul.f32 0.01, %v1824_v17  ;;  %vm1840_vm5 = vcmp.gt.f32.partialorder %v1824_v17, 0.0 }
 0x2a8   : > { %v1871_v2 = vsel %vm1839_vm2, %v1823_v48, %v1855_v23  ;;  %vm1835_vm2 = vcmp.gt.f32.partialorder %v1819_v40, 0.0 }
 0x2a9   : > { %v5385_v1 = vsel %vm4905_vm13, %v1871_v2, -1e+30  ;;  %v1867_v30 = vsel %vm1835_vm2, %v1819_v40, %v1851_v62  ;;  %v3705_v2 = vpack.c.bf16 %v5290_v7, %v5286_v9  ;;  %vm6620_vm2 = vnez %v6596_v16 }
 0x2aa   : > { %1914 = vmax.xlane.f32.xlu2 %v5381_v6  ;;  %v5413_v13 = vsel %vm4816_vm6, %v1867_v30, -1e+30  ;;  %v1854_v40 = vmul.f32 0.01, %v1822_v19 }
 0x2ab   : > { %1924 = vmax.xlane.f32.xlu1 %v5390_v49  ;;  %v1790_v10 = vpop.permute.xlu2 %1789  ;;  %v5393_v43 = vpop.permute.xlu1 %1520 }
 0x2ac   : > { %v1826_v15 = vadd.f32 %v5278_v27, %v1790_v10  ;;  %v1795_v48 = vpop.permute.xlu0 %1794  ;;  %1928 = vmax.xlane.f32.xlu0 %v5385_v1  ;;  %v1872_v10 = vsel %vm1840_vm5, %v1824_v17, %v1856_v35  ;;  %vm6621_vm5 = vnez %v6579_v29 }
 0x2ad   : > { %v1827_v24 = vadd.f32 %v5278_v27, %v1795_v48  ;;  %v5422_v9 = vsel %vm6621_vm5, %v1872_v10, -1e+30 }
 0x2ae   : > { %v1858_v23 = vmul.f32 0.01, %v1826_v15  ;;  %vm1842_vm10 = vcmp.gt.f32.partialorder %v1826_v15, 0.0 }
 0x2af   : > { %v1859_v7 = vmul.f32 0.01, %v1827_v24 }
 0x2b0   : > { %v1874_v5 = vsel %vm1842_vm10, %v1826_v15, %v1858_v23  ;;  %vm1838_vm10 = vcmp.gt.f32.partialorder %v1822_v19, 0.0 }
 0x2b1   : > { %3706 = vmatmul.msk.bf16.gmra.mxu2 %vm6539_vm15, %v3705_v2  ;;  %v5417_v62 = vsel %vm6620_vm2, %v1874_v5, -1e+30  ;;  %vm1843_vm15 = vcmp.gt.f32.partialorder %v1827_v24, 0.0  ;;  %v1870_v30 = vsel %vm1838_vm10, %v1822_v19, %v1854_v40 }
 0x2b2   : > { %1920 = vmax.xlane.f32.xlu2 %v5413_v13  ;;  %v1875_v10 = vsel %vm1843_vm15, %v1827_v24, %v1859_v7  ;;  %v5431_v49 = vsel %vm6611_vm9, %v1870_v30, -1e+30 }
 0x2b3   : > { %v1805_v17 = vpop.permute.xlu2 %1804  ;;  %1930 = vmax.xlane.f32.xlu1 %v5422_v9  ;;  %v1785_v35 = vpop.permute.xlu1 %1784 }
 0x2b4   : > { %v1829_v15 = vadd.f32 %v5278_v27, %v1805_v17  ;;  %v1810_v48 = vpop.permute.xlu0 %1809  ;;  %1934 = vmax.xlane.f32.xlu0 %v5417_v62  ;;  %v1825_v23 = vadd.f32 %v5278_v27, %v1785_v35  ;;  %v5440_v35 = vsel %vm4910_vm14, %v1875_v10, -1e+30 }
 0x2b5   : > { %v1830_v2 = vadd.f32 %v5278_v27, %v1810_v48 }
 0x2b6   : > { %v1861_v5 = vmul.f32 0.01, %v1829_v15  ;;  %vm1845_vm2 = vcmp.gt.f32.partialorder %v1829_v15, 0.0  ;;  %v1857_v56 = vmul.f32 0.01, %v1825_v23  ;;  %vm1841_vm15 = vcmp.gt.f32.partialorder %v1825_v23, 0.0 }
 0x2b7   : > { %v1862_v19 = vmul.f32 0.01, %v1830_v2 }
 0x2b8   : > { %v1877_v16 = vsel %vm1845_vm2, %v1829_v15, %v1861_v5  ;;  %vm1846_vm2 = vcmp.gt.f32.partialorder %v1830_v2, 0.0  ;;  %v1873_v7 = vsel %vm1841_vm15, %v1825_v23, %v1857_v56  ;;  %v1335_v56 = vld [vmem:[#allocation3] sm:$0xff]  ;;  %v1432_v23 = vld [vmem:[#allocation4 + $0xb0] sm:$0xff]  ;;  %vm6622_vm15 = vcmask 7168  }
 0x2b9   : > { %v5435_v17 = vsel %vm4955_vm12, %v1877_v16, -1e+30  ;;  %v1878_v16 = vsel %vm1846_vm2, %v1830_v2, %v1862_v19  ;;  %v5447_v15 = vsel %vm4883_vm4, %v1873_v7, -1e+30  ;;  %v1351_v2 = vmul.f32 %v5090_v12, %v1335_v56  ;;  %vm6623_vm2 = vmmov %vm6622_vm15 }
 0x2ba   : > { %1926 = vmax.xlane.f32.xlu2 %v5431_v49  ;;  %v5452_v5 = vsel %vm4941_vm8, %v1878_v16, -1e+30  ;;  %v1528_v10 = vmul.f32 %v5208_v57, %v1432_v23 }
 0x2bb   : > { %1936 = vmax.xlane.f32.xlu1 %v5440_v35  ;;  %v1800_v24 = vpop.permute.xlu1 %1799 }
 0x2bc   : > { %1940 = vmax.xlane.f32.xlu0 %v5435_v17  ;;  %v1828_v40 = vadd.f32 %v5278_v27, %v1800_v24 }
 0x2be   : > { %v1860_v48 = vmul.f32 0.01, %v1828_v40  ;;  %vm1844_vm10 = vcmp.gt.f32.partialorder %v1828_v40, 0.0 }
 0x2c0   : > { %v1876_v30 = vsel %vm1844_vm10, %v1828_v40, %v1860_v48  ;;  %v1338_v40 = vld [vmem:[#allocation3 + $0x18] sm:$0xff]  ;;  %v1433_v48 = vld [vmem:[#allocation4] sm:$0xff]  ;;  %vm6624_vm10 = vmmov %vm6623_vm2 }
 0x2c1   : > { %v5457_v27 = vsel %vm6617_vm0, %v1876_v30, -1e+30  ;;  %v1353_v30 = vmul.f32 %v5060_v8, %v1337_v51  ;;  %v1354_v44 = vmul.f32 %v5103_v58, %v1338_v40  ;;  %v1529_v59 = vmul.f32 %v5274_v4, %v1433_v48  ;;  %v1344_v40 = vld [vmem:[#allocation3 + $0x48] sm:$0xff]  ;;  %v1435_v48 = vld [vmem:[#allocation4 + $0x18] sm:$0xff] }
 0x2c2   : > { %1932 = vmax.xlane.f32.xlu2 %v5447_v15 }
 0x2c3   : > { %1942 = vmax.xlane.f32.xlu1 %v5452_v5 }
 0x2ca   : > { %1938 = vmax.xlane.f32.xlu2 %v5457_v27 }
 0x2df   : > { %v1368_v19 = vpop.xlane.xlu0 %1367  ;;  %v1625_v24 = vpop.f32.mrf.mxu0 }
 0x2e0   : > { %v1399_v7 = vadd.f32 %v1368_v19, %v1351_v2  ;;  %v1665_v16 = vadd.f32 %v1625_v24, %v1528_v10  ;;  %v1340_v2 = vld [vmem:[#allocation3 + $0x28] sm:$0xff]  ;;  %v1341_v10 = vld [vmem:[#allocation3 + $0x30] sm:$0xff]  ;;  %v1434_v19 = vld [vmem:[#allocation4 + $0xd8] sm:$0xff] }
 0x2e1   : > { %v1356_v8 = vmul.f32 %v5105_v11, %v1340_v2  ;;  %v1357_v58 = vmul.f32 %v5117_v63, %v1341_v10  ;;  %v1530_v4 = vmul.f32 %v5225_v60, %v1434_v19 }
 0x2e2   : > { %1416 = vst.msk [vmem:[#allocation3] sm:$0xff] %vm6622_vm15, %v1399_v7  ;;  %vm6625_vm15 = vmmov %vm6623_vm2 }
 0x2e3   : > { %1681 = vst [vmem:[#allocation4 + $0xb0] sm:$0xff] %v1665_v16  ;;  %v1336_v16 = vld [vmem:[#allocation3 + $0x8] sm:$0xff] }
 0x2e4   : > { %v1352_v11 = vmul.f32 %v5092_v37, %v1336_v16  ;;  %v1346_v37 = vld [vmem:[#allocation3 + $0x58] sm:$0xff] }
 0x2e6   : > { %v1372_v31 = vpop.xlane.xlu1 %1371 }
 0x2e7   : > { %v1374_v12 = vpop.xlane.xlu0 %1373  ;;  %v1401_v56 = vadd.f32 %v1372_v31, %v1353_v30  ;;  %v1627_v57 = vpop.f32.mrf.mxu0 }
 0x2e8   : > { %v1402_v23 = vadd.f32 %v1374_v12, %v1354_v44  ;;  %v1666_v3 = vadd.f32 %v1627_v57, %v1529_v59  ;;  %v1360_v12 = vmul.f32 %v5132_v18, %v1344_v40  ;;  %v1531_v57 = vmul.f32 %v5220_v41, %v1435_v48 }
 0x2e9   : > { %1418 = vst.msk [vmem:[#allocation3 + $0x10] sm:$0xff] %vm6623_vm2, %v1401_v56  ;;  %v1362_v41 = vmul.f32 %v5135_v38, %v1346_v37  ;;  %v1349_v38 = vld [vmem:[#allocation3 + $0x70] sm:$0xff] }
 0x2ea   : > { %1419 = vst.msk [vmem:[#allocation3 + $0x18] sm:$0xff] %vm6624_vm10, %v1402_v23  ;;  %vm6626_vm10 = vmmov %vm6623_vm2 }
 0x2eb   : > { %1682 = vst [vmem:[#allocation4] sm:$0xff] %v1666_v3  ;;  %v1343_v3 = vld [vmem:[#allocation3 + $0x40] sm:$0xff] }
 0x2ec   : > { %v1359_v30 = vmul.f32 %v5119_v26, %v1343_v3  ;;  %v1347_v26 = vld [vmem:[#allocation3 + $0x60] sm:$0xff] }
 0x2ed   : > { %v1440_v3 = vld [vmem:[#allocation4 + $0x80] sm:$0xff] }
 0x2ee   : > { %v1378_v51 = vpop.xlane.xlu1 %1377 }
 0x2ef   : > { %v1380_v24 = vpop.xlane.xlu0 %1379  ;;  %v1404_v31 = vadd.f32 %v1378_v51, %v1356_v8  ;;  %v1630_v7 = vpop.f32.mrf.mxu0  ;;  %v1436_v51 = vld [vmem:[#allocation4 + $0x50] sm:$0xff] }
 0x2f0   : > { %v1405_v44 = vadd.f32 %v1380_v24, %v1357_v58  ;;  %v1667_v59 = vadd.f32 %v1630_v7, %v1530_v4  ;;  %v1339_v58 = vld [vmem:[#allocation3 + $0x20] sm:$0xff] }
 0x2f1   : > { %1421 = vst.msk [vmem:[#allocation3 + $0x28] sm:$0xff] %vm6625_vm15, %v1404_v31  ;;  %vm6627_vm15 = vmmov %vm6623_vm2  ;;  %v1355_v18 = vmul.f32 %v5077_v52, %v1339_v58  ;;  %v1363_v31 = vmul.f32 %v5143_v33, %v1347_v26  ;;  %v1342_v52 = vld [vmem:[#allocation3 + $0x38] sm:$0xff] }
 0x2f2   : > { %1422 = vst.msk [vmem:[#allocation3 + $0x30] sm:$0xff] %vm6623_vm2, %v1405_v44  ;;  %v1532_v44 = vmul.f32 %v5260_v39, %v1436_v51  ;;  %v1350_v33 = vld [vmem:[#allocation3 + $0x78] sm:$0xff] }
 0x2f3   : > { %1683 = vst [vmem:[#allocation4 + $0xd8] sm:$0xff] %v1667_v59 }
 0x2f5   : > { %v1370_v63 = vpop.xlane.xlu2 %1369 }
 0x2f6   : > { %v1400_v60 = vadd.f32 %v1370_v63, %v1352_v11  ;;  %v1384_v56 = vpop.xlane.xlu1 %1383  ;;  %v1536_v63 = vmul.f32 %v5342_v61, %v1440_v3  ;;  %v1441_v61 = vld [vmem:[#allocation4 + $0x88] sm:$0xff] }
 0x2f7   : > { %v1386_v23 = vpop.xlane.xlu0 %1385  ;;  %v1407_v2 = vadd.f32 %v1384_v56, %v1359_v30  ;;  %v1632_v10 = vpop.f32.mrf.mxu0  ;;  %v1437_v30 = vld [vmem:[#allocation4 + $0x68] sm:$0xff] }
 0x2f8   : > { %1417 = vst.msk [vmem:[#allocation3 + $0x8] sm:$0xff] %vm6626_vm10, %v1400_v60  ;;  %v1408_v19 = vadd.f32 %v1386_v23, %v1360_v12  ;;  %v1668_v8 = vadd.f32 %v1632_v10, %v1531_v57  ;;  %vm6628_vm10 = vmmov %vm6623_vm2  ;;  %v1358_v60 = vmul.f32 %v5094_v0, %v1342_v52  ;;  %v1365_v57 = vmul.f32 %v5146_v53, %v1349_v38  ;;  %v1345_v0 = vld [vmem:[#allocation3 + $0x50] sm:$0xff] }
 0x2f9   : > { %1424 = vst.msk [vmem:[#allocation3 + $0x40] sm:$0xff] %vm6627_vm15, %v1407_v2  ;;  %vm6629_vm15 = vmmov %vm6623_vm2  ;;  %v1366_v2 = vmul.f32 %v5154_v14, %v1350_v33  ;;  %v1537_v53 = vmul.f32 %v5269_v20, %v1441_v61  ;;  %v1438_v14 = vld [vmem:[#allocation4 + $0x30] sm:$0xff]  ;;  %v1442_v20 = vld [vmem:[#allocation4 + $0xe8] sm:$0xff] }
 0x2fa   : > { %1425 = vst.msk [vmem:[#allocation3 + $0x48] sm:$0xff] %vm6623_vm2, %v1408_v19  ;;  %v1533_v19 = vmul.f32 %v5321_v28, %v1437_v30  ;;  %v6632_v28 = vld [vmem:[#allocation25_spill] sm:$0xff]  ;;  %v1538_v33 = vmul.f32 %v5323_v25, %v1442_v20  ;;  %v1439_v30 = vld [vmem:[#allocation4 + $0x48] sm:$0xff] }
 0x2fb   : > { %1684 = vst [vmem:[#allocation4 + $0x18] sm:$0xff] %v1668_v8  ;;  %v1443_v25 = vld [vmem:[#allocation4 + $0xb8] sm:$0xff] }
 0x2fd   : > { %v1376_v4 = vpop.xlane.xlu2 %1375 }
 0x2fe   : > { %v1403_v24 = vadd.f32 %v1376_v4, %v1355_v18  ;;  %v1390_v7 = vpop.xlane.xlu1 %1389  ;;  %v1361_v4 = vmul.f32 %v6632_v28, %v1345_v0  ;;  %v5545_v28 = vld [vmem:[#allocation2 + $0xb0] sm:$0xff] }
 0x2ff   : > { %v1392_v59 = vpop.xlane.xlu0 %1391  ;;  %v1410_v16 = vadd.f32 %v1390_v7, %v1362_v41  ;;  %v1635_v40 = vpop.f32.mrf.mxu0  ;;  %v5497_v41 = vld [vmem:[#allocation2 + $0x80] sm:$0xff]  ;;  %v5499_v7 = vld [vmem:[#allocation2 + $0x90] sm:$0xff] }
 0x300   : > { %1420 = vst.msk [vmem:[#allocation3 + $0x20] sm:$0xff] %vm6628_vm10, %v1403_v24  ;;  %v1411_v48 = vadd.f32 %v1392_v59, %v1363_v31  ;;  %v1669_v11 = vadd.f32 %v1635_v40, %v1532_v44  ;;  %vm6630_vm10 = vmmov %vm6623_vm2  ;;  %v6661_v0 = vld [vmem:[#allocation20_spill] sm:$0xff] }
 0x301   : > { %1427 = vst.msk [vmem:[#allocation3 + $0x58] sm:$0xff] %vm6629_vm15, %v1410_v16  ;;  %vm6631_vm15 = vmmov %vm6623_vm2  ;;  %v1534_v16 = vmul.f32 %v5256_v34, %v1438_v14  ;;  %v1348_v34 = vld [vmem:[#allocation3 + $0x68] sm:$0xff] }
 0x302   : > { %1428 = vst.msk [vmem:[#allocation3 + $0x60] sm:$0xff] %vm6623_vm2, %v1411_v48  ;;  %v5543_v14 = vld [vmem:[#allocation2 + $0x88] sm:$0xff] }
 0x303   : > { %1685 = vst [vmem:[#allocation4 + $0x50] sm:$0xff] %v1669_v11 }
 0x304   : > { %v1645_v39 = vpop.f32.mrf.mxu2 }
 0x305   : > { %v1673_v12 = vadd.f32 %v1645_v39, %v1536_v63  ;;  %v1382_v56 = vpop.xlane.xlu2 %1381 }
 0x306   : > { %v1406_v23 = vadd.f32 %v1382_v56, %v1358_v60  ;;  %v1396_v10 = vpop.xlane.xlu1 %1395  ;;  %v6635_v60 = vld [vmem:[#allocation26_spill] sm:$0xff] }
 0x307   : > { %1689 = vst [vmem:[#allocation4 + $0x80] sm:$0xff] %v1673_v12  ;;  %v1398_v8 = vpop.xlane.xlu0 %1397  ;;  %v1413_v58 = vadd.f32 %v1396_v10, %v1365_v57  ;;  %v1637_v37 = vpop.f32.mrf.mxu0  ;;  %v1364_v12 = vmul.f32 %v6635_v60, %v1348_v34  ;;  %v5521_v56 = vld [vmem:[#allocation2 + $0x98] sm:$0xff]  ;;  %v5574_v60 = vld [vmem:[#allocation2 + $0xc8] sm:$0xff] }
 0x308   : > { %1423 = vst.msk [vmem:[#allocation3 + $0x38] sm:$0xff] %vm6630_vm10, %v1406_v23  ;;  %v1414_v26 = vadd.f32 %v1398_v8, %v1366_v2  ;;  %v1670_v51 = vadd.f32 %v1637_v37, %v1533_v19  ;;  %vm6633_vm10 = vmmov %vm6623_vm2  ;;  %v5523_v2 = vld [vmem:[#allocation2 + $0xa8] sm:$0xff]  ;;  %v1535_v8 = vmul.f32 %v5280_v45, %v1439_v30  ;;  %v5572_v30 = vld [vmem:[#allocation2 + $0xa0] sm:$0xff] }
 0x309   : > { %1430 = vst.msk [vmem:[#allocation3 + $0x70] sm:$0xff] %vm6631_vm15, %v1413_v58  ;;  %vm6634_vm15 = vmmov %vm6623_vm2 }
 0x30a   : > { %1431 = vst.msk [vmem:[#allocation3 + $0x78] sm:$0xff] %vm6623_vm2, %v1414_v26 }
 0x30b   : > { %1686 = vst [vmem:[#allocation4 + $0x68] sm:$0xff] %v1670_v51 }
 0x30c   : > { %v1647_v18 = vpop.f32.mrf.mxu2 }
 0x30d   : > { %v1674_v24 = vadd.f32 %v1647_v18, %v1537_v53  ;;  %v1388_v31 = vpop.xlane.xlu2 %1387  ;;  %v1539_v53 = vmul.f32 %v5372_v46, %v1443_v25  ;;  %v1444_v46 = vld [vmem:[#allocation4 + $0x60] sm:$0xff]  ;;  %v1445_v25 = vld [vmem:[#allocation4 + $0xf0] sm:$0xff] }
 0x30e   : > { %v1409_v44 = vadd.f32 %v1388_v31, %v1361_v4  ;;  %v1913_v59 = vpop.xlane.xlu1 %1912  ;;  %v5547_v31 = vld [vmem:[#allocation2 + $0xc0] sm:$0xff] }
 0x30f   : > { %1690 = vst [vmem:[#allocation4 + $0x88] sm:$0xff] %v1674_v24  ;;  %v1917_v3 = vpop.xlane.xlu0 %1916  ;;  %v5503_v40 = vmax.f32 %v5497_v41, %v1913_v59  ;;  %v1640_v48 = vpop.f32.mrf.mxu0 }
 0x310   : > { %1426 = vst.msk [vmem:[#allocation3 + $0x50] sm:$0xff] %vm6633_vm10, %v1409_v44  ;;  %v5507_v11 = vmax.f32 %v5499_v7, %v1917_v3  ;;  %v1671_v52 = vadd.f32 %v1640_v48, %v1534_v16  ;;  %vm6636_vm10 = vmmov %vm6623_vm2 }
 0x311   : > { %2516 = vst.msk [vmem:[#allocation2 + $0x80] sm:$0xff] %vm6634_vm15, %v5503_v40  ;;  %2010 = vperm.xlu2 %4000, %v5503_v40   ;;  %vm6637_vm15 = vmmov %vm6623_vm2 }
 0x312   : > { %2518 = vst.msk [vmem:[#allocation2 + $0x90] sm:$0xff] %vm6623_vm2, %v5507_v11  ;;  %2020 = vperm.xlu1 %3999, %v5507_v11   ;;  %v6676_v32 = vsub.f32 %v5499_v7, %v5507_v11 }
 0x313   : > { %1687 = vst [vmem:[#allocation4 + $0x30] sm:$0xff] %v1671_v52 }
 0x314   : > { %v1650_v39 = vpop.f32.mrf.mxu2 }
 0x315   : > { %v1675_v57 = vadd.f32 %v1650_v39, %v1538_v33  ;;  %v1394_v23 = vpop.xlane.xlu2 %1393  ;;  %v1540_v33 = vmul.f32 %v5316_v47, %v1444_v46 }
 0x316   : > { %v1412_v10 = vadd.f32 %v1394_v23, %v1364_v12  ;;  %v1919_v19 = vpop.xlane.xlu1 %1918  ;;  %v5576_v23 = vld [vmem:[#allocation2 + $0xd8] sm:$0xff] }
 0x317   : > { %1691 = vst [vmem:[#allocation4 + $0xe8] sm:$0xff] %v1675_v57  ;;  %v1923_v58 = vpop.xlane.xlu0 %1922  ;;  %v5527_v61 = vmax.f32 %v5521_v56, %v1919_v19  ;;  %v1642_v37 = vpop.f32.mrf.mxu0 }
 0x318   : > { %1429 = vst.msk [vmem:[#allocation3 + $0x68] sm:$0xff] %vm6636_vm10, %v1412_v10  ;;  %v5531_v26 = vmax.f32 %v5523_v2, %v1923_v58  ;;  %v1672_v51 = vadd.f32 %v1642_v37, %v1535_v8  ;;  %vm6638_vm10 = vmmov %vm6623_vm2 }
 0x319   : > { %2519 = vst.msk [vmem:[#allocation2 + $0x98] sm:$0xff] %vm6637_vm15, %v5527_v61  ;;  %vm6639_vm15 = vmmov %vm6623_vm2 }
 0x31a   : > { %2521 = vst.msk [vmem:[#allocation2 + $0xa8] sm:$0xff] %vm6623_vm2, %v5531_v26  ;;  %2025 = vperm.xlu1 %3999, %v5527_v61  }
 0x31b   : > { %1688 = vst [vmem:[#allocation4 + $0x48] sm:$0xff] %v1672_v51 }
 0x31c   : > { %v1652_v18 = vpop.f32.mrf.mxu2 }
 0x31d   : > { %v1676_v4 = vadd.f32 %v1652_v18, %v1539_v53  ;;  %v1915_v24 = vpop.xlane.xlu2 %1914  ;;  %v1541_v18 = vmul.f32 %v5344_v21, %v1445_v25 }
 0x31e   : > { %v5550_v44 = vmax.f32 %v5543_v14, %v1915_v24  ;;  %v1925_v59 = vpop.xlane.xlu1 %1924 }
 0x31f   : > { %1692 = vst [vmem:[#allocation4 + $0xb8] sm:$0xff] %v1676_v4  ;;  %v1929_v16 = vpop.xlane.xlu0 %1928  ;;  %v5553_v3 = vmax.f32 %v5545_v28, %v1925_v59  ;;  %v5603_v4 = vld [vmem:[#allocation2 + $0xb8] sm:$0xff]  ;;  %v5605_v59 = vld [vmem:[#allocation2 + $0xe0] sm:$0xff] }
 0x320   : > { %2517 = vst.msk [vmem:[#allocation2 + $0x88] sm:$0xff] %vm6638_vm10, %v5550_v44  ;;  %v5560_v48 = vmax.f32 %v5547_v31, %v1929_v16  ;;  %2015 = vperm.xlu0 %3998, %v5550_v44   ;;  %vm6640_vm10 = vmmov %vm6623_vm2 }
 0x321   : > { %2522 = vst.msk [vmem:[#allocation2 + $0xb0] sm:$0xff] %vm6639_vm15, %v5553_v3  ;;  %vm6641_vm15 = vmmov %vm6623_vm2 }
 0x322   : > { %2524 = vst.msk [vmem:[#allocation2 + $0xc0] sm:$0xff] %vm6623_vm2, %v5560_v48 }
 0x324   : > { %v1655_v39 = vpop.f32.mrf.mxu2 }
 0x325   : > { %v1677_v12 = vadd.f32 %v1655_v39, %v1540_v33  ;;  %v1921_v57 = vpop.xlane.xlu2 %1920  ;;  %v5607_v33 = vld [vmem:[#allocation2 + $0xf0] sm:$0xff] }
 0x326   : > { %v5579_v10 = vmax.f32 %v5572_v30, %v1921_v57  ;;  %v1931_v19 = vpop.xlane.xlu1 %1930 }
 0x327   : > { %1693 = vst [vmem:[#allocation4 + $0x60] sm:$0xff] %v1677_v12  ;;  %v1935_v8 = vpop.xlane.xlu0 %1934  ;;  %v5582_v58 = vmax.f32 %v5574_v60, %v1931_v19 }
 0x328   : > { %2520 = vst.msk [vmem:[#allocation2 + $0xa0] sm:$0xff] %vm6640_vm10, %v5579_v10  ;;  %v5589_v37 = vmax.f32 %v5576_v23, %v1935_v8  ;;  %2050 = vperm.xlu0 %3998, %v5560_v48   ;;  %2030 = vperm.xlu1 %3999, %v5579_v10   ;;  %v1446_v8 = vld [vmem:[#allocation4 + $0x8] sm:$0xff]  ;;  %vm6642_vm10 = vmmov %vm6623_vm2 }
 0x329   : > { %2525 = vst.msk [vmem:[#allocation2 + $0xc8] sm:$0xff] %vm6641_vm15, %v5582_v58  ;;  %2055 = vperm.xlu2 %4000, %v5582_v58   ;;  %vm6643_vm15 = vmmov %vm6623_vm2 }
 0x32a   : > { %2527 = vst.msk [vmem:[#allocation2 + $0xd8] sm:$0xff] %vm6623_vm2, %v5589_v37 }
 0x32c   : > { %v1657_v24 = vpop.f32.mrf.mxu2 }
 0x32d   : > { %v1678_v16 = vadd.f32 %v1657_v24, %v1541_v18  ;;  %v1927_v46 = vpop.xlane.xlu2 %1926  ;;  %v1447_v24 = vld [vmem:[#allocation4 + $0x78] sm:$0xff] }
 0x32e   : > { %v5610_v39 = vmax.f32 %v5603_v4, %v1927_v46  ;;  %v1937_v12 = vpop.xlane.xlu1 %1936  ;;  %v5633_v46 = vld [vmem:[#allocation2 + $0xd0] sm:$0xff] }
 0x32f   : > { %1694 = vst [vmem:[#allocation4 + $0xf0] sm:$0xff] %v1678_v16  ;;  %v1941_v57 = vpop.xlane.xlu0 %1940  ;;  %v5613_v19 = vmax.f32 %v5605_v59, %v1937_v12  ;;  %v1542_v16 = vmul.f32 %v5393_v43, %v1446_v8  ;;  %v5654_v8 = vld [vmem:[#allocation2 + $0xe8] sm:$0xff]  ;;  %v3846_v43 = vld [vmem:[%s4634_s9 + $0x58] sm:$0xff] }
 0x330   : > { %2523 = vst.msk [vmem:[#allocation2 + $0xb8] sm:$0xff] %vm6642_vm10, %v5610_v39  ;;  %v5620_v25 = vmax.f32 %v5607_v33, %v1941_v57  ;;  %2035 = vperm.xlu1 %3999, %v5531_v26   ;;  %v5635_v57 = vld [vmem:[#allocation2 + $0xf8] sm:$0xff]  ;;  %vm6644_vm10 = vmmov %vm6623_vm2 }
 0x331   : > { %2528 = vst.msk [vmem:[#allocation2 + $0xe0] sm:$0xff] %vm6643_vm15, %v5613_v19  ;;  %2065 = vperm.xlu2 %4000, %v5589_v37   ;;  %vm6645_vm15 = vmmov %vm6623_vm2 }
 0x332   : > { %2530 = vst.msk [vmem:[#allocation2 + $0xf0] sm:$0xff] %vm6623_vm2, %v5620_v25 }
 0x333   : > { %6646 = vst [vmem:[#allocation25_spill] sm:$0xff] %v5654_v8 }
 0x334   : > { %v1660_v12 = vpop.f32.mrf.mxu2 }
 0x335   : > { %v1679_v21 = vadd.f32 %v1660_v12, %v1542_v16  ;;  %v1933_v53 = vpop.xlane.xlu2 %1932 }
 0x336   : > { %v5638_v47 = vmax.f32 %v5633_v46, %v1933_v53  ;;  %v1943_v18 = vpop.xlane.xlu1 %1942  ;;  %v1543_v53 = vmul.f32 %v5336_v55, %v1447_v24  ;;  %v3850_v55 = vld [vmem:[%s4634_s9 + $0x78] sm:$0xff]  ;;  %v3849_v24 = vld [vmem:[%s4634_s9 + $0x70] sm:$0xff] }
 0x337   : > { %1695 = vst [vmem:[#allocation4 + $0x8] sm:$0xff] %v1679_v21  ;;  %v5641_v34 = vmax.f32 %v5635_v57, %v1943_v18  ;;  %2435 = vmatpush.bf16.msra.mxu1 %v3850_v55  ;;  %3898 = vmatpush.bf16.msra.mxu3 %v3850_v55  ;;  %v3845_v55 = vld [vmem:[%s4634_s9 + $0x50] sm:$0xff] }
 0x338   : > { %2526 = vst.msk [vmem:[#allocation2 + $0xd0] sm:$0xff] %vm6644_vm10, %v5638_v47  ;;  %2060 = vperm.xlu0 %3998, %v5638_v47   ;;  %2040 = vperm.xlu1 %3999, %v5553_v3   ;;  %vm6648_vm10 = vnez %v6564_v36 }
 0x339   : > { %2531 = vst.msk [vmem:[#allocation2 + $0xf8] sm:$0xff] %vm6645_vm15, %v5641_v34  ;;  %vm6652_vm15 = vmpackc.low %vm4821_vm7, %vm6648_vm10 }
 0x33b   : > { %2436 = vmatpush.bf16.msra.mxu1 %v3849_v24  ;;  %3899 = vmatpush.bf16.msra.mxu3 %v3849_v24 }
 0x33c   : > { %v1662_v21 = vpop.f32.mrf.mxu2 }
 0x33d   : > { %v1680_v18 = vadd.f32 %v1662_v21, %v1543_v53  ;;  %v1939_v16 = vpop.xlane.xlu2 %1938  ;;  %v3848_v53 = vld [vmem:[%s4634_s9 + $0x68] sm:$0xff] }
 0x33e   : > { %v5657_v12 = vmax.f32 %v5654_v8, %v1939_v16  ;;  %v3847_v16 = vld [vmem:[%s4634_s9 + $0x60] sm:$0xff] }
 0x33f   : > { %1696 = vst [vmem:[#allocation4 + $0x78] sm:$0xff] %v1680_v18  ;;  %2437 = vmatpush.bf16.msra.mxu1 %v3848_v53  ;;  %3900 = vmatpush.bf16.msra.mxu3 %v3848_v53  ;;  %v3844_v53 = vld [vmem:[%s4634_s9 + $0x48] sm:$0xff] }
 0x340   : > { %6647 = vst [vmem:[#allocation26_spill] sm:$0xff] %v5657_v12  ;;  %2075 = vperm.xlu2 %4000, %v5657_v12   ;;  %2070 = vperm.xlu0 %3998, %v5613_v19  }
 0x341   : > { %2529 = vst.msk [vmem:[#allocation2 + $0xe8] sm:$0xff] %vm6623_vm2, %v5657_v12  ;;  %vm6658_vm2 = vmpackc.low %vm4843_vm11, %vm4793_vm1 }
 0x343   : > { %2438 = vmatpush.bf16.msra.mxu1 %v3847_v16  ;;  %3901 = vmatpush.bf16.msra.mxu3 %v3847_v16 }
 0x347   : > { %2439 = vmatpush.bf16.msra.mxu1 %v3846_v43  ;;  %3902 = vmatpush.bf16.msra.mxu3 %v3846_v43 }
 0x348   : > { %2080 = vperm.xlu0 %3998, %v5620_v25   ;;  %2085 = vperm.xlu2 %4000, %v5641_v34  }
 0x34b   : > { %2440 = vmatpush.bf16.msra.mxu1 %v3845_v55  ;;  %3903 = vmatpush.bf16.msra.mxu3 %v3845_v55 }
 0x34f   : > { %2441 = vmatpush.bf16.msra.mxu1 %v3844_v53  ;;  %3904 = vmatpush.bf16.msra.mxu3 %v3844_v53 }
 0x350   : > { %2045 = vperm.xlu0 %3998, %v5610_v39  }
 0x36b   : > { %v2011_v21 = vpop.permute.xlu2 %2010 }
 0x36c   : > { %v2088_v18 = vsub.f32 %v5333_v22, %v2011_v21  ;;  %v3843_v22 = vld [vmem:[%s4634_s9 + $0x40] sm:$0xff] }
 0x36d   : > { %2442 = vmatpush.bf16.msra.mxu1 %v3843_v22  ;;  %3905 = vmatpush.bf16.msra.mxu3 %v3843_v22 }
 0x36e   : > { %v2104_v51 = vmul.f32 1.442695, %v2088_v18  ;;  %v6649_v18 = vld [vmem:[#allocation24_spill] sm:$0xff] }
 0x370   : > { %4067 = vpow2.f32 %v2104_v51 }
 0x376   : > { %v4068_v45 = vpop.eup %4067 }
 0x377   : > { %v2136_v24 = vsel %vm6648_vm10, %v4068_v45, 0.0 }
 0x378   : > { %2185 = vadd.xlane.f32.xlu2 %v2136_v24 }
 0x383   : > { %v2056_v53 = vpop.permute.xlu2 %2055 }
 0x384   : > { %v2021_v21 = vpop.permute.xlu1 %2020  ;;  %v2097_v12 = vsub.f32 %v5422_v9, %v2056_v53 }
 0x385   : > { %v2090_v51 = vsub.f32 %v6649_v18, %v2021_v21 }
 0x387   : > { %v2108_v16 = vmul.f32 1.442695, %v2090_v51 }
 0x389   : > { %4069 = vpow2.f32 %v2108_v16 }
 0x38c   : > { %v2026_v43 = vpop.permute.xlu1 %2025 }
 0x38d   : > { %v2091_v52 = vsub.f32 %v5365_v42, %v2026_v43  ;;  %v2122_v42 = vmul.f32 1.442695, %v2097_v12 }
 0x38f   : > { %v4070_v63 = vpop.eup %4069  ;;  %v2110_v38 = vmul.f32 1.442695, %v2091_v52 }
 0x390   : > { %v2138_v55 = vsel %vm4793_vm1, %v4070_v63, 0.0  ;;  %vm6662_vm1 = vnez %v6661_v0 }
 0x391   : > { %4071 = vpow2.f32 %v2110_v38  ;;  %2189 = vadd.xlane.f32.xlu0 %v2138_v55 }
 0x392   : > { %v2016_v24 = vpop.permute.xlu0 %2015 }
 0x393   : > { %v2089_v20 = vsub.f32 %v5381_v6, %v2016_v24  ;;  %v6653_v24 = vld [vmem:[#allocation19_spill] sm:$0xff] }
 0x395   : > { %v2106_v22 = vmul.f32 1.442695, %v2089_v20 }
 0x397   : > { %v4072_v21 = vpop.eup %4071  ;;  %4073 = vpow2.f32 %v2106_v22 }
 0x398   : > { %v2139_v51 = vsel %vm4843_vm11, %v4072_v21, 0.0  ;;  %4075 = vpow2.f32 %v2122_v42  ;;  %vm6663_vm11 = vmpackc.low %vm6662_vm1, %vm4883_vm4 }
 0x399   : > { %2191 = vadd.xlane.f32.xlu2 %v2139_v51 }
 0x39a   : > { %v2051_v52 = vpop.permute.xlu0 %2050  ;;  %v2031_v43 = vpop.permute.xlu1 %2030 }
 0x39b   : > { %v2096_v16 = vsub.f32 %v5385_v1, %v2051_v52  ;;  %v2092_v38 = vsub.f32 %v5413_v13, %v2031_v43  ;;  %v2066_v1 = vpop.permute.xlu2 %2065 }
 0x39c   : > { %v2099_v51 = vsub.f32 %v5417_v62, %v2066_v1  ;;  %v6656_v62 = vld [vmem:[#allocation23_spill] sm:$0xff]  ;;  %v3776_v1 = vpack.c.bf16 %v4072_v21, %v4070_v63 }
 0x39d   : > { %v4074_v55 = vpop.eup %4073  ;;  %v2120_v8 = vmul.f32 1.442695, %v2096_v16  ;;  %v2112_v6 = vmul.f32 1.442695, %v2092_v38 }
 0x39e   : > { %v2137_v9 = vsel %vm4821_vm7, %v4074_v55, 0.0  ;;  %v3773_v20 = vpack.c.bf16 %v4074_v55, %v4068_v45  ;;  %v4076_v13 = vpop.eup %4075  ;;  %vm6655_vm7 = vmpackc.low %vm6621_vm5, %vm4905_vm13 }
 0x39f   : > { %4077 = vpow2.f32 %v2120_v8  ;;  %2187 = vadd.xlane.f32.xlu1 %v2137_v9  ;;  %v2126_v8 = vmul.f32 1.442695, %v2099_v51 }
 0x3a0   : > { %3774 = vmatmul.msk.bf16.vlgmr.msra.gmra.mxu1 %vm6652_vm15, %v3773_v20  ;;  %4079 = vpow2.f32 %v2112_v6 }
 0x3a2   : > { %v2036_v12 = vpop.permute.xlu1 %2035 }
 0x3a3   : > { %v2093_v53 = vsub.f32 %v6653_v24, %v2036_v12 }
 0x3a5   : > { %v4078_v22 = vpop.eup %4077  ;;  %v2114_v42 = vmul.f32 1.442695, %v2093_v53 }
 0x3a6   : > { %v3785_v52 = vpack.c.bf16 %v4076_v13, %v4078_v22  ;;  %v4080_v45 = vpop.eup %4079  ;;  %v2144_v21 = vsel %vm4905_vm13, %v4078_v22, 0.0  ;;  %vm6664_vm13 = vmpackc.low %vm4879_vm3, %vm4816_vm6 }
 0x3a7   : > { %4081 = vpow2.f32 %v2114_v42  ;;  %v2140_v54 = vsel %vm4816_vm6, %v4080_v45, 0.0  ;;  %vm6668_vm6 = vmpackc.low %vm6617_vm0, %vm4910_vm14 }
 0x3a8   : > { %3786 = vmatmul.msk.bf16.vlgmr.msra.gmra.mxu3 %vm6655_vm7, %v3785_v52  ;;  %2193 = vadd.xlane.f32.xlu1 %v2140_v54  ;;  %4083 = vpow2.f32 %v2126_v8  ;;  %v6659_v8 = vld [vmem:[#allocation12_spill] sm:$0xff] }
 0x3a9   : > { %vm6660_vm10 = vnez %v6659_v8 }
 0x3aa   : > { %v2061_v16 = vpop.permute.xlu0 %2060  ;;  %v2041_v38 = vpop.permute.xlu1 %2040 }
 0x3ab   : > { %v2098_v43 = vsub.f32 %v5447_v15, %v2061_v16  ;;  %v2094_v55 = vsub.f32 %v6656_v62, %v2041_v38  ;;  %v2076_v15 = vpop.permute.xlu2 %2075 }
 0x3ac   : > { %v2101_v18 = vsub.f32 %v5457_v27, %v2076_v15 }
 0x3ad   : > { %v2124_v6 = vmul.f32 1.442695, %v2098_v43  ;;  %v4082_v9 = vpop.eup %4081  ;;  %v2116_v20 = vmul.f32 1.442695, %v2094_v55 }
 0x3ae   : > { %v2141_v24 = vsel %vm4879_vm3, %v4082_v9, 0.0  ;;  %v4084_v51 = vpop.eup %4083  ;;  %v2130_v36 = vmul.f32 1.442695, %v2101_v18  ;;  %vm6672_vm3 = vmpackc.low %vm6611_vm9, %vm6660_vm10 }
 0x3af   : > { %4085 = vpow2.f32 %v2124_v6  ;;  %2195 = vadd.xlane.f32.xlu0 %v2141_v24  ;;  %v2147_v27 = vsel %vm6662_vm1, %v4084_v51, 0.0  ;;  %v2145_v6 = vsel %vm6621_vm5, %v4076_v13, 0.0 }
 0x3b0   : > { %4087 = vpow2.f32 %v2116_v20  ;;  %3777 = vmatmul.msk.bf16.gmra.mxu1 %vm6658_vm2, %v3776_v1  ;;  %v3779_v20 = vpack.c.bf16 %v4082_v9, %v4080_v45 }
 0x3b2   : > { %v2071_v53 = vpop.permute.xlu0 %2070 }
 0x3b3   : > { %v2100_v54 = vsub.f32 %v5440_v35, %v2071_v53  ;;  %v2086_v35 = vpop.permute.xlu2 %2085 }
 0x3b4   : > { %v2103_v55 = vsub.f32 %v5452_v5, %v2086_v35 }
 0x3b5   : > { %v4086_v42 = vpop.eup %4085  ;;  %v2128_v43 = vmul.f32 1.442695, %v2100_v54 }
 0x3b6   : > { %v4088_v52 = vpop.eup %4087  ;;  %v3788_v63 = vpack.c.bf16 %v4084_v51, %v4086_v42  ;;  %v2146_v35 = vsel %vm4883_vm4, %v4086_v42, 0.0  ;;  %v1980_v42 = vmul.f32 1.442695, %v6676_v32 }
 0x3b7   : > { %v2142_v16 = vsel %vm6660_vm10, %v4088_v52, 0.0  ;;  %2201 = vadd.xlane.f32.xlu0 %v2144_v21  ;;  %4089 = vpow2.f32 %v2128_v43  ;;  %v6671_v43 = vsub.f32 %v5543_v14, %v5550_v44  ;;  %v6675_v44 = vsub.f32 %v5497_v41, %v5503_v40 }
 0x3b8   : > { %2197 = vadd.xlane.f32.xlu2 %v2142_v16  ;;  %3789 = vmatmul.msk.bf16.gmra.mxu3 %vm6663_vm11, %v3788_v63  ;;  %v6678_v41 = vsub.f32 %v5523_v2, %v5531_v26  ;;  %v6680_v2 = vsub.f32 %v5547_v31, %v5560_v48  ;;  %v6684_v31 = vsub.f32 %v5576_v23, %v5589_v37 }
 0x3b9   : > { %v1976_v8 = vmul.f32 1.442695, %v6675_v44  ;;  %v6687_v23 = vsub.f32 %v5607_v33, %v5620_v25 }
 0x3ba   : > { %v2081_v38 = vpop.permute.xlu0 %2080  ;;  %v1986_v40 = vmul.f32 1.442695, %v6678_v41  ;;  %v1992_v26 = vmul.f32 1.442695, %v6680_v2  ;;  %v1998_v48 = vmul.f32 1.442695, %v6684_v31 }
 0x3bb   : > { %v2102_v62 = vsub.f32 %v5435_v17, %v2081_v38  ;;  %v2134_v17 = vmul.f32 1.442695, %v2103_v55  ;;  %v1978_v38 = vmul.f32 1.442695, %v6671_v43  ;;  %v2004_v37 = vmul.f32 1.442695, %v6687_v23 }
 0x3bc   : > { %v2159_v41 = vld [vmem:[#allocation3 + $0xb0] sm:$0xff] }
 0x3bd   : > { %v2132_v22 = vmul.f32 1.442695, %v2102_v62  ;;  %v4090_v24 = vpop.eup %4089  ;;  %v6673_v62 = vsub.f32 %v5521_v56, %v5527_v61  ;;  %v6677_v61 = vsub.f32 %v5545_v28, %v5553_v3  ;;  %v2167_v31 = vld [vmem:[#allocation3 + $0xf0] sm:$0xff] }
 0x3be   : > { %v2148_v9 = vsel %vm4910_vm14, %v4090_v24, 0.0  ;;  %vm6674_vm14 = vmpackc.low %vm4941_vm8, %vm4955_vm12 }
 0x3bf   : > { %4091 = vpow2.f32 %v2132_v22  ;;  %2207 = vadd.xlane.f32.xlu0 %v2147_v27  ;;  %v1988_v22 = vmul.f32 1.442695, %v6677_v61  ;;  %v2153_v27 = vld [vmem:[#allocation3 + $0x80] sm:$0xff] }
 0x3c0   : > { %4093 = vpow2.f32 %v2130_v36  ;;  %2203 = vadd.xlane.f32.xlu2 %v2145_v6  ;;  %3780 = vmatmul.msk.bf16.gmra.mxu1 %vm6664_vm13, %v3779_v20  ;;  %v1982_v36 = vmul.f32 1.442695, %v6673_v62  ;;  %v6679_v6 = vsub.f32 %v5574_v60, %v5582_v58  ;;  %v6682_v60 = vsub.f32 %v5605_v59, %v5613_v19 }
 0x3c1   : > { %4095 = vpow2.f32 %v2134_v17  ;;  %v6685_v59 = vsub.f32 %v5635_v57, %v5641_v34  ;;  %v2155_v34 = vld [vmem:[#allocation3 + $0x90] sm:$0xff] }
 0x3c2   : > { %v2046_v5 = vpop.permute.xlu0 %2045  ;;  %v1994_v20 = vmul.f32 1.442695, %v6679_v6  ;;  %v2000_v58 = vmul.f32 1.442695, %v6682_v60 }
 0x3c3   : > { %v2095_v1 = vsub.f32 %v5431_v49, %v2046_v5  ;;  %v2006_v19 = vmul.f32 1.442695, %v6685_v59 }
 0x3c5   : > { %v4092_v15 = vpop.eup %4091  ;;  %v2118_v53 = vmul.f32 1.442695, %v2095_v1 }
 0x3c6   : > { %v4094_v51 = vpop.eup %4093  ;;  %v2150_v13 = vsel %vm4955_vm12, %v4092_v15, 0.0  ;;  %vm6681_vm12 = vcmask 7168  }
 0x3c7   : > { %4097 = vpow2.f32 %v2118_v53  ;;  %v3791_v12 = vpack.c.bf16 %v4094_v51, %v4090_v24  ;;  %2213 = vadd.xlane.f32.xlu0 %v2150_v13  ;;  %v4096_v49 = vpop.eup %4095  ;;  %v2149_v56 = vsel %vm6617_vm0, %v4094_v51, 0.0  ;;  %vm6689_vm0 = vmmov %vm6681_vm12 }
 0x3c8   : > { %2209 = vadd.xlane.f32.xlu2 %v2148_v9  ;;  %v2151_v0 = vsel %vm4941_vm8, %v4096_v49, 0.0  ;;  %4099 = vpow2.f32 %v1978_v38  ;;  %vm6693_vm4 = vmmov %vm6689_vm0 }
 0x3c9   : > { %3792 = vmatmul.msk.bf16.gmra.mxu3 %vm6668_vm6, %v3791_v12  ;;  %4101 = vpow2.f32 %v1982_v36  ;;  %vm6694_vm8 = vmmov %vm6689_vm0  ;;  %v2157_v36 = vld [vmem:[#allocation3 + $0xa0] sm:$0xff] }
 0x3ca   : > { %4103 = vpow2.f32 %v1976_v8  ;;  %vm6696_vm5 = vmmov %vm6689_vm0 }
 0x3cb   : > { %4105 = vpow2.f32 %v1980_v42  ;;  %v2158_v42 = vld [vmem:[#allocation3 + $0xa8] sm:$0xff]  ;;  %vm6697_vm15 = vmmov %vm6689_vm0 }
 0x3cc   : > { %4107 = vpow2.f32 %v1988_v22  ;;  %vm6698_vm7 = vmmov %vm6689_vm0 }
 0x3cd   : > { %v4098_v54 = vpop.eup %4097  ;;  %4109 = vpow2.f32 %v1986_v40  ;;  %vm6699_vm2 = vmmov %vm6689_vm0 }
 0x3ce   : > { %v2143_v21 = vsel %vm6611_vm9, %v4098_v54, 0.0  ;;  %v3782_v16 = vpack.c.bf16 %v4098_v54, %v4088_v52  ;;  %v3794_v52 = vpack.c.bf16 %v4096_v49, %v4092_v15  ;;  %v5768_v14 = vpop.eup %4099  ;;  %4111 = vpow2.f32 %v1994_v20  ;;  %v2156_v49 = vld [vmem:[#allocation3 + $0x98] sm:$0xff]  ;;  %vm6695_vm9 = vmmov %vm6689_vm0 }
 0x3cf   : > { %2199 = vadd.xlane.f32.xlu1 %v2143_v21  ;;  %v4102_v55 = vpop.eup %4101  ;;  %4113 = vpow2.f32 %v1992_v26  ;;  %v6683_v15 = vsub.f32 %v5572_v30, %v5579_v10  ;;  %v6686_v30 = vsub.f32 %v5603_v4, %v5610_v39  ;;  %v6688_v4 = vsub.f32 %v5633_v46, %v5638_v47  ;;  %v6690_v21 = vld [vmem:[#allocation25_spill] sm:$0xff]  ;;  %v2154_v47 = vld [vmem:[#allocation3 + $0x88] sm:$0xff]  ;;  %vm6700_vm10 = vmmov %vm6689_vm0 }
 0x3d0   : > { %2215 = vadd.xlane.f32.xlu2 %v2151_v0  ;;  %3783 = vmatmul.msk.bf16.gmra.mxu1 %vm6672_vm3, %v3782_v16  ;;  %v4104_v7 = vpop.eup %4103  ;;  %4115 = vpow2.f32 %v2000_v58  ;;  %v2172_v54 = vmul.f32 %v4102_v55, %v2156_v49  ;;  %v6691_v16 = vld [vmem:[#allocation26_spill] sm:$0xff]  ;;  %v2170_v38 = vmul.f32 %v5768_v14, %v2154_v47  ;;  %vm6701_vm1 = vmmov %vm6689_vm0  ;;  %v2166_v47 = vld [vmem:[#allocation3 + $0xe8] sm:$0xff] }
 0x3d1   : > { %v4106_v11 = vpop.eup %4105  ;;  %v2169_v17 = vmul.f32 %v4104_v7, %v2153_v27  ;;  %v1984_v53 = vmul.f32 1.442695, %v6683_v15  ;;  %v1990_v10 = vmul.f32 1.442695, %v6686_v30  ;;  %v1996_v39 = vmul.f32 1.442695, %v6688_v4  ;;  %vm6702_vm11 = vmmov %vm6689_vm0 }
 0x3d2   : > { %v5788_v5 = vpop.eup %4107  ;;  %v2171_v9 = vmul.f32 %v4106_v11, %v2155_v34  ;;  %v6692_v18 = vsub.f32 %v6690_v21, %v6691_v16  ;;  %vm6703_vm13 = vmmov %vm6689_vm0  ;;  %v2252_v49 = vld [vmem:[#allocation4 + $0x40] sm:$0xff] }
 0x3d3   : > { %v4110_v1 = vpop.eup %4109  ;;  %4117 = vpow2.f32 %v1984_v53  ;;  %vm6704_vm6 = vmmov %vm6689_vm0 }
 0x3d4   : > { %v5798_v24 = vpop.eup %4111  ;;  %4119 = vpow2.f32 %v1998_v48  ;;  %v2002_v0 = vmul.f32 1.442695, %v6692_v18  ;;  %v2165_v48 = vld [vmem:[#allocation3 + $0xe0] sm:$0xff]  ;;  %v2251_v18 = vld [vmem:[#allocation4 + $0x58] sm:$0xff]  ;;  %vm6705_vm3 = vmmov %vm6689_vm0 }
 0x3d5   : > { %v4114_v51 = vpop.eup %4113  ;;  %4121 = vpow2.f32 %v2006_v19 }
 0x3d6   : > { %v5810_v29 = vpop.eup %4115  ;;  %4123 = vpow2.f32 %v1990_v10 }
 0x3d7   : > { %2205 = vadd.xlane.f32.xlu1 %v2146_v35  ;;  %4125 = vpow2.f32 %v2004_v37  ;;  %v2181_v19 = vmul.f32 %v5810_v29, %v2165_v48  ;;  %v2160_v37 = vld [vmem:[#allocation3 + $0xb8] sm:$0xff] }
 0x3d8   : > { %4127 = vpow2.f32 %v1996_v39 }
 0x3d9   : > { %3795 = vmatmul.msk.bf16.gmra.mxu3 %vm6674_vm14, %v3794_v52  ;;  %v4118_v13 = vpop.eup %4117  ;;  %4129 = vpow2.f32 %v2002_v0  ;;  %vm6706_vm14 = vmmov %vm6689_vm0 }
 0x3da   : > { %v4120_v45 = vpop.eup %4119  ;;  %v2173_v44 = vmul.f32 %v4118_v13, %v2157_v36  ;;  %v2255_v36 = vld [vmem:[#allocation4 + $0x90] sm:$0xff] }
 0x3db   : > { %2273 = vperm.xlu0 %3998, %v5768_v14   ;;  %v5819_v57 = vpop.eup %4121 }
 0x3dc   : > { %v5825_v25 = vpop.eup %4123 }
 0x3dd   : > { %v4126_v50 = vpop.eup %4125  ;;  %v2176_v34 = vmul.f32 %v5825_v25, %v2160_v37  ;;  %v2262_v37 = vld [vmem:[#allocation4 + $0xa0] sm:$0xff] }
 0x3de   : > { %v5832_v46 = vpop.eup %4127  ;;  %v2183_v59 = vmul.f32 %v4126_v50, %v2167_v31 }
 0x3df   : > { %2211 = vadd.xlane.f32.xlu1 %v2149_v56  ;;  %v5838_v62 = vpop.eup %4129  ;;  %v2174_v56 = vmul.f32 %v4110_v1, %v2158_v42 }
 0x3e3   : > { %2283 = vperm.xlu0 %3998, %v4102_v55   ;;  %v2161_v55 = vld [vmem:[#allocation3 + $0xc0] sm:$0xff] }
 0x3e4   : > { %v2177_v40 = vmul.f32 %v4114_v51, %v2161_v55 }
 0x3e8   : > { %2278 = vperm.xlu2 %4000, %v4106_v11  }
 0x3eb   : > { %v2186_v28 = vpop.xlane.xlu2 %2185  ;;  %2298 = vperm.xlu0 %3998, %v5788_v5  }
 0x3ec   : > { %v2217_v3 = vadd.f32 %v2186_v28, %v2169_v17  ;;  %v2164_v28 = vld [vmem:[#allocation3 + $0xd8] sm:$0xff] }
 0x3ed   : > { %v2180_v26 = vmul.f32 %v4120_v45, %v2164_v28 }
 0x3ee   : > { %2233 = vst.msk [vmem:[#allocation3 + $0x80] sm:$0xff] %vm6681_vm12, %v2217_v3  ;;  %v2162_v3 = vld [vmem:[#allocation3 + $0xc8] sm:$0xff] }
 0x3f0   : > { %2293 = vperm.xlu2 %4000, %v4110_v1   ;;  %v2178_v1 = vmul.f32 %v5798_v24, %v2162_v3 }
 0x3f3   : > { %2313 = vperm.xlu0 %3998, %v5798_v24  }
 0x3f8   : > { %2308 = vperm.xlu2 %4000, %v4114_v51   ;;  %2268 = vperm.xlu1 %3999, %v4104_v7   ;;  %v2175_v7 = vmul.f32 %v5788_v5, %v2159_v41 }
 0x3fb   : > { %2328 = vperm.xlu0 %3998, %v5810_v29  }
 0x400   : > { %2323 = vperm.xlu2 %4000, %v4120_v45   ;;  %2288 = vperm.xlu1 %3999, %v4118_v13   ;;  %v2168_v13 = vld [vmem:[#allocation3 + $0xf8] sm:$0xff] }
 0x403   : > { %2343 = vperm.xlu0 %3998, %v5819_v57  }
 0x404   : > { %v2190_v12 = vpop.xlane.xlu0 %2189 }
 0x405   : > { %v2219_v33 = vadd.f32 %v2190_v12, %v2171_v9  ;;  %v2184_v9 = vmul.f32 %v5819_v57, %v2168_v13 }
 0x407   : > { %2235 = vst.msk [vmem:[#allocation3 + $0x90] sm:$0xff] %vm6689_vm0, %v2219_v33 }
 0x408   : > { %2338 = vperm.xlu2 %4000, %v4126_v50   ;;  %2303 = vperm.xlu1 %3999, %v5825_v25   ;;  %v2163_v50 = vld [vmem:[#allocation3 + $0xd0] sm:$0xff] }
 0x40c   : > { %v2192_v63 = vpop.xlane.xlu2 %2191 }
 0x40d   : > { %v2220_v43 = vadd.f32 %v2192_v63, %v2172_v54  ;;  %v2179_v54 = vmul.f32 %v5832_v46, %v2163_v50  ;;  %v2265_v50 = vld [vmem:[#allocation4 + $0x98] sm:$0xff] }
 0x40f   : > { %2236 = vst.msk [vmem:[#allocation3 + $0x98] sm:$0xff] %vm6693_vm4, %v2220_v43 }
 0x410   : > { %2318 = vperm.xlu1 %3999, %v5832_v46  }
 0x412   : > { %v2188_v35 = vpop.xlane.xlu1 %2187 }
 0x413   : > { %v2218_v52 = vadd.f32 %v2188_v35, %v2170_v38 }
 0x415   : > { %2234 = vst.msk [vmem:[#allocation3 + $0x88] sm:$0xff] %vm6694_vm8, %v2218_v52 }
 0x418   : > { %2333 = vperm.xlu1 %3999, %v5838_v62  }
 0x41b   : > { %v2194_v8 = vpop.xlane.xlu1 %2193 }
 0x41c   : > { %v2221_v32 = vadd.f32 %v2194_v8, %v2173_v44  ;;  %v2182_v44 = vmul.f32 %v5838_v62, %v2166_v47  ;;  %v2256_v62 = vld [vmem:[#allocation4 + $0x70] sm:$0xff] }
 0x41d   : > { %v5842_v61 = vpop.f32.mrf.mxu1  ;;  %v2260_v47 = vld [vmem:[#allocation4 + $0x10] sm:$0xff] }
 0x41e   : > { %2237 = vst.msk [vmem:[#allocation3 + $0xa0] sm:$0xff] %vm6695_vm9, %v2221_v32 }
 0x422   : > { %v2196_v22 = vpop.xlane.xlu0 %2195 }
 0x423   : > { %v2222_v14 = vadd.f32 %v2196_v22, %v2174_v56  ;;  %v2253_v56 = vld [vmem:[#allocation4 + $0xc8] sm:$0xff] }
 0x425   : > { %2238 = vst.msk [vmem:[#allocation3 + $0xa8] sm:$0xff] %vm6696_vm5, %v2222_v14  ;;  %v2446_v17 = vpop.f32.mrf.mxu1 }
 0x42a   : > { %v2202_v11 = vpop.xlane.xlu0 %2201 }
 0x42b   : > { %v2198_v27 = vpop.xlane.xlu2 %2197  ;;  %v2225_v6 = vadd.f32 %v2202_v11, %v2177_v40  ;;  %v5848_v2 = vpop.f32.mrf.mxu3  ;;  %v2258_v11 = vld [vmem:[#allocation4 + $0xa8] sm:$0xff] }
 0x42c   : > { %v2223_v20 = vadd.f32 %v2198_v27, %v2175_v7 }
 0x42d   : > { %2241 = vst.msk [vmem:[#allocation3 + $0xc0] sm:$0xff] %vm6697_vm15, %v2225_v6  ;;  %v2449_v53 = vpop.f32.mrf.mxu1 }
 0x42e   : > { %2239 = vst.msk [vmem:[#allocation3 + $0xb0] sm:$0xff] %vm6698_vm7, %v2223_v20 }
 0x432   : > { %v2208_v60 = vpop.xlane.xlu0 %2207 }
 0x433   : > { %v2204_v58 = vpop.xlane.xlu2 %2203  ;;  %v2228_v15 = vadd.f32 %v2208_v60, %v2180_v26  ;;  %v5853_v51 = vpop.f32.mrf.mxu3 }
 0x434   : > { %v2226_v5 = vadd.f32 %v2204_v58, %v2178_v1  ;;  %v2261_v1 = vld [vmem:[#allocation4 + $0x28] sm:$0xff] }
 0x435   : > { %2244 = vst.msk [vmem:[#allocation3 + $0xd8] sm:$0xff] %vm6699_vm2, %v2228_v15  ;;  %v2451_v45 = vpop.f32.mrf.mxu1 }
 0x436   : > { %2242 = vst.msk [vmem:[#allocation3 + $0xc8] sm:$0xff] %vm6700_vm10, %v2226_v5  ;;  %v2259_v5 = vld [vmem:[#allocation4 + $0xd0] sm:$0xff] }
 0x43a   : > { %v2214_v30 = vpop.xlane.xlu0 %2213 }
 0x43b   : > { %v2210_v10 = vpop.xlane.xlu2 %2209  ;;  %v2231_v23 = vadd.f32 %v2214_v30, %v2183_v59  ;;  %v5860_v29 = vpop.f32.mrf.mxu3  ;;  %v2250_v59 = vld [vmem:[#allocation4 + $0x38] sm:$0xff]  ;;  %v2264_v30 = vld [vmem:[#allocation4 + $0x20] sm:$0xff] }
 0x43c   : > { %v2229_v24 = vadd.f32 %v2210_v10, %v2181_v19 }
 0x43d   : > { %2247 = vst.msk [vmem:[#allocation3 + $0xf0] sm:$0xff] %vm6701_vm1, %v2231_v23  ;;  %v5865_v21 = vpop.f32.mrf.mxu1 }
 0x43e   : > { %2245 = vst.msk [vmem:[#allocation3 + $0xe0] sm:$0xff] %vm6702_vm11, %v2229_v24 }
 0x442   : > { %v2200_v12 = vpop.xlane.xlu1 %2199 }
 0x443   : > { %v2216_v4 = vpop.xlane.xlu2 %2215  ;;  %v2224_v39 = vadd.f32 %v2200_v12, %v2176_v34  ;;  %v2471_v38 = vpop.f32.mrf.mxu3 }
 0x444   : > { %v2232_v33 = vadd.f32 %v2216_v4, %v2184_v9  ;;  %v2254_v4 = vld [vmem:[#allocation4 + $0xe0] sm:$0xff] }
 0x445   : > { %2240 = vst.msk [vmem:[#allocation3 + $0xb8] sm:$0xff] %vm6703_vm13, %v2224_v39  ;;  %v2456_v22 = vpop.f32.mrf.mxu1 }
 0x446   : > { %2248 = vst.msk [vmem:[#allocation3 + $0xf8] sm:$0xff] %vm6704_vm6, %v2232_v33 }
 0x44a   : > { %v2206_v63 = vpop.xlane.xlu1 %2205 }
 0x44b   : > { %v2279_v25 = vpop.permute.xlu2 %2278  ;;  %v2227_v16 = vadd.f32 %v2206_v63, %v2179_v54 }
 0x44c   : > { %v2348_v57 = vmul.f32 %v2279_v25, %v2252_v49  ;;  %v2474_v40 = vpop.f32.mrf.mxu3 }
 0x44d   : > { %2243 = vst.msk [vmem:[#allocation3 + $0xd0] sm:$0xff] %vm6705_vm3, %v2227_v16  ;;  %v2274_v43 = vpop.permute.xlu0 %2273  ;;  %v2459_v3 = vpop.f32.mrf.mxu1  ;;  %v2257_v16 = vld [vmem:[#allocation4 + $0xc0] sm:$0xff] }
 0x44e   : > { %v2486_v0 = vadd.f32 %v2449_v53, %v2348_v57  ;;  %v2347_v35 = vmul.f32 %v2274_v43, %v2251_v18 }
 0x450   : > { %2502 = vst [vmem:[#allocation4 + $0x40] sm:$0xff] %v2486_v0  ;;  %v2485_v52 = vadd.f32 %v2446_v17, %v2347_v35 }
 0x452   : > { %v2212_v46 = vpop.xlane.xlu1 %2211  ;;  %2501 = vst [vmem:[#allocation4 + $0x58] sm:$0xff] %v2485_v52 }
 0x453   : > { %v2294_v8 = vpop.permute.xlu2 %2293  ;;  %v2230_v32 = vadd.f32 %v2212_v46, %v2182_v44 }
 0x454   : > { %v2351_v42 = vmul.f32 %v2294_v8, %v2255_v36  ;;  %v2476_v60 = vpop.f32.mrf.mxu3  ;;  %v2263_v36 = vld [vmem:[#allocation4 + $0xf8] sm:$0xff] }
 0x455   : > { %2246 = vst.msk [vmem:[#allocation3 + $0xe8] sm:$0xff] %vm6706_vm14, %v2230_v32  ;;  %v2284_v55 = vpop.permute.xlu0 %2283  ;;  %v2461_v0 = vpop.f32.mrf.mxu1 }
 0x456   : > { %v2489_v14 = vadd.f32 %v2456_v22, %v2351_v42  ;;  %v2349_v41 = vmul.f32 %v2284_v55, %v2253_v56 }
 0x458   : > { %2505 = vst [vmem:[#allocation4 + $0x90] sm:$0xff] %v2489_v14  ;;  %v2487_v7 = vadd.f32 %v2451_v45, %v2349_v41 }
 0x45a   : > { %2503 = vst [vmem:[#allocation4 + $0xc8] sm:$0xff] %v2487_v7 }
 0x45b   : > { %v2309_v27 = vpop.permute.xlu2 %2308 }
 0x45c   : > { %v2354_v6 = vmul.f32 %v2309_v27, %v2258_v11  ;;  %v2479_v13 = vpop.f32.mrf.mxu3 }
 0x45d   : > { %v2299_v17 = vpop.permute.xlu0 %2298 }
 0x45e   : > { %v2492_v20 = vadd.f32 %v5848_v2, %v2354_v6  ;;  %v2352_v28 = vmul.f32 %v2299_v17, %v2256_v62 }
 0x460   : > { %2508 = vst [vmem:[#allocation4 + $0xa8] sm:$0xff] %v2492_v20  ;;  %v2490_v26 = vadd.f32 %v2459_v3, %v2352_v28 }
 0x462   : > { %2506 = vst [vmem:[#allocation4 + $0x70] sm:$0xff] %v2490_v26 }
 0x463   : > { %v2324_v58 = vpop.permute.xlu2 %2323 }
 0x464   : > { %v2357_v15 = vmul.f32 %v2324_v58, %v2261_v1  ;;  %v2481_v25 = vpop.f32.mrf.mxu3 }
 0x465   : > { %v2314_v31 = vpop.permute.xlu0 %2313 }
 0x466   : > { %v2495_v53 = vadd.f32 %v2471_v38, %v2357_v15  ;;  %v2355_v48 = vmul.f32 %v2314_v31, %v2259_v5 }
 0x468   : > { %2511 = vst [vmem:[#allocation4 + $0x28] sm:$0xff] %v2495_v53  ;;  %v2493_v19 = vadd.f32 %v5853_v51, %v2355_v48 }
 0x46a   : > { %v2269_v2 = vpop.permute.xlu1 %2268  ;;  %2509 = vst [vmem:[#allocation4 + $0xd0] sm:$0xff] %v2493_v19 }
 0x46b   : > { %v2339_v10 = vpop.permute.xlu2 %2338  ;;  %v2346_v23 = vmul.f32 %v2269_v2, %v2250_v59 }
 0x46c   : > { %v2360_v24 = vmul.f32 %v2339_v10, %v2264_v30 }
 0x46d   : > { %v2484_v45 = vadd.f32 %v5842_v61, %v2346_v23  ;;  %v2329_v9 = vpop.permute.xlu0 %2328 }
 0x46e   : > { %v2498_v34 = vadd.f32 %v2479_v13, %v2360_v24  ;;  %v2358_v12 = vmul.f32 %v2329_v9, %v2262_v37 }
 0x46f   : > { %2500 = vst [vmem:[#allocation4 + $0x38] sm:$0xff] %v2484_v45 }
 0x470   : > { %2514 = vst [vmem:[#allocation4 + $0x20] sm:$0xff] %v2498_v34  ;;  %v2496_v39 = vadd.f32 %v2474_v40, %v2358_v12 }
 0x472   : > { %v2289_v33 = vpop.permute.xlu1 %2288  ;;  %2512 = vst [vmem:[#allocation4 + $0xa0] sm:$0xff] %v2496_v39 }
 0x473   : > { %v2350_v51 = vmul.f32 %v2289_v33, %v2254_v4 }
 0x475   : > { %v2488_v49 = vadd.f32 %v5865_v21, %v2350_v51  ;;  %v2344_v54 = vpop.permute.xlu0 %2343 }
 0x476   : > { %v2361_v63 = vmul.f32 %v2344_v54, %v2265_v50 }
 0x477   : > { %2504 = vst [vmem:[#allocation4 + $0xe0] sm:$0xff] %v2488_v49 }
 0x478   : > { %v2499_v57 = vadd.f32 %v2481_v25, %v2361_v63 }
 0x47a   : > { %v2304_v61 = vpop.permute.xlu1 %2303  ;;  %2515 = vst [vmem:[#allocation4 + $0x98] sm:$0xff] %v2499_v57 }
 0x47b   : > { %v2353_v18 = vmul.f32 %v2304_v61, %v2257_v16 }
 0x47d   : > { %v2491_v43 = vadd.f32 %v2461_v0, %v2353_v18 }
 0x47f   : > { %2507 = vst [vmem:[#allocation4 + $0xc0] sm:$0xff] %v2491_v43 }
 0x482   : > { %v2319_v38 = vpop.permute.xlu1 %2318 }
 0x483   : > { %v2356_v35 = vmul.f32 %v2319_v38, %v2260_v47 }
 0x485   : > { %v2494_v52 = vadd.f32 %v5860_v29, %v2356_v35 }
 0x487   : > { %2510 = vst [vmem:[#allocation4 + $0x10] sm:$0xff] %v2494_v52 }
 0x48a   : > { %v2334_v21 = vpop.permute.xlu1 %2333 }
 0x48b   : > { %v2359_v44 = vmul.f32 %v2334_v21, %v2263_v36  ;;  %2535 = sbr.rel (%p3796_p4) target bundleno = 1453 (0x5ad), region = 198 }
 0x48d   : > { %v2497_v46 = vadd.f32 %v2476_v60, %v2359_v44 }
 0x48f   : > { %2513 = vst [vmem:[#allocation4 + $0xf8] sm:$0xff] %v2497_v46 }
 0x490   : > { %v2556_v8 = vld [vmem:[#allocation3 + $0x20] sm:$0xff]  ;;  %v2554_v32 = vld [vmem:[#allocation3 + $0x10] sm:$0xff]  ;;  %v4353_v56 = vmov 0   ;;  %v2557_v29 = vld [vmem:[#allocation3 + $0x28] sm:$0xff] }
 0x491   : > { %v2552_v42 = vld [vmem:[#allocation3] sm:$0xff]  ;;  %4133 = vset.pattern.permute.xlu2 %v4353_v56  ;;  %4132 = vset.pattern.permute.xlu1 %v4353_v56  ;;  %v2572_v22 = vmax.f32 %v2556_v8, 1e-20  ;;  %v2570_v14 = vmax.f32 %v2554_v32, 1e-20  ;;  %v2555_v41 = vld [vmem:[#allocation3 + $0x18] sm:$0xff] }
 0x492   : > { %v2568_v55 = vmax.f32 %v2552_v42, 1e-20  ;;  %4131 = vset.pattern.permute.xlu0 %v4353_v56  ;;  %v2553_v40 = vld [vmem:[#allocation3 + $0x8] sm:$0xff]  ;;  %v2573_v7 = vmax.f32 %v2557_v29, 1e-20  ;;  %v2560_v6 = vld [vmem:[#allocation3 + $0x40] sm:$0xff] }
 0x493   : > { %2606 = vperm.xlu2 %4133, %v2572_v22   ;;  %2596 = vperm.xlu1 %4132, %v2570_v14   ;;  %v2571_v11 = vmax.f32 %v2555_v41, 1e-20  ;;  %v2569_v27 = vmax.f32 %v2553_v40, 1e-20  ;;  %v2559_v62 = vld [vmem:[#allocation3 + $0x38] sm:$0xff]  ;;  %v2558_v20 = vld [vmem:[#allocation3 + $0x30] sm:$0xff] }
 0x494   : > { %2586 = vperm.xlu0 %4131, %v2568_v55   ;;  %v2576_v17 = vmax.f32 %v2560_v6, 1e-20  ;;  %v2575_v28 = vmax.f32 %v2559_v62, 1e-20  ;;  %v2574_v3 = vmax.f32 %v2558_v20, 1e-20 }
 0x495   : > { %v2563_v26 = vld [vmem:[#allocation3 + $0x58] sm:$0xff]  ;;  %v2562_v1 = vld [vmem:[#allocation3 + $0x50] sm:$0xff]  ;;  %v2561_v60 = vld [vmem:[#allocation3 + $0x48] sm:$0xff] }
 0x496   : > { %v2579_v58 = vmax.f32 %v2563_v26, 1e-20  ;;  %v2578_v15 = vmax.f32 %v2562_v1, 1e-20  ;;  %v2577_v5 = vmax.f32 %v2561_v60, 1e-20 }
 0x497   : > { %v2566_v53 = vld [vmem:[#allocation3 + $0x70] sm:$0xff]  ;;  %v2565_v31 = vld [vmem:[#allocation3 + $0x68] sm:$0xff]  ;;  %v2564_v48 = vld [vmem:[#allocation3 + $0x60] sm:$0xff] }
 0x498   : > { %v2582_v59 = vmax.f32 %v2566_v53, 1e-20  ;;  %v2581_v19 = vmax.f32 %v2565_v31, 1e-20  ;;  %v2580_v30 = vmax.f32 %v2564_v48, 1e-20 }
 0x499   : > { %v3033_v2 = vld [vmem:[#allocation3 + $0x88] sm:$0xff]  ;;  %v3032_v10 = vld [vmem:[#allocation3 + $0x80] sm:$0xff]  ;;  %v2567_v23 = vld [vmem:[#allocation3 + $0x78] sm:$0xff] }
 0x49a   : > { %v3049_v24 = vmax.f32 %v3033_v2, 1e-20  ;;  %v3048_v37 = vmax.f32 %v3032_v10, 1e-20  ;;  %v2583_v13 = vmax.f32 %v2567_v23, 1e-20 }
 0x49b   : > { %2611 = vperm.xlu2 %4133, %v2573_v7   ;;  %2601 = vperm.xlu1 %4132, %v2571_v11   ;;  %v3036_v45 = vld [vmem:[#allocation3 + $0xa0] sm:$0xff]  ;;  %v3035_v34 = vld [vmem:[#allocation3 + $0x98] sm:$0xff]  ;;  %v3034_v9 = vld [vmem:[#allocation3 + $0x90] sm:$0xff] }
 0x49c   : > { %2591 = vperm.xlu0 %4131, %v2569_v27   ;;  %v3052_v12 = vmax.f32 %v3036_v45, 1e-20  ;;  %v3051_v4 = vmax.f32 %v3035_v34, 1e-20  ;;  %v3050_v39 = vmax.f32 %v3034_v9, 1e-20 }
 0x49d   : > { %v3039_v33 = vld [vmem:[#allocation3 + $0xb8] sm:$0xff]  ;;  %v3038_v51 = vld [vmem:[#allocation3 + $0xb0] sm:$0xff]  ;;  %v3037_v50 = vld [vmem:[#allocation3 + $0xa8] sm:$0xff] }
 0x49e   : > { %v3055_v49 = vmax.f32 %v3039_v33, 1e-20  ;;  %v3054_v54 = vmax.f32 %v3038_v51, 1e-20  ;;  %v3053_v63 = vmax.f32 %v3037_v50, 1e-20 }
 0x49f   : > { %v3042_v25 = vld [vmem:[#allocation3 + $0xd0] sm:$0xff]  ;;  %v3041_v16 = vld [vmem:[#allocation3 + $0xc8] sm:$0xff]  ;;  %v3040_v57 = vld [vmem:[#allocation3 + $0xc0] sm:$0xff] }
 0x4a0   : > { %v3058_v61 = vmax.f32 %v3042_v25, 1e-20  ;;  %v3057_v18 = vmax.f32 %v3041_v16, 1e-20  ;;  %v3056_v0 = vmax.f32 %v3040_v57, 1e-20 }
 0x4a1   : > { %v3045_v43 = vld [vmem:[#allocation3 + $0xe8] sm:$0xff]  ;;  %v3044_v47 = vld [vmem:[#allocation3 + $0xe0] sm:$0xff]  ;;  %v3043_v38 = vld [vmem:[#allocation3 + $0xd8] sm:$0xff] }
 0x4a2   : > { %v3061_v35 = vmax.f32 %v3045_v43, 1e-20  ;;  %v3060_v52 = vmax.f32 %v3044_v47, 1e-20  ;;  %v3059_v36 = vmax.f32 %v3043_v38, 1e-20 }
 0x4a3   : > { %2626 = vperm.xlu2 %4133, %v2576_v17   ;;  %2621 = vperm.xlu1 %4132, %v2575_v28   ;;  %v3047_v21 = vld [vmem:[#allocation3 + $0xf8] sm:$0xff]  ;;  %v3046_v44 = vld [vmem:[#allocation3 + $0xf0] sm:$0xff]  ;;  %v2541_v48 = vld [vmem:[#allocation4 + $0x68] sm:$0xff] }
 0x4a4   : > { %2616 = vperm.xlu0 %4131, %v2574_v3   ;;  %v3063_v46 = vmax.f32 %v3047_v21, 1e-20  ;;  %v3062_v8 = vmax.f32 %v3046_v44, 1e-20  ;;  %v2540_v27 = vld [vmem:[#allocation4 + $0x50] sm:$0xff]  ;;  %v2544_v57 = vld [vmem:[#allocation4 + $0x80] sm:$0xff] }
 0x4ab   : > { %2641 = vperm.xlu2 %4133, %v2579_v58   ;;  %2636 = vperm.xlu1 %4132, %v2578_v15  }
 0x4ac   : > { %2631 = vperm.xlu0 %4131, %v2577_v5  }
 0x4b3   : > { %2656 = vperm.xlu2 %4133, %v2582_v59   ;;  %2651 = vperm.xlu1 %4132, %v2581_v19  }
 0x4b4   : > { %2646 = vperm.xlu0 %4131, %v2580_v30  }
 0x4bb   : > { %3071 = vperm.xlu2 %4133, %v3049_v24   ;;  %3066 = vperm.xlu1 %4132, %v3048_v37  }
 0x4bc   : > { %2661 = vperm.xlu0 %4131, %v2583_v13  }
 0x4c3   : > { %3086 = vperm.xlu2 %4133, %v3052_v12   ;;  %3081 = vperm.xlu1 %4132, %v3051_v4  }
 0x4c4   : > { %3076 = vperm.xlu0 %4131, %v3050_v39  }
 0x4cb   : > { %3101 = vperm.xlu2 %4133, %v3055_v49   ;;  %3096 = vperm.xlu1 %4132, %v3054_v54  }
 0x4cc   : > { %3091 = vperm.xlu0 %4131, %v3053_v63  }
 0x4d3   : > { %3116 = vperm.xlu2 %4133, %v3058_v61   ;;  %3111 = vperm.xlu1 %4132, %v3057_v18  }
 0x4d4   : > { %3106 = vperm.xlu0 %4131, %v3056_v0  }
 0x4db   : > { %3131 = vperm.xlu2 %4133, %v3061_v35   ;;  %3126 = vperm.xlu1 %4132, %v3060_v52  }
 0x4dc   : > { %3121 = vperm.xlu0 %4131, %v3059_v36  }
 0x4e3   : > { %3141 = vperm.xlu1 %4132, %v3063_v46  }
 0x4e4   : > { %3136 = vperm.xlu0 %4131, %v3062_v8  }
 0x4ed   : > { %v2607_v32 = vpop.permute.xlu2 %2606 }
 0x4ee   : > { %4134 = vrcp.f32 %v2607_v32  ;;  %v2735_v14 = vand.u32 2147483648, %v2607_v32  ;;  %vm2729_vm12 = vweird.f32 %v2607_v32  ;;  %v2733_v29 = vand.u32 2147483647, %v2607_v32 }
 0x4f0   : > { %v2736_v40 = vor.u32 1.1754944e-38, %v2735_v14  ;;  %vm2734_vm8 = vcmp.eq.f32.partialorder %v2733_v29, 8.507059e+37 }
 0x4f4   : > { %v4135_v42 = vpop.eup %4134 }
 0x4f5   : > { %v2725_v56 = vmul.f32 %v4135_v42, %v2607_v32  ;;  %v2612_v22 = vpop.permute.xlu2 %2611  ;;  %vm2730_vm0 = vweird.f32 %v4135_v42 }
 0x4f6   : > { %4136 = vrcp.f32 %v2612_v22  ;;  %vm2731_vm4 = vmor %vm2729_vm12, %vm2730_vm0  ;;  %vm2744_vm9 = vweird.f32 %v2612_v22  ;;  %v2750_v28 = vand.u32 2147483648, %v2612_v22  ;;  %v2748_v1 = vand.u32 2147483647, %v2612_v22 }
 0x4f7   : > { %v2726_v55 = vsub.f32 1.0, %v2725_v56 }
 0x4f8   : > { %v2751_v15 = vor.u32 1.1754944e-38, %v2750_v28  ;;  %vm2749_vm7 = vcmp.eq.f32.partialorder %v2748_v1, 8.507059e+37  ;;  %v2538_v1 = vld [vmem:[#allocation4 + $0xd8] sm:$0xff] }
 0x4f9   : > { %v2727_v41 = vmul.f32 %v4135_v42, %v2726_v55 }
 0x4fb   : > { %v2728_v7 = vadd.f32 %v4135_v42, %v2727_v41 }
 0x4fc   : > { %v4137_v11 = vpop.eup %4136 }
 0x4fd   : > { %v2732_v6 = vsel %vm2731_vm4, %v4135_v42, %v2728_v7  ;;  %v2740_v62 = vmul.f32 %v4137_v11, %v2612_v22  ;;  %v2627_v20 = vpop.permute.xlu2 %2626  ;;  %vm2745_vm5 = vweird.f32 %v4137_v11 }
 0x4fe   : > { %v2737_v17 = vsel %vm2734_vm8, %v2736_v40, %v2732_v6  ;;  %4138 = vrcp.f32 %v2627_v20  ;;  %vm2746_vm15 = vmor %vm2744_vm9, %vm2745_vm5  ;;  %vm2789_vm2 = vweird.f32 %v2627_v20  ;;  %v2793_v23 = vand.u32 2147483647, %v2627_v20 }
 0x4ff   : > { %v2738_v3 = vmul.f32 %v2737_v17, %v2540_v27  ;;  %v2741_v26 = vsub.f32 1.0, %v2740_v62  ;;  %v2795_v24 = vand.u32 2147483648, %v2627_v20  ;;  %v2547_v17 = vld [vmem:[#allocation4 + $0xb8] sm:$0xff] }
 0x500   : > { %vm5893_vm13 = vcmp.eq.f32.partialorder %v2793_v23, 8.507059e+37  ;;  %v2536_v23 = vld [vmem:[#allocation4 + $0xb0] sm:$0xff] }
 0x501   : > { %v2924_v60 = vmin.f32 %v2738_v3, 0.0  ;;  %v2742_v58 = vmul.f32 %v4137_v11, %v2741_v26  ;;  %vm2908_vm1 = vcmp.gt.f32.partialorder %v2738_v3, 0.0  ;;  %v2796_v33 = vor.u32 1.1754944e-38, %v2795_v24 }
 0x503   : > { %v2944_v5 = vmul.f32 1.442695, %v2924_v60  ;;  %v2743_v53 = vadd.f32 %v4137_v11, %v2742_v58 }
 0x504   : > { %v4139_v31 = vpop.eup %4138 }
 0x505   : > { %4140 = vpow2.f32 %v2944_v5  ;;  %v2747_v59 = vsel %vm2746_vm15, %v4137_v11, %v2743_v53  ;;  %v2785_v19 = vmul.f32 %v4139_v31, %v2627_v20  ;;  %v5876_v30 = vpop.permute.xlu2 %2641  ;;  %v5878_v2 = vpop.permute.xlu1 %2596  ;;  %vm2790_vm10 = vweird.f32 %v4139_v31 }
 0x506   : > { %v2752_v10 = vsel %vm2749_vm7, %v2751_v15, %v2747_v59  ;;  %4142 = vrcp.f32 %v5876_v30  ;;  %v5884_v45 = vpop.permute.xlu0 %2586  ;;  %v2838_v12 = vand.u32 2147483647, %v5876_v30  ;;  %vm5889_vm11 = vmor %vm2789_vm2, %vm2790_vm10  ;;  %v2840_v54 = vand.u32 2147483648, %v5876_v30 }
 0x507   : > { %v5881_v37 = vmul.f32 %v2752_v10, %v2541_v48  ;;  %v2786_v13 = vsub.f32 1.0, %v2785_v19  ;;  %4144 = vrcp.f32 %v5878_v2  ;;  %v2703_v63 = vand.u32 2147483647, %v5878_v2 }
 0x508   : > { %4146 = vrcp.f32 %v5884_v45  ;;  %vm2834_vm6 = vweird.f32 %v5876_v30  ;;  %v2705_v61 = vand.u32 2147483648, %v5878_v2  ;;  %vm5905_vm3 = vcmp.eq.f32.partialorder %v2838_v12, 8.507059e+37 }
 0x509   : > { %v2925_v34 = vmin.f32 %v5881_v37, 0.0  ;;  %v2787_v9 = vmul.f32 %v4139_v31, %v2786_v13  ;;  %vm2699_vm14 = vweird.f32 %v5878_v2  ;;  %vm2909_vm12 = vcmp.gt.f32.partialorder %v5881_v37, 0.0 }
 0x50a   : > { %v2841_v46 = vor.u32 1.1754944e-38, %v2840_v54  ;;  %vm5920_vm0 = vcmp.eq.f32.partialorder %v2703_v63, 8.507059e+37  ;;  %v2706_v56 = vor.u32 1.1754944e-38, %v2705_v61  ;;  %v2673_v22 = vand.u32 2147483647, %v5884_v45 }
 0x50b   : > { %v4141_v51 = vpop.eup %4140  ;;  %v2946_v50 = vmul.f32 1.442695, %v2925_v34  ;;  %v2788_v49 = vadd.f32 %v4139_v31, %v2787_v9  ;;  %vm2669_vm9 = vweird.f32 %v5884_v45  ;;  %v2675_v7 = vand.u32 2147483648, %v5884_v45 }
 0x50c   : > { %v4143_v25 = vpop.eup %4142  ;;  %v3801_v16 = vadd.f32 -1.0, %v4141_v51  ;;  %vm5935_vm7 = vcmp.eq.f32.partialorder %v2673_v22, 8.507059e+37 }
 0x50d   : > { %v4145_v18 = vpop.eup %4144  ;;  %4148 = vpow2.f32 %v2946_v50  ;;  %v2792_v0 = vsel %vm5889_vm11, %v4139_v31, %v2788_v49  ;;  %v2830_v43 = vmul.f32 %v4143_v25, %v5876_v30  ;;  %v5910_v38 = vpop.permute.xlu2 %2656  ;;  %vm2835_vm4 = vweird.f32 %v4143_v25 }
 0x50e   : > { %v2988_v35 = vsel %vm2908_vm1, %v2738_v3, %v3801_v16  ;;  %v2797_v52 = vsel %vm5893_vm13, %v2796_v33, %v2792_v0  ;;  %v2695_v36 = vmul.f32 %v4145_v18, %v5878_v2  ;;  %v4147_v32 = vpop.eup %4146  ;;  %4150 = vrcp.f32 %v5910_v38  ;;  %v5926_v14 = vpop.permute.xlu1 %2601  ;;  %vm2836_vm5 = vmor %vm2834_vm6, %vm2835_vm4 }
 0x50f   : > { %3004 = vst [vmem:[%s4627_s7 + $0x40] sm:$0xff] %v2988_v35  ;;  %v5918_v21 = vmul.f32 %v2797_v52, %v2544_v57  ;;  %v2831_v44 = vsub.f32 1.0, %v2830_v43  ;;  %v2665_v41 = vmul.f32 %v4147_v32, %v5884_v45  ;;  %vm2700_vm8 = vweird.f32 %v4145_v18  ;;  %v5963_v4 = vpop.permute.xlu0 %2591  ;;  %v2550_v35 = vld [vmem:[#allocation4 + $0x8] sm:$0xff] }
 0x510   : > { %v2696_v42 = vsub.f32 1.0, %v2695_v36  ;;  %4152 = vrcp.f32 %v5926_v14  ;;  %vm2670_vm15 = vweird.f32 %v4147_v32  ;;  %vm2701_vm2 = vmor %vm2699_vm14, %vm2700_vm8  ;;  %v2885_v58 = vand.u32 2147483648, %v5910_v38 }
 0x511   : > { %v2928_v55 = vmin.f32 %v5918_v21, 0.0  ;;  %v2832_v29 = vmul.f32 %v4143_v25, %v2831_v44  ;;  %v2666_v62 = vsub.f32 1.0, %v2665_v41  ;;  %v2676_v48 = vor.u32 1.1754944e-38, %v2675_v7  ;;  %vm2671_vm1 = vmor %vm2669_vm9, %vm2670_vm15 }
 0x512   : > { %v2697_v40 = vmul.f32 %v4145_v18, %v2696_v42  ;;  %vm2912_vm10 = vcmp.gt.f32.partialorder %v5918_v21, 0.0  ;;  %vm2879_vm11 = vweird.f32 %v5910_v38  ;;  %v2883_v24 = vand.u32 2147483647, %v5910_v38  ;;  %v2539_v42 = vld [vmem:[#allocation4 + $0x18] sm:$0xff] }
 0x513   : > { %v4149_v11 = vpop.eup %4148  ;;  %v2952_v27 = vmul.f32 1.442695, %v2928_v55  ;;  %v2833_v6 = vadd.f32 %v4143_v25, %v2832_v29  ;;  %v2667_v60 = vmul.f32 %v4147_v32, %v2666_v62  ;;  %v2886_v12 = vor.u32 1.1754944e-38, %v2885_v58 }
 0x514   : > { %v3802_v20 = vadd.f32 -1.0, %v4149_v11  ;;  %v2698_v28 = vadd.f32 %v4145_v18, %v2697_v40  ;;  %v4151_v15 = vpop.eup %4150  ;;  %v2718_v51 = vand.u32 2147483647, %v5926_v14  ;;  %v2720_v0 = vand.u32 2147483648, %v5926_v14 }
 0x515   : > { %4154 = vpow2.f32 %v2952_v27  ;;  %v2837_v26 = vsel %vm2836_vm5, %v4143_v25, %v2833_v6  ;;  %v2668_v30 = vadd.f32 %v4147_v32, %v2667_v60  ;;  %v2875_v2 = vmul.f32 %v4151_v15, %v5910_v38  ;;  %v5975_v43 = vpop.permute.xlu2 %3071 }
 0x516   : > { %v2989_v5 = vsel %vm2909_vm12, %v5881_v37, %v3802_v20  ;;  %v2842_v53 = vsel %vm5905_vm3, %v2841_v46, %v2837_v26  ;;  %v2702_v31 = vsel %vm2701_vm2, %v4145_v18, %v2698_v28  ;;  %v4153_v37 = vpop.eup %4152  ;;  %vm2880_vm13 = vweird.f32 %v4151_v15  ;;  %v5983_v46 = vpop.permute.xlu1 %2621 }
 0x517   : > { %3005 = vst [vmem:[%s4627_s7 + $0x50] sm:$0xff] %v2989_v5  ;;  %v5949_v59 = vmul.f32 %v2842_v53, %v2547_v17  ;;  %v2707_v19 = vsel %vm5920_vm0, %v2706_v56, %v2702_v31  ;;  %v2672_v34 = vsel %vm2671_vm1, %v4147_v32, %v2668_v30  ;;  %v2876_v9 = vsub.f32 1.0, %v2875_v2  ;;  %vm2881_vm6 = vmor %vm2879_vm11, %vm2880_vm13 }
 0x518   : > { %v5955_v10 = vmul.f32 %v2707_v19, %v2538_v1  ;;  %v2677_v33 = vsel %vm5935_vm7, %v2676_v48, %v2672_v34  ;;  %v2710_v45 = vmul.f32 %v4153_v37, %v5926_v14  ;;  %4156 = vrcp.f32 %v5963_v4  ;;  %v6015_v19 = vpop.permute.xlu0 %2616 }
 0x519   : > { %v2931_v13 = vmin.f32 %v5949_v59, 0.0  ;;  %v5970_v54 = vmul.f32 %v2677_v33, %v2536_v23  ;;  %v2877_v63 = vmul.f32 %v4151_v15, %v2876_v9  ;;  %vm2715_vm3 = vweird.f32 %v4153_v37 }
 0x51a   : > { %v2922_v39 = vmin.f32 %v5955_v10, 0.0  ;;  %v2711_v57 = vsub.f32 1.0, %v2710_v45  ;;  %vm2884_vm14 = vcmp.eq.f32.partialorder %v2883_v24, 8.507059e+37  ;;  %vm2714_vm12 = vweird.f32 %v5926_v14 }
 0x51b   : > { %v4155_v50 = vpop.eup %4154  ;;  %v2958_v49 = vmul.f32 1.442695, %v2931_v13  ;;  %v2920_v61 = vmin.f32 %v5970_v54, 0.0  ;;  %v2878_v18 = vadd.f32 %v4151_v15, %v2877_v63  ;;  %vm2716_vm0 = vmor %vm2714_vm12, %vm2715_vm3  ;;  %vm2719_vm4 = vcmp.eq.f32.partialorder %v2718_v51, 8.507059e+37 }
 0x51c   : > { %v3805_v25 = vadd.f32 -1.0, %v4155_v50  ;;  %v2940_v16 = vmul.f32 1.442695, %v2922_v39  ;;  %v2712_v52 = vmul.f32 %v4153_v37, %v2711_v57  ;;  %v2721_v38 = vor.u32 1.1754944e-38, %v2720_v0 }
 0x51d   : > { %4158 = vpow2.f32 %v2958_v49  ;;  %v2936_v36 = vmul.f32 1.442695, %v2920_v61  ;;  %v2882_v44 = vsel %vm2881_vm6, %v4151_v15, %v2878_v18  ;;  %vm2915_vm8 = vcmp.gt.f32.partialorder %v5949_v59, 0.0  ;;  %v6028_v39 = vpop.permute.xlu2 %3086 }
 0x51e   : > { %v2992_v47 = vsel %vm2912_vm10, %v5918_v21, %v3805_v25  ;;  %4160 = vpow2.f32 %v2940_v16  ;;  %v2887_v8 = vsel %vm2884_vm14, %v2886_v12, %v2882_v44  ;;  %v2713_v32 = vadd.f32 %v4153_v37, %v2712_v52  ;;  %v4157_v56 = vpop.eup %4156  ;;  %v3017_v25 = vld [vmem:[#allocation4 + $0x58] sm:$0xff] }
 0x51f   : > { %3008 = vst [vmem:[%s4627_s7 + $0x80] sm:$0xff] %v2992_v47  ;;  %4162 = vrcp.f32 %v5975_v43  ;;  %v5987_v21 = vmul.f32 %v2887_v8, %v2550_v35  ;;  %vm2906_vm9 = vcmp.gt.f32.partialorder %v5955_v10, 0.0  ;;  %vm2904_vm5 = vcmp.gt.f32.partialorder %v5970_v54, 0.0 }
 0x520   : > { %4164 = vpow2.f32 %v2936_v36  ;;  %v2717_v22 = vsel %vm2716_vm0, %v4153_v37, %v2713_v32  ;;  %v2680_v41 = vmul.f32 %v4157_v56, %v5963_v4  ;;  %v2688_v27 = vand.u32 2147483647, %v5963_v4  ;;  %v2537_v37 = vld [vmem:[#allocation4] sm:$0xff]  ;;  %v2543_v32 = vld [vmem:[#allocation4 + $0x48] sm:$0xff] }
 0x521   : > { %4166 = vrcp.f32 %v5983_v46  ;;  %v2934_v14 = vmin.f32 %v5987_v21, 0.0  ;;  %v2722_v29 = vsel %vm2719_vm4, %v2721_v38, %v2717_v22  ;;  %v2690_v6 = vand.u32 2147483648, %v5963_v4  ;;  %v6049_v38 = vpop.permute.xlu1 %2636 }
 0x522   : > { %v5995_v11 = vmul.f32 %v2722_v29, %v2539_v42  ;;  %v2681_v17 = vsub.f32 1.0, %v2680_v41  ;;  %vm2684_vm15 = vweird.f32 %v5963_v4  ;;  %vm2685_vm7 = vweird.f32 %v4157_v56 }
 0x523   : > { %v4159_v55 = vpop.eup %4158  ;;  %v2964_v20 = vmul.f32 1.442695, %v2934_v14  ;;  %vm3164_vm2 = vweird.f32 %v5975_v43  ;;  %vm6011_vm10 = vcmp.eq.f32.partialorder %v2688_v27, 8.507059e+37  ;;  %vm2686_vm1 = vmor %vm2684_vm15, %vm2685_vm7  ;;  %v3170_v13 = vand.u32 2147483648, %v5975_v43 }
 0x524   : > { %v4161_v40 = vpop.eup %4160  ;;  %v3808_v7 = vadd.f32 -1.0, %v4159_v55  ;;  %v2923_v26 = vmin.f32 %v5995_v11, 0.0  ;;  %v2682_v58 = vmul.f32 %v4157_v56, %v2681_v17  ;;  %vm2918_vm13 = vcmp.gt.f32.partialorder %v5987_v21, 0.0 }
 0x525   : > { %v3799_v62 = vadd.f32 -1.0, %v4161_v40  ;;  %v4163_v28 = vpop.eup %4162  ;;  %4168 = vpow2.f32 %v2964_v20  ;;  %v2778_v45 = vand.u32 2147483647, %v5983_v46  ;;  %v2780_v4 = vand.u32 2147483648, %v5983_v46 }
 0x526   : > { %v2995_v3 = vsel %vm2915_vm8, %v5949_v59, %v3808_v7  ;;  %v4165_v1 = vpop.eup %4164  ;;  %v3160_v15 = vmul.f32 %v4163_v28, %v5975_v43  ;;  %v2942_v31 = vmul.f32 1.442695, %v2923_v26  ;;  %v2691_v59 = vor.u32 1.1754944e-38, %v2690_v6 }
 0x527   : > { %3011 = vst [vmem:[%s4627_s7 + $0xb0] sm:$0xff] %v2995_v3  ;;  %v2986_v60 = vsel %vm2906_vm9, %v5955_v10, %v3799_v62  ;;  %v4167_v5 = vpop.eup %4166  ;;  %v3797_v53 = vadd.f32 -1.0, %v4165_v1  ;;  %v2683_v30 = vadd.f32 %v4157_v56, %v2682_v58  ;;  %v3168_v10 = vand.u32 2147483647, %v5975_v43  ;;  %v2542_v58 = vld [vmem:[#allocation4 + $0x30] sm:$0xff] }
 0x528   : > { %3002 = vst [vmem:[%s4627_s7 + $0x20] sm:$0xff] %v2986_v60  ;;  %v3161_v2 = vsub.f32 1.0, %v3160_v15  ;;  %v2770_v23 = vmul.f32 %v4167_v5, %v5983_v46  ;;  %4170 = vpow2.f32 %v2942_v31  ;;  %vm3165_vm11 = vweird.f32 %v4163_v28 }
 0x529   : > { %v2984_v24 = vsel %vm2904_vm5, %v5970_v54, %v3797_v53  ;;  %v2687_v34 = vsel %vm2686_vm1, %v4157_v56, %v2683_v30  ;;  %4172 = vrcp.f32 %v6015_v19  ;;  %vm2775_vm6 = vweird.f32 %v4167_v5  ;;  %vm3166_vm3 = vmor %vm3164_vm2, %vm3165_vm11  ;;  %v6082_v30 = vpop.permute.xlu2 %3101 }
 0x52a   : > { %3000 = vst [vmem:[%s4627_s7] sm:$0xff] %v2984_v24  ;;  %v3162_v9 = vmul.f32 %v4163_v28, %v3161_v2  ;;  %v2771_v12 = vsub.f32 1.0, %v2770_v23  ;;  %v2692_v33 = vsel %vm6011_vm10, %v2691_v59, %v2687_v34  ;;  %vm3169_vm14 = vcmp.eq.f32.partialorder %v3168_v10, 8.507059e+37 }
 0x52b   : > { %v4169_v51 = vpop.eup %4168  ;;  %v6035_v50 = vmul.f32 %v2692_v33, %v2537_v37  ;;  %v3171_v16 = vor.u32 1.1754944e-38, %v3170_v13  ;;  %4174 = vrcp.f32 %v6028_v39  ;;  %vm2774_vm12 = vweird.f32 %v5983_v46  ;;  %v3020_v37 = vld [vmem:[#allocation4 + $0xe0] sm:$0xff] }
 0x52c   : > { %v3163_v49 = vadd.f32 %v4163_v28, %v3162_v9  ;;  %v2772_v54 = vmul.f32 %v4167_v5, %v2771_v12  ;;  %v3811_v63 = vadd.f32 -1.0, %v4169_v51  ;;  %vm2776_vm0 = vmor %vm2774_vm12, %vm2775_vm6  ;;  %vm2779_vm4 = vcmp.eq.f32.partialorder %v2778_v45, 8.507059e+37 }
 0x52d   : > { %v2921_v57 = vmin.f32 %v6035_v50, 0.0  ;;  %v2781_v43 = vor.u32 1.1754944e-38, %v2780_v4  ;;  %vm2907_vm8 = vcmp.gt.f32.partialorder %v5995_v11, 0.0  ;;  %v2763_v56 = vand.u32 2147483647, %v6015_v19 }
 0x52e   : > { %v3167_v61 = vsel %vm3166_vm3, %v4163_v28, %v3163_v49  ;;  %v2773_v18 = vadd.f32 %v4167_v5, %v2772_v54  ;;  %v4171_v0 = vpop.eup %4170  ;;  %v2998_v47 = vsel %vm2918_vm13, %v5987_v21, %v3811_v63  ;;  %vm2759_vm9 = vweird.f32 %v6015_v19 }
 0x52f   : > { %v3172_v35 = vsel %vm3169_vm14, %v3171_v16, %v3167_v61  ;;  %v4173_v52 = vpop.eup %4172  ;;  %3014 = vst [vmem:[%s4627_s7 + $0xe0] sm:$0xff] %v2998_v47  ;;  %v3800_v36 = vadd.f32 -1.0, %v4171_v0  ;;  %v2938_v44 = vmul.f32 1.442695, %v2921_v57  ;;  %v2765_v7 = vand.u32 2147483648, %v6015_v19 }
 0x530   : > { %v6047_v8 = vmul.f32 %v3172_v35, %v3017_v25  ;;  %v2777_v42 = vsel %vm2776_vm0, %v4167_v5, %v2773_v18  ;;  %v2755_v21 = vmul.f32 %v4173_v52, %v6015_v19  ;;  %v3213_v6 = vand.u32 2147483647, %v6028_v39  ;;  %v6115_v18 = vpop.permute.xlu1 %2651 }
 0x531   : > { %v2782_v46 = vsel %vm2779_vm4, %v2781_v43, %v2777_v42  ;;  %v2987_v22 = vsel %vm2907_vm8, %v5995_v11, %v3800_v36  ;;  %4176 = vpow2.f32 %v2938_v44  ;;  %v4175_v14 = vpop.eup %4174  ;;  %v6064_v11 = vpop.permute.xlu0 %2631  ;;  %vm2760_vm5 = vweird.f32 %v4173_v52 }
 0x532   : > { %v3401_v55 = vmin.f32 %v6047_v8, 0.0  ;;  %3003 = vst [vmem:[%s4627_s7 + $0x30] sm:$0xff] %v2987_v22  ;;  %v6057_v29 = vmul.f32 %v2782_v46, %v2543_v32  ;;  %v2756_v41 = vsub.f32 1.0, %v2755_v21  ;;  %4178 = vrcp.f32 %v6049_v38  ;;  %vm2761_vm10 = vmor %vm2759_vm9, %vm2760_vm5 }
 0x533   : > { %v3205_v27 = vmul.f32 %v4175_v14, %v6028_v39  ;;  %vm6067_vm15 = vcmp.eq.f32.partialorder %v2763_v56, 8.507059e+37  ;;  %vm2905_vm7 = vcmp.gt.f32.partialorder %v6035_v50, 0.0  ;;  %vm3209_vm2 = vweird.f32 %v6028_v39 }
 0x534   : > { %v3418_v40 = vmul.f32 1.442695, %v3401_v55  ;;  %v2927_v62 = vmin.f32 %v6057_v29, 0.0  ;;  %v2757_v20 = vmul.f32 %v4173_v52, %v2756_v41  ;;  %v3215_v1 = vand.u32 2147483648, %v6028_v39 }
 0x535   : > { %v3206_v28 = vsub.f32 1.0, %v3205_v27  ;;  %v2766_v15 = vor.u32 1.1754944e-38, %v2765_v7  ;;  %vm3210_vm1 = vweird.f32 %v4175_v14  ;;  %vm6077_vm11 = vcmp.eq.f32.partialorder %v3213_v6, 8.507059e+37 }
 0x536   : > { %4180 = vpow2.f32 %v3418_v40  ;;  %v2950_v3 = vmul.f32 1.442695, %v2927_v62  ;;  %v2758_v26 = vadd.f32 %v4173_v52, %v2757_v20  ;;  %vm3385_vm13 = vcmp.gt.f32.partialorder %v6047_v8, 0.0  ;;  %vm3211_vm3 = vmor %vm3209_vm2, %vm3210_vm1  ;;  %v2545_v62 = vld [vmem:[#allocation4 + $0x88] sm:$0xff] }
 0x537   : > { %4182 = vrcp.f32 %v6064_v11  ;;  %v4177_v60 = vpop.eup %4176  ;;  %v3207_v5 = vmul.f32 %v4175_v14, %v3206_v28  ;;  %vm2819_vm6 = vweird.f32 %v6049_v38  ;;  %v3216_v13 = vor.u32 1.1754944e-38, %v3215_v1 }
 0x538   : > { %v4179_v31 = vpop.eup %4178  ;;  %v3798_v48 = vadd.f32 -1.0, %v4177_v60  ;;  %4184 = vpow2.f32 %v2950_v3  ;;  %v2762_v59 = vsel %vm2761_vm10, %v4173_v52, %v2758_v26  ;;  %v2823_v34 = vand.u32 2147483647, %v6049_v38  ;;  %v2546_v52 = vld [vmem:[#allocation4 + $0xe8] sm:$0xff] }
 0x539   : > { %v2767_v19 = vsel %vm6067_vm15, %v2766_v15, %v2762_v59  ;;  %v3208_v2 = vadd.f32 %v4175_v14, %v3207_v5  ;;  %v2815_v10 = vmul.f32 %v4179_v31, %v6049_v38  ;;  %vm2911_vm14 = vcmp.gt.f32.partialorder %v6057_v29, 0.0  ;;  %v6128_v56 = vpop.permute.xlu0 %2646 }
 0x53a   : > { %v2985_v23 = vsel %vm2905_vm7, %v6035_v50, %v3798_v48  ;;  %v6091_v24 = vmul.f32 %v2767_v19, %v2542_v58  ;;  %4186 = vrcp.f32 %v6082_v30  ;;  %v2825_v50 = vand.u32 2147483648, %v6049_v38  ;;  %v3023_v19 = vld [vmem:[#allocation4 + $0xc0] sm:$0xff] }
 0x53b   : > { %3001 = vst [vmem:[%s4627_s7 + $0x10] sm:$0xff] %v2985_v23  ;;  %v3212_v12 = vsel %vm3211_vm3, %v4175_v14, %v3208_v2  ;;  %v2816_v33 = vsub.f32 1.0, %v2815_v10  ;;  %vm2820_vm12 = vweird.f32 %v4179_v31  ;;  %vm6110_vm0 = vcmp.eq.f32.partialorder %v2823_v34, 8.507059e+37  ;;  %v6165_v10 = vpop.permute.xlu2 %3116 }
 0x53c   : > { %v4181_v9 = vpop.eup %4180  ;;  %v2926_v51 = vmin.f32 %v6091_v24, 0.0  ;;  %v3217_v39 = vsel %vm6077_vm11, %v3216_v13, %v3212_v12  ;;  %vm2804_vm4 = vweird.f32 %v6064_v11  ;;  %v2808_v43 = vand.u32 2147483647, %v6064_v11  ;;  %vm2821_vm8 = vmor %vm2819_vm6, %vm2820_vm12 }
 0x53d   : > { %v4183_v45 = vpop.eup %4182  ;;  %v3814_v4 = vadd.f32 -1.0, %v4181_v9  ;;  %v6104_v49 = vmul.f32 %v3217_v39, %v3020_v37  ;;  %v2817_v54 = vmul.f32 %v4179_v31, %v2816_v33  ;;  %v2826_v36 = vor.u32 1.1754944e-38, %v2825_v50 }
 0x53e   : > { %v2800_v63 = vmul.f32 %v4183_v45, %v6064_v11  ;;  %v4185_v25 = vpop.eup %4184  ;;  %v2948_v57 = vmul.f32 1.442695, %v2926_v51  ;;  %vm2805_vm9 = vweird.f32 %v4183_v45  ;;  %vm6136_vm5 = vcmp.eq.f32.partialorder %v2808_v43, 8.507059e+37  ;;  %v6180_v51 = vpop.permute.xlu1 %3066 }
 0x53f   : > { %v3465_v16 = vsel %vm3385_vm13, %v6047_v8, %v3814_v4  ;;  %v3804_v0 = vadd.f32 -1.0, %v4185_v25  ;;  %v3404_v47 = vmin.f32 %v6104_v49, 0.0  ;;  %v2818_v35 = vadd.f32 %v4179_v31, %v2817_v54  ;;  %vm2806_vm7 = vmor %vm2804_vm4, %vm2805_vm9 }
 0x540   : > { %3481 = vst [vmem:[%s4627_s7 + $0x18] sm:$0xff] %v3465_v16  ;;  %4188 = vpow2.f32 %v2948_v57  ;;  %v2801_v44 = vsub.f32 1.0, %v2800_v63  ;;  %v2810_v8 = vand.u32 2147483648, %v6064_v11  ;;  %v4187_v32 = vpop.eup %4186  ;;  %v3260_v27 = vand.u32 2147483648, %v6082_v30 }
 0x541   : > { %v2991_v42 = vsel %vm2911_vm14, %v6057_v29, %v3804_v0  ;;  %v3424_v46 = vmul.f32 1.442695, %v3404_v47  ;;  %v2822_v21 = vsel %vm2821_vm8, %v4179_v31, %v2818_v35  ;;  %4190 = vrcp.f32 %v6115_v18  ;;  %v2549_v35 = vld [vmem:[#allocation4 + $0xf0] sm:$0xff] }
 0x542   : > { %3007 = vst [vmem:[%s4627_s7 + $0x70] sm:$0xff] %v2991_v42  ;;  %v2827_v38 = vsel %vm6110_vm0, %v2826_v36, %v2822_v21  ;;  %v2802_v22 = vmul.f32 %v4183_v45, %v2801_v44  ;;  %v3250_v55 = vmul.f32 %v4187_v32, %v6082_v30  ;;  %v3258_v29 = vand.u32 2147483647, %v6082_v30  ;;  %v2548_v21 = vld [vmem:[#allocation4 + $0x60] sm:$0xff] }
 0x543   : > { %4192 = vpow2.f32 %v3424_v46  ;;  %v6134_v14 = vmul.f32 %v2827_v38, %v2546_v52  ;;  %vm2910_vm15 = vcmp.gt.f32.partialorder %v6091_v24, 0.0  ;;  %v2811_v20 = vor.u32 1.1754944e-38, %v2810_v8 }
 0x544   : > { %v2803_v40 = vadd.f32 %v4183_v45, %v2802_v22  ;;  %v3251_v7 = vsub.f32 1.0, %v3250_v55  ;;  %4194 = vrcp.f32 %v6128_v56  ;;  %vm3254_vm2 = vweird.f32 %v6082_v30 }
 0x545   : > { %v2930_v6 = vmin.f32 %v6134_v14, 0.0  ;;  %vm3388_vm10 = vcmp.gt.f32.partialorder %v6104_v49, 0.0  ;;  %vm3255_vm1 = vweird.f32 %v4187_v32  ;;  %vm6151_vm11 = vcmp.eq.f32.partialorder %v3258_v29, 8.507059e+37 }
 0x546   : > { %v4189_v17 = vpop.eup %4188  ;;  %v2807_v28 = vsel %vm2806_vm7, %v4183_v45, %v2803_v40  ;;  %v3252_v3 = vmul.f32 %v4187_v32, %v3251_v7  ;;  %v3261_v53 = vor.u32 1.1754944e-38, %v3260_v27  ;;  %vm3256_vm13 = vmor %vm3254_vm2, %vm3255_vm1  ;;  %vm2864_vm6 = vweird.f32 %v6115_v18 }
 0x547   : > { %v4191_v26 = vpop.eup %4190  ;;  %v3803_v1 = vadd.f32 -1.0, %v4189_v17  ;;  %v2956_v60 = vmul.f32 1.442695, %v2930_v6  ;;  %v2812_v58 = vsel %vm6136_vm5, %v2811_v20, %v2807_v28  ;;  %v2868_v2 = vand.u32 2147483647, %v6115_v18 }
 0x548   : > { %v6155_v11 = vmul.f32 %v2812_v58, %v2545_v62  ;;  %v3253_v5 = vadd.f32 %v4187_v32, %v3252_v3  ;;  %v2860_v31 = vmul.f32 %v4191_v26, %v6115_v18  ;;  %vm2914_vm3 = vcmp.gt.f32.partialorder %v6134_v14, 0.0 }
 0x549   : > { %v4193_v48 = vpop.eup %4192  ;;  %v2990_v59 = vsel %vm2910_vm15, %v6091_v24, %v3803_v1  ;;  %4196 = vpow2.f32 %v2956_v60  ;;  %v2870_v24 = vand.u32 2147483648, %v6115_v18  ;;  %vm2865_vm14 = vweird.f32 %v4191_v26  ;;  %v6224_v1 = vpop.permute.xlu2 %3131 }
 0x54a   : > { %v4195_v23 = vpop.eup %4194  ;;  %3006 = vst [vmem:[%s4627_s7 + $0x60] sm:$0xff] %v2990_v59  ;;  %v3817_v37 = vadd.f32 -1.0, %v4193_v48  ;;  %v2929_v13 = vmin.f32 %v6155_v11, 0.0  ;;  %v3257_v34 = vsel %vm3256_vm13, %v4187_v32, %v3253_v5  ;;  %v2861_v9 = vsub.f32 1.0, %v2860_v31  ;;  %vm2866_vm4 = vmor %vm2864_vm6, %vm2865_vm14  ;;  %v6196_v32 = vpop.permute.xlu0 %2661 }
 0x54b   : > { %v3262_v30 = vsel %vm6151_vm11, %v3261_v53, %v3257_v34  ;;  %v2845_v12 = vmul.f32 %v4195_v23, %v6128_v56  ;;  %4198 = vrcp.f32 %v6165_v10  ;;  %v2855_v54 = vand.u32 2147483648, %v6128_v56  ;;  %v6229_v48 = vpop.permute.xlu1 %3081 }
 0x54c   : > { %v3468_v33 = vsel %vm3388_vm10, %v6104_v49, %v3817_v37  ;;  %v2954_v45 = vmul.f32 1.442695, %v2929_v13  ;;  %v6177_v4 = vmul.f32 %v3262_v30, %v3023_v19  ;;  %v2862_v39 = vmul.f32 %v4191_v26, %v2861_v9  ;;  %v3026_v37 = vld [vmem:[#allocation4 + $0x10] sm:$0xff] }
 0x54d   : > { %3484 = vst [vmem:[%s4627_s7 + $0x48] sm:$0xff] %v3468_v33  ;;  %v2846_v50 = vsub.f32 1.0, %v2845_v12  ;;  %vm6185_vm12 = vcmp.eq.f32.partialorder %v2868_v2, 8.507059e+37  ;;  %v2853_v49 = vand.u32 2147483647, %v6128_v56  ;;  %vm2850_vm0 = vweird.f32 %v4195_v23  ;;  %v3016_v33 = vld [vmem:[#allocation4 + $0x38] sm:$0xff] }
 0x54e   : > { %4200 = vpow2.f32 %v2954_v45  ;;  %v3407_v63 = vmin.f32 %v6177_v4, 0.0  ;;  %v2863_v57 = vadd.f32 %v4191_v26, %v2862_v39  ;;  %v2871_v43 = vor.u32 1.1754944e-38, %v2870_v24 }
 0x54f   : > { %v4197_v16 = vpop.eup %4196  ;;  %v2847_v61 = vmul.f32 %v4195_v23, %v2846_v50  ;;  %4202 = vrcp.f32 %v6180_v51  ;;  %vm2849_vm8 = vweird.f32 %v6128_v56  ;;  %v2856_v44 = vor.u32 1.1754944e-38, %v2855_v54 }
 0x550   : > { %v3807_v0 = vadd.f32 -1.0, %v4197_v16  ;;  %v3430_v47 = vmul.f32 1.442695, %v3407_v63  ;;  %v2867_v52 = vsel %vm2866_vm4, %v4191_v26, %v2863_v57  ;;  %v3303_v8 = vand.u32 2147483647, %v6165_v10  ;;  %vm2851_vm9 = vmor %vm2849_vm8, %vm2850_vm0 }
 0x551   : > { %v2848_v36 = vadd.f32 %v4195_v23, %v2847_v61  ;;  %v4199_v42 = vpop.eup %4198  ;;  %v2872_v18 = vsel %vm6185_vm12, %v2871_v43, %v2867_v52  ;;  %v3305_v56 = vand.u32 2147483648, %v6165_v10  ;;  %vm2854_vm5 = vcmp.eq.f32.partialorder %v2853_v49, 8.507059e+37 }
 0x552   : > { %v2994_v46 = vsel %vm2914_vm3, %v6134_v14, %v3807_v0  ;;  %4204 = vpow2.f32 %v3430_v47  ;;  %v6206_v38 = vmul.f32 %v2872_v18, %v2549_v35  ;;  %v3295_v55 = vmul.f32 %v4199_v42, %v6165_v10  ;;  %v6253_v25 = vpop.permute.xlu0 %3076 }
 0x553   : > { %3010 = vst [vmem:[%s4627_s7 + $0xa0] sm:$0xff] %v2994_v46  ;;  %v2852_v22 = vsel %vm2851_vm9, %v4195_v23, %v2848_v36  ;;  %vm2913_vm15 = vcmp.gt.f32.partialorder %v6155_v11, 0.0  ;;  %vm3299_vm7 = vweird.f32 %v6165_v10  ;;  %4206 = vrcp.f32 %v6196_v32 }
 0x554   : > { %v4201_v41 = vpop.eup %4200  ;;  %v2857_v14 = vsel %vm2854_vm5, %v2856_v44, %v2852_v22  ;;  %vm3391_vm2 = vcmp.gt.f32.partialorder %v6177_v4, 0.0  ;;  %v2933_v7 = vmin.f32 %v6206_v38, 0.0  ;;  %v3296_v6 = vsub.f32 1.0, %v3295_v55  ;;  %v6274_v55 = vpop.permute.xlu1 %3096 }
 0x555   : > { %v4203_v29 = vpop.eup %4202  ;;  %v3806_v40 = vadd.f32 -1.0, %v4201_v41  ;;  %v6214_v27 = vmul.f32 %v2857_v14, %v2548_v21  ;;  %vm6216_vm10 = vcmp.eq.f32.partialorder %v3303_v8, 8.507059e+37  ;;  %v3306_v20 = vor.u32 1.1754944e-38, %v3305_v56  ;;  %v2551_v8 = vld [vmem:[#allocation4 + $0x78] sm:$0xff] }
 0x556   : > { %v3145_v17 = vmul.f32 %v4203_v29, %v6180_v51  ;;  %v2962_v3 = vmul.f32 1.442695, %v2933_v7  ;;  %vm3149_vm1 = vweird.f32 %v6180_v51  ;;  %v3297_v58 = vmul.f32 %v4199_v42, %v3296_v6 }
 0x557   : > { %v2993_v28 = vsel %vm2913_vm15, %v6155_v11, %v3806_v40  ;;  %v2932_v26 = vmin.f32 %v6214_v27, 0.0  ;;  %vm3300_vm11 = vweird.f32 %v4199_v42  ;;  %v3155_v5 = vand.u32 2147483648, %v6180_v51 }
 0x558   : > { %v4205_v60 = vpop.eup %4204  ;;  %3009 = vst [vmem:[%s4627_s7 + $0x90] sm:$0xff] %v2993_v28  ;;  %v3146_v15 = vsub.f32 1.0, %v3145_v17  ;;  %4208 = vpow2.f32 %v2962_v3  ;;  %v3153_v11 = vand.u32 2147483647, %v6180_v51  ;;  %v3298_v19 = vadd.f32 %v4199_v42, %v3297_v58  ;;  %vm3301_vm6 = vmor %vm3299_vm7, %vm3300_vm11  ;;  %v3029_v17 = vld [vmem:[#allocation4 + $0xf8] sm:$0xff] }
 0x559   : > { %v3820_v53 = vadd.f32 -1.0, %v4205_v60  ;;  %v2960_v31 = vmul.f32 1.442695, %v2932_v26  ;;  %v4207_v59 = vpop.eup %4206  ;;  %vm3150_vm13 = vweird.f32 %v4203_v29  ;;  %4210 = vrcp.f32 %v6224_v1 }
 0x55a   : > { %v3147_v2 = vmul.f32 %v4203_v29, %v3146_v15  ;;  %v2890_v13 = vmul.f32 %v4207_v59, %v6196_v32  ;;  %vm2894_vm3 = vweird.f32 %v6196_v32  ;;  %v3302_v34 = vsel %vm3301_vm6, %v4199_v42, %v3298_v19  ;;  %vm3151_vm14 = vmor %vm3149_vm1, %vm3150_vm13  ;;  %v6294_v58 = vpop.permute.xlu0 %3091  ;;  %v3019_v19 = vld [vmem:[#allocation4 + $0xc8] sm:$0xff] }
 0x55b   : > { %v3471_v23 = vsel %vm3391_vm2, %v6177_v4, %v3820_v53  ;;  %4212 = vpow2.f32 %v2960_v31  ;;  %v3156_v30 = vor.u32 1.1754944e-38, %v3155_v5  ;;  %v2898_v9 = vand.u32 2147483647, %v6196_v32 }
 0x55c   : > { %3487 = vst [vmem:[%s4627_s7 + $0x78] sm:$0xff] %v3471_v23  ;;  %v3148_v24 = vadd.f32 %v4203_v29, %v3147_v2  ;;  %v3307_v12 = vsel %vm6216_vm10, %v3306_v20, %v3302_v34  ;;  %v2891_v10 = vsub.f32 1.0, %v2890_v13  ;;  %v2900_v45 = vand.u32 2147483648, %v6196_v32 }
 0x55d   : > { %4214 = vrcp.f32 %v6229_v48  ;;  %vm2917_vm12 = vcmp.gt.f32.partialorder %v6206_v38, 0.0  ;;  %v6250_v4 = vmul.f32 %v3307_v12, %v3026_v37  ;;  %vm3154_vm0 = vcmp.eq.f32.partialorder %v3153_v11, 8.507059e+37 }
 0x55e   : > { %v3152_v39 = vsel %vm3151_vm14, %v4203_v29, %v3148_v24  ;;  %v4209_v50 = vpop.eup %4208  ;;  %vm2916_vm4 = vcmp.gt.f32.partialorder %v6214_v27, 0.0  ;;  %v2892_v63 = vmul.f32 %v4207_v59, %v2891_v10  ;;  %vm2895_vm8 = vweird.f32 %v4207_v59 }
 0x55f   : > { %v3157_v54 = vsel %vm3154_vm0, %v3156_v30, %v3152_v39  ;;  %v4211_v51 = vpop.eup %4210  ;;  %v3810_v49 = vadd.f32 -1.0, %v4209_v50  ;;  %v3410_v16 = vmin.f32 %v6250_v4, 0.0  ;;  %vm6258_vm9 = vcmp.eq.f32.partialorder %v2898_v9, 8.507059e+37  ;;  %vm2896_vm15 = vmor %vm2894_vm3, %vm2895_vm8  ;;  %v6316_v30 = vpop.permute.xlu1 %3111 }
 0x560   : > { %v6256_v57 = vmul.f32 %v3157_v54, %v3016_v33  ;;  %v2893_v47 = vadd.f32 %v4207_v59, %v2892_v63  ;;  %v2901_v35 = vor.u32 1.1754944e-38, %v2900_v45  ;;  %v3340_v43 = vmul.f32 %v4211_v51, %v6224_v1 }
 0x561   : > { %v4213_v0 = vpop.eup %4212  ;;  %vm3344_vm5 = vweird.f32 %v6224_v1  ;;  %v2997_v52 = vsel %vm2917_vm12, %v6206_v38, %v3810_v49  ;;  %v3436_v44 = vmul.f32 1.442695, %v3410_v16  ;;  %v3348_v42 = vand.u32 2147483647, %v6224_v1 }
 0x562   : > { %v3809_v36 = vadd.f32 -1.0, %v4213_v0  ;;  %3013 = vst [vmem:[%s4627_s7 + $0xd0] sm:$0xff] %v2997_v52  ;;  %v3400_v18 = vmin.f32 %v6256_v57, 0.0  ;;  %v2897_v21 = vsel %vm2896_vm15, %v4207_v59, %v2893_v47  ;;  %v3341_v56 = vsub.f32 1.0, %v3340_v43 }
 0x563   : > { %v4215_v46 = vpop.eup %4214  ;;  %v3350_v22 = vand.u32 2147483648, %v6224_v1  ;;  %4216 = vpow2.f32 %v3436_v44  ;;  %v2902_v32 = vsel %vm6258_vm9, %v2901_v35, %v2897_v21  ;;  %vm3345_vm7 = vweird.f32 %v4211_v51  ;;  %v3018_v21 = vld [vmem:[#allocation4 + $0x40] sm:$0xff] }
 0x564   : > { %v2996_v38 = vsel %vm2916_vm4, %v6214_v27, %v3809_v36  ;;  %v3190_v41 = vmul.f32 %v4215_v46, %v6229_v48  ;;  %v3416_v14 = vmul.f32 1.442695, %v3400_v18  ;;  %v6283_v29 = vmul.f32 %v2902_v32, %v2551_v8  ;;  %vm3346_vm10 = vmor %vm3344_vm5, %vm3345_vm7  ;;  %v6338_v8 = vpop.permute.xlu0 %3106 }
 0x565   : > { %3012 = vst [vmem:[%s4627_s7 + $0xc0] sm:$0xff] %v2996_v38  ;;  %v3342_v40 = vmul.f32 %v4211_v51, %v3341_v56  ;;  %vm3194_vm2 = vweird.f32 %v6229_v48  ;;  %v3198_v6 = vand.u32 2147483647, %v6229_v48  ;;  %4218 = vrcp.f32 %v6253_v25 }
 0x566   : > { %v3191_v7 = vsub.f32 1.0, %v3190_v41  ;;  %4220 = vpow2.f32 %v3416_v14  ;;  %v2935_v27 = vmin.f32 %v6283_v29, 0.0  ;;  %v3200_v20 = vand.u32 2147483648, %v6229_v48  ;;  %v3022_v41 = vld [vmem:[#allocation4 + $0x70] sm:$0xff] }
 0x567   : > { %v3343_v62 = vadd.f32 %v4211_v51, %v3342_v40  ;;  %v3351_v28 = vor.u32 1.1754944e-38, %v3350_v22  ;;  %vm3195_vm1 = vweird.f32 %v4215_v46  ;;  %4222 = vrcp.f32 %v6274_v55 }
 0x568   : > { %v3192_v3 = vmul.f32 %v4215_v46, %v3191_v7  ;;  %vm3394_vm11 = vcmp.gt.f32.partialorder %v6250_v4, 0.0  ;;  %v2966_v26 = vmul.f32 1.442695, %v2935_v27  ;;  %vm3349_vm13 = vcmp.eq.f32.partialorder %v3348_v42, 8.507059e+37  ;;  %vm3196_vm3 = vmor %vm3194_vm2, %vm3195_vm1  ;;  %v6360_v27 = vpop.permute.xlu1 %3126 }
 0x569   : > { %v3347_v60 = vsel %vm3346_vm10, %v4211_v51, %v3343_v62  ;;  %v4217_v15 = vpop.eup %4216  ;;  %vm6296_vm6 = vcmp.eq.f32.partialorder %v3198_v6, 8.507059e+37  ;;  %v3183_v1 = vand.u32 2147483647, %v6253_v25  ;;  %v3201_v2 = vor.u32 1.1754944e-38, %v3200_v20 }
 0x56a   : > { %v3352_v5 = vsel %vm3349_vm13, %v3351_v28, %v3347_v60  ;;  %v3193_v53 = vadd.f32 %v4215_v46, %v3192_v3  ;;  %v3823_v11 = vadd.f32 -1.0, %v4217_v15  ;;  %4224 = vpow2.f32 %v2966_v26 }
 0x56b   : > { %v6301_v59 = vmul.f32 %v3352_v5, %v3029_v17  ;;  %v4219_v23 = vpop.eup %4218  ;;  %vm3384_vm14 = vcmp.gt.f32.partialorder %v6256_v57, 0.0  ;;  %vm3179_vm12 = vweird.f32 %v6253_v25  ;;  %4226 = vrcp.f32 %v6294_v58 }
 0x56c   : > { %v3197_v37 = vsel %vm3196_vm3, %v4215_v46, %v3193_v53  ;;  %v4221_v13 = vpop.eup %4220  ;;  %v3474_v34 = vsel %vm3394_vm11, %v6250_v4, %v3823_v11  ;;  %vm2919_vm0 = vcmp.gt.f32.partialorder %v6283_v29, 0.0  ;;  %v3175_v10 = vmul.f32 %v4219_v23, %v6253_v25  ;;  %v3021_v53 = vld [vmem:[#allocation4 + $0x90] sm:$0xff] }
 0x56d   : > { %v3413_v24 = vmin.f32 %v6301_v59, 0.0  ;;  %v3202_v48 = vsel %vm6296_vm6, %v3201_v2, %v3197_v37  ;;  %v4223_v9 = vpop.eup %4222  ;;  %3490 = vst [vmem:[%s4627_s7 + $0xa8] sm:$0xff] %v3474_v34  ;;  %v3813_v12 = vadd.f32 -1.0, %v4221_v13  ;;  %vm6322_vm4 = vcmp.eq.f32.partialorder %v3183_v1, 8.507059e+37 }
 0x56e   : > { %v6319_v33 = vmul.f32 %v3202_v48, %v3019_v19  ;;  %v3185_v39 = vand.u32 2147483648, %v6253_v25  ;;  %v3235_v50 = vmul.f32 %v4223_v9, %v6274_v55  ;;  %vm3239_vm8 = vweird.f32 %v6274_v55 }
 0x56f   : > { %v3442_v4 = vmul.f32 1.442695, %v3413_v24  ;;  %v3464_v54 = vsel %vm3384_vm14, %v6256_v57, %v3813_v12  ;;  %v3176_v51 = vsub.f32 1.0, %v3175_v10  ;;  %v3243_v49 = vand.u32 2147483647, %v6274_v55  ;;  %v6388_v10 = vpop.permute.xlu0 %3121 }
 0x570   : > { %v3403_v63 = vmin.f32 %v6319_v33, 0.0  ;;  %v4225_v16 = vpop.eup %4224  ;;  %3480 = vst [vmem:[%s4627_s7 + $0x8] sm:$0xff] %v3464_v54  ;;  %vm3180_vm9 = vweird.f32 %v4219_v23  ;;  %v3236_v61 = vsub.f32 1.0, %v3235_v50  ;;  %v3245_v0 = vand.u32 2147483648, %v6274_v55 }
 0x571   : > { %4228 = vpow2.f32 %v3442_v4  ;;  %v4227_v47 = vpop.eup %4226  ;;  %v3812_v35 = vadd.f32 -1.0, %v4225_v16  ;;  %v3177_v52 = vmul.f32 %v4219_v23, %v3176_v51  ;;  %v3186_v57 = vor.u32 1.1754944e-38, %v3185_v39  ;;  %vm3181_vm7 = vmor %vm3179_vm12, %vm3180_vm9  ;;  %v3025_v51 = vld [vmem:[#allocation4 + $0xd0] sm:$0xff]  ;;  %v6397_v16 = vpop.permute.xlu1 %3141 }
 0x572   : > { %v3422_v43 = vmul.f32 1.442695, %v3403_v63  ;;  %4230 = vrcp.f32 %v6316_v30  ;;  %v3237_v36 = vmul.f32 %v4223_v9, %v3236_v61  ;;  %vm3240_vm5 = vweird.f32 %v4223_v9 }
 0x573   : > { %v3220_v44 = vmul.f32 %v4227_v47, %v6294_v58  ;;  %v2999_v42 = vsel %vm2919_vm0, %v6283_v29, %v3812_v35  ;;  %v3178_v46 = vadd.f32 %v4219_v23, %v3177_v52  ;;  %vm6343_vm15 = vcmp.eq.f32.partialorder %v3243_v49, 8.507059e+37  ;;  %vm3241_vm10 = vmor %vm3239_vm8, %vm3240_vm5 }
 0x574   : > { %4232 = vpow2.f32 %v3422_v43  ;;  %3015 = vst [vmem:[%s4627_s7 + $0xf0] sm:$0xff] %v2999_v42  ;;  %v3238_v56 = vadd.f32 %v4223_v9, %v3237_v36  ;;  %v3246_v22 = vor.u32 1.1754944e-38, %v3245_v0  ;;  %vm3224_vm2 = vweird.f32 %v6294_v58 }
 0x575   : > { %v3221_v38 = vsub.f32 1.0, %v3220_v44  ;;  %v3182_v32 = vsel %vm3181_vm7, %v4219_v23, %v3178_v46  ;;  %v3228_v14 = vand.u32 2147483647, %v6294_v58  ;;  %v3230_v29 = vand.u32 2147483648, %v6294_v58 }
 0x576   : > { %4234 = vrcp.f32 %v6338_v8  ;;  %v3187_v25 = vsel %vm6322_vm4, %v3186_v57, %v3182_v32  ;;  %v3242_v7 = vsel %vm3241_vm10, %v4223_v9, %v3238_v56  ;;  %vm3225_vm1 = vweird.f32 %v4227_v47 }
 0x577   : > { %v4229_v40 = vpop.eup %4228  ;;  %v3222_v6 = vmul.f32 %v4227_v47, %v3221_v38  ;;  %vm3397_vm11 = vcmp.gt.f32.partialorder %v6301_v59, 0.0  ;;  %v6363_v20 = vmul.f32 %v3187_v25, %v3018_v21  ;;  %v3247_v17 = vsel %vm6343_vm15, %v3246_v22, %v3242_v7  ;;  %vm3226_vm6 = vmor %vm3224_vm2, %vm3225_vm1 }
 0x578   : > { %v4231_v62 = vpop.eup %4230  ;;  %v3826_v55 = vadd.f32 -1.0, %v4229_v40  ;;  %vm3387_vm13 = vcmp.gt.f32.partialorder %v6319_v33, 0.0  ;;  %v6368_v28 = vmul.f32 %v3247_v17, %v3022_v41  ;;  %vm3229_vm3 = vcmp.eq.f32.partialorder %v3228_v14, 8.507059e+37 }
 0x579   : > { %v3223_v3 = vadd.f32 %v4227_v47, %v3222_v6  ;;  %v3280_v26 = vmul.f32 %v4231_v62, %v6316_v30  ;;  %v3402_v5 = vmin.f32 %v6363_v20, 0.0  ;;  %v3231_v31 = vor.u32 1.1754944e-38, %v3230_v29 }
 0x57a   : > { %v4233_v60 = vpop.eup %4232  ;;  %v3477_v15 = vsel %vm3397_vm11, %v6301_v59, %v3826_v55  ;;  %v3406_v11 = vmin.f32 %v6368_v28, 0.0  ;;  %vm3284_vm14 = vweird.f32 %v6316_v30  ;;  %v3290_v13 = vand.u32 2147483648, %v6316_v30 }
 0x57b   : > { %3493 = vst [vmem:[%s4627_s7 + $0xd8] sm:$0xff] %v3477_v15  ;;  %v3816_v1 = vadd.f32 -1.0, %v4233_v60  ;;  %v3227_v19 = vsel %vm3226_vm6, %v4227_v47, %v3223_v3  ;;  %v3420_v23 = vmul.f32 1.442695, %v3402_v5  ;;  %v3281_v37 = vsub.f32 1.0, %v3280_v26 }
 0x57c   : > { %v4235_v2 = vpop.eup %4234  ;;  %v3232_v59 = vsel %vm3229_vm3, %v3231_v31, %v3227_v19  ;;  %v3428_v34 = vmul.f32 1.442695, %v3406_v11  ;;  %vm3285_vm12 = vweird.f32 %v4231_v62  ;;  %v3288_v12 = vand.u32 2147483647, %v6316_v30  ;;  %v3024_v30 = vld [vmem:[#allocation4 + $0xa8] sm:$0xff]  ;;  %v3028_v19 = vld [vmem:[#allocation4 + $0xa0] sm:$0xff] }
 0x57d   : > { %v3467_v58 = vsel %vm3387_vm13, %v6319_v33, %v3816_v1  ;;  %v6383_v24 = vmul.f32 %v3232_v59, %v3021_v53  ;;  %v3265_v48 = vmul.f32 %v4235_v2, %v6338_v8  ;;  %4236 = vpow2.f32 %v3420_v23  ;;  %vm3286_vm0 = vmor %vm3284_vm14, %vm3285_vm12 }
 0x57e   : > { %3483 = vst [vmem:[%s4627_s7 + $0x38] sm:$0xff] %v3467_v58  ;;  %v3282_v9 = vmul.f32 %v4231_v62, %v3281_v37  ;;  %4238 = vpow2.f32 %v3428_v34  ;;  %v3273_v39 = vand.u32 2147483647, %v6338_v8  ;;  %v3291_v50 = vor.u32 1.1754944e-38, %v3290_v13  ;;  %v3027_v58 = vld [vmem:[#allocation4 + $0x28] sm:$0xff] }
 0x57f   : > { %v3405_v45 = vmin.f32 %v6383_v24, 0.0  ;;  %v3266_v4 = vsub.f32 1.0, %v3265_v48  ;;  %v3275_v54 = vand.u32 2147483648, %v6338_v8  ;;  %4240 = vrcp.f32 %v6360_v27 }
 0x580   : > { %v3283_v33 = vadd.f32 %v4231_v62, %v3282_v9  ;;  %vm3270_vm4 = vweird.f32 %v4235_v2  ;;  %4242 = vrcp.f32 %v6388_v10  ;;  %vm3289_vm8 = vcmp.eq.f32.partialorder %v3288_v12, 8.507059e+37 }
 0x581   : > { %v3426_v63 = vmul.f32 1.442695, %v3405_v45  ;;  %v3267_v49 = vmul.f32 %v4235_v2, %v3266_v4  ;;  %vm3269_vm9 = vweird.f32 %v6338_v8  ;;  %vm3386_vm5 = vcmp.gt.f32.partialorder %v6363_v20, 0.0 }
 0x582   : > { %v3287_v61 = vsel %vm3286_vm0, %v4231_v62, %v3283_v33  ;;  %vm3271_vm15 = vmor %vm3269_vm9, %vm3270_vm4  ;;  %vm3274_vm7 = vcmp.eq.f32.partialorder %v3273_v39, 8.507059e+37  ;;  %v3276_v52 = vor.u32 1.1754944e-38, %v3275_v54  ;;  %vm3390_vm2 = vcmp.gt.f32.partialorder %v6368_v28, 0.0 }
 0x583   : > { %4244 = vpow2.f32 %v3426_v63  ;;  %v3292_v0 = vsel %vm3289_vm8, %v3291_v50, %v3287_v61  ;;  %v3268_v47 = vadd.f32 %v4235_v2, %v3267_v49  ;;  %v4237_v35 = vpop.eup %4236  ;;  %v3333_v8 = vand.u32 2147483647, %v6360_v27  ;;  %v3031_v50 = vld [vmem:[#allocation4 + $0x98] sm:$0xff] }
 0x584   : > { %v6401_v43 = vmul.f32 %v3292_v0, %v3025_v51  ;;  %4246 = vrcp.f32 %v6397_v16  ;;  %v4239_v57 = vpop.eup %4238  ;;  %v3815_v36 = vadd.f32 -1.0, %v4237_v35  ;;  %vm3389_vm10 = vcmp.gt.f32.partialorder %v6383_v24, 0.0 }
 0x585   : > { %v3272_v44 = vsel %vm3271_vm15, %v4235_v2, %v3268_v47  ;;  %v4241_v42 = vpop.eup %4240  ;;  %v3819_v46 = vadd.f32 -1.0, %v4239_v57  ;;  %vm3329_vm1 = vweird.f32 %v6360_v27  ;;  %v3335_v29 = vand.u32 2147483648, %v6360_v27 }
 0x586   : > { %v3409_v18 = vmin.f32 %v6401_v43, 0.0  ;;  %v3277_v21 = vsel %vm3274_vm7, %v3276_v52, %v3272_v44  ;;  %v4243_v56 = vpop.eup %4242  ;;  %v3466_v22 = vsel %vm3386_vm5, %v6363_v20, %v3815_v36  ;;  %v3325_v32 = vmul.f32 %v4241_v42, %v6360_v27  ;;  %v6426_v20 = vpop.permute.xlu0 %3136 }
 0x587   : > { %v6411_v38 = vmul.f32 %v3277_v21, %v3024_v30  ;;  %3482 = vst [vmem:[%s4627_s7 + $0x28] sm:$0xff] %v3466_v22  ;;  %v3470_v41 = vsel %vm3390_vm2, %v6368_v28, %v3819_v46  ;;  %v3310_v40 = vmul.f32 %v4243_v56, %v6388_v10  ;;  %vm6421_vm11 = vcmp.eq.f32.partialorder %v3333_v8, 8.507059e+37 }
 0x588   : > { %v3434_v14 = vmul.f32 1.442695, %v3409_v18  ;;  %3486 = vst [vmem:[%s4627_s7 + $0x68] sm:$0xff] %v3470_v41  ;;  %v3326_v6 = vsub.f32 1.0, %v3325_v32  ;;  %v3318_v55 = vand.u32 2147483647, %v6388_v10  ;;  %vm3330_vm13 = vweird.f32 %v4241_v42 }
 0x589   : > { %v4245_v25 = vpop.eup %4244  ;;  %v3408_v7 = vmin.f32 %v6411_v38, 0.0  ;;  %v3311_v3 = vsub.f32 1.0, %v3310_v40  ;;  %v3320_v26 = vand.u32 2147483648, %v6388_v10  ;;  %vm3315_vm6 = vweird.f32 %v4243_v56  ;;  %vm3331_vm14 = vmor %vm3329_vm1, %vm3330_vm13 }
 0x58a   : > { %v4247_v17 = vpop.eup %4246  ;;  %v3818_v28 = vadd.f32 -1.0, %v4245_v25  ;;  %4248 = vpow2.f32 %v3434_v14  ;;  %v3327_v15 = vmul.f32 %v4241_v42, %v3326_v6  ;;  %vm3314_vm3 = vweird.f32 %v6388_v10 }
 0x58b   : > { %v3432_v60 = vmul.f32 1.442695, %v3408_v7  ;;  %v3370_v5 = vmul.f32 %v4247_v17, %v6397_v16  ;;  %v3312_v31 = vmul.f32 %v4243_v56, %v3311_v3  ;;  %4250 = vrcp.f32 %v6426_v20  ;;  %vm3316_vm12 = vmor %vm3314_vm3, %vm3315_vm6 }
 0x58c   : > { %v3469_v53 = vsel %vm3389_vm10, %v6383_v24, %v3818_v28  ;;  %v3328_v1 = vadd.f32 %v4241_v42, %v3327_v15  ;;  %v3336_v2 = vor.u32 1.1754944e-38, %v3335_v29  ;;  %v3378_v59 = vand.u32 2147483647, %v6397_v16 }
 0x58d   : > { %3485 = vst [vmem:[%s4627_s7 + $0x58] sm:$0xff] %v3469_v53  ;;  %4252 = vpow2.f32 %v3432_v60  ;;  %v3371_v11 = vsub.f32 1.0, %v3370_v5  ;;  %v3313_v23 = vadd.f32 %v4243_v56, %v3312_v31  ;;  %v3380_v37 = vand.u32 2147483648, %v6397_v16 }
 0x58e   : > { %v3332_v13 = vsel %vm3331_vm14, %v4241_v42, %v3328_v1  ;;  %v3321_v34 = vor.u32 1.1754944e-38, %v3320_v26  ;;  %vm3375_vm0 = vweird.f32 %v4247_v17  ;;  %vm3319_vm4 = vcmp.eq.f32.partialorder %v3318_v55, 8.507059e+37 }
 0x58f   : > { %v3372_v24 = vmul.f32 %v4247_v17, %v3371_v11  ;;  %v3337_v9 = vsel %vm6421_vm11, %v3336_v2, %v3332_v13  ;;  %v3317_v12 = vsel %vm3316_vm12, %v4243_v56, %v3313_v23  ;;  %vm3374_vm8 = vweird.f32 %v6397_v16  ;;  %v3030_v56 = vld [vmem:[#allocation4 + $0x20] sm:$0xff] }
 0x590   : > { %v4249_v48 = vpop.eup %4248  ;;  %v3338_v10 = vmul.f32 %v3337_v9, %v3028_v19  ;;  %v3322_v45 = vsel %vm3319_vm4, %v3321_v34, %v3317_v12  ;;  %vm3393_vm9 = vcmp.gt.f32.partialorder %v6401_v43, 0.0  ;;  %vm3376_vm5 = vmor %vm3374_vm8, %vm3375_vm0  ;;  %v3381_v54 = vor.u32 1.1754944e-38, %v3380_v37 }
 0x591   : > { %v3822_v27 = vadd.f32 -1.0, %v4249_v48  ;;  %v3373_v4 = vadd.f32 %v4247_v17, %v3372_v24  ;;  %v4251_v39 = vpop.eup %4250  ;;  %v3323_v33 = vmul.f32 %v3322_v45, %v3027_v58  ;;  %vm3379_vm15 = vcmp.eq.f32.partialorder %v3378_v59, 8.507059e+37 }
 0x592   : > { %v3412_v49 = vmin.f32 %v3338_v10, 0.0  ;;  %vm3392_vm7 = vcmp.gt.f32.partialorder %v6411_v38, 0.0  ;;  %v3355_v52 = vmul.f32 %v4251_v39, %v6426_v20  ;;  %v3365_v8 = vand.u32 2147483648, %v6426_v20 }
 0x593   : > { %v4253_v63 = vpop.eup %4252  ;;  %v3473_v51 = vsel %vm3393_vm9, %v6401_v43, %v3822_v27  ;;  %v3377_v61 = vsel %vm3376_vm5, %v4247_v17, %v3373_v4  ;;  %v3411_v0 = vmin.f32 %v3323_v33, 0.0  ;;  %vm3360_vm2 = vweird.f32 %v4251_v39 }
 0x594   : > { %3489 = vst [vmem:[%s4627_s7 + $0x98] sm:$0xff] %v3473_v51  ;;  %v3821_v16 = vadd.f32 -1.0, %v4253_v63  ;;  %v3382_v47 = vsel %vm3379_vm15, %v3381_v54, %v3377_v61  ;;  %v3440_v35 = vmul.f32 1.442695, %v3412_v49  ;;  %v3356_v43 = vsub.f32 1.0, %v3355_v52 }
 0x595   : > { %v3383_v30 = vmul.f32 %v3382_v47, %v3031_v50  ;;  %v3438_v36 = vmul.f32 1.442695, %v3411_v0  ;;  %v3363_v18 = vand.u32 2147483647, %v6426_v20  ;;  %vm3359_vm10 = vweird.f32 %v6426_v20 }
 0x596   : > { %v3472_v57 = vsel %vm3392_vm7, %v6411_v38, %v3821_v16  ;;  %4254 = vpow2.f32 %v3440_v35  ;;  %v3357_v46 = vmul.f32 %v4251_v39, %v3356_v43  ;;  %vm3361_vm1 = vmor %vm3359_vm10, %vm3360_vm2  ;;  %v3366_v22 = vor.u32 1.1754944e-38, %v3365_v8 }
 0x597   : > { %3488 = vst [vmem:[%s4627_s7 + $0x88] sm:$0xff] %v3472_v57  ;;  %v3415_v44 = vmin.f32 %v3383_v30, 0.0  ;;  %4256 = vpow2.f32 %v3438_v36  ;;  %vm3364_vm11 = vcmp.eq.f32.partialorder %v3363_v18, 8.507059e+37  ;;  %vm3396_vm13 = vcmp.gt.f32.partialorder %v3338_v10, 0.0 }
 0x598   : > { %v3358_v21 = vadd.f32 %v4251_v39, %v3357_v46  ;;  %vm3395_vm6 = vcmp.gt.f32.partialorder %v3323_v33, 0.0  ;;  %vm3399_vm3 = vcmp.gt.f32.partialorder %v3383_v30, 0.0 }
 0x599   : > { %v3446_v42 = vmul.f32 1.442695, %v3415_v44 }
 0x59a   : > { %v3362_v32 = vsel %vm3361_vm1, %v4251_v39, %v3358_v21 }
 0x59b   : > { %4258 = vpow2.f32 %v3446_v42  ;;  %v3367_v29 = vsel %vm3364_vm11, %v3366_v22, %v3362_v32 }
 0x59c   : > { %v4255_v38 = vpop.eup %4254  ;;  %v3368_v25 = vmul.f32 %v3367_v29, %v3030_v56 }
 0x59d   : > { %v4257_v41 = vpop.eup %4256  ;;  %v3825_v14 = vadd.f32 -1.0, %v4255_v38 }
 0x59e   : > { %v3824_v40 = vadd.f32 -1.0, %v4257_v41  ;;  %v3414_v55 = vmin.f32 %v3368_v25, 0.0  ;;  %vm3398_vm14 = vcmp.gt.f32.partialorder %v3368_v25, 0.0 }
 0x59f   : > { %v3476_v7 = vsel %vm3396_vm13, %v3338_v10, %v3825_v14 }
 0x5a0   : > { %3492 = vst [vmem:[%s4627_s7 + $0xc8] sm:$0xff] %v3476_v7  ;;  %v3475_v62 = vsel %vm3395_vm6, %v3323_v33, %v3824_v40  ;;  %v3444_v17 = vmul.f32 1.442695, %v3414_v55 }
 0x5a1   : > { %v4259_v6 = vpop.eup %4258  ;;  %3491 = vst [vmem:[%s4627_s7 + $0xb8] sm:$0xff] %v3475_v62 }
 0x5a2   : > { %v3828_v20 = vadd.f32 -1.0, %v4259_v6  ;;  %4260 = vpow2.f32 %v3444_v17 }
 0x5a4   : > { %v3479_v28 = vsel %vm3399_vm3, %v3383_v30, %v3828_v20 }
 0x5a5   : > { %3495 = vst [vmem:[%s4627_s7 + $0xf8] sm:$0xff] %v3479_v28 }
 0x5a8   : > { %v4261_v3 = vpop.eup %4260 }
 0x5a9   : > { %v3827_v26 = vadd.f32 -1.0, %v4261_v3 }
 0x5ab   : > { %v3478_v60 = vsel %vm3398_vm14, %v3368_v25, %v3827_v26 }
 0x5ac   : > { %3494 = vst [vmem:[%s4627_s7 + $0xe8] sm:$0xff] %v3478_v60 }
 0x5ad PF: > { %s14_s25 = sadd.s32 1, %s4348_s25   ;;  %s6743_s29 = sld [smem:[#allocation9_spill]] }
 0x5ae   : > { %p11_p5 = scmp.ge.s32.totalorder %s14_s25, 6   ;;  %s6744_s14 = sld [smem:[#allocation10_spill]] }
 0x5af   : > { %s6745_s15 = smov %s4312_s16  ;;  %s6746_s16 = smov %s4472_s12 }
 0x5b0   : > { %s6747_s17 = smov %s4320_s18  ;;  %s6748_s18 = smov %s4457_s6 }
 0x5b1   : > { %s6749_s19 = smov %s4328_s20  ;;  %s6750_s20 = smov %s4469_s11 }
 0x5b2   : > { %s6751_s21 = smov %s4340_s23  ;;  %s6752_s22 = smov %s4344_s24 }
 0x5b3   : > { %s6753_s23 = smov %s6743_s29  ;;  %13 = sbr.rel (!%p11_p5) target bundleno = 8 (0x8), region = 263 }
 0x5b4   : > { %s6754_s24 = smov %s6744_s14 }

</bundles_post_ra>
